<compile_context>
chip_gen: v7x
topology: tpu7x:2x2x1
jax: 0.10.0
libtpu: 0.0.40
codegen_flags: <defaults>
</compile_context>

<pallas_src>
import math
import jax
import jax.numpy as jnp
from jax.experimental import pallas as pl
from jax.experimental.pallas import tpu as pltpu

NODES = 16          # small stand-in for the original 200 nodes
NUM_CLASS = 1
SLOPE = 0.33        # LeakyReLU negative slope
TILE_B = 128        # samples per grid step (batch tile, lives on the lane axis)

C1 = 8              # E2E output channels
C2 = 48             # e2n output channels
HID1 = 64
HID2 = 10


def _align8(v):
    return ((v + 7) // 8) * 8


# Offsets (rows) inside the packed bias column, all 8-aligned.
OFF_BETA1 = 0                               # len NODES*C1 = 128  (b1xd + bdx1, replicated)
OFF_BETA2 = OFF_BETA1 + NODES * C1          # 128, len 128
OFF_BN = OFF_BETA2 + NODES * C1             # 256, len 48
OFF_BG = OFF_BN + C2                        # 304, len 16
OFF_BL1 = OFF_BG + NODES                    # 320, len 64
OFF_BL2 = OFF_BL1 + HID1                    # 384, len 10
OFF_BL3 = _align8(OFF_BL2 + HID2)           # 400, len NUM_CLASS
BCOL_LEN = _align8(OFF_BL3 + NUM_CLASS)     # 408


# ---------------------------------------------------------------------------
# Kernel
# ---------------------------------------------------------------------------
def brainnet_kernel(xr_ref, xc_ref, w1_ref, w2_ref, wn_ref, wg_ref,
                    wl1_ref, wl2_ref, wl3_ref, bcol_ref,
                    probs_ref, logits_ref):
    d = NODES
    tb = xr_ref.shape[2] // d           # samples in this block (lane minor dim)
    f32 = jnp.float32

    def leaky(v):
        return jnp.where(v > 0, v, SLOPE * v)

    def rowize(f):
        # (R, d*tb) lanes (s, b)  ->  (d*R, tb) rows (s, r), lanes b.
        # 128-lane aligned slices + 8-row aligned concat -> no relayout.
        return jnp.concatenate([f[:, t * tb:(t + 1) * tb] for t in range(d)], axis=0)

    def tile_lanes(m):
        # (R, tb) -> (R, d*tb): identical copy in every 128-lane tile.
        return jnp.concatenate([m] * d, axis=1)

    def rep_rows(f):
        # (R, L) -> (d*R, L): d stacked copies, rows ordered (copy, r).
        return jnp.concatenate([f] * d, axis=0)

    xr = xr_ref[0]                      # (d, d*tb): rows i,  lanes (j, b)
    xc = xc_ref[0]                      # (d, d*tb): rows j,  lanes (i, b)

    # ---- E2E #1 (1 -> 8 channels) ----------------------------------------
    # a1[c,(j,b)] = sum_i W1xd[c,i] x[b,i,j]   ;   b1[c,(i,b)] = sum_j Wdx1[c,j] x[b,i,j]
    a1 = jnp.dot(w1_ref[0:C1, :], xr, preferred_element_type=f32)        # (8, d*tb)
    b1 = jnp.dot(w1_ref[C1:2 * C1, :], xc, preferred_element_type=f32)   # (8, d*tb)
    beta1 = bcol_ref[OFF_BETA1:OFF_BETA1 + d * C1, :]                    # (128, 1)

    # X1[b,c,i,j] = leaky(a1[c,j,b] + b1[c,i,b] + beta1[c]); build both views
    # (rows (i,c) / rows (j,c)) straight from the factors -> no transposes.
    x1r = leaky(rep_rows(a1) + tile_lanes(rowize(b1)) + beta1)           # rows (i,c), lanes (j,b)
    x1c = leaky(tile_lanes(rowize(a1)) + rep_rows(b1) + beta1)           # rows (j,c), lanes (i,b)

    # ---- E2E #2 (8 -> 8 channels) -----------------------------------------
    a2 = jnp.dot(w2_ref[0:C1, :], x1r, preferred_element_type=f32)       # (8, d*tb) lanes (j,b)
    b2 = jnp.dot(w2_ref[C1:2 * C1, :], x1c, preferred_element_type=f32)  # (8, d*tb) lanes (i,b)
    beta2 = bcol_ref[OFF_BETA2:OFF_BETA2 + d * C1, :]
    x2c = leaky(tile_lanes(rowize(a2)) + rep_rows(b2) + beta2)           # rows (j,c), lanes (i,b)

    # ---- e2n: Conv2d(8, 48, (1, d)) ----------------------------------------
    bn = bcol_ref[OFF_BN:OFF_BN + C2, :]
    h = leaky(jnp.dot(wn_ref[...], x2c, preferred_element_type=f32) + bn)    # (48, d*tb), lanes (i,b)

    # ---- n2g: Conv2d(48, d, (d, 1)) ----------------------------------------
    bg = bcol_ref[OFF_BG:OFF_BG + d, :]
    g = leaky(jnp.dot(wg_ref[...], rowize(h), preferred_element_type=f32) + bg)   # (d, tb)

    # ---- MLP head (Dropout = identity at inference) -------------------------
    bl1 = bcol_ref[OFF_BL1:OFF_BL1 + HID1, :]
    bl2 = bcol_ref[OFF_BL2:OFF_BL2 + HID2, :]
    bl3 = bcol_ref[OFF_BL3:OFF_BL3 + NUM_CLASS, :]
    y1 = leaky(jnp.dot(wl1_ref[...], g, preferred_element_type=f32) + bl1)   # (64, tb)
    y2 = leaky(jnp.dot(wl2_ref[...], y1, preferred_element_type=f32) + bl2)  # (10, tb)
    y3 = jnp.dot(wl3_ref[...], y2, preferred_element_type=f32) + bl3         # (NC, tb)

    logits_ref[...] = y3
    if NUM_CLASS == 1:
        # softmax over a single class is exactly 1.0 -> skip exp/reduce.
        probs_ref[...] = jnp.ones_like(y3)
    else:
        m = jnp.max(y3, axis=0, keepdims=True)
        e = jnp.exp(y3 - m)
        probs_ref[...] = e / jnp.sum(e, axis=0, keepdims=True)


# ---------------------------------------------------------------------------
# Parameter packing (torch-layout params -> kernel-layout matrices)
# ---------------------------------------------------------------------------
def _pack_params(p):
    d = NODES
    f32 = jnp.float32

    def spatial_major(w3):          # (O, C, S) -> (O, S*C), index [o, s*C + c]
        return jnp.transpose(w3, (0, 2, 1)).reshape(w3.shape[0], -1)

    w1 = jnp.concatenate([p['e2e1_w1xd'].reshape(C1, d),
                          p['e2e1_wdx1'].reshape(C1, d)], axis=0).astype(f32)       # (16, d)
    w2 = jnp.concatenate([spatial_major(p['e2e2_w1xd'][:, :, :, 0]),
                          spatial_major(p['e2e2_wdx1'][:, :, 0, :])], axis=0).astype(f32)  # (16, d*8)
    wn = spatial_major(p['e2n_w'][:, :, 0, :]).astype(f32)                           # (48, d*8)
    wg = spatial_major(p['n2g_w'][:, :, :, 0]).astype(f32)                           # (d, d*48)

    def rep_bias(b):                # (O,) -> (d*O,): value b[c] at index s*O + c
        return jnp.tile(b[None, :], (d, 1)).reshape(-1)

    bcol = jnp.zeros((BCOL_LEN, 1), f32)
    bcol = bcol.at[OFF_BETA1:OFF_BETA1 + d * C1, 0].set(
        rep_bias((p['e2e1_b1xd'] + p['e2e1_bdx1']).astype(f32)))
    bcol = bcol.at[OFF_BETA2:OFF_BETA2 + d * C1, 0].set(
        rep_bias((p['e2e2_b1xd'] + p['e2e2_bdx1']).astype(f32)))
    bcol = bcol.at[OFF_BN:OFF_BN + C2, 0].set(p['e2n_b'].astype(f32))
    bcol = bcol.at[OFF_BG:OFF_BG + d, 0].set(p['n2g_b'].astype(f32))
    bcol = bcol.at[OFF_BL1:OFF_BL1 + HID1, 0].set(p['lin1_b'].astype(f32))
    bcol = bcol.at[OFF_BL2:OFF_BL2 + HID2, 0].set(p['lin2_b'].astype(f32))
    bcol = bcol.at[OFF_BL3:OFF_BL3 + NUM_CLASS, 0].set(p['lin3_b'].astype(f32))

    return {'w1': w1, 'w2': w2, 'wn': wn, 'wg': wg,
            'wl1': p['lin1_w'].astype(f32), 'wl2': p['lin2_w'].astype(f32),
            'wl3': p['lin3_w'].astype(f32), 'bcol': bcol}


# ---------------------------------------------------------------------------
# Wrapper
# ---------------------------------------------------------------------------
@jax.jit
def forward_pallas(x, params):
    """x: (B, 1, d, d) float32 -> (probs (B, NC), logits (B, NC))."""
    d = NODES
    B = x.shape[0]
    C = x.shape[1]
    nb = -(-B // TILE_B)
    bp = nb * TILE_B
    if bp != B:
        x = jnp.concatenate(
            [x, jnp.zeros((bp - B,) + x.shape[1:], x.dtype)], axis=0)
    L = d * TILE_B

    # Row / column views of the input, built once in XLA (no in-kernel
    # transposes); batch lives on the lane (minor) axis.
    x5 = x.astype(jnp.float32).reshape(nb, TILE_B, C, d, d)
    xr = x5.transpose(0, 2, 3, 4, 1).reshape(nb, C * d, L)   # rows i, lanes (j, b)
    xc = x5.transpose(0, 2, 4, 3, 1).reshape(nb, C * d, L)   # rows j, lanes (i, b)

    w = _pack_params(params)
    weights = [w[k] for k in ('w1', 'w2', 'wn', 'wg', 'wl1', 'wl2', 'wl3', 'bcol')]

    in_specs = [pl.BlockSpec((1, C * d, L), lambda n: (n, 0, 0)),
                pl.BlockSpec((1, C * d, L), lambda n: (n, 0, 0))]
    in_specs += [pl.BlockSpec(a.shape, lambda n: (0, 0)) for a in weights]

    out_shape = (jax.ShapeDtypeStruct((NUM_CLASS, bp), jnp.float32),
                 jax.ShapeDtypeStruct((NUM_CLASS, bp), jnp.float32))
    out_specs = (pl.BlockSpec((NUM_CLASS, TILE_B), lambda n: (0, n)),
                 pl.BlockSpec((NUM_CLASS, TILE_B), lambda n: (0, n)))

    probs_t, logits_t = pl.pallas_call(
        brainnet_kernel,
        grid=(nb,),
        in_specs=in_specs,
        out_specs=out_specs,
        out_shape=out_shape,
        compiler_params=pltpu.CompilerParams(
            dimension_semantics=("parallel",),
            vmem_limit_bytes=48 * 1024 * 1024),
    )(xr, xc, *weights)

    return probs_t.T[:B], logits_t.T[:B]


def model_forward(x, params):
    """Mirrors Model.forward: returns (softmax probs, None)."""
    probs, _ = forward_pallas(x, params)
    return probs, None


# ---------------------------------------------------------------------------
# Parameter init (PyTorch-equivalent layouts & init)
# ---------------------------------------------------------------------------
def init_params(key, d=NODES, num_class=NUM_CLASS):
    ks = jax.random.split(key, 16)

    def conv_w(k, shape):
        fan_in = shape[1] * shape[2] * shape[3]
        bound = 1.0 / math.sqrt(fan_in)
        return jax.random.uniform(k, shape, jnp.float32, -bound, bound)

    def conv_b(k, out_ch, fan_in):
        bound = 1.0 / math.sqrt(fan_in)
        return jax.random.uniform(k, (out_ch,), jnp.float32, -bound, bound)

    def kaiming(k, shape):   # nn.init.kaiming_normal_: std = sqrt(2 / fan_in)
        return jax.random.normal(k, shape, jnp.float32) * math.sqrt(2.0 / shape[1])

    return {
        'e2e1_w1xd': conv_w(ks[0], (C1, 1, d, 1)), 'e2e1_b1xd': conv_b(ks[1], C1, d),
        'e2e1_wdx1': conv_w(ks[2], (C1, 1, 1, d)), 'e2e1_bdx1': conv_b(ks[3], C1, d),
        'e2e2_w1xd': conv_w(ks[4], (C1, C1, d, 1)), 'e2e2_b1xd': conv_b(ks[5], C1, C1 * d),
        'e2e2_wdx1': conv_w(ks[6], (C1, C1, 1, d)), 'e2e2_bdx1': conv_b(ks[7], C1, C1 * d),
        'e2n_w': conv_w(ks[8], (C2, C1, 1, d)), 'e2n_b': conv_b(ks[9], C2, C1 * d),
        'n2g_w': conv_w(ks[10], (d, C2, d, 1)), 'n2g_b': conv_b(ks[11], d, C2 * d),
        'lin1_w': kaiming(ks[12], (HID1, d)), 'lin1_b': jnp.zeros((HID1,), jnp.float32),
        'lin2_w': kaiming(ks[13], (HID2, HID1)), 'lin2_b': jnp.zeros((HID2,), jnp.float32),
        'lin3_w': kaiming(ks[14], (num_class, HID2)), 'lin3_b': jnp.zeros((num_class,), jnp.float32),
    }


# ---------------------------------------------------------------------------
# Pure-JAX reference (mirrors the PyTorch graph) for a correctness check
# ---------------------------------------------------------------------------
def reference_forward(x, p):
    hi = jax.lax.Precision.HIGHEST
    leaky = lambda v: jnp.where(v > 0, v, SLOPE * v)

    def e2e(A, w1xd, b1xd, wdx1, bdx1):
        a = jnp.einsum('bcij,oci->boj', A, w1xd[:, :, :, 0], precision=hi) + b1xd[None, :, None]
        t = jnp.einsum('bcij,ocj->boi', A, wdx1[:, :, 0, :], precision=hi) + bdx1[None, :, None]
        return a[:, :, None, :] + t[:, :, :, None]

    x1 = leaky(e2e(x, p['e2e1_w1xd'], p['e2e1_b1xd'], p['e2e1_wdx1'], p['e2e1_bdx1']))
    x2 = leaky(e2e(x1, p['e2e2_w1xd'], p['e2e2_b1xd'], p['e2e2_wdx1'], p['e2e2_bdx1']))
    h = leaky(jnp.einsum('bcij,ocj->boi', x2, p['e2n_w'][:, :, 0, :], precision=hi)
              + p['e2n_b'][None, :, None])
    g = leaky(jnp.einsum('bci,oci->bo', h, p['n2g_w'][:, :, :, 0], precision=hi)
              + p['n2g_b'][None, :])
    y1 = leaky(jnp.dot(g, p['lin1_w'].T, precision=hi) + p['lin1_b'])
    y2 = leaky(jnp.dot(y1, p['lin2_w'].T, precision=hi) + p['lin2_b'])
    y3 = jnp.dot(y2, p['lin3_w'].T, precision=hi) + p['lin3_b']
    return jax.nn.softmax(y3, axis=-1), y3


if __name__ == "__main__":
    key = jax.random.PRNGKey(0)
    kx, kp = jax.random.split(key)
    B = 256                                   # 2 grid blocks of 128 samples
    x = jax.random.normal(kx, (B, 1, NODES, NODES), jnp.float32)
    params = init_params(kp)

    probs, logits = forward_pallas(x, params)
    probs, logits = jax.block_until_ready((probs, logits))

    assert probs.shape == (B, NUM_CLASS)
    assert logits.shape == (B, NUM_CLASS)
    assert bool(jnp.all(jnp.isfinite(probs))) and bool(jnp.all(jnp.isfinite(logits)))
    # num_class == 1 => softmax output is exactly 1.0 per row
    assert bool(jnp.allclose(probs, 1.0))

    # Structural correctness check of the fused kernel against a pure-JAX
    # reference (loose tolerance to allow for MXU matmul precision).
    _, ref_logits = reference_forward(x, params)
    assert bool(jnp.allclose(logits, ref_logits, rtol=1e-1, atol=2e-2))

    p_api, aux = model_forward(x, params)
    assert aux is None and p_api.shape == (B, NUM_CLASS)

    print("KERNEL_OK")
</pallas_src>

<mosaic_0001>
module attributes {stable_mosaic.version = 11 : i64} {
  func.func @brainnet_kernel(%arg0: i32, %arg1: memref<1x16x2048xf32, #tpu.memory_space<vmem>>, %arg2: memref<1x16x2048xf32, #tpu.memory_space<vmem>>, %arg3: memref<16x16xf32, #tpu.memory_space<vmem>>, %arg4: memref<16x128xf32, #tpu.memory_space<vmem>>, %arg5: memref<48x128xf32, #tpu.memory_space<vmem>>, %arg6: memref<16x768xf32, #tpu.memory_space<vmem>>, %arg7: memref<64x16xf32, #tpu.memory_space<vmem>>, %arg8: memref<10x64xf32, #tpu.memory_space<vmem>>, %arg9: memref<1x10xf32, #tpu.memory_space<vmem>>, %arg10: memref<408x1xf32, #tpu.memory_space<vmem>>, %arg11: memref<1x128xf32, #tpu.memory_space<vmem>>, %arg12: memref<1x128xf32, #tpu.memory_space<vmem>>) attributes {dimension_semantics = [#tpu.dimension_semantics<parallel>], iteration_bounds = array<i64: 2>, scalar_prefetch = 0 : i64, scratch_operands = 0 : i64, tpu.core_type = #tpu.core_type<tc>, window_params = [{transform_indices = @transform_0, window_bounds = array<i64: 1, 16, 2048>}, {transform_indices = @transform_1, window_bounds = array<i64: 1, 16, 2048>}, {pipeline_mode = #tpu.pipeline_mode<synchronous>, transform_indices = @transform_2, window_bounds = array<i64: 16, 16>}, {pipeline_mode = #tpu.pipeline_mode<synchronous>, transform_indices = @transform_3, window_bounds = array<i64: 16, 128>}, {pipeline_mode = #tpu.pipeline_mode<synchronous>, transform_indices = @transform_4, window_bounds = array<i64: 48, 128>}, {pipeline_mode = #tpu.pipeline_mode<synchronous>, transform_indices = @transform_5, window_bounds = array<i64: 16, 768>}, {pipeline_mode = #tpu.pipeline_mode<synchronous>, transform_indices = @transform_6, window_bounds = array<i64: 64, 16>}, {pipeline_mode = #tpu.pipeline_mode<synchronous>, transform_indices = @transform_7, window_bounds = array<i64: 10, 64>}, {pipeline_mode = #tpu.pipeline_mode<synchronous>, transform_indices = @transform_8, window_bounds = array<i64: 1, 10>}, {pipeline_mode = #tpu.pipeline_mode<synchronous>, transform_indices = @transform_9, window_bounds = array<i64: 408, 1>}, {transform_indices = @transform_10, window_bounds = array<i64: 1, 128>}, {transform_indices = @transform_11, window_bounds = array<i64: 1, 128>}]} {
    %c0 = arith.constant 0 : index
    %c0_0 = arith.constant 0 : index
    %c0_1 = arith.constant 0 : index
    %0 = vector.load %arg1[%c0, %c0_0, %c0_1] : memref<1x16x2048xf32, #tpu.memory_space<vmem>>, vector<1x16x2048xf32>
    %1 = vector.shape_cast %0 : vector<1x16x2048xf32> to vector<16x2048xf32>
    %c0_2 = arith.constant 0 : index
    %c0_3 = arith.constant 0 : index
    %c0_4 = arith.constant 0 : index
    %2 = vector.load %arg2[%c0_2, %c0_3, %c0_4] : memref<1x16x2048xf32, #tpu.memory_space<vmem>>, vector<1x16x2048xf32>
    %3 = vector.shape_cast %2 : vector<1x16x2048xf32> to vector<16x2048xf32>
    %c0_5 = arith.constant 0 : index
    %c0_6 = arith.constant 0 : index
    %4 = vector.load %arg3[%c0_5, %c0_6] : memref<16x16xf32, #tpu.memory_space<vmem>>, vector<8x16xf32>
    %cst = arith.constant dense<0.000000e+00> : vector<8x2048xf32>
    %5 = tpu.matmul %4, %1, %cst {dimension_numbers = #tpu.dot_dimension_numbers<[1], [0], [0], [1], [0, 0, 1, 1], [], []>} : vector<8x16xf32>, vector<16x2048xf32>, vector<8x2048xf32> -> vector<8x2048xf32>
    %c8 = arith.constant 8 : index
    %c0_7 = arith.constant 0 : index
    %6 = vector.load %arg3[%c8, %c0_7] : memref<16x16xf32, #tpu.memory_space<vmem>>, vector<8x16xf32>
    %cst_8 = arith.constant dense<0.000000e+00> : vector<8x2048xf32>
    %7 = tpu.matmul %6, %3, %cst_8 {dimension_numbers = #tpu.dot_dimension_numbers<[1], [0], [0], [1], [0, 0, 1, 1], [], []>} : vector<8x16xf32>, vector<16x2048xf32>, vector<8x2048xf32> -> vector<8x2048xf32>
    %c0_9 = arith.constant 0 : index
    %c0_10 = arith.constant 0 : index
    %8 = vector.load %arg10[%c0_9, %c0_10] : memref<408x1xf32, #tpu.memory_space<vmem>>, vector<128x1xf32>
    %9 = tpu.concatenate %5, %5, %5, %5, %5, %5, %5, %5, %5, %5, %5, %5, %5, %5, %5, %5 in 0 : vector<8x2048xf32>, vector<8x2048xf32>, vector<8x2048xf32>, vector<8x2048xf32>, vector<8x2048xf32>, vector<8x2048xf32>, vector<8x2048xf32>, vector<8x2048xf32>, vector<8x2048xf32>, vector<8x2048xf32>, vector<8x2048xf32>, vector<8x2048xf32>, vector<8x2048xf32>, vector<8x2048xf32>, vector<8x2048xf32>, vector<8x2048xf32> -> vector<128x2048xf32>
    %10 = vector.extract_strided_slice %7 {offsets = [0, 0], sizes = [8, 128], strides = [1, 1]} : vector<8x2048xf32> to vector<8x128xf32>
    %11 = vector.extract_strided_slice %7 {offsets = [0, 128], sizes = [8, 128], strides = [1, 1]} : vector<8x2048xf32> to vector<8x128xf32>
    %12 = vector.extract_strided_slice %7 {offsets = [0, 256], sizes = [8, 128], strides = [1, 1]} : vector<8x2048xf32> to vector<8x128xf32>
    %13 = vector.extract_strided_slice %7 {offsets = [0, 384], sizes = [8, 128], strides = [1, 1]} : vector<8x2048xf32> to vector<8x128xf32>
    %14 = vector.extract_strided_slice %7 {offsets = [0, 512], sizes = [8, 128], strides = [1, 1]} : vector<8x2048xf32> to vector<8x128xf32>
    %15 = vector.extract_strided_slice %7 {offsets = [0, 640], sizes = [8, 128], strides = [1, 1]} : vector<8x2048xf32> to vector<8x128xf32>
    %16 = vector.extract_strided_slice %7 {offsets = [0, 768], sizes = [8, 128], strides = [1, 1]} : vector<8x2048xf32> to vector<8x128xf32>
    %17 = vector.extract_strided_slice %7 {offsets = [0, 896], sizes = [8, 128], strides = [1, 1]} : vector<8x2048xf32> to vector<8x128xf32>
    %18 = vector.extract_strided_slice %7 {offsets = [0, 1024], sizes = [8, 128], strides = [1, 1]} : vector<8x2048xf32> to vector<8x128xf32>
    %19 = vector.extract_strided_slice %7 {offsets = [0, 1152], sizes = [8, 128], strides = [1, 1]} : vector<8x2048xf32> to vector<8x128xf32>
    %20 = vector.extract_strided_slice %7 {offsets = [0, 1280], sizes = [8, 128], strides = [1, 1]} : vector<8x2048xf32> to vector<8x128xf32>
    %21 = vector.extract_strided_slice %7 {offsets = [0, 1408], sizes = [8, 128], strides = [1, 1]} : vector<8x2048xf32> to vector<8x128xf32>
    %22 = vector.extract_strided_slice %7 {offsets = [0, 1536], sizes = [8, 128], strides = [1, 1]} : vector<8x2048xf32> to vector<8x128xf32>
    %23 = vector.extract_strided_slice %7 {offsets = [0, 1664], sizes = [8, 128], strides = [1, 1]} : vector<8x2048xf32> to vector<8x128xf32>
    %24 = vector.extract_strided_slice %7 {offsets = [0, 1792], sizes = [8, 128], strides = [1, 1]} : vector<8x2048xf32> to vector<8x128xf32>
    %25 = vector.extract_strided_slice %7 {offsets = [0, 1920], sizes = [8, 128], strides = [1, 1]} : vector<8x2048xf32> to vector<8x128xf32>
    %26 = tpu.concatenate %10, %11, %12, %13, %14, %15, %16, %17, %18, %19, %20, %21, %22, %23, %24, %25 in 0 : vector<8x128xf32>, vector<8x128xf32>, vector<8x128xf32>, vector<8x128xf32>, vector<8x128xf32>, vector<8x128xf32>, vector<8x128xf32>, vector<8x128xf32>, vector<8x128xf32>, vector<8x128xf32>, vector<8x128xf32>, vector<8x128xf32>, vector<8x128xf32>, vector<8x128xf32>, vector<8x128xf32>, vector<8x128xf32> -> vector<128x128xf32>
    %27 = tpu.concatenate %26, %26, %26, %26, %26, %26, %26, %26, %26, %26, %26, %26, %26, %26, %26, %26 in 1 : vector<128x128xf32>, vector<128x128xf32>, vector<128x128xf32>, vector<128x128xf32>, vector<128x128xf32>, vector<128x128xf32>, vector<128x128xf32>, vector<128x128xf32>, vector<128x128xf32>, vector<128x128xf32>, vector<128x128xf32>, vector<128x128xf32>, vector<128x128xf32>, vector<128x128xf32>, vector<128x128xf32>, vector<128x128xf32> -> vector<128x2048xf32>
    %28 = arith.addf %9, %27 : vector<128x2048xf32>
    %29 = vector.broadcast %8 : vector<128x1xf32> to vector<128x2048xf32>
    %30 = arith.addf %28, %29 : vector<128x2048xf32>
    %cst_11 = arith.constant 0.000000e+00 : f32
    %31 = vector.broadcast %cst_11 : f32 to vector<128x2048xf32>
    %32 = arith.cmpf ogt, %30, %31 : vector<128x2048xf32>
    %cst_12 = arith.constant 3.300000e-01 : f32
    %33 = vector.broadcast %cst_12 : f32 to vector<128x2048xf32>
    %34 = arith.mulf %33, %30 : vector<128x2048xf32>
    %35 = arith.select %32, %30, %34 : vector<128x2048xi1>, vector<128x2048xf32>
    %36 = vector.extract_strided_slice %5 {offsets = [0, 0], sizes = [8, 128], strides = [1, 1]} : vector<8x2048xf32> to vector<8x128xf32>
    %37 = vector.extract_strided_slice %5 {offsets = [0, 128], sizes = [8, 128], strides = [1, 1]} : vector<8x2048xf32> to vector<8x128xf32>
    %38 = vector.extract_strided_slice %5 {offsets = [0, 256], sizes = [8, 128], strides = [1, 1]} : vector<8x2048xf32> to vector<8x128xf32>
    %39 = vector.extract_strided_slice %5 {offsets = [0, 384], sizes = [8, 128], strides = [1, 1]} : vector<8x2048xf32> to vector<8x128xf32>
    %40 = vector.extract_strided_slice %5 {offsets = [0, 512], sizes = [8, 128], strides = [1, 1]} : vector<8x2048xf32> to vector<8x128xf32>
    %41 = vector.extract_strided_slice %5 {offsets = [0, 640], sizes = [8, 128], strides = [1, 1]} : vector<8x2048xf32> to vector<8x128xf32>
    %42 = vector.extract_strided_slice %5 {offsets = [0, 768], sizes = [8, 128], strides = [1, 1]} : vector<8x2048xf32> to vector<8x128xf32>
    %43 = vector.extract_strided_slice %5 {offsets = [0, 896], sizes = [8, 128], strides = [1, 1]} : vector<8x2048xf32> to vector<8x128xf32>
    %44 = vector.extract_strided_slice %5 {offsets = [0, 1024], sizes = [8, 128], strides = [1, 1]} : vector<8x2048xf32> to vector<8x128xf32>
    %45 = vector.extract_strided_slice %5 {offsets = [0, 1152], sizes = [8, 128], strides = [1, 1]} : vector<8x2048xf32> to vector<8x128xf32>
    %46 = vector.extract_strided_slice %5 {offsets = [0, 1280], sizes = [8, 128], strides = [1, 1]} : vector<8x2048xf32> to vector<8x128xf32>
    %47 = vector.extract_strided_slice %5 {offsets = [0, 1408], sizes = [8, 128], strides = [1, 1]} : vector<8x2048xf32> to vector<8x128xf32>
    %48 = vector.extract_strided_slice %5 {offsets = [0, 1536], sizes = [8, 128], strides = [1, 1]} : vector<8x2048xf32> to vector<8x128xf32>
    %49 = vector.extract_strided_slice %5 {offsets = [0, 1664], sizes = [8, 128], strides = [1, 1]} : vector<8x2048xf32> to vector<8x128xf32>
    %50 = vector.extract_strided_slice %5 {offsets = [0, 1792], sizes = [8, 128], strides = [1, 1]} : vector<8x2048xf32> to vector<8x128xf32>
    %51 = vector.extract_strided_slice %5 {offsets = [0, 1920], sizes = [8, 128], strides = [1, 1]} : vector<8x2048xf32> to vector<8x128xf32>
    %52 = tpu.concatenate %36, %37, %38, %39, %40, %41, %42, %43, %44, %45, %46, %47, %48, %49, %50, %51 in 0 : vector<8x128xf32>, vector<8x128xf32>, vector<8x128xf32>, vector<8x128xf32>, vector<8x128xf32>, vector<8x128xf32>, vector<8x128xf32>, vector<8x128xf32>, vector<8x128xf32>, vector<8x128xf32>, vector<8x128xf32>, vector<8x128xf32>, vector<8x128xf32>, vector<8x128xf32>, vector<8x128xf32>, vector<8x128xf32> -> vector<128x128xf32>
    %53 = tpu.concatenate %52, %52, %52, %52, %52, %52, %52, %52, %52, %52, %52, %52, %52, %52, %52, %52 in 1 : vector<128x128xf32>, vector<128x128xf32>, vector<128x128xf32>, vector<128x128xf32>, vector<128x128xf32>, vector<128x128xf32>, vector<128x128xf32>, vector<128x128xf32>, vector<128x128xf32>, vector<128x128xf32>, vector<128x128xf32>, vector<128x128xf32>, vector<128x128xf32>, vector<128x128xf32>, vector<128x128xf32>, vector<128x128xf32> -> vector<128x2048xf32>
    %54 = tpu.concatenate %7, %7, %7, %7, %7, %7, %7, %7, %7, %7, %7, %7, %7, %7, %7, %7 in 0 : vector<8x2048xf32>, vector<8x2048xf32>, vector<8x2048xf32>, vector<8x2048xf32>, vector<8x2048xf32>, vector<8x2048xf32>, vector<8x2048xf32>, vector<8x2048xf32>, vector<8x2048xf32>, vector<8x2048xf32>, vector<8x2048xf32>, vector<8x2048xf32>, vector<8x2048xf32>, vector<8x2048xf32>, vector<8x2048xf32>, vector<8x2048xf32> -> vector<128x2048xf32>
    %55 = arith.addf %53, %54 : vector<128x2048xf32>
    %56 = vector.broadcast %8 : vector<128x1xf32> to vector<128x2048xf32>
    %57 = arith.addf %55, %56 : vector<128x2048xf32>
    %cst_13 = arith.constant 0.000000e+00 : f32
    %58 = vector.broadcast %cst_13 : f32 to vector<128x2048xf32>
    %59 = arith.cmpf ogt, %57, %58 : vector<128x2048xf32>
    %cst_14 = arith.constant 3.300000e-01 : f32
    %60 = vector.broadcast %cst_14 : f32 to vector<128x2048xf32>
    %61 = arith.mulf %60, %57 : vector<128x2048xf32>
    %62 = arith.select %59, %57, %61 : vector<128x2048xi1>, vector<128x2048xf32>
    %c0_15 = arith.constant 0 : index
    %c0_16 = arith.constant 0 : index
    %63 = vector.load %arg4[%c0_15, %c0_16] : memref<16x128xf32, #tpu.memory_space<vmem>>, vector<8x128xf32>
    %cst_17 = arith.constant dense<0.000000e+00> : vector<8x2048xf32>
    %64 = tpu.matmul %63, %35, %cst_17 {dimension_numbers = #tpu.dot_dimension_numbers<[1], [0], [0], [1], [0, 0, 1, 1], [], []>} : vector<8x128xf32>, vector<128x2048xf32>, vector<8x2048xf32> -> vector<8x2048xf32>
    %c8_18 = arith.constant 8 : index
    %c0_19 = arith.constant 0 : index
    %65 = vector.load %arg4[%c8_18, %c0_19] : memref<16x128xf32, #tpu.memory_space<vmem>>, vector<8x128xf32>
    %cst_20 = arith.constant dense<0.000000e+00> : vector<8x2048xf32>
    %66 = tpu.matmul %65, %62, %cst_20 {dimension_numbers = #tpu.dot_dimension_numbers<[1], [0], [0], [1], [0, 0, 1, 1], [], []>} : vector<8x128xf32>, vector<128x2048xf32>, vector<8x2048xf32> -> vector<8x2048xf32>
    %c128 = arith.constant 128 : index
    %c0_21 = arith.constant 0 : index
    %67 = vector.load %arg10[%c128, %c0_21] : memref<408x1xf32, #tpu.memory_space<vmem>>, vector<128x1xf32>
    %68 = vector.extract_strided_slice %64 {offsets = [0, 0], sizes = [8, 128], strides = [1, 1]} : vector<8x2048xf32> to vector<8x128xf32>
    %69 = vector.extract_strided_slice %64 {offsets = [0, 128], sizes = [8, 128], strides = [1, 1]} : vector<8x2048xf32> to vector<8x128xf32>
    %70 = vector.extract_strided_slice %64 {offsets = [0, 256], sizes = [8, 128], strides = [1, 1]} : vector<8x2048xf32> to vector<8x128xf32>
    %71 = vector.extract_strided_slice %64 {offsets = [0, 384], sizes = [8, 128], strides = [1, 1]} : vector<8x2048xf32> to vector<8x128xf32>
    %72 = vector.extract_strided_slice %64 {offsets = [0, 512], sizes = [8, 128], strides = [1, 1]} : vector<8x2048xf32> to vector<8x128xf32>
    %73 = vector.extract_strided_slice %64 {offsets = [0, 640], sizes = [8, 128], strides = [1, 1]} : vector<8x2048xf32> to vector<8x128xf32>
    %74 = vector.extract_strided_slice %64 {offsets = [0, 768], sizes = [8, 128], strides = [1, 1]} : vector<8x2048xf32> to vector<8x128xf32>
    %75 = vector.extract_strided_slice %64 {offsets = [0, 896], sizes = [8, 128], strides = [1, 1]} : vector<8x2048xf32> to vector<8x128xf32>
    %76 = vector.extract_strided_slice %64 {offsets = [0, 1024], sizes = [8, 128], strides = [1, 1]} : vector<8x2048xf32> to vector<8x128xf32>
    %77 = vector.extract_strided_slice %64 {offsets = [0, 1152], sizes = [8, 128], strides = [1, 1]} : vector<8x2048xf32> to vector<8x128xf32>
    %78 = vector.extract_strided_slice %64 {offsets = [0, 1280], sizes = [8, 128], strides = [1, 1]} : vector<8x2048xf32> to vector<8x128xf32>
    %79 = vector.extract_strided_slice %64 {offsets = [0, 1408], sizes = [8, 128], strides = [1, 1]} : vector<8x2048xf32> to vector<8x128xf32>
    %80 = vector.extract_strided_slice %64 {offsets = [0, 1536], sizes = [8, 128], strides = [1, 1]} : vector<8x2048xf32> to vector<8x128xf32>
    %81 = vector.extract_strided_slice %64 {offsets = [0, 1664], sizes = [8, 128], strides = [1, 1]} : vector<8x2048xf32> to vector<8x128xf32>
    %82 = vector.extract_strided_slice %64 {offsets = [0, 1792], sizes = [8, 128], strides = [1, 1]} : vector<8x2048xf32> to vector<8x128xf32>
    %83 = vector.extract_strided_slice %64 {offsets = [0, 1920], sizes = [8, 128], strides = [1, 1]} : vector<8x2048xf32> to vector<8x128xf32>
    %84 = tpu.concatenate %68, %69, %70, %71, %72, %73, %74, %75, %76, %77, %78, %79, %80, %81, %82, %83 in 0 : vector<8x128xf32>, vector<8x128xf32>, vector<8x128xf32>, vector<8x128xf32>, vector<8x128xf32>, vector<8x128xf32>, vector<8x128xf32>, vector<8x128xf32>, vector<8x128xf32>, vector<8x128xf32>, vector<8x128xf32>, vector<8x128xf32>, vector<8x128xf32>, vector<8x128xf32>, vector<8x128xf32>, vector<8x128xf32> -> vector<128x128xf32>
    %85 = tpu.concatenate %84, %84, %84, %84, %84, %84, %84, %84, %84, %84, %84, %84, %84, %84, %84, %84 in 1 : vector<128x128xf32>, vector<128x128xf32>, vector<128x128xf32>, vector<128x128xf32>, vector<128x128xf32>, vector<128x128xf32>, vector<128x128xf32>, vector<128x128xf32>, vector<128x128xf32>, vector<128x128xf32>, vector<128x128xf32>, vector<128x128xf32>, vector<128x128xf32>, vector<128x128xf32>, vector<128x128xf32>, vector<128x128xf32> -> vector<128x2048xf32>
    %86 = tpu.concatenate %66, %66, %66, %66, %66, %66, %66, %66, %66, %66, %66, %66, %66, %66, %66, %66 in 0 : vector<8x2048xf32>, vector<8x2048xf32>, vector<8x2048xf32>, vector<8x2048xf32>, vector<8x2048xf32>, vector<8x2048xf32>, vector<8x2048xf32>, vector<8x2048xf32>, vector<8x2048xf32>, vector<8x2048xf32>, vector<8x2048xf32>, vector<8x2048xf32>, vector<8x2048xf32>, vector<8x2048xf32>, vector<8x2048xf32>, vector<8x2048xf32> -> vector<128x2048xf32>
    %87 = arith.addf %85, %86 : vector<128x2048xf32>
    %88 = vector.broadcast %67 : vector<128x1xf32> to vector<128x2048xf32>
    %89 = arith.addf %87, %88 : vector<128x2048xf32>
    %cst_22 = arith.constant 0.000000e+00 : f32
    %90 = vector.broadcast %cst_22 : f32 to vector<128x2048xf32>
    %91 = arith.cmpf ogt, %89, %90 : vector<128x2048xf32>
    %cst_23 = arith.constant 3.300000e-01 : f32
    %92 = vector.broadcast %cst_23 : f32 to vector<128x2048xf32>
    %93 = arith.mulf %92, %89 : vector<128x2048xf32>
    %94 = arith.select %91, %89, %93 : vector<128x2048xi1>, vector<128x2048xf32>
    %c256 = arith.constant 256 : index
    %c0_24 = arith.constant 0 : index
    %95 = vector.load %arg10[%c256, %c0_24] : memref<408x1xf32, #tpu.memory_space<vmem>>, vector<48x1xf32>
    %c0_25 = arith.constant 0 : index
    %c0_26 = arith.constant 0 : index
    %96 = vector.load %arg5[%c0_25, %c0_26] : memref<48x128xf32, #tpu.memory_space<vmem>>, vector<48x128xf32>
    %cst_27 = arith.constant dense<0.000000e+00> : vector<48x2048xf32>
    %97 = tpu.matmul %96, %94, %cst_27 {dimension_numbers = #tpu.dot_dimension_numbers<[1], [0], [0], [1], [0, 0, 1, 1], [], []>} : vector<48x128xf32>, vector<128x2048xf32>, vector<48x2048xf32> -> vector<48x2048xf32>
    %98 = vector.broadcast %95 : vector<48x1xf32> to vector<48x2048xf32>
    %99 = arith.addf %97, %98 : vector<48x2048xf32>
    %cst_28 = arith.constant 0.000000e+00 : f32
    %100 = vector.broadcast %cst_28 : f32 to vector<48x2048xf32>
    %101 = arith.cmpf ogt, %99, %100 : vector<48x2048xf32>
    %cst_29 = arith.constant 3.300000e-01 : f32
    %102 = vector.broadcast %cst_29 : f32 to vector<48x2048xf32>
    %103 = arith.mulf %102, %99 : vector<48x2048xf32>
    %104 = arith.select %101, %99, %103 : vector<48x2048xi1>, vector<48x2048xf32>
    %c304 = arith.constant 304 : index
    %c0_30 = arith.constant 0 : index
    %105 = vector.load %arg10[%c304, %c0_30] : memref<408x1xf32, #tpu.memory_space<vmem>>, vector<16x1xf32>
    %c0_31 = arith.constant 0 : index
    %c0_32 = arith.constant 0 : index
    %106 = vector.load %arg6[%c0_31, %c0_32] : memref<16x768xf32, #tpu.memory_space<vmem>>, vector<16x768xf32>
    %107 = vector.extract_strided_slice %104 {offsets = [0, 0], sizes = [48, 128], strides = [1, 1]} : vector<48x2048xf32> to vector<48x128xf32>
    %108 = vector.extract_strided_slice %104 {offsets = [0, 128], sizes = [48, 128], strides = [1, 1]} : vector<48x2048xf32> to vector<48x128xf32>
    %109 = vector.extract_strided_slice %104 {offsets = [0, 256], sizes = [48, 128], strides = [1, 1]} : vector<48x2048xf32> to vector<48x128xf32>
    %110 = vector.extract_strided_slice %104 {offsets = [0, 384], sizes = [48, 128], strides = [1, 1]} : vector<48x2048xf32> to vector<48x128xf32>
    %111 = vector.extract_strided_slice %104 {offsets = [0, 512], sizes = [48, 128], strides = [1, 1]} : vector<48x2048xf32> to vector<48x128xf32>
    %112 = vector.extract_strided_slice %104 {offsets = [0, 640], sizes = [48, 128], strides = [1, 1]} : vector<48x2048xf32> to vector<48x128xf32>
    %113 = vector.extract_strided_slice %104 {offsets = [0, 768], sizes = [48, 128], strides = [1, 1]} : vector<48x2048xf32> to vector<48x128xf32>
    %114 = vector.extract_strided_slice %104 {offsets = [0, 896], sizes = [48, 128], strides = [1, 1]} : vector<48x2048xf32> to vector<48x128xf32>
    %115 = vector.extract_strided_slice %104 {offsets = [0, 1024], sizes = [48, 128], strides = [1, 1]} : vector<48x2048xf32> to vector<48x128xf32>
    %116 = vector.extract_strided_slice %104 {offsets = [0, 1152], sizes = [48, 128], strides = [1, 1]} : vector<48x2048xf32> to vector<48x128xf32>
    %117 = vector.extract_strided_slice %104 {offsets = [0, 1280], sizes = [48, 128], strides = [1, 1]} : vector<48x2048xf32> to vector<48x128xf32>
    %118 = vector.extract_strided_slice %104 {offsets = [0, 1408], sizes = [48, 128], strides = [1, 1]} : vector<48x2048xf32> to vector<48x128xf32>
    %119 = vector.extract_strided_slice %104 {offsets = [0, 1536], sizes = [48, 128], strides = [1, 1]} : vector<48x2048xf32> to vector<48x128xf32>
    %120 = vector.extract_strided_slice %104 {offsets = [0, 1664], sizes = [48, 128], strides = [1, 1]} : vector<48x2048xf32> to vector<48x128xf32>
    %121 = vector.extract_strided_slice %104 {offsets = [0, 1792], sizes = [48, 128], strides = [1, 1]} : vector<48x2048xf32> to vector<48x128xf32>
    %122 = vector.extract_strided_slice %104 {offsets = [0, 1920], sizes = [48, 128], strides = [1, 1]} : vector<48x2048xf32> to vector<48x128xf32>
    %123 = tpu.concatenate %107, %108, %109, %110, %111, %112, %113, %114, %115, %116, %117, %118, %119, %120, %121, %122 in 0 : vector<48x128xf32>, vector<48x128xf32>, vector<48x128xf32>, vector<48x128xf32>, vector<48x128xf32>, vector<48x128xf32>, vector<48x128xf32>, vector<48x128xf32>, vector<48x128xf32>, vector<48x128xf32>, vector<48x128xf32>, vector<48x128xf32>, vector<48x128xf32>, vector<48x128xf32>, vector<48x128xf32>, vector<48x128xf32> -> vector<768x128xf32>
    %cst_33 = arith.constant dense<0.000000e+00> : vector<16x128xf32>
    %124 = tpu.matmul %106, %123, %cst_33 {dimension_numbers = #tpu.dot_dimension_numbers<[1], [0], [0], [1], [0, 0, 1, 1], [], []>} : vector<16x768xf32>, vector<768x128xf32>, vector<16x128xf32> -> vector<16x128xf32>
    %125 = vector.broadcast %105 : vector<16x1xf32> to vector<16x128xf32>
    %126 = arith.addf %124, %125 : vector<16x128xf32>
    %cst_34 = arith.constant 0.000000e+00 : f32
    %127 = vector.broadcast %cst_34 : f32 to vector<16x128xf32>
    %128 = arith.cmpf ogt, %126, %127 : vector<16x128xf32>
    %cst_35 = arith.constant 3.300000e-01 : f32
    %129 = vector.broadcast %cst_35 : f32 to vector<16x128xf32>
    %130 = arith.mulf %129, %126 : vector<16x128xf32>
    %131 = arith.select %128, %126, %130 : vector<16x128xi1>, vector<16x128xf32>
    %c320 = arith.constant 320 : index
    %c0_36 = arith.constant 0 : index
    %132 = vector.load %arg10[%c320, %c0_36] : memref<408x1xf32, #tpu.memory_space<vmem>>, vector<64x1xf32>
    %c384 = arith.constant 384 : index
    %c0_37 = arith.constant 0 : index
    %133 = vector.load %arg10[%c384, %c0_37] : memref<408x1xf32, #tpu.memory_space<vmem>>, vector<10x1xf32>
    %c400 = arith.constant 400 : index
    %c0_38 = arith.constant 0 : index
    %134 = vector.load %arg10[%c400, %c0_38] : memref<408x1xf32, #tpu.memory_space<vmem>>, vector<1x1xf32>
    %c0_39 = arith.constant 0 : index
    %c0_40 = arith.constant 0 : index
    %135 = vector.load %arg7[%c0_39, %c0_40] : memref<64x16xf32, #tpu.memory_space<vmem>>, vector<64x16xf32>
    %cst_41 = arith.constant dense<0.000000e+00> : vector<64x128xf32>
    %136 = tpu.matmul %135, %131, %cst_41 {dimension_numbers = #tpu.dot_dimension_numbers<[1], [0], [0], [1], [0, 0, 1, 1], [], []>} : vector<64x16xf32>, vector<16x128xf32>, vector<64x128xf32> -> vector<64x128xf32>
    %137 = vector.broadcast %132 : vector<64x1xf32> to vector<64x128xf32>
    %138 = arith.addf %136, %137 : vector<64x128xf32>
    %cst_42 = arith.constant 0.000000e+00 : f32
    %139 = vector.broadcast %cst_42 : f32 to vector<64x128xf32>
    %140 = arith.cmpf ogt, %138, %139 : vector<64x128xf32>
    %cst_43 = arith.constant 3.300000e-01 : f32
    %141 = vector.broadcast %cst_43 : f32 to vector<64x128xf32>
    %142 = arith.mulf %141, %138 : vector<64x128xf32>
    %143 = arith.select %140, %138, %142 : vector<64x128xi1>, vector<64x128xf32>
    %c0_44 = arith.constant 0 : index
    %c0_45 = arith.constant 0 : index
    %144 = vector.load %arg8[%c0_44, %c0_45] : memref<10x64xf32, #tpu.memory_space<vmem>>, vector<10x64xf32>
    %cst_46 = arith.constant dense<0.000000e+00> : vector<10x128xf32>
    %145 = tpu.matmul %144, %143, %cst_46 {dimension_numbers = #tpu.dot_dimension_numbers<[1], [0], [0], [1], [0, 0, 1, 1], [], []>} : vector<10x64xf32>, vector<64x128xf32>, vector<10x128xf32> -> vector<10x128xf32>
    %146 = vector.broadcast %133 : vector<10x1xf32> to vector<10x128xf32>
    %147 = arith.addf %145, %146 : vector<10x128xf32>
    %cst_47 = arith.constant 0.000000e+00 : f32
    %148 = vector.broadcast %cst_47 : f32 to vector<10x128xf32>
    %149 = arith.cmpf ogt, %147, %148 : vector<10x128xf32>
    %cst_48 = arith.constant 3.300000e-01 : f32
    %150 = vector.broadcast %cst_48 : f32 to vector<10x128xf32>
    %151 = arith.mulf %150, %147 : vector<10x128xf32>
    %152 = arith.select %149, %147, %151 : vector<10x128xi1>, vector<10x128xf32>
    %c0_49 = arith.constant 0 : index
    %c0_50 = arith.constant 0 : index
    %153 = vector.load %arg9[%c0_49, %c0_50] : memref<1x10xf32, #tpu.memory_space<vmem>>, vector<1x10xf32>
    %cst_51 = arith.constant dense<0.000000e+00> : vector<1x128xf32>
    %154 = tpu.matmul %153, %152, %cst_51 {dimension_numbers = #tpu.dot_dimension_numbers<[1], [0], [0], [1], [0, 0, 1, 1], [], []>} : vector<1x10xf32>, vector<10x128xf32>, vector<1x128xf32> -> vector<1x128xf32>
    %155 = vector.broadcast %134 : vector<1x1xf32> to vector<1x128xf32>
    %156 = arith.addf %154, %155 : vector<1x128xf32>
    %c0_52 = arith.constant 0 : index
    %c0_53 = arith.constant 0 : index
    %157 = vector.load %arg12[%c0_52, %c0_53] : memref<1x128xf32, #tpu.memory_space<vmem>>, vector<1x128xf32>
    tpu.vector_store %arg12[%c0_52, %c0_53], %156 {strides = array<i32>} : memref<1x128xf32, #tpu.memory_space<vmem>>, vector<1x128xf32>,
    %cst_54 = arith.constant 1.000000e+00 : f32
    %158 = vector.broadcast %cst_54 : f32 to vector<1x128xf32>
    %c0_55 = arith.constant 0 : index
    %c0_56 = arith.constant 0 : index
    %159 = vector.load %arg11[%c0_55, %c0_56] : memref<1x128xf32, #tpu.memory_space<vmem>>, vector<1x128xf32>
    tpu.vector_store %arg11[%c0_55, %c0_56], %158 {strides = array<i32>} : memref<1x128xf32, #tpu.memory_space<vmem>>, vector<1x128xf32>,
    return
  }
  func.func @transform_0(%arg0: i32) -> (i32, i32, i32) {
    %c0_i32 = arith.constant 0 : i32
    %c0_i32_0 = arith.constant 0 : i32
    %c0_i32_1 = arith.constant 0 : i32
    return %arg0, %c0_i32, %c0_i32_0 : i32, i32, i32
  }
  func.func @transform_1(%arg0: i32) -> (i32, i32, i32) {
    %c0_i32 = arith.constant 0 : i32
    %c0_i32_0 = arith.constant 0 : i32
    %c0_i32_1 = arith.constant 0 : i32
    return %arg0, %c0_i32, %c0_i32_0 : i32, i32, i32
  }
  func.func @transform_2(%arg0: i32) -> (i32, i32) {
    %c0_i32 = arith.constant 0 : i32
    %c0_i32_0 = arith.constant 0 : i32
    %c0_i32_1 = arith.constant 0 : i32
    return %c0_i32, %c0_i32_0 : i32, i32
  }
  func.func @transform_3(%arg0: i32) -> (i32, i32) {
    %c0_i32 = arith.constant 0 : i32
    %c0_i32_0 = arith.constant 0 : i32
    %c0_i32_1 = arith.constant 0 : i32
    return %c0_i32, %c0_i32_0 : i32, i32
  }
  func.func @transform_4(%arg0: i32) -> (i32, i32) {
    %c0_i32 = arith.constant 0 : i32
    %c0_i32_0 = arith.constant 0 : i32
    %c0_i32_1 = arith.constant 0 : i32
    return %c0_i32, %c0_i32_0 : i32, i32
  }
  func.func @transform_5(%arg0: i32) -> (i32, i32) {
    %c0_i32 = arith.constant 0 : i32
    %c0_i32_0 = arith.constant 0 : i32
    %c0_i32_1 = arith.constant 0 : i32
    return %c0_i32, %c0_i32_0 : i32, i32
  }
  func.func @transform_6(%arg0: i32) -> (i32, i32) {
    %c0_i32 = arith.constant 0 : i32
    %c0_i32_0 = arith.constant 0 : i32
    %c0_i32_1 = arith.constant 0 : i32
    return %c0_i32, %c0_i32_0 : i32, i32
  }
  func.func @transform_7(%arg0: i32) -> (i32, i32) {
    %c0_i32 = arith.constant 0 : i32
    %c0_i32_0 = arith.constant 0 : i32
    %c0_i32_1 = arith.constant 0 : i32
    return %c0_i32, %c0_i32_0 : i32, i32
  }
  func.func @transform_8(%arg0: i32) -> (i32, i32) {
    %c0_i32 = arith.constant 0 : i32
    %c0_i32_0 = arith.constant 0 : i32
    %c0_i32_1 = arith.constant 0 : i32
    return %c0_i32, %c0_i32_0 : i32, i32
  }
  func.func @transform_9(%arg0: i32) -> (i32, i32) {
    %c0_i32 = arith.constant 0 : i32
    %c0_i32_0 = arith.constant 0 : i32
    %c0_i32_1 = arith.constant 0 : i32
    return %c0_i32, %c0_i32_0 : i32, i32
  }
  func.func @transform_10(%arg0: i32) -> (i32, i32) {
    %c0_i32 = arith.constant 0 : i32
    %c0_i32_0 = arith.constant 0 : i32
    return %c0_i32, %arg0 : i32, i32
  }
  func.func @transform_11(%arg0: i32) -> (i32, i32) {
    %c0_i32 = arith.constant 0 : i32
    %c0_i32_0 = arith.constant 0 : i32
    return %c0_i32, %arg0 : i32, i32
  }
}

</mosaic_0001>

<bundles_post_ra>
// kernel: tile.10
= control target key start
LH: loop header
LB: loop body
LE: loop exit
PB: predicated region body
PF: predicated region fallthrough
CT: control target
= control target key end

     0   :  { %s28_s0 = inlined_call_operand.vmem [shape: f32[8], index: 0, kind: input, shape index: {}]   ;;  %s29_s1 = inlined_call_operand.vmem [shape: f32[16,1,1,8], index: 1, kind: output, shape index: {}]  }
   0x1   :  { %v4_v0 = vld [vmem:[%s28_s0] ss:$0 sm:$0xff] }
   0x2   :  { %5 = vst [vmem:[%s29_s1] sm:$0xff] %v4_v0  ;;  %8 = vst [vmem:[%s29_s1 + $0x8] sm:$0xff] %v4_v0 }

// kernel: forward_pallas.1
= control target key start
LH: loop header
LB: loop body
LE: loop exit
PB: predicated region body
PF: predicated region fallthrough
CT: control target
= control target key end

     0   :  { %s14017_s0 = inlined_call_operand.vmem [shape: f32[2,16,2048], index: 0, kind: input, shape index: {}]   ;;  %s14018_s1 = inlined_call_operand.vmem [shape: f32[2,16,2048], index: 1, kind: input, shape index: {}]   ;;  %s14019_s2 = inlined_call_operand.vmem [shape: f32[16,16], index: 2, kind: input, shape index: {}]   ;;  %s14020_s3 = inlined_call_operand.vmem [shape: f32[16,128], index: 3, kind: input, shape index: {}]   ;;  %s14021_s4 = inlined_call_operand.vmem [shape: f32[48,128], index: 4, kind: input, shape index: {}]   ;;  %s14022_s5 = inlined_call_operand.vmem [shape: f32[16,768], index: 5, kind: input, shape index: {}]   ;;  %s14023_s6 = inlined_call_operand.vmem [shape: f32[64,16], index: 6, kind: input, shape index: {}]   ;;  %s14024_s7 = inlined_call_operand.vmem [shape: f32[10,64], index: 7, kind: input, shape index: {}]   ;;  %s14025_s8 = inlined_call_operand.vmem [shape: f32[1,10], index: 8, kind: input, shape index: {}]   ;;  %s14026_s9 = inlined_call_operand.vmem [shape: f32[408,1], index: 9, kind: input, shape index: {}]   ;;  %s14027_s10 = inlined_call_operand.hbm [shape: f32[1,256], index: 10, kind: output, shape index: {0}]   ;;  %s14028_s11 = inlined_call_operand.hbm [shape: f32[1,256], index: 11, kind: output, shape index: {1}]  }
   0x1   :  { %14281 = sst [smem:[#allocation240_spill]] %s14017_s0 }
   0x2   :  { %14282 = sst [smem:[#allocation241_spill]] %s14018_s1 }
   0x3   :  { %17 = vsyncpa [#allocation3], 0 }
   0x4   :  { %19 = vsyncpa [#allocation3 + $0x1], 0 }
   0x5   :  { %20 = vsyncpa [#allocation5], 0 }
   0x6   :  { %22 = vsyncpa [#allocation5 + $0x1], 0  ;;  %s9786_s17 = smov 0   ;;  %s9788_s18 = smov 0  }
   0x7   :  { %s9790_s19 = smov 0   ;;  %s9792_s20 = smov 0  }
   0x8 LB: > { %s9807_s21 = sadd.s32 4294967295, %s9716_s20   ;;  %s8389_s22 = sadd.s32 4294967294, %s9716_s20   ;;  %s9716_s20 = sphi %s9792_s20, %s14778_s20   ;;  %s9712_s19 = sphi %s9790_s19, %s14777_s19   ;;  %s9708_s18 = sphi %s9788_s18, %s14776_s18   ;;  %s9704_s17 = sphi %s9786_s17, %s14775_s17  }
   0x9   : > { %s9811_s23 = sadd.s32 1, %s9716_s20   ;;  %s255_s24 = sadd.s32 1, %s9712_s19 }
   0xa   : > { %s252_s25 = ssub.s32 %s9716_s20, %s9811_s23  ;;  %p265_p0 = scmp.ne.s32.totalorder %s9712_s19, %s9708_s18 }
   0xb   : > { %p253_p1 = scmp.eq.s32.totalorder %s252_s25, 0  ;;  %p266_p2 = scmp.eq.s32.totalorder %s9807_s21, 1 }
   0xc   : > { %p271_p3 = scmp.ne.s32.totalorder %s9708_s18, %s9704_s17  ;;  %p272_p4 = scmp.eq.s32.totalorder %s8389_s22, 1 }
   0xd   : > { %s9822_s26 = scalar_select %p253_p1, %s9712_s19, %s255_s24  }
   0xe   : > { %p9824_p5 = por %p266_p2, %p265_p0  ;;  %p9828_p6 = por %p272_p4, %p271_p3 }
   0xf   : > { %p8392_p7 = scmp.ge.s32.totalorder %s9716_s20, 1  ;;  %p356_p8 = scmp.lt.s32.totalorder %s9716_s20, 3 }
  0x11   : > { %p357_p9 = pnand %p8392_p7, %p356_p8 }
  0x13   : > { %360 = sbr.rel (%p357_p9) target bundleno = 2458 (0x99a), region = 60 }
  0x1a   : > { %p404_p10 = scmp.lt.s32.totalorder %s9807_s21, 1  ;;  %v1623_v0 = vld [vmem:[%s14026_s9] sm:$0xff]  ;;  %v9718_v1 = vmov 0   ;;  %v14029_v2 = vmov 0.0   ;;  %v1625_v3 = vld [vmem:[%s14026_s9 + $0x10] sm:$0xff]  ;;  %v1624_v4 = vld [vmem:[%s14026_s9 + $0x8] sm:$0xff] }
  0x1b   : > { %9612 = vset.pattern.permute.xlu0 %v9718_v1  ;;  %547 = vmatprep.mubr.f32.mxu1 %v14029_v2  ;;  %s14285_s0 = sld [smem:[#allocation240_spill]]  ;;  %v1626_v5 = vld [vmem:[%s14026_s9 + $0x18] sm:$0xff]  ;;  %v1627_v9 = vld [vmem:[%s14026_s9 + $0x20] sm:$0xff]  ;;  %v1628_v20 = vld [vmem:[%s14026_s9 + $0x28] sm:$0xff]  ;;  %vm479_vm0 = vcmask 130048   ;;  %s14286_s1 = sld [smem:[#allocation241_spill]] }
  0x1c   : > { %s9843_s14 = scalar_select %p404_p10, %s9807_s21, 1  ;;  %1897 = vperm.xlu0 %9612, %v1623_v0   ;;  %689 = vmatprep.mubr.f32.mxu0 %v14029_v2  ;;  %v9874_v18 = vld [vmem:[%s14019_s2] sm:$0xff]  ;;  %v1629_v56 = vld [vmem:[%s14026_s9 + $0x30] sm:$0xff] }
  0x1d   : > { %9613 = vset.pattern.permute.xlu1 %v9718_v1  ;;  %s14280_s16 = sshll.u32 %s9807_s21, 4 }
  0x1e   : > { %s8429_s22 = sshll.u32 %s9843_s14, 8  ;;  %1907 = vperm.xlu1 %9613, %v1625_v3   ;;  %s13948_s12 = scalar_lea.hbm %s14027_s10, %s14280_s16 }
  0x1f   : > { %s9724_s14 = smov [#allocation2]  }
  0x20   : > { %1902 = vperm.xlu0 %9612, %v1624_v4  }
  0x21   : > { %s9855_s29 = scalar_lea.vmem %s14285_s0, %s8429_s22  ;;  %s9891_s15 = scalar_lea.vmem %s14286_s1, %s8429_s22 }
  0x22   : > { %v415_v6 = vld [vmem:[%s9855_s29 + $0x8] sm:$0xff]  ;;  %v414_v12 = vld [vmem:[%s9855_s29] sm:$0xff]  ;;  %v417_v19 = vld [vmem:[%s9855_s29 + $0x18] sm:$0xff]  ;;  %1912 = vperm.xlu1 %9613, %v1626_v5   ;;  %s13939_s22 = sand.u32 1, %s9708_s18   ;;  %s9626_s0 = sshll.u32 %s9724_s14, 4  ;;  %s9627_s0 = int_to_ptr.vmem [resolvable:$false] %s9626_s0 }
  0x23   : > { %v431_v7 = vld [vmem:[%s9855_s29 + $0x88] sm:$0xff]  ;;  %v430_v13 = vld [vmem:[%s9855_s29 + $0x80] sm:$0xff]  ;;  %v433_v22 = vld [vmem:[%s9855_s29 + $0x98] sm:$0xff]  ;;  %s8265_s13 = scalar_lea.sflag [#allocation3], %s13939_s22  ;;  %s9628_s1 = scalar_lea.vmem %s9627_s0, 32 }
  0x24   : > { %v419_v8 = vld [vmem:[%s9855_s29 + $0x28] sm:$0xff]  ;;  %v8610_v10 = vpack.c.bf16 %v431_v7, %v415_v6  ;;  %v8612_v15 = vpack.c.bf16 %v430_v13, %v414_v12  ;;  %v418_v16 = vld [vmem:[%s9855_s29 + $0x20] sm:$0xff]  ;;  %v8614_v25 = vpack.c.bf16 %v433_v22, %v417_v19  ;;  %v416_v27 = vld [vmem:[%s9855_s29 + $0x10] sm:$0xff]  ;;  %1917 = vperm.xlu0 %9612, %v1627_v9  }
  0x25   : > { %v435_v11 = vld [vmem:[%s9855_s29 + $0xa8] sm:$0xff]  ;;  %v434_v17 = vld [vmem:[%s9855_s29 + $0xa0] sm:$0xff]  ;;  %v432_v28 = vld [vmem:[%s9855_s29 + $0x90] sm:$0xff] }
  0x26   : > { %v8618_v14 = vpack.c.bf16 %v435_v11, %v419_v8  ;;  %8611 = vmatprep.subr.bf16.mxu1 %v8610_v10  ;;  %v8620_v21 = vpack.c.bf16 %v434_v17, %v418_v16  ;;  %v423_v23 = vld [vmem:[%s9855_s29 + $0x48] sm:$0xff]  ;;  %v422_v29 = vld [vmem:[%s9855_s29 + $0x40] sm:$0xff]  ;;  %v8616_v30 = vpack.c.bf16 %v432_v28, %v416_v27  ;;  %v421_v32 = vld [vmem:[%s9855_s29 + $0x38] sm:$0xff]  ;;  %1922 = vperm.xlu1 %9613, %v1628_v20  }
  0x27   : > { %v439_v24 = vld [vmem:[%s9855_s29 + $0xc8] sm:$0xff]  ;;  %8613 = vmatpush1.bf16.msra.mxu1 %v8612_v15  ;;  %v438_v31 = vld [vmem:[%s9855_s29 + $0xc0] sm:$0xff]  ;;  %v437_v33 = vld [vmem:[%s9855_s29 + $0xb8] sm:$0xff] }
  0x28   : > { %8619 = vmatprep.subr.bf16.mxu0 %v8618_v14  ;;  %v8626_v26 = vpack.c.bf16 %v439_v24, %v423_v23  ;;  %8615 = vmatprep.subr.bf16.mxu1 %v8614_v25  ;;  %v8628_v34 = vpack.c.bf16 %v438_v31, %v422_v29  ;;  %v8622_v35 = vpack.c.bf16 %v437_v33, %v421_v32  ;;  %v427_v36 = vld [vmem:[%s9855_s29 + $0x68] sm:$0xff]  ;;  %v420_v38 = vld [vmem:[%s9855_s29 + $0x30] sm:$0xff]  ;;  %v426_v41 = vld [vmem:[%s9855_s29 + $0x60] sm:$0xff] }
  0x29   : > { %8621 = vmatpush1.bf16.msra.mxu0 %v8620_v21  ;;  %v443_v37 = vld [vmem:[%s9855_s29 + $0xe8] sm:$0xff]  ;;  %v436_v40 = vld [vmem:[%s9855_s29 + $0xb0] sm:$0xff]  ;;  %v442_v42 = vld [vmem:[%s9855_s29 + $0xe0] sm:$0xff]  ;;  %1927 = vperm.xlu0 %9612, %v1629_v56  }
  0x2a   : > { %8627 = vmatprep.subr.bf16.mxu0 %v8626_v26  ;;  %8397 = vmatmul.mubr.msk.f32.vlgmr.msra.gmra.mrb[0].mxu1 %vm479_vm0, %v9874_v18  ;;  %v8634_v39 = vpack.c.bf16 %v443_v37, %v427_v36  ;;  %v8624_v43 = vpack.c.bf16 %v436_v40, %v420_v38  ;;  %v425_v44 = vld [vmem:[%s9855_s29 + $0x58] sm:$0xff]  ;;  %v447_v46 = vld [vmem:[%s9891_s15 + $0x8] sm:$0xff]  ;;  %v8636_v47 = vpack.c.bf16 %v442_v42, %v426_v41  ;;  %v424_v49 = vld [vmem:[%s9855_s29 + $0x50] sm:$0xff] }
  0x2b   : > { %8617 = vmatpush1.bf16.msra.mxu1 %v8616_v30  ;;  %v441_v45 = vld [vmem:[%s9855_s29 + $0xd8] sm:$0xff]  ;;  %618 = vmatprep.mubr.f32.mxu1 %v14029_v2  ;;  %v463_v48 = vld [vmem:[%s9891_s15 + $0x88] sm:$0xff]  ;;  %v440_v50 = vld [vmem:[%s9855_s29 + $0xd0] sm:$0xff] }
  0x2c   : > { %8399 = vmatmul.mubr.msk.f32.vlgmr.msra.gmra.mrb[0].mxu0 %vm479_vm0, %v9874_v18  ;;  %8623 = vmatprep.subr.bf16.mxu1 %v8622_v35  ;;  %v8630_v51 = vpack.c.bf16 %v441_v45, %v425_v44  ;;  %v446_v52 = vld [vmem:[%s9891_s15] sm:$0xff]  ;;  %v8642_v54 = vpack.c.bf16 %v463_v48, %v447_v46  ;;  %v8632_v55 = vpack.c.bf16 %v440_v50, %v424_v49  ;;  %v429_v57 = vld [vmem:[%s9855_s29 + $0x78] sm:$0xff]  ;;  %v451_v60 = vld [vmem:[%s9891_s15 + $0x28] sm:$0xff] }
  0x2d   : > { %8629 = vmatpush1.bf16.msra.mxu0 %v8628_v34  ;;  %831 = vmatprep.mubr.f32.mxu0 %v14029_v2  ;;  %v462_v53 = vld [vmem:[%s9891_s15 + $0x80] sm:$0xff]  ;;  %v445_v58 = vld [vmem:[%s9855_s29 + $0xf8] sm:$0xff]  ;;  %v467_v61 = vld [vmem:[%s9891_s15 + $0xa8] sm:$0xff] }
  0x2e   : > { %8398 = vmatmul.mubr.msk.f32.vlgmr.msra.gmra.mrb[2].mxu1 %vm479_vm0, %v9874_v18  ;;  %8635 = vmatprep.subr.bf16.mxu0 %v8634_v39  ;;  %v8644_v59 = vpack.c.bf16 %v462_v53, %v446_v52  ;;  %v428_v62 = vld [vmem:[%s9855_s29 + $0x70] sm:$0xff]  ;;  %v450_v0 = vld [vmem:[%s9891_s15 + $0x20] sm:$0xff]  ;;  %v8638_v3 = vpack.c.bf16 %v445_v58, %v429_v57  ;;  %v8650_v4 = vpack.c.bf16 %v467_v61, %v451_v60  ;;  %v449_v5 = vld [vmem:[%s9891_s15 + $0x18] sm:$0xff] }
  0x2f   : > { %8625 = vmatpush1.bf16.msra.mxu1 %v8624_v43  ;;  %760 = vmatprep.mubr.f32.mxu1 %v14029_v2  ;;  %v444_v63 = vld [vmem:[%s9855_s29 + $0xf0] sm:$0xff]  ;;  %v466_v1 = vld [vmem:[%s9891_s15 + $0xa0] sm:$0xff]  ;;  %v465_v6 = vld [vmem:[%s9891_s15 + $0x98] sm:$0xff]  ;;  %s397_s29 = scalar_lea.vmem [#allocation2], %s13939_s22 }
  0x30   : > { %8401 = vmatmul.mubr.msk.f32.vlgmr.msra.gmra.mrb[2].mxu0 %vm479_vm0, %v9874_v18  ;;  %8631 = vmatprep.subr.bf16.mxu1 %v8630_v51  ;;  %v9942_v7 = vld [vmem:[%s14019_s2 + $0x8] sm:$0xff]  ;;  %v8640_v8 = vpack.c.bf16 %v444_v63, %v428_v62  ;;  %v8652_v9 = vpack.c.bf16 %v466_v1, %v450_v0  ;;  %v448_v12 = vld [vmem:[%s9891_s15 + $0x10] sm:$0xff]  ;;  %v1631_v14 = vld [vmem:[%s14026_s9 + $0x40] sm:$0xff]  ;;  %v8646_v15 = vpack.c.bf16 %v465_v6, %v449_v5  ;;  %s8281_s24 = sshll.u32 %s397_s29, 4  ;;  %s8282_s24 = int_to_ptr.vmem [resolvable:$true] %s8281_s24 }
  0x31   : > { %8637 = vmatpush1.bf16.msra.mxu0 %v8636_v47  ;;  %973 = vmatprep.mubr.f32.mxu0 %v14029_v2  ;;  %v455_v10 = vld [vmem:[%s9891_s15 + $0x48] sm:$0xff]  ;;  %v464_v13 = vld [vmem:[%s9891_s15 + $0x90] sm:$0xff]  ;;  %v454_v16 = vld [vmem:[%s9891_s15 + $0x40] sm:$0xff]  ;;  %p9629_p0 = scmp.lt.s32.totalorder %s8282_s24, %s9627_s0 }
  0x32   : > { %8400 = vmatmul.mubr.msk.f32.vlgmr.msra.gmra.mrb[4].mxu1 %vm479_vm0, %v9874_v18  ;;  %8643 = vmatprep.subr.bf16.mxu0 %v8642_v54  ;;  %v471_v11 = vld [vmem:[%s9891_s15 + $0xc8] sm:$0xff]  ;;  %v470_v17 = vld [vmem:[%s9891_s15 + $0xc0] sm:$0xff]  ;;  %v8648_v20 = vpack.c.bf16 %v464_v13, %v448_v12  ;;  %v1630_v21 = vld [vmem:[%s14026_s9 + $0x38] sm:$0xff] }
  0x33   : > { %8633 = vmatpush1.bf16.msra.mxu1 %v8632_v55  ;;  %902 = vmatprep.mubr.f32.mxu1 %v14029_v2  ;;  %v8658_v19 = vpack.c.bf16 %v471_v11, %v455_v10  ;;  %v8660_v22 = vpack.c.bf16 %v470_v17, %v454_v16  ;;  %v453_v23 = vld [vmem:[%s9891_s15 + $0x38] sm:$0xff]  ;;  %v459_v25 = vld [vmem:[%s9891_s15 + $0x68] sm:$0xff]  ;;  %v452_v27 = vld [vmem:[%s9891_s15 + $0x30] sm:$0xff] }
  0x34   : > { %8403 = vmatmul.mubr.msk.f32.vlgmr.msra.gmra.mrb[4].mxu0 %vm479_vm0, %v9874_v18  ;;  %8639 = vmatprep.subr.bf16.mxu1 %v8638_v3  ;;  %v469_v24 = vld [vmem:[%s9891_s15 + $0xb8] sm:$0xff]  ;;  %v475_v26 = vld [vmem:[%s9891_s15 + $0xe8] sm:$0xff]  ;;  %v468_v28 = vld [vmem:[%s9891_s15 + $0xb0] sm:$0xff] }
  0x35   : > { %8645 = vmatpush1.bf16.msra.mxu0 %v8644_v59  ;;  %1119 = vmatprep.mubr.f32.mxu0 %v14029_v2  ;;  %v1633_v29 = vld [vmem:[%s14026_s9 + $0x50] sm:$0xff]  ;;  %v458_v30 = vld [vmem:[%s9891_s15 + $0x60] sm:$0xff]  ;;  %v8654_v32 = vpack.c.bf16 %v469_v24, %v453_v23  ;;  %v8666_v33 = vpack.c.bf16 %v475_v26, %v459_v25  ;;  %v8656_v34 = vpack.c.bf16 %v468_v28, %v452_v27  ;;  %v457_v35 = vld [vmem:[%s9891_s15 + $0x58] sm:$0xff] }
  0x36   : > { %8402 = vmatmul.mubr.msk.f32.vlgmr.msra.gmra.mrb[6].mxu1 %vm479_vm0, %v9874_v18  ;;  %8651 = vmatprep.subr.bf16.mxu0 %v8650_v4  ;;  %v474_v31 = vld [vmem:[%s9891_s15 + $0xe0] sm:$0xff]  ;;  %v473_v36 = vld [vmem:[%s9891_s15 + $0xd8] sm:$0xff]  ;;  %v1632_v37 = vld [vmem:[%s14026_s9 + $0x48] sm:$0xff] }
  0x37   : > { %8641 = vmatpush1.bf16.msra.mxu1 %v8640_v8  ;;  %1937 = vperm.xlu0 %9612, %v1631_v14   ;;  %v456_v38 = vld [vmem:[%s9891_s15 + $0x50] sm:$0xff]  ;;  %v1635_v40 = vld [vmem:[%s14026_s9 + $0x60] sm:$0xff]  ;;  %v8662_v41 = vpack.c.bf16 %v473_v36, %v457_v35  ;;  %v461_v42 = vld [vmem:[%s9891_s15 + $0x78] sm:$0xff] }
  0x38   : > { %8405 = vmatmul.mubr.msk.f32.vlgmr.msra.gmra.mrb[6].mxu0 %vm479_vm0, %v9942_v7  ;;  %1044 = vmatprep.mubr.f32.mxu1 %v14029_v2  ;;  %v472_v39 = vld [vmem:[%s9891_s15 + $0xd0] sm:$0xff]  ;;  %v477_v43 = vld [vmem:[%s9891_s15 + $0xf8] sm:$0xff]  ;;  %v1636_v51 = vld [vmem:[%s14026_s9 + $0x68] sm:$0xff] }
  0x39   : > { %8653 = vmatpush1.bf16.msra.mxu0 %v8652_v9  ;;  %1261 = vmatprep.mubr.f32.mxu0 %v14029_v2  ;;  %v8664_v44 = vpack.c.bf16 %v472_v39, %v456_v38  ;;  %v1634_v45 = vld [vmem:[%s14026_s9 + $0x58] sm:$0xff]  ;;  %v460_v46 = vld [vmem:[%s9891_s15 + $0x70] sm:$0xff]  ;;  %v8670_v49 = vpack.c.bf16 %v477_v43, %v461_v42  ;;  %v5097_v52 = vld [vmem:[%s14026_s9 + $0x80] sm:$0xff] }
  0x3a   : > { %8647 = vmatprep.subr.bf16.mxu1 %v8646_v15  ;;  %8404 = vmatmul.mubr.msk.f32.vlgmr.msra.gmra.mrb[8].mxu1 %vm479_vm0, %v9874_v18  ;;  %v8668_v18 = vpack.c.bf16 %v474_v31, %v458_v30  ;;  %v476_v47 = vld [vmem:[%s9891_s15 + $0xf0] sm:$0xff]  ;;  %v1638_v53 = vld [vmem:[%s14026_s9 + $0x78] sm:$0xff]  ;;  %v5098_v55 = vld [vmem:[%s14026_s9 + $0x88] sm:$0xff]  ;;  %s9622_s15 = scalar_lea.vmem %s8282_s24, 16 }
  0x3b   : > { %8659 = vmatprep.subr.bf16.mxu0 %v8658_v19  ;;  %8649 = vmatpush1.bf16.msra.mxu1 %v8648_v20  ;;  %v1637_v48 = vld [vmem:[%s14026_s9 + $0x70] sm:$0xff]  ;;  %v8672_v50 = vpack.c.bf16 %v476_v47, %v460_v46  ;;  %v5101_v56 = vld [vmem:[%s14026_s9 + $0xa0] sm:$0xff]  ;;  %v5100_v57 = vld [vmem:[%s14026_s9 + $0x98] sm:$0xff]  ;;  %p9623_p11 = scmp.ne.s32.totalorder %s8282_s24, %s9622_s15  ;;  %p9630_p1 = scmp.lt.s32.totalorder %s9628_s1, %s9622_s15 }
  0x3c   : > { %8407 = vmatmul.mubr.msk.f32.vlgmr.msra.gmra.mrb[8].mxu0 %vm479_vm0, %v9942_v7  ;;  %1932 = vperm.xlu1 %9613, %v1630_v21   ;;  %v5099_v54 = vld [vmem:[%s14026_s9 + $0x90] sm:$0xff]  ;;  %v5102_v59 = vld [vmem:[%s14026_s9 + $0xa8] sm:$0xff]  ;;  %v5105_v60 = vld [vmem:[%s14026_s9 + $0xc0] sm:$0xff] }
  0x3d   : > { %8661 = vmatpush1.bf16.msra.mxu0 %v8660_v22  ;;  %1947 = vperm.xlu0 %9612, %v1633_v29   ;;  %v5103_v58 = vld [vmem:[%s14026_s9 + $0xb0] sm:$0xff]  ;;  %v5104_v61 = vld [vmem:[%s14026_s9 + $0xb8] sm:$0xff]  ;;  %v5106_v63 = vld [vmem:[%s14026_s9 + $0xc8] sm:$0xff]  ;;  %p9624_p12 = pnand %p9623_p11, %p9824_p5  ;;  %p9631_p2 = por %p9630_p1, %p9629_p0 }
  0x3e   : > { %1190 = vmatprep.mubr.f32.mxu1 %v14029_v2  ;;  %1403 = vmatprep.mubr.f32.mxu0 %v14029_v2  ;;  %v5107_v62 = vld [vmem:[%s14026_s9 + $0xd0] sm:$0xff]  ;;  %v5109_v0 = vld [vmem:[%s14026_s9 + $0xe0] sm:$0xff]  ;;  %v5108_v1 = vld [vmem:[%s14026_s9 + $0xd8] sm:$0xff] }
  0x3f   : > { %8406 = vmatmul.mubr.msk.f32.vlgmr.msra.gmra.mrb[10].mxu1 %vm479_vm0, %v9942_v7  ;;  %8655 = vmatprep.subr.bf16.mxu1 %v8654_v32  ;;  %v5111_v3 = vld [vmem:[%s14026_s9 + $0xf0] sm:$0xff]  ;;  %v5110_v4 = vld [vmem:[%s14026_s9 + $0xe8] sm:$0xff]  ;;  %v6477_v5 = vld [vmem:[%s14026_s9 + $0x120] sm:$0xff]  ;;  %p9625_p13 = pneg %p9624_p12 }
  0x40   : > { %8409 = vmatmul.mubr.msk.f32.vlgmr.msra.gmra.mrb[10].mxu0 %vm479_vm0, %v9942_v7  ;;  %8667 = vmatprep.subr.bf16.mxu0 %v8666_v33  ;;  %v5112_v6 = vld [vmem:[%s14026_s9 + $0xf8] sm:$0xff]  ;;  %v6478_v8 = vld [vmem:[%s14026_s9 + $0x128] sm:$0xff]  ;;  %v6475_v9 = vld [vmem:[%s14026_s9 + $0x110] sm:$0xff] }
  0x41   : > { %8657 = vmatpush1.bf16.msra.mxu1 %v8656_v34  ;;  %8669 = vmatpush1.bf16.msra.mxu0 %v8668_v18  ;;  %v6474_v10 = vld [vmem:[%s14026_s9 + $0x108] sm:$0xff]  ;;  %v7611_v11 = vld [vmem:[%s14026_s9 + $0x130] sm:$0xff]  ;;  %v6476_v12 = vld [vmem:[%s14026_s9 + $0x118] sm:$0xff]  ;;  %p9632_p3 = pnand %p9631_p2, %p9625_p13 }
  0x42   : > { %1942 = vperm.xlu1 %9613, %v1632_v37   ;;  %1957 = vperm.xlu0 %9612, %v1635_v40   ;;  %v7866_v13 = vld [vmem:[%s14026_s9 + $0x140] sm:$0xff]  ;;  %v7612_v14 = vld [vmem:[%s14026_s9 + $0x138] sm:$0xff]  ;;  %v7868_v15 = vld [vmem:[%s14026_s9 + $0x150] sm:$0xff] }
  0x43   : > { %1332 = vmatprep.mubr.f32.mxu1 %v14029_v2  ;;  %1545 = vmatprep.mubr.f32.mxu0 %v14029_v2  ;;  %v7867_v16 = vld [vmem:[%s14026_s9 + $0x148] sm:$0xff]  ;;  %v7870_v17 = vld [vmem:[%s14026_s9 + $0x160] sm:$0xff]  ;;  %v7869_v19 = vld [vmem:[%s14026_s9 + $0x158] sm:$0xff] }
  0x44   : > { %8408 = vmatmul.mubr.msk.f32.vlgmr.msra.gmra.mrb[12].mxu1 %vm479_vm0, %v9942_v7  ;;  %8663 = vmatprep.subr.bf16.mxu1 %v8662_v41  ;;  %v7872_v20 = vld [vmem:[%s14026_s9 + $0x170] sm:$0xff]  ;;  %v7871_v21 = vld [vmem:[%s14026_s9 + $0x168] sm:$0xff]  ;;  %v7874_v22 = vld [vmem:[%s14026_s9 + $0x180] sm:$0xff] }
  0x45   : > { %8411 = vmatmul.mubr.msk.f32.vlgmr.msra.gmra.mrb[12].mxu0 %vm479_vm0, %v9942_v7  ;;  %8665 = vmatpush1.bf16.msra.mxu1 %v8664_v44  ;;  %v7873_v23 = vld [vmem:[%s14026_s9 + $0x178] sm:$0xff]  ;;  %v7876_v24 = vld [vmem:[%s14026_s9 + $0x190] sm:$0x1]  ;;  %v7875_v25 = vld [vmem:[%s14026_s9 + $0x188] sm:$0x3] }
  0x46   : > { %1952 = vperm.xlu1 %9613, %v1634_v45   ;;  %1967 = vperm.xlu0 %9612, %v1637_v48  }
  0x47   : > { %1474 = vmatprep.mubr.f32.mxu1 %v14029_v2  ;;  %8671 = vmatprep.subr.bf16.mxu1 %v8670_v49 }
  0x48   : > { %4024 = vmatprep.mubr.f32.mxu0 %v14029_v2  ;;  %8410 = vmatmul.mubr.msk.f32.vlgmr.msra.gmra.mrb[14].mxu1 %vm479_vm0, %v9942_v7 }
  0x49   : > { %8673 = vmatpush1.bf16.msra.mxu1 %v8672_v50  ;;  %1616 = vmatprep.mubr.f32.mxu1 %v14029_v2 }
  0x4a   : > { %1962 = vperm.xlu1 %9613, %v1636_v51   ;;  %5371 = vperm.xlu0 %9612, %v5097_v52  }
  0x4c   : > { %8412 = vmatmul.mubr.msk.f32.vlgmr.msra.gmra.mrb[16].mxu1 %vm479_vm0, %v9942_v7  ;;  %v6473_v7 = vld [vmem:[%s14026_s9 + $0x100] sm:$0xff] }
  0x4d   : > { %4095 = vmatprep.mubr.f32.mxu1 %v14029_v2 }
  0x4e   : > { %1972 = vperm.xlu1 %9613, %v1638_v53   ;;  %5381 = vperm.xlu0 %9612, %v5099_v54  }
  0x52   : > { %5376 = vperm.xlu1 %9613, %v5098_v55   ;;  %5391 = vperm.xlu0 %9612, %v5101_v56  }
  0x56   : > { %5386 = vperm.xlu1 %9613, %v5100_v57   ;;  %5401 = vperm.xlu0 %9612, %v5103_v58  }
  0x5a   : > { %5396 = vperm.xlu1 %9613, %v5102_v59   ;;  %5411 = vperm.xlu0 %9612, %v5105_v60  }
  0x5e   : > { %5406 = vperm.xlu1 %9613, %v5104_v61   ;;  %5421 = vperm.xlu0 %9612, %v5107_v62  }
  0x62   : > { %5416 = vperm.xlu1 %9613, %v5106_v63   ;;  %5431 = vperm.xlu0 %9612, %v5109_v0  }
  0x66   : > { %5426 = vperm.xlu1 %9613, %v5108_v1   ;;  %5441 = vperm.xlu0 %9612, %v5111_v3  }
  0x6a   : > { %5436 = vperm.xlu1 %9613, %v5110_v4   ;;  %6507 = vperm.xlu0 %9612, %v6477_v5  }
  0x6e   : > { %5446 = vperm.xlu1 %9613, %v5112_v6   ;;  %6487 = vperm.xlu0 %9612, %v6473_v7  }
  0x72   : > { %6512 = vperm.xlu1 %9613, %v6478_v8   ;;  %6497 = vperm.xlu0 %9612, %v6475_v9  }
  0x76   : > { %6492 = vperm.xlu1 %9613, %v6474_v10   ;;  %7627 = vperm.xlu0 %9612, %v7611_v11  }
  0x7a   : > { %6502 = vperm.xlu1 %9613, %v6476_v12   ;;  %7887 = vperm.xlu0 %9612, %v7866_v13  }
  0x7e   : > { %7632 = vperm.xlu1 %9613, %v7612_v14   ;;  %7897 = vperm.xlu0 %9612, %v7868_v15  }
  0x82   : > { %7892 = vperm.xlu1 %9613, %v7867_v16   ;;  %7907 = vperm.xlu0 %9612, %v7870_v17  }
  0x86   : > { %7902 = vperm.xlu1 %9613, %v7869_v19   ;;  %7917 = vperm.xlu0 %9612, %v7872_v20  }
  0x8a   : > { %7912 = vperm.xlu1 %9613, %v7871_v21   ;;  %8082 = vperm.xlu0 %9612, %v7874_v22  }
  0x8e   : > { %7922 = vperm.xlu1 %9613, %v7873_v23   ;;  %8181 = vperm.xlu0 %9612, %v7876_v24  }
  0x92   : > { %8087 = vperm.xlu1 %9613, %v7875_v25  }
  0x9b   : > { %v10150_v35 = vpop.permute.xlu0 %1897 }
  0x9d   : > { %v10218_v0 = vpop.permute.xlu1 %1907 }
  0x9f   : > { %v10192_v50 = vpop.permute.xlu0 %1902 }
  0xfd   : > { %v10130_v26 = vpop.f32.mrb[0].mxu1 }
  0xfe   : > { %v10132_v27 = vpop.f32.mrb[1].mxu1 }
  0xff   : > { %v10134_v28 = vpop.f32.mrb[0].mxu0 }
 0x100   : > { %v10136_v29 = vpop.f32.mrb[1].mxu0 }
 0x101   : > { %v10138_v30 = vpop.f32.mrb[2].mxu1 }
 0x102   : > { %v10140_v31 = vpop.f32.mrb[3].mxu1 }
 0x103   : > { %v10142_v32 = vpop.f32.mrb[2].mxu0 }
 0x104   : > { %v10144_v33 = vpop.f32.mrb[3].mxu0 }
 0x105   : > { %v10146_v34 = vpop.f32.mrb[4].mxu1 }
 0x106   : > { %v10148_v18 = vpop.f32.mrb[5].mxu1 }
 0x107   : > { %v10152_v36 = vpop.f32.mrb[4].mxu0 }
 0x108   : > { %14287 = vst [vmem:[#allocation8_spill] sm:$0xff] %v10152_v36  ;;  %v10154_v37 = vpop.f32.mrb[5].mxu0 }
 0x109   : > { %14288 = vst [vmem:[#allocation9_spill] sm:$0xff] %v10154_v37  ;;  %v10156_v38 = vpop.f32.mrb[6].mxu1 }
 0x10a   : > { %v10160_v40 = vpop.f32.mrb[7].mxu1 }
 0x10b   : > { %v10158_v39 = vpop.f32.mrb[6].mxu0 }
 0x10c   : > { %v10162_v41 = vpop.f32.mrb[7].mxu0  ;;  %v10166_v42 = vadd.f32 %v10158_v39, %v10132_v27  ;;  %v10170_v43 = vadd.f32 %v10158_v39, %v10140_v31  ;;  %v1639_v44 = vadd.f32 %v10158_v39, %v10130_v26  ;;  %v10176_v45 = vadd.f32 %v10158_v39, %v10138_v30 }
 0x10d   : > { %v1656_v46 = vadd.f32 %v10162_v41, %v10132_v27  ;;  %v10182_v47 = vadd.f32 %v10162_v41, %v10140_v31  ;;  %v10186_v48 = vadd.f32 %v10162_v41, %v10130_v26  ;;  %v10190_v49 = vadd.f32 %v10162_v41, %v10138_v30  ;;  %v10201_v55 = vpop.f32.mrb[8].mxu1 }
 0x10e   : > { %14289 = vst [vmem:[#allocation10_spill] sm:$0xff] %v10166_v42  ;;  %14290 = vst [vmem:[#allocation11_spill] sm:$0xff] %v10170_v43  ;;  %v1976_v51 = vadd.f32 %v10150_v35, %v10166_v42  ;;  %v1978_v52 = vadd.f32 %v10150_v35, %v10170_v43  ;;  %v1975_v53 = vadd.f32 %v10150_v35, %v1639_v44  ;;  %v10212_v61 = vpop.f32.mrb[9].mxu1  ;;  %v10246_v44 = vpop.permute.xlu1 %1912 }
 0x10f   : > { %14291 = vst [vmem:[#allocation12_spill] sm:$0xff] %v10176_v45  ;;  %14292 = vst [vmem:[#allocation13_spill] sm:$0xff] %v10182_v47  ;;  %v1977_v54 = vadd.f32 %v10150_v35, %v10176_v45  ;;  %v1992_v56 = vadd.f32 %v10192_v50, %v1656_v46  ;;  %v1994_v57 = vadd.f32 %v10192_v50, %v10182_v47  ;;  %v10210_v60 = vpop.f32.mrb[8].mxu0 }
 0x110   : > { %14293 = vst [vmem:[#allocation14_spill] sm:$0xff] %v10186_v48  ;;  %14294 = vst [vmem:[#allocation15_spill] sm:$0xff] %v10190_v49  ;;  %v1991_v58 = vadd.f32 %v10192_v50, %v10186_v48  ;;  %v1993_v59 = vadd.f32 %v10192_v50, %v10190_v49  ;;  %vm2232_vm1 = vcmp.gt.f32.partialorder %v1976_v51, 0.0  ;;  %v2488_v62 = vmul.f32 0.33, %v1976_v51  ;;  %v10220_v1 = vpop.f32.mrb[9].mxu0 }
 0x111   : > { %14295 = vst [vmem:[#allocation16_spill] sm:$0xff] %v10201_v55  ;;  %14296 = vst [vmem:[#allocation17_spill] sm:$0xff] %v10212_v61  ;;  %vm2234_vm2 = vcmp.gt.f32.partialorder %v1978_v52, 0.0  ;;  %v10216_v63 = vadd.f32 %v10158_v39, %v10136_v29  ;;  %vm2248_vm3 = vcmp.gt.f32.partialorder %v1992_v56, 0.0  ;;  %v2504_v3 = vmul.f32 0.33, %v1992_v56 }
 0x112   : > { %vm2250_vm4 = vcmp.gt.f32.partialorder %v1994_v57, 0.0  ;;  %vm2231_vm5 = vcmp.gt.f32.partialorder %v1975_v53, 0.0  ;;  %v2744_v4 = vsel %vm2232_vm1, %v1976_v51, %v2488_v62  ;;  %v2490_v5 = vmul.f32 0.33, %v1978_v52  ;;  %v10222_v7 = vpop.f32.mrb[10].mxu1 }
 0x113   : > { %14297 = vst [vmem:[#allocation18_spill] sm:$0xff] %v10216_v63  ;;  %v2506_v6 = vmul.f32 0.33, %v1994_v57  ;;  %vm2247_vm6 = vcmp.gt.f32.partialorder %v1991_v58, 0.0  ;;  %v10224_v8 = vsel %vm2248_vm3, %v1992_v56, %v2504_v3  ;;  %v2487_v9 = vmul.f32 0.33, %v1975_v53 }
 0x114   : > { %14298 = vst [vmem:[#allocation19_spill] sm:$0xff] %v10224_v8  ;;  %v2503_v10 = vmul.f32 0.33, %v1991_v58  ;;  %vm2233_vm7 = vcmp.gt.f32.partialorder %v1977_v54, 0.0  ;;  %v10226_v11 = vpop.f32.mrb[10].mxu0  ;;  %v10228_v12 = vpop.f32.mrb[11].mxu1  ;;  %v8674_v13 = vpack.c.bf16 %v10224_v8, %v2744_v4  ;;  %v2746_v14 = vsel %vm2234_vm2, %v1978_v52, %v2490_v5 }
 0x115   : > { %v2762_v15 = vsel %vm2250_vm4, %v1994_v57, %v2506_v6  ;;  %vm2249_vm8 = vcmp.gt.f32.partialorder %v1993_v59, 0.0  ;;  %v10232_v16 = vpop.f32.mrb[11].mxu0  ;;  %v10235_v19 = vsel %vm2231_vm5, %v1975_v53, %v2487_v9  ;;  %v2489_v21 = vmul.f32 0.33, %v1977_v54 }
 0x116   : > { %v8706_v17 = vpack.c.bf16 %v2762_v15, %v2746_v14  ;;  %14299 = vst [vmem:[#allocation20_spill] sm:$0xff] %v10235_v19  ;;  %v2759_v20 = vsel %vm2247_vm6, %v1991_v58, %v2503_v10  ;;  %8675 = vmatprep.subr.bf16.mxu0 %v8674_v13  ;;  %v2505_v23 = vmul.f32 0.33, %v1993_v59  ;;  %v10240_v24 = vadd.f32 %v10222_v7, %v10132_v27 }
 0x117   : > { %v8676_v22 = vpack.c.bf16 %v2759_v20, %v10235_v19  ;;  %v10244_v25 = vadd.f32 %v10228_v12, %v10132_v27  ;;  %v2745_v46 = vsel %vm2233_vm7, %v1977_v54, %v2489_v21  ;;  %v10251_v51 = vadd.f32 %v10222_v7, %v10140_v31  ;;  %v10259_v56 = vpop.f32.mrb[12].mxu1 }
 0x118   : > { %14300 = vst [vmem:[#allocation21_spill] sm:$0xff] %v10240_v24  ;;  %8707 = vmatprep.subr.bf16.mxu1 %v8706_v17  ;;  %v1690_v52 = vadd.f32 %v10228_v12, %v10140_v31  ;;  %v10257_v53 = vadd.f32 %v10222_v7, %v10130_v26  ;;  %v2761_v57 = vsel %vm2249_vm8, %v1993_v59, %v2505_v23  ;;  %v10270_v3 = vpop.f32.mrb[12].mxu0  ;;  %v10272_v5 = vpop.f32.mrb[13].mxu1 }
 0x119   : > { %14301 = vst [vmem:[#allocation22_spill] sm:$0xff] %v10244_v25  ;;  %14302 = vst [vmem:[#allocation23_spill] sm:$0xff] %v10251_v51  ;;  %8677 = vmatpush1.bf16.msra.mxu0 %v8676_v22  ;;  %v2008_v58 = vadd.f32 %v10218_v0, %v10240_v24  ;;  %v2024_v54 = vadd.f32 %v10246_v44, %v10244_v25  ;;  %v10268_v62 = vadd.f32 %v10228_v12, %v10130_v26  ;;  %v10279_v10 = vpop.f32.mrb[13].mxu0 }
 0x11a   : > { %14303 = vst [vmem:[#allocation24_spill] sm:$0xff] %v10257_v53  ;;  %v8708_v4 = vpack.c.bf16 %v2761_v57, %v2745_v46  ;;  %v2010_v6 = vadd.f32 %v10218_v0, %v10251_v51  ;;  %v2026_v59 = vadd.f32 %v10246_v44, %v1690_v52  ;;  %v2007_v9 = vadd.f32 %v10218_v0, %v10257_v53 }
 0x11b   : > { %14304 = vst [vmem:[#allocation25_spill] sm:$0xff] %v10268_v62  ;;  %vm2264_vm9 = vcmp.gt.f32.partialorder %v2008_v58, 0.0  ;;  %vm2280_vm10 = vcmp.gt.f32.partialorder %v2024_v54, 0.0  ;;  %v2520_v13 = vmul.f32 0.33, %v2008_v58  ;;  %v2023_v14 = vadd.f32 %v10246_v44, %v10268_v62  ;;  %v10283_v22 = vpop.f32.mrb[14].mxu1 }
 0x11c   : > { %8709 = vmatpush1.bf16.msra.mxu1 %v8708_v4  ;;  %v2536_v15 = vmul.f32 0.33, %v2024_v54  ;;  %vm2266_vm11 = vcmp.gt.f32.partialorder %v2010_v6, 0.0  ;;  %vm2282_vm12 = vcmp.gt.f32.partialorder %v2026_v59, 0.0  ;;  %v2522_v17 = vmul.f32 0.33, %v2010_v6 }
 0x11d   : > { %v2776_v20 = vsel %vm2264_vm9, %v2008_v58, %v2520_v13  ;;  %v2538_v21 = vmul.f32 0.33, %v2026_v59  ;;  %vm2263_vm13 = vcmp.gt.f32.partialorder %v2007_v9, 0.0  ;;  %vm2279_vm14 = vcmp.gt.f32.partialorder %v2023_v14, 0.0  ;;  %v10285_v2 = vpop.f32.mrb[15].mxu1 }
 0x11e   : > { %v2792_v23 = vsel %vm2280_vm10, %v2024_v54, %v2536_v15  ;;  %v2778_v46 = vsel %vm2266_vm11, %v2010_v6, %v2522_v17  ;;  %v2519_v52 = vmul.f32 0.33, %v2007_v9  ;;  %v2535_v57 = vmul.f32 0.33, %v2023_v14  ;;  %v10300_v6 = vpop.permute.xlu0 %1917 }
 0x11f   : > { %v8678_v51 = vpack.c.bf16 %v2792_v23, %v2776_v20  ;;  %v10287_v43 = vsel %vm2282_vm12, %v2026_v59, %v2538_v21  ;;  %v1673_v4 = vadd.f32 %v10222_v7, %v10138_v30  ;;  %v10293_v58 = vadd.f32 %v10228_v12, %v10138_v30 }
 0x120   : > { %14305 = vst [vmem:[#allocation26_spill] sm:$0xff] %v10287_v43  ;;  %v8710_v13 = vpack.c.bf16 %v10287_v43, %v2778_v46  ;;  %v2775_v45 = vsel %vm2263_vm13, %v2007_v9, %v2519_v52  ;;  %v2791_v19 = vsel %vm2279_vm14, %v2023_v14, %v2535_v57  ;;  %v10298_v54 = vadd.f32 %v10210_v60, %v10132_v27  ;;  %v10309_v9 = vpop.f32.mrb[16].mxu1 }
 0x121   : > { %14306 = vst [vmem:[#allocation27_spill] sm:$0xff] %v10293_v58  ;;  %8679 = vmatprep.subr.bf16.mxu0 %v8678_v51  ;;  %v8680_v59 = vpack.c.bf16 %v2791_v19, %v2775_v45  ;;  %v2009_v15 = vadd.f32 %v10218_v0, %v1673_v4  ;;  %v2025_v17 = vadd.f32 %v10246_v44, %v10293_v58  ;;  %v10325_v51 = vpop.permute.xlu1 %1922  ;;  %v10327_v52 = vpop.f32.mrb[17].mxu1 }
 0x122   : > { %14307 = vst [vmem:[#allocation28_spill] sm:$0xff] %v10298_v54  ;;  %v10307_v20 = vadd.f32 %v10220_v1, %v10132_v27  ;;  %8711 = vmatprep.subr.bf16.mxu1 %v8710_v13  ;;  %v2040_v14 = vadd.f32 %v10300_v6, %v10298_v54  ;;  %v10315_v21 = vadd.f32 %v10210_v60, %v10140_v31 }
 0x123   : > { %v10319_v45 = vadd.f32 %v10220_v1, %v10140_v31  ;;  %v10323_v19 = vadd.f32 %v10210_v60, %v10130_v26  ;;  %8681 = vmatpush1.bf16.msra.mxu0 %v8680_v59  ;;  %vm2265_vm15 = vcmp.gt.f32.partialorder %v2009_v15, 0.0  ;;  %vm2281_vm1 = vcmp.gt.f32.partialorder %v2025_v17, 0.0 }
 0x124   : > { %14308 = vst [vmem:[#allocation29_spill] sm:$0xff] %v10307_v20  ;;  %14309 = vst [vmem:[#allocation30_spill] sm:$0xff] %v10315_v21  ;;  %v2521_v23 = vmul.f32 0.33, %v2009_v15  ;;  %v2537_v46 = vmul.f32 0.33, %v2025_v17  ;;  %v2056_v57 = vadd.f32 %v10325_v51, %v10307_v20  ;;  %v2042_v13 = vadd.f32 %v10300_v6, %v10315_v21 }
 0x125   : > { %14310 = vst [vmem:[#allocation31_spill] sm:$0xff] %v10319_v45  ;;  %14311 = vst [vmem:[#allocation32_spill] sm:$0xff] %v10323_v19  ;;  %vm2296_vm2 = vcmp.gt.f32.partialorder %v2040_v14, 0.0  ;;  %v2552_v4 = vmul.f32 0.33, %v2040_v14  ;;  %v2058_v59 = vadd.f32 %v10325_v51, %v10319_v45  ;;  %v10339_v58 = vadd.f32 %v10220_v1, %v10130_v26 }
 0x126   : > { %v10333_v54 = vsel %vm2265_vm15, %v2009_v15, %v2521_v23  ;;  %v2793_v43 = vsel %vm2281_vm1, %v2025_v17, %v2537_v46  ;;  %vm2312_vm3 = vcmp.gt.f32.partialorder %v2056_v57, 0.0  ;;  %v2568_v49 = vmul.f32 0.33, %v2056_v57 }
 0x127   : > { %14312 = vst [vmem:[#allocation33_spill] sm:$0xff] %v10333_v54  ;;  %14313 = vst [vmem:[#allocation34_spill] sm:$0xff] %v10339_v58  ;;  %v8712_v47 = vpack.c.bf16 %v2793_v43, %v10333_v54  ;;  %v2808_v20 = vsel %vm2296_vm2, %v2040_v14, %v2552_v4  ;;  %vm2298_vm4 = vcmp.gt.f32.partialorder %v2042_v13, 0.0  ;;  %vm2314_vm5 = vcmp.gt.f32.partialorder %v2058_v59, 0.0 }
 0x128   : > { %v2554_v24 = vmul.f32 0.33, %v2042_v13  ;;  %v2570_v53 = vmul.f32 0.33, %v2058_v59  ;;  %v2824_v15 = vsel %vm2312_vm3, %v2056_v57, %v2568_v49  ;;  %v2039_v17 = vadd.f32 %v10300_v6, %v10323_v19 }
 0x129   : > { %8713 = vmatpush1.bf16.msra.mxu1 %v8712_v47  ;;  %v2055_v23 = vadd.f32 %v10325_v51, %v10339_v58  ;;  %v10348_v46 = vadd.f32 %v10210_v60, %v10138_v30  ;;  %v8682_v43 = vpack.c.bf16 %v2824_v15, %v2808_v20  ;;  %v10352_v14 = vadd.f32 %v10220_v1, %v10138_v30 }
 0x12a   : > { %v2810_v21 = vsel %vm2298_vm4, %v2042_v13, %v2554_v24  ;;  %v2826_v45 = vsel %vm2314_vm5, %v2058_v59, %v2570_v53  ;;  %vm2295_vm6 = vcmp.gt.f32.partialorder %v2039_v17, 0.0  ;;  %v2551_v47 = vmul.f32 0.33, %v2039_v17  ;;  %v10374_v13 = vpop.permute.xlu0 %1927  ;;  %v10376_v59 = vpop.permute.xlu1 %1932 }
 0x12b   : > { %14314 = vst [vmem:[#allocation35_spill] sm:$0xff] %v10348_v46  ;;  %14315 = vst [vmem:[#allocation36_spill] sm:$0xff] %v10352_v14  ;;  %v8714_v4 = vpack.c.bf16 %v2826_v45, %v2810_v21  ;;  %vm2311_vm7 = vcmp.gt.f32.partialorder %v2055_v23, 0.0  ;;  %8683 = vmatprep.subr.bf16.mxu0 %v8682_v43  ;;  %v2567_v49 = vmul.f32 0.33, %v2055_v23  ;;  %v2041_v57 = vadd.f32 %v10300_v6, %v10348_v46 }
 0x12c   : > { %v2057_v19 = vadd.f32 %v10325_v51, %v10352_v14  ;;  %v10360_v24 = vadd.f32 %v10259_v56, %v10132_v27  ;;  %v2807_v53 = vsel %vm2295_vm6, %v2039_v17, %v2551_v47  ;;  %v10364_v20 = vadd.f32 %v10272_v5, %v10132_v27 }
 0x12d   : > { %8715 = vmatprep.subr.bf16.mxu1 %v8714_v4  ;;  %v10368_v21 = vadd.f32 %v10259_v56, %v10140_v31  ;;  %v10372_v45 = vadd.f32 %v10272_v5, %v10140_v31  ;;  %v2823_v15 = vsel %vm2311_vm7, %v2055_v23, %v2567_v49  ;;  %vm2297_vm8 = vcmp.gt.f32.partialorder %v2041_v57, 0.0 }
 0x12e   : > { %14316 = vst [vmem:[#allocation37_spill] sm:$0xff] %v10360_v24  ;;  %14317 = vst [vmem:[#allocation38_spill] sm:$0xff] %v10364_v20  ;;  %vm2313_vm9 = vcmp.gt.f32.partialorder %v2057_v19, 0.0  ;;  %v2553_v17 = vmul.f32 0.33, %v2041_v57  ;;  %v8684_v43 = vpack.c.bf16 %v2823_v15, %v2807_v53  ;;  %v2072_v47 = vadd.f32 %v10374_v13, %v10360_v24 }
 0x12f   : > { %14318 = vst [vmem:[#allocation39_spill] sm:$0xff] %v10368_v21  ;;  %14319 = vst [vmem:[#allocation40_spill] sm:$0xff] %v10372_v45  ;;  %v2569_v4 = vmul.f32 0.33, %v2057_v19  ;;  %v2088_v46 = vadd.f32 %v10376_v59, %v10364_v20  ;;  %v2074_v58 = vadd.f32 %v10374_v13, %v10368_v21  ;;  %v2090_v54 = vadd.f32 %v10376_v59, %v10372_v45 }
 0x130   : > { %v2809_v14 = vsel %vm2297_vm8, %v2041_v57, %v2553_v17  ;;  %v10388_v23 = vadd.f32 %v10259_v56, %v10130_v26  ;;  %8685 = vmatpush1.bf16.msra.mxu0 %v8684_v43  ;;  %vm2328_vm10 = vcmp.gt.f32.partialorder %v2072_v47, 0.0  ;;  %v2584_v53 = vmul.f32 0.33, %v2072_v47 }
 0x131   : > { %v2825_v49 = vsel %vm2313_vm9, %v2057_v19, %v2569_v4  ;;  %vm2344_vm11 = vcmp.gt.f32.partialorder %v2088_v46, 0.0  ;;  %v2600_v24 = vmul.f32 0.33, %v2088_v46  ;;  %vm2330_vm12 = vcmp.gt.f32.partialorder %v2074_v58, 0.0 }
 0x132   : > { %14320 = vst [vmem:[#allocation41_spill] sm:$0xff] %v10388_v23  ;;  %v8716_v15 = vpack.c.bf16 %v2825_v49, %v2809_v14  ;;  %vm2346_vm13 = vcmp.gt.f32.partialorder %v2090_v54, 0.0  ;;  %v2840_v57 = vsel %vm2328_vm10, %v2072_v47, %v2584_v53  ;;  %v2586_v17 = vmul.f32 0.33, %v2074_v58 }
 0x133   : > { %v2602_v20 = vmul.f32 0.33, %v2090_v54  ;;  %v10392_v21 = vadd.f32 %v10272_v5, %v10130_v26  ;;  %v2856_v45 = vsel %vm2344_vm11, %v2088_v46, %v2600_v24  ;;  %v2071_v43 = vadd.f32 %v10374_v13, %v10388_v23 }
 0x134   : > { %8717 = vmatpush1.bf16.msra.mxu1 %v8716_v15  ;;  %v10398_v19 = vadd.f32 %v10259_v56, %v10138_v30  ;;  %v10402_v14 = vadd.f32 %v10272_v5, %v10138_v30  ;;  %v8686_v4 = vpack.c.bf16 %v2856_v45, %v2840_v57  ;;  %v2842_v47 = vsel %vm2330_vm12, %v2074_v58, %v2586_v17  ;;  %v10414_v58 = vpop.permute.xlu0 %1937  ;;  %v10420_v17 = vpop.permute.xlu1 %1942 }
 0x135   : > { %14321 = vst [vmem:[#allocation42_spill] sm:$0xff] %v10392_v21  ;;  %v2858_v49 = vsel %vm2346_vm13, %v2090_v54, %v2602_v20  ;;  %v2087_v53 = vadd.f32 %v10376_v59, %v10392_v21  ;;  %vm2327_vm14 = vcmp.gt.f32.partialorder %v2071_v43, 0.0  ;;  %v2583_v46 = vmul.f32 0.33, %v2071_v43 }
 0x136   : > { %14322 = vst [vmem:[#allocation43_spill] sm:$0xff] %v10398_v19  ;;  %14323 = vst [vmem:[#allocation44_spill] sm:$0xff] %v10402_v14  ;;  %v8718_v42 = vpack.c.bf16 %v2858_v49, %v2842_v47  ;;  %v2073_v24 = vadd.f32 %v10374_v13, %v10398_v19  ;;  %8687 = vmatprep.subr.bf16.mxu0 %v8686_v4  ;;  %v2089_v23 = vadd.f32 %v10376_v59, %v10402_v14 }
 0x137   : > { %vm2343_vm15 = vcmp.gt.f32.partialorder %v2087_v53, 0.0  ;;  %v2599_v15 = vmul.f32 0.33, %v2087_v53  ;;  %v10412_v45 = vadd.f32 %v10226_v11, %v10132_v27  ;;  %v2839_v54 = vsel %vm2327_vm14, %v2071_v43, %v2583_v46 }
 0x138   : > { %8719 = vmatprep.subr.bf16.mxu1 %v8718_v42  ;;  %vm2329_vm1 = vcmp.gt.f32.partialorder %v2073_v24, 0.0  ;;  %v2585_v20 = vmul.f32 0.33, %v2073_v24  ;;  %v10418_v57 = vadd.f32 %v10232_v16, %v10132_v27  ;;  %vm2345_vm2 = vcmp.gt.f32.partialorder %v2089_v23, 0.0 }
 0x139   : > { %14324 = vst [vmem:[#allocation45_spill] sm:$0xff] %v10412_v45  ;;  %v2855_v4 = vsel %vm2343_vm15, %v2087_v53, %v2599_v15  ;;  %v2601_v47 = vmul.f32 0.33, %v2089_v23  ;;  %v2104_v49 = vadd.f32 %v10414_v58, %v10412_v45  ;;  %v10428_v43 = vadd.f32 %v10226_v11, %v10140_v31 }
 0x13a   : > { %14325 = vst [vmem:[#allocation46_spill] sm:$0xff] %v10418_v57  ;;  %v8688_v19 = vpack.c.bf16 %v2855_v4, %v2839_v54  ;;  %v2841_v14 = vsel %vm2329_vm1, %v2073_v24, %v2585_v20  ;;  %v2120_v42 = vadd.f32 %v10420_v17, %v10418_v57  ;;  %v10432_v53 = vadd.f32 %v10232_v16, %v10140_v31  ;;  %v10466_v57 = vpop.permute.xlu0 %1947 }
 0x13b   : > { %14326 = vst [vmem:[#allocation47_spill] sm:$0xff] %v10428_v43  ;;  %v2857_v46 = vsel %vm2345_vm2, %v2089_v23, %v2601_v47  ;;  %vm2360_vm3 = vcmp.gt.f32.partialorder %v2104_v49, 0.0  ;;  %v2616_v21 = vmul.f32 0.33, %v2104_v49  ;;  %v2106_v24 = vadd.f32 %v10414_v58, %v10428_v43 }
 0x13c   : > { %14327 = vst [vmem:[#allocation48_spill] sm:$0xff] %v10432_v53  ;;  %8689 = vmatpush1.bf16.msra.mxu0 %v8688_v19  ;;  %v8720_v15 = vpack.c.bf16 %v2857_v46, %v2841_v14  ;;  %vm2376_vm4 = vcmp.gt.f32.partialorder %v2120_v42, 0.0  ;;  %v2632_v45 = vmul.f32 0.33, %v2120_v42  ;;  %v2122_v20 = vadd.f32 %v10420_v17, %v10432_v53 }
 0x13d   : > { %v2872_v54 = vsel %vm2360_vm3, %v2104_v49, %v2616_v21  ;;  %v10440_v23 = vadd.f32 %v10226_v11, %v10130_v26  ;;  %v10444_v4 = vadd.f32 %v10232_v16, %v10130_v26  ;;  %vm2362_vm5 = vcmp.gt.f32.partialorder %v2106_v24, 0.0 }
 0x13e   : > { %8721 = vmatpush1.bf16.msra.mxu1 %v8720_v15  ;;  %v2888_v19 = vsel %vm2376_vm4, %v2120_v42, %v2632_v45  ;;  %v2618_v14 = vmul.f32 0.33, %v2106_v24  ;;  %v10448_v47 = vadd.f32 %v10226_v11, %v10138_v30  ;;  %vm2378_vm6 = vcmp.gt.f32.partialorder %v2122_v20, 0.0 }
 0x13f   : > { %14328 = vst [vmem:[#allocation49_spill] sm:$0xff] %v10440_v23  ;;  %14329 = vst [vmem:[#allocation50_spill] sm:$0xff] %v10444_v4  ;;  %v8690_v21 = vpack.c.bf16 %v2888_v19, %v2872_v54  ;;  %v2634_v49 = vmul.f32 0.33, %v2122_v20  ;;  %v2103_v46 = vadd.f32 %v10414_v58, %v10440_v23  ;;  %v2119_v53 = vadd.f32 %v10420_v17, %v10444_v4 }
 0x140   : > { %14330 = vst [vmem:[#allocation51_spill] sm:$0xff] %v10448_v47  ;;  %v2874_v43 = vsel %vm2362_vm5, %v2106_v24, %v2618_v14  ;;  %v10456_v15 = vadd.f32 %v10232_v16, %v10138_v30  ;;  %v2105_v45 = vadd.f32 %v10414_v58, %v10448_v47  ;;  %v10462_v19 = vadd.f32 %v10283_v22, %v10132_v27 }
 0x141   : > { %8691 = vmatprep.subr.bf16.mxu0 %v8690_v21  ;;  %v2890_v42 = vsel %vm2378_vm6, %v2122_v20, %v2634_v49  ;;  %vm2359_vm7 = vcmp.gt.f32.partialorder %v2103_v46, 0.0  ;;  %v2615_v54 = vmul.f32 0.33, %v2103_v46  ;;  %vm2375_vm8 = vcmp.gt.f32.partialorder %v2119_v53, 0.0  ;;  %v10472_v21 = vpop.permute.xlu1 %1952 }
 0x142   : > { %14331 = vst [vmem:[#allocation52_spill] sm:$0xff] %v10456_v15  ;;  %14332 = vst [vmem:[#allocation53_spill] sm:$0xff] %v10462_v19  ;;  %v8722_v23 = vpack.c.bf16 %v2890_v42, %v2874_v43  ;;  %v2631_v24 = vmul.f32 0.33, %v2119_v53  ;;  %v2121_v14 = vadd.f32 %v10420_v17, %v10456_v15  ;;  %vm2361_vm9 = vcmp.gt.f32.partialorder %v2105_v45, 0.0 }
 0x143   : > { %v2871_v4 = vsel %vm2359_vm7, %v2103_v46, %v2615_v54  ;;  %v2617_v8 = vmul.f32 0.33, %v2105_v45  ;;  %v10470_v20 = vadd.f32 %v10285_v2, %v10132_v27  ;;  %v2136_v42 = vadd.f32 %v10466_v57, %v10462_v19 }
 0x144   : > { %8723 = vmatprep.subr.bf16.mxu1 %v8722_v23  ;;  %v2887_v49 = vsel %vm2375_vm8, %v2119_v53, %v2631_v24  ;;  %vm2377_vm10 = vcmp.gt.f32.partialorder %v2121_v14, 0.0  ;;  %v2633_v43 = vmul.f32 0.33, %v2121_v14  ;;  %v10480_v54 = vadd.f32 %v10283_v22, %v10140_v31 }
 0x145   : > { %14333 = vst [vmem:[#allocation54_spill] sm:$0xff] %v10470_v20  ;;  %v8692_v47 = vpack.c.bf16 %v2887_v49, %v2871_v4  ;;  %v2873_v15 = vsel %vm2361_vm9, %v2105_v45, %v2617_v8  ;;  %v2152_v46 = vadd.f32 %v10472_v21, %v10470_v20  ;;  %vm2392_vm11 = vcmp.gt.f32.partialorder %v2136_v42, 0.0 }
 0x146   : > { %14334 = vst [vmem:[#allocation55_spill] sm:$0xff] %v10480_v54  ;;  %v2889_v25 = vsel %vm2377_vm10, %v2121_v14, %v2633_v43  ;;  %v2648_v62 = vmul.f32 0.33, %v2136_v42  ;;  %v10484_v53 = vadd.f32 %v10285_v2, %v10140_v31  ;;  %v2138_v8 = vadd.f32 %v10466_v57, %v10480_v54 }
 0x147   : > { %8693 = vmatpush1.bf16.msra.mxu0 %v8692_v47  ;;  %v8724_v23 = vpack.c.bf16 %v2889_v25, %v2873_v15  ;;  %vm2408_vm12 = vcmp.gt.f32.partialorder %v2152_v46, 0.0  ;;  %v2664_v24 = vmul.f32 0.33, %v2152_v46  ;;  %v10492_v14 = vadd.f32 %v10283_v22, %v10130_v26 }
 0x148   : > { %14335 = vst [vmem:[#allocation56_spill] sm:$0xff] %v10484_v53  ;;  %v2904_v4 = vsel %vm2392_vm11, %v2136_v42, %v2648_v62  ;;  %v2154_v45 = vadd.f32 %v10472_v21, %v10484_v53  ;;  %v10496_v49 = vadd.f32 %v10285_v2, %v10130_v26  ;;  %vm2394_vm13 = vcmp.gt.f32.partialorder %v2138_v8, 0.0 }
 0x149   : > { %14336 = vst [vmem:[#allocation57_spill] sm:$0xff] %v10492_v14  ;;  %8725 = vmatpush1.bf16.msra.mxu1 %v8724_v23  ;;  %v2920_v47 = vsel %vm2408_vm12, %v2152_v46, %v2664_v24  ;;  %v2650_v25 = vmul.f32 0.33, %v2138_v8  ;;  %v10500_v15 = vadd.f32 %v10283_v22, %v10138_v30  ;;  %v2135_v42 = vadd.f32 %v10466_v57, %v10492_v14  ;;  %v10518_v14 = vpop.permute.xlu0 %1957 }
 0x14a   : > { %14337 = vst [vmem:[#allocation58_spill] sm:$0xff] %v10496_v49  ;;  %v8694_v62 = vpack.c.bf16 %v2920_v47, %v2904_v4  ;;  %vm2410_vm14 = vcmp.gt.f32.partialorder %v2154_v45, 0.0  ;;  %v2666_v43 = vmul.f32 0.33, %v2154_v45  ;;  %v2151_v53 = vadd.f32 %v10472_v21, %v10496_v49 }
 0x14b   : > { %14338 = vst [vmem:[#allocation59_spill] sm:$0xff] %v10500_v15  ;;  %v2906_v54 = vsel %vm2394_vm13, %v2138_v8, %v2650_v25  ;;  %v10508_v23 = vadd.f32 %v10285_v2, %v10138_v30  ;;  %v2137_v46 = vadd.f32 %v10466_v57, %v10500_v15  ;;  %vm2391_vm15 = vcmp.gt.f32.partialorder %v2135_v42, 0.0 }
 0x14c   : > { %8695 = vmatprep.subr.bf16.mxu0 %v8694_v62  ;;  %v2922_v24 = vsel %vm2410_vm14, %v2154_v45, %v2666_v43  ;;  %v2647_v4 = vmul.f32 0.33, %v2135_v42  ;;  %v10514_v47 = vadd.f32 %v10270_v3, %v10132_v27  ;;  %vm2407_vm1 = vcmp.gt.f32.partialorder %v2151_v53, 0.0  ;;  %v10524_v62 = vpop.permute.xlu1 %1962 }
 0x14d   : > { %14339 = vst [vmem:[#allocation60_spill] sm:$0xff] %v10508_v23  ;;  %v8726_v19 = vpack.c.bf16 %v2922_v24, %v2906_v54  ;;  %v2663_v8 = vmul.f32 0.33, %v2151_v53  ;;  %v2153_v25 = vadd.f32 %v10472_v21, %v10508_v23  ;;  %vm2393_vm2 = vcmp.gt.f32.partialorder %v2137_v46, 0.0 }
 0x14e   : > { %14340 = vst [vmem:[#allocation61_spill] sm:$0xff] %v10514_v47  ;;  %v2903_v20 = vsel %vm2391_vm15, %v2135_v42, %v2647_v4  ;;  %v2649_v49 = vmul.f32 0.33, %v2137_v46  ;;  %v10522_v45 = vadd.f32 %v10279_v10, %v10132_v27  ;;  %v2168_v24 = vadd.f32 %v10518_v14, %v10514_v47 }
 0x14f   : > { %8727 = vmatprep.subr.bf16.mxu1 %v8726_v19  ;;  %v2919_v43 = vsel %vm2407_vm1, %v2151_v53, %v2663_v8  ;;  %vm2409_vm3 = vcmp.gt.f32.partialorder %v2153_v25, 0.0  ;;  %v2665_v54 = vmul.f32 0.33, %v2153_v25  ;;  %v10532_v4 = vadd.f32 %v10270_v3, %v10140_v31 }
 0x150   : > { %14341 = vst [vmem:[#allocation62_spill] sm:$0xff] %v10522_v45  ;;  %v8696_v15 = vpack.c.bf16 %v2919_v43, %v2903_v20  ;;  %v2905_v23 = vsel %vm2393_vm2, %v2137_v46, %v2649_v49  ;;  %v2184_v42 = vadd.f32 %v10524_v62, %v10522_v45  ;;  %vm2424_vm4 = vcmp.gt.f32.partialorder %v2168_v24, 0.0 }
 0x151   : > { %14342 = vst [vmem:[#allocation63_spill] sm:$0xff] %v10532_v4  ;;  %v2921_v48 = vsel %vm2409_vm3, %v2153_v25, %v2665_v54  ;;  %v2680_v55 = vmul.f32 0.33, %v2168_v24  ;;  %v10536_v19 = vadd.f32 %v10279_v10, %v10140_v31  ;;  %v2170_v20 = vadd.f32 %v10518_v14, %v10532_v4 }
 0x152   : > { %8697 = vmatpush1.bf16.msra.mxu0 %v8696_v15  ;;  %v8728_v53 = vpack.c.bf16 %v2921_v48, %v2905_v23  ;;  %vm2440_vm5 = vcmp.gt.f32.partialorder %v2184_v42, 0.0  ;;  %v2696_v8 = vmul.f32 0.33, %v2184_v42  ;;  %v10544_v25 = vadd.f32 %v10270_v3, %v10130_v26 }
 0x153   : > { %14343 = vst [vmem:[#allocation64_spill] sm:$0xff] %v10536_v19  ;;  %v2936_v49 = vsel %vm2424_vm4, %v2168_v24, %v2680_v55  ;;  %v2186_v46 = vadd.f32 %v10524_v62, %v10536_v19  ;;  %v10548_v43 = vadd.f32 %v10279_v10, %v10130_v26  ;;  %vm2426_vm6 = vcmp.gt.f32.partialorder %v2170_v20, 0.0 }
 0x154   : > { %14344 = vst [vmem:[#allocation65_spill] sm:$0xff] %v10544_v25  ;;  %8729 = vmatpush1.bf16.msra.mxu1 %v8728_v53  ;;  %v2952_v15 = vsel %vm2440_vm5, %v2184_v42, %v2696_v8  ;;  %v2682_v48 = vmul.f32 0.33, %v2170_v20  ;;  %v10552_v23 = vadd.f32 %v10270_v3, %v10138_v30  ;;  %v2167_v24 = vadd.f32 %v10518_v14, %v10544_v25  ;;  %v10570_v25 = vpop.permute.xlu0 %1967 }
 0x155   : > { %14345 = vst [vmem:[#allocation66_spill] sm:$0xff] %v10548_v43  ;;  %v8698_v55 = vpack.c.bf16 %v2952_v15, %v2936_v49  ;;  %vm2442_vm7 = vcmp.gt.f32.partialorder %v2186_v46, 0.0  ;;  %v2698_v54 = vmul.f32 0.33, %v2186_v46  ;;  %v2183_v19 = vadd.f32 %v10524_v62, %v10548_v43 }
 0x156   : > { %14346 = vst [vmem:[#allocation67_spill] sm:$0xff] %v10552_v23  ;;  %v2938_v4 = vsel %vm2426_vm6, %v2170_v20, %v2682_v48  ;;  %v10560_v53 = vadd.f32 %v10279_v10, %v10138_v30  ;;  %v2169_v42 = vadd.f32 %v10518_v14, %v10552_v23  ;;  %vm2423_vm8 = vcmp.gt.f32.partialorder %v2167_v24, 0.0 }
 0x157   : > { %8699 = vmatprep.subr.bf16.mxu0 %v8698_v55  ;;  %v2954_v8 = vsel %vm2442_vm7, %v2186_v46, %v2698_v54  ;;  %v2679_v49 = vmul.f32 0.33, %v2167_v24  ;;  %v10566_v15 = vadd.f32 %v10309_v9, %v10132_v27  ;;  %vm2439_vm9 = vcmp.gt.f32.partialorder %v2183_v19, 0.0  ;;  %v10576_v55 = vpop.permute.xlu1 %1972 }
 0x158   : > { %14347 = vst [vmem:[#allocation68_spill] sm:$0xff] %v10560_v53  ;;  %v8730_v47 = vpack.c.bf16 %v2954_v8, %v2938_v4  ;;  %v2695_v20 = vmul.f32 0.33, %v2183_v19  ;;  %v2185_v48 = vadd.f32 %v10524_v62, %v10560_v53  ;;  %vm2425_vm10 = vcmp.gt.f32.partialorder %v2169_v42, 0.0 }
 0x159   : > { %14348 = vst [vmem:[#allocation69_spill] sm:$0xff] %v10566_v15  ;;  %v2935_v45 = vsel %vm2423_vm8, %v2167_v24, %v2679_v49  ;;  %v2681_v43 = vmul.f32 0.33, %v2169_v42  ;;  %v10574_v46 = vadd.f32 %v10327_v52, %v10132_v27  ;;  %v2200_v8 = vadd.f32 %v10570_v25, %v10566_v15 }
 0x15a   : > { %8731 = vmatprep.subr.bf16.mxu1 %v8730_v47  ;;  %v2951_v54 = vsel %vm2439_vm9, %v2183_v19, %v2695_v20  ;;  %vm2441_vm11 = vcmp.gt.f32.partialorder %v2185_v48, 0.0  ;;  %v2697_v4 = vmul.f32 0.33, %v2185_v48  ;;  %v10584_v49 = vadd.f32 %v10309_v9, %v10140_v31 }
 0x15b   : > { %14349 = vst [vmem:[#allocation70_spill] sm:$0xff] %v10574_v46  ;;  %v8700_v23 = vpack.c.bf16 %v2951_v54, %v2935_v45  ;;  %v2937_v53 = vsel %vm2425_vm10, %v2169_v42, %v2681_v43  ;;  %v2216_v24 = vadd.f32 %v10576_v55, %v10574_v46  ;;  %vm2456_vm12 = vcmp.gt.f32.partialorder %v2200_v8, 0.0 }
 0x15c   : > { %14350 = vst [vmem:[#allocation71_spill] sm:$0xff] %v10584_v49  ;;  %v2953_v27 = vsel %vm2441_vm11, %v2185_v48, %v2697_v4  ;;  %v2712_v36 = vmul.f32 0.33, %v2200_v8  ;;  %v10588_v47 = vadd.f32 %v10327_v52, %v10140_v31  ;;  %v2202_v45 = vadd.f32 %v10570_v25, %v10584_v49 }
 0x15d   : > { %8701 = vmatpush1.bf16.msra.mxu0 %v8700_v23  ;;  %v8732_v19 = vpack.c.bf16 %v2953_v27, %v2937_v53  ;;  %vm2472_vm13 = vcmp.gt.f32.partialorder %v2216_v24, 0.0  ;;  %v2728_v20 = vmul.f32 0.33, %v2216_v24  ;;  %v10596_v48 = vadd.f32 %v10309_v9, %v10130_v26 }
 0x15e   : > { %14351 = vst [vmem:[#allocation72_spill] sm:$0xff] %v10588_v47  ;;  %v2968_v43 = vsel %vm2456_vm12, %v2200_v8, %v2712_v36  ;;  %v2218_v42 = vadd.f32 %v10576_v55, %v10588_v47  ;;  %v10600_v54 = vadd.f32 %v10327_v52, %v10130_v26  ;;  %vm2458_vm14 = vcmp.gt.f32.partialorder %v2202_v45, 0.0 }
 0x15f   : > { %14352 = vst [vmem:[#allocation73_spill] sm:$0xff] %v10596_v48  ;;  %8733 = vmatpush1.bf16.msra.mxu1 %v8732_v19  ;;  %v2984_v31 = vsel %vm2472_vm13, %v2216_v24, %v2728_v20  ;;  %v2714_v23 = vmul.f32 0.33, %v2202_v45  ;;  %v10604_v53 = vadd.f32 %v10309_v9, %v10138_v30  ;;  %v2199_v8 = vadd.f32 %v10570_v25, %v10596_v48 }
 0x160   : > { %14353 = vst [vmem:[#allocation74_spill] sm:$0xff] %v10600_v54  ;;  %v8702_v36 = vpack.c.bf16 %v2984_v31, %v2968_v43  ;;  %vm2474_vm15 = vcmp.gt.f32.partialorder %v2218_v42, 0.0  ;;  %v2730_v4 = vmul.f32 0.33, %v2218_v42  ;;  %v2215_v49 = vadd.f32 %v10576_v55, %v10600_v54 }
 0x161   : > { %14354 = vst [vmem:[#allocation75_spill] sm:$0xff] %v10604_v53  ;;  %v2970_v27 = vsel %vm2458_vm14, %v2202_v45, %v2714_v23  ;;  %v10612_v26 = vadd.f32 %v10327_v52, %v10138_v30  ;;  %v2201_v24 = vadd.f32 %v10570_v25, %v10604_v53  ;;  %vm2455_vm1 = vcmp.gt.f32.partialorder %v2199_v8, 0.0 }
 0x162   : > { %8703 = vmatprep.subr.bf16.mxu0 %v8702_v36  ;;  %v2986_v19 = vsel %vm2474_vm15, %v2218_v42, %v2730_v4  ;;  %v2711_v20 = vmul.f32 0.33, %v2199_v8  ;;  %v10618_v43 = vadd.f32 %v10162_v41, %v10136_v29  ;;  %vm2471_vm2 = vcmp.gt.f32.partialorder %v2215_v49, 0.0 }
 0x163   : > { %14355 = vst [vmem:[#allocation76_spill] sm:$0xff] %v10612_v26  ;;  %v8734_v31 = vpack.c.bf16 %v2986_v19, %v2970_v27  ;;  %v2727_v45 = vmul.f32 0.33, %v2215_v49  ;;  %v2217_v23 = vadd.f32 %v10576_v55, %v10612_v26  ;;  %vm2457_vm3 = vcmp.gt.f32.partialorder %v2201_v24, 0.0 }
 0x164   : > { %14356 = vst [vmem:[#allocation77_spill] sm:$0xff] %v10618_v43  ;;  %v2967_v47 = vsel %vm2455_vm1, %v2199_v8, %v2711_v20  ;;  %v2713_v30 = vmul.f32 0.33, %v2201_v24  ;;  %v1980_v53 = vadd.f32 %v10150_v35, %v10216_v63  ;;  %v1996_v4 = vadd.f32 %v10192_v50, %v10618_v43 }
 0x165   : > { %8735 = vmatprep.subr.bf16.mxu1 %v8734_v31  ;;  %v2983_v42 = vsel %vm2471_vm2, %v2215_v49, %v2727_v45  ;;  %vm2473_vm4 = vcmp.gt.f32.partialorder %v2217_v23, 0.0  ;;  %v2729_v36 = vmul.f32 0.33, %v2217_v23  ;;  %v10628_v8 = vadd.f32 %v10158_v39, %v10148_v18 }
 0x166   : > { %v8704_v15 = vpack.c.bf16 %v2983_v42, %v2967_v47  ;;  %v2969_v27 = vsel %vm2457_vm3, %v2201_v24, %v2713_v30  ;;  %vm2236_vm5 = vcmp.gt.f32.partialorder %v1980_v53, 0.0  ;;  %v2492_v19 = vmul.f32 0.33, %v1980_v53  ;;  %v10637_v47 = vld [vmem:[%s14020_s3] sm:$0xff] }
 0x167   : > { %v2985_v48 = vsel %vm2473_vm4, %v2217_v23, %v2729_v36  ;;  %vm2252_vm6 = vcmp.gt.f32.partialorder %v1996_v4, 0.0  ;;  %v2508_v26 = vmul.f32 0.33, %v1996_v4  ;;  %14357 = vst [vmem:[#allocation78_spill] sm:$0xff] %v10628_v8  ;;  %v10632_v49 = vadd.f32 %v10162_v41, %v10148_v18 }
 0x168   : > { %8705 = vmatpush1.bf16.msra.mxu0 %v8704_v15  ;;  %v8736_v20 = vpack.c.bf16 %v2985_v48, %v2969_v27  ;;  %v2748_v31 = vsel %vm2236_vm5, %v1980_v53, %v2492_v19  ;;  %v10641_v24 = vadd.f32 %v10158_v39, %v10134_v28  ;;  %v1982_v23 = vadd.f32 %v10150_v35, %v10628_v8 }
 0x169   : > { %14358 = vst [vmem:[#allocation79_spill] sm:$0xff] %v10632_v49  ;;  %v2764_v45 = vsel %vm2252_vm6, %v1996_v4, %v2508_v26  ;;  %v10647_v15 = vadd.f32 %v10162_v41, %v10134_v28  ;;  %v10651_v48 = vadd.f32 %v10158_v39, %v10146_v34  ;;  %v1998_v30 = vadd.f32 %v10192_v50, %v10632_v49 }
 0x16a   : > { %14359 = vst [vmem:[#allocation80_spill] sm:$0xff] %v10641_v24  ;;  %8737 = vmatpush1.bf16.msra.mxu1 %v8736_v20  ;;  %v8738_v53 = vpack.c.bf16 %v2764_v45, %v2748_v31  ;;  %v1979_v42 = vadd.f32 %v10150_v35, %v10641_v24  ;;  %v10659_v26 = vadd.f32 %v10162_v41, %v10146_v34  ;;  %vm2238_vm7 = vcmp.gt.f32.partialorder %v1982_v23, 0.0 }
 0x16b   : > { %14360 = vst [vmem:[#allocation81_spill] sm:$0xff] %v10647_v15  ;;  %14361 = vst [vmem:[#allocation82_spill] sm:$0xff] %v10651_v48  ;;  %v2494_v36 = vmul.f32 0.33, %v1982_v23  ;;  %4025 = vmatmul.mubr.f32.vlgmr.msra.gmra.mrb[14].mxu0 %v10637_v47  ;;  %v1995_v4 = vadd.f32 %v10192_v50, %v10647_v15  ;;  %v1981_v27 = vadd.f32 %v10150_v35, %v10651_v48  ;;  %vm2254_vm8 = vcmp.gt.f32.partialorder %v1998_v30, 0.0 }
 0x16c   : > { %14362 = vst [vmem:[#allocation83_spill] sm:$0xff] %v10659_v26  ;;  %8739 = vmatprep.subr.bf16.mxu0 %v8738_v53  ;;  %v2510_v19 = vmul.f32 0.33, %v1998_v30  ;;  %vm2235_vm9 = vcmp.gt.f32.partialorder %v1979_v42, 0.0  ;;  %v2491_v20 = vmul.f32 0.33, %v1979_v42  ;;  %v1997_v54 = vadd.f32 %v10192_v50, %v10659_v26 }
 0x16d   : > { %v14363_v31 = vmov 0.0   ;;  %v2750_v45 = vsel %vm2238_vm7, %v1982_v23, %v2494_v36  ;;  %4096 = vmatmul.mubr.f32.vlgmr.msra.gmra.mrb[18].mxu1 %v10637_v47  ;;  %vm2251_vm10 = vcmp.gt.f32.partialorder %v1995_v4, 0.0  ;;  %v2507_v46 = vmul.f32 0.33, %v1995_v4 }
 0x16e   : > { %4166 = vmatprep.mubr.f32.mxu0 %v14363_v31  ;;  %v2766_v8 = vsel %vm2254_vm8, %v1998_v30, %v2510_v19  ;;  %v2747_v49 = vsel %vm2235_vm9, %v1979_v42, %v2491_v20  ;;  %vm2237_vm11 = vcmp.gt.f32.partialorder %v1981_v27, 0.0  ;;  %v2493_v63 = vmul.f32 0.33, %v1981_v27  ;;  %4237 = vmatprep.mubr.f32.mxu1 %v14363_v31 }
 0x16f   : > { %v8770_v53 = vpack.c.bf16 %v2766_v8, %v2750_v45  ;;  %v2763_v48 = vsel %vm2251_vm10, %v1995_v4, %v2507_v46  ;;  %vm2253_vm12 = vcmp.gt.f32.partialorder %v1997_v54, 0.0  ;;  %v2509_v24 = vmul.f32 0.33, %v1997_v54 }
 0x170   : > { %v8740_v43 = vpack.c.bf16 %v2763_v48, %v2747_v49  ;;  %v2749_v15 = vsel %vm2237_vm11, %v1981_v27, %v2493_v63  ;;  %v10673_v23 = vadd.f32 %v10222_v7, %v10136_v29  ;;  %v10677_v36 = vadd.f32 %v10228_v12, %v10136_v29 }
 0x171   : > { %8771 = vmatprep.subr.bf16.mxu1 %v8770_v53  ;;  %v2765_v30 = vsel %vm2253_vm12, %v1997_v54, %v2509_v24  ;;  %v10681_v42 = vadd.f32 %v10222_v7, %v10148_v18  ;;  %v10685_v46 = vadd.f32 %v10228_v12, %v10148_v18  ;;  %v10689_v63 = vadd.f32 %v10222_v7, %v10134_v28 }
 0x172   : > { %14364 = vst [vmem:[#allocation84_spill] sm:$0xff] %v10673_v23  ;;  %14365 = vst [vmem:[#allocation85_spill] sm:$0xff] %v10677_v36  ;;  %8741 = vmatpush1.bf16.msra.mxu0 %v8740_v43  ;;  %v8772_v8 = vpack.c.bf16 %v2765_v30, %v2749_v15  ;;  %v2012_v49 = vadd.f32 %v10218_v0, %v10673_v23  ;;  %v2028_v54 = vadd.f32 %v10246_v44, %v10677_v36 }
 0x173   : > { %14366 = vst [vmem:[#allocation86_spill] sm:$0xff] %v10681_v42  ;;  %14367 = vst [vmem:[#allocation87_spill] sm:$0xff] %v10685_v46  ;;  %v10697_v24 = vadd.f32 %v10228_v12, %v10134_v28  ;;  %v2014_v48 = vadd.f32 %v10218_v0, %v10681_v42  ;;  %v2030_v4 = vadd.f32 %v10246_v44, %v10685_v46 }
 0x174   : > { %14368 = vst [vmem:[#allocation88_spill] sm:$0xff] %v10689_v63  ;;  %v2011_v43 = vadd.f32 %v10218_v0, %v10689_v63  ;;  %v10707_v15 = vadd.f32 %v10222_v7, %v10146_v34  ;;  %8773 = vmatpush1.bf16.msra.mxu1 %v8772_v8  ;;  %vm2268_vm13 = vcmp.gt.f32.partialorder %v2012_v49, 0.0  ;;  %vm2284_vm14 = vcmp.gt.f32.partialorder %v2028_v54, 0.0 }
 0x175   : > { %14369 = vst [vmem:[#allocation89_spill] sm:$0xff] %v10697_v24  ;;  %v2524_v27 = vmul.f32 0.33, %v2012_v49  ;;  %v2540_v19 = vmul.f32 0.33, %v2028_v54  ;;  %vm2270_vm15 = vcmp.gt.f32.partialorder %v2014_v48, 0.0  ;;  %v2027_v42 = vadd.f32 %v10246_v44, %v10697_v24 }
 0x176   : > { %14370 = vst [vmem:[#allocation90_spill] sm:$0xff] %v10707_v15  ;;  %vm2286_vm1 = vcmp.gt.f32.partialorder %v2030_v4, 0.0  ;;  %v2526_v20 = vmul.f32 0.33, %v2014_v48  ;;  %v2542_v45 = vmul.f32 0.33, %v2030_v4  ;;  %v10713_v61 = vadd.f32 %v10228_v12, %v10146_v34 }
 0x177   : > { %v2780_v53 = vsel %vm2268_vm13, %v2012_v49, %v2524_v27  ;;  %v2796_v30 = vsel %vm2284_vm14, %v2028_v54, %v2540_v19  ;;  %vm2267_vm2 = vcmp.gt.f32.partialorder %v2011_v43, 0.0  ;;  %v2523_v63 = vmul.f32 0.33, %v2011_v43 }
 0x178   : > { %v8742_v46 = vpack.c.bf16 %v2796_v30, %v2780_v53  ;;  %v2782_v26 = vsel %vm2270_vm15, %v2014_v48, %v2526_v20  ;;  %v2798_v23 = vsel %vm2286_vm1, %v2030_v4, %v2542_v45  ;;  %vm2283_vm3 = vcmp.gt.f32.partialorder %v2027_v42, 0.0  ;;  %14371 = vst [vmem:[#allocation91_spill] sm:$0xff] %v10713_v61 }
 0x179   : > { %v8774_v36 = vpack.c.bf16 %v2798_v23, %v2782_v26  ;;  %v2539_v8 = vmul.f32 0.33, %v2027_v42  ;;  %v2779_v37 = vsel %vm2267_vm2, %v2011_v43, %v2523_v63  ;;  %v2013_v49 = vadd.f32 %v10218_v0, %v10707_v15 }
 0x17a   : > { %8743 = vmatprep.subr.bf16.mxu0 %v8742_v46  ;;  %v10719_v54 = vadd.f32 %v10210_v60, %v10136_v29  ;;  %v1724_v48 = vadd.f32 %v10220_v1, %v10136_v29  ;;  %v2029_v23 = vadd.f32 %v10246_v44, %v10713_v61  ;;  %v10727_v4 = vadd.f32 %v10210_v60, %v10148_v18 }
 0x17b   : > { %8775 = vmatprep.subr.bf16.mxu1 %v8774_v36  ;;  %v2795_v26 = vsel %vm2283_vm3, %v2027_v42, %v2539_v8  ;;  %v10731_v46 = vadd.f32 %v10220_v1, %v10148_v18  ;;  %vm2269_vm4 = vcmp.gt.f32.partialorder %v2013_v49, 0.0  ;;  %v2525_v43 = vmul.f32 0.33, %v2013_v49 }
 0x17c   : > { %14372 = vst [vmem:[#allocation92_spill] sm:$0xff] %v10719_v54  ;;  %14373 = vst [vmem:[#allocation93_spill] sm:$0xff] %v10727_v4  ;;  %v8744_v63 = vpack.c.bf16 %v2795_v26, %v2779_v37  ;;  %v2044_v27 = vadd.f32 %v10300_v6, %v10719_v54  ;;  %vm2285_vm5 = vcmp.gt.f32.partialorder %v2029_v23, 0.0  ;;  %v2541_v36 = vmul.f32 0.33, %v2029_v23 }
 0x17d   : > { %14374 = vst [vmem:[#allocation94_spill] sm:$0xff] %v10731_v46  ;;  %v2060_v42 = vadd.f32 %v10325_v51, %v1724_v48  ;;  %v2046_v19 = vadd.f32 %v10300_v6, %v10727_v4  ;;  %v2781_v20 = vsel %vm2269_vm4, %v2013_v49, %v2525_v43  ;;  %v2062_v53 = vadd.f32 %v10325_v51, %v10731_v46 }
 0x17e   : > { %8745 = vmatpush1.bf16.msra.mxu0 %v8744_v63  ;;  %vm2300_vm6 = vcmp.gt.f32.partialorder %v2044_v27, 0.0  ;;  %v2556_v45 = vmul.f32 0.33, %v2044_v27  ;;  %v2797_v37 = vsel %vm2285_vm5, %v2029_v23, %v2541_v36  ;;  %v1707_v63 = vadd.f32 %v10210_v60, %v10134_v28 }
 0x17f   : > { %vm2316_vm7 = vcmp.gt.f32.partialorder %v2060_v42, 0.0  ;;  %v2572_v30 = vmul.f32 0.33, %v2060_v42  ;;  %vm2302_vm8 = vcmp.gt.f32.partialorder %v2046_v19, 0.0  ;;  %v8776_v8 = vpack.c.bf16 %v2797_v37, %v2781_v20 }
 0x180   : > { %v2812_v26 = vsel %vm2300_vm6, %v2044_v27, %v2556_v45  ;;  %vm2318_vm9 = vcmp.gt.f32.partialorder %v2062_v53, 0.0  ;;  %v2558_v54 = vmul.f32 0.33, %v2046_v19  ;;  %v2574_v48 = vmul.f32 0.33, %v2062_v53 }
 0x181   : > { %v10740_v15 = vsel %vm2316_vm7, %v2060_v42, %v2572_v30  ;;  %v10746_v49 = vadd.f32 %v10220_v1, %v10134_v28  ;;  %8777 = vmatpush1.bf16.msra.mxu1 %v8776_v8  ;;  %v10751_v36 = vadd.f32 %v10210_v60, %v10146_v34  ;;  %v10755_v27 = vadd.f32 %v10220_v1, %v10146_v34 }
 0x182   : > { %14375 = vst [vmem:[#allocation95_spill] sm:$0xff] %v10740_v15  ;;  %v8746_v23 = vpack.c.bf16 %v10740_v15, %v2812_v26  ;;  %v2814_v43 = vsel %vm2302_vm8, %v2046_v19, %v2558_v54  ;;  %v2830_v42 = vsel %vm2318_vm9, %v2062_v53, %v2574_v48  ;;  %v2043_v20 = vadd.f32 %v10300_v6, %v1707_v63 }
 0x183   : > { %14376 = vst [vmem:[#allocation96_spill] sm:$0xff] %v10746_v49  ;;  %14377 = vst [vmem:[#allocation97_spill] sm:$0xff] %v10751_v36  ;;  %v2059_v45 = vadd.f32 %v10325_v51, %v10746_v49  ;;  %v10762_v37 = vadd.f32 %v10259_v56, %v10136_v29  ;;  %v8778_v54 = vpack.c.bf16 %v2830_v42, %v2814_v43 }
 0x184   : > { %14378 = vst [vmem:[#allocation98_spill] sm:$0xff] %v10755_v27  ;;  %8747 = vmatprep.subr.bf16.mxu0 %v8746_v23  ;;  %v2045_v19 = vadd.f32 %v10300_v6, %v10751_v36  ;;  %v2061_v30 = vadd.f32 %v10325_v51, %v10755_v27  ;;  %v10770_v53 = vadd.f32 %v10272_v5, %v10136_v29  ;;  %vm2299_vm10 = vcmp.gt.f32.partialorder %v2043_v20, 0.0 }
 0x185   : > { %14379 = vst [vmem:[#allocation99_spill] sm:$0xff] %v10762_v37  ;;  %vm2315_vm11 = vcmp.gt.f32.partialorder %v2059_v45, 0.0  ;;  %v2555_v8 = vmul.f32 0.33, %v2043_v20  ;;  %v2571_v26 = vmul.f32 0.33, %v2059_v45  ;;  %8779 = vmatprep.subr.bf16.mxu1 %v8778_v54  ;;  %v2076_v42 = vadd.f32 %v10374_v13, %v10762_v37 }
 0x186   : > { %14380 = vst [vmem:[#allocation100_spill] sm:$0xff] %v10770_v53  ;;  %vm2301_vm12 = vcmp.gt.f32.partialorder %v2045_v19, 0.0  ;;  %vm2317_vm13 = vcmp.gt.f32.partialorder %v2061_v30, 0.0  ;;  %v2557_v48 = vmul.f32 0.33, %v2045_v19  ;;  %v2092_v4 = vadd.f32 %v10376_v59, %v10770_v53 }
 0x187   : > { %v2573_v63 = vmul.f32 0.33, %v2061_v30  ;;  %v10772_v23 = vsel %vm2299_vm10, %v2043_v20, %v2555_v8  ;;  %v2827_v43 = vsel %vm2315_vm11, %v2059_v45, %v2571_v26  ;;  %v10781_v54 = vadd.f32 %v10259_v56, %v10148_v18 }
 0x188   : > { %14381 = vst [vmem:[#allocation101_spill] sm:$0xff] %v10772_v23  ;;  %v8748_v36 = vpack.c.bf16 %v2827_v43, %v10772_v23  ;;  %v2813_v46 = vsel %vm2301_vm12, %v2045_v19, %v2557_v48  ;;  %vm2332_vm14 = vcmp.gt.f32.partialorder %v2076_v42, 0.0  ;;  %vm2348_vm15 = vcmp.gt.f32.partialorder %v2092_v4, 0.0 }
 0x189   : > { %v2829_v27 = vsel %vm2317_vm13, %v2061_v30, %v2573_v63  ;;  %14382 = vst [vmem:[#allocation102_spill] sm:$0xff] %v10781_v54  ;;  %v2588_v20 = vmul.f32 0.33, %v2076_v42  ;;  %v2604_v45 = vmul.f32 0.33, %v2092_v4  ;;  %v1758_v8 = vadd.f32 %v10272_v5, %v10148_v18 }
 0x18a   : > { %v8780_v15 = vpack.c.bf16 %v2829_v27, %v2813_v46  ;;  %8749 = vmatpush1.bf16.msra.mxu0 %v8748_v36  ;;  %v2078_v26 = vadd.f32 %v10374_v13, %v10781_v54  ;;  %v10789_v19 = vadd.f32 %v10259_v56, %v10134_v28  ;;  %v10793_v46 = vadd.f32 %v10272_v5, %v10134_v28 }
 0x18b   : > { %v2844_v30 = vsel %vm2332_vm14, %v2076_v42, %v2588_v20  ;;  %v1741_v36 = vadd.f32 %v10259_v56, %v10146_v34  ;;  %v10799_v27 = vadd.f32 %v10272_v5, %v10146_v34  ;;  %v2860_v48 = vsel %vm2348_vm15, %v2092_v4, %v2604_v45 }
 0x18c   : > { %14383 = vst [vmem:[#allocation103_spill] sm:$0xff] %v10789_v19  ;;  %8781 = vmatpush1.bf16.msra.mxu1 %v8780_v15  ;;  %14384 = vst [vmem:[#allocation104_spill] sm:$0xff] %v10793_v46  ;;  %v2094_v63 = vadd.f32 %v10376_v59, %v1758_v8  ;;  %vm2334_vm1 = vcmp.gt.f32.partialorder %v2078_v26, 0.0  ;;  %v2590_v43 = vmul.f32 0.33, %v2078_v26  ;;  %v8750_v54 = vpack.c.bf16 %v2860_v48, %v2844_v30 }
 0x18d   : > { %14385 = vst [vmem:[#allocation105_spill] sm:$0xff] %v10799_v27  ;;  %v2075_v15 = vadd.f32 %v10374_v13, %v10789_v19  ;;  %v2091_v42 = vadd.f32 %v10376_v59, %v10793_v46  ;;  %v2077_v20 = vadd.f32 %v10374_v13, %v1741_v36  ;;  %v2093_v53 = vadd.f32 %v10376_v59, %v10799_v27 }
 0x18e   : > { %vm2350_vm2 = vcmp.gt.f32.partialorder %v2094_v63, 0.0  ;;  %v2606_v23 = vmul.f32 0.33, %v2094_v63  ;;  %v2846_v37 = vsel %vm2334_vm1, %v2078_v26, %v2590_v43  ;;  %8751 = vmatprep.subr.bf16.mxu0 %v8750_v54  ;;  %v10816_v54 = vadd.f32 %v10226_v11, %v10136_v29 }
 0x18f   : > { %vm2331_vm3 = vcmp.gt.f32.partialorder %v2075_v15, 0.0  ;;  %vm2347_vm4 = vcmp.gt.f32.partialorder %v2091_v42, 0.0  ;;  %v2587_v4 = vmul.f32 0.33, %v2075_v15  ;;  %v2603_v45 = vmul.f32 0.33, %v2091_v42 }
 0x190   : > { %v10809_v8 = vsel %vm2350_vm2, %v2094_v63, %v2606_v23  ;;  %vm2333_vm5 = vcmp.gt.f32.partialorder %v2077_v20, 0.0  ;;  %vm2349_vm6 = vcmp.gt.f32.partialorder %v2093_v53, 0.0  ;;  %v2589_v30 = vmul.f32 0.33, %v2077_v20  ;;  %14388 = vst [vmem:[#allocation108_spill] sm:$0xff] %v10816_v54 }
 0x191   : > { %14386 = vst [vmem:[#allocation106_spill] sm:$0xff] %v10809_v8  ;;  %v8782_v48 = vpack.c.bf16 %v10809_v8, %v2846_v37  ;;  %v2843_v19 = vsel %vm2331_vm3, %v2075_v15, %v2587_v4  ;;  %v2859_v36 = vsel %vm2347_vm4, %v2091_v42, %v2603_v45  ;;  %v2605_v46 = vmul.f32 0.33, %v2093_v53 }
 0x192   : > { %v8752_v49 = vpack.c.bf16 %v2859_v36, %v2843_v19  ;;  %v10812_v26 = vsel %vm2333_vm5, %v2077_v20, %v2589_v30  ;;  %v10820_v43 = vadd.f32 %v10232_v16, %v10136_v29  ;;  %v10824_v63 = vadd.f32 %v10226_v11, %v10148_v18 }
 0x193   : > { %14387 = vst [vmem:[#allocation107_spill] sm:$0xff] %v10812_v26  ;;  %8783 = vmatprep.subr.bf16.mxu1 %v8782_v48  ;;  %v2861_v23 = vsel %vm2349_vm6, %v2093_v53, %v2605_v46  ;;  %v10828_v37 = vadd.f32 %v10232_v16, %v10148_v18  ;;  %v10832_v19 = vadd.f32 %v10226_v11, %v10134_v28 }
 0x194   : > { %14389 = vst [vmem:[#allocation109_spill] sm:$0xff] %v10820_v43  ;;  %14390 = vst [vmem:[#allocation110_spill] sm:$0xff] %v10824_v63  ;;  %8753 = vmatpush1.bf16.msra.mxu0 %v8752_v49  ;;  %v8784_v15 = vpack.c.bf16 %v2861_v23, %v10812_v26  ;;  %v2108_v42 = vadd.f32 %v10414_v58, %v10816_v54  ;;  %v2124_v53 = vadd.f32 %v10420_v17, %v10820_v43 }
 0x195   : > { %14391 = vst [vmem:[#allocation111_spill] sm:$0xff] %v10828_v37  ;;  %14392 = vst [vmem:[#allocation112_spill] sm:$0xff] %v10832_v19  ;;  %v10841_v46 = vadd.f32 %v10232_v16, %v10134_v28  ;;  %v2110_v20 = vadd.f32 %v10414_v58, %v10824_v63  ;;  %v2126_v4 = vadd.f32 %v10420_v17, %v10828_v37 }
 0x196   : > { %v2107_v49 = vadd.f32 %v10414_v58, %v10832_v19  ;;  %v10851_v45 = vadd.f32 %v10226_v11, %v10146_v34  ;;  %8785 = vmatpush1.bf16.msra.mxu1 %v8784_v15  ;;  %vm2364_vm7 = vcmp.gt.f32.partialorder %v2108_v42, 0.0  ;;  %vm2380_vm8 = vcmp.gt.f32.partialorder %v2124_v53, 0.0 }
 0x197   : > { %14393 = vst [vmem:[#allocation113_spill] sm:$0xff] %v10841_v46  ;;  %v2620_v30 = vmul.f32 0.33, %v2108_v42  ;;  %v2636_v48 = vmul.f32 0.33, %v2124_v53  ;;  %vm2366_vm9 = vcmp.gt.f32.partialorder %v2110_v20, 0.0  ;;  %v2123_v37 = vadd.f32 %v10420_v17, %v10841_v46 }
 0x198   : > { %14394 = vst [vmem:[#allocation114_spill] sm:$0xff] %v10851_v45  ;;  %vm2382_vm10 = vcmp.gt.f32.partialorder %v2126_v4, 0.0  ;;  %v2622_v36 = vmul.f32 0.33, %v2110_v20  ;;  %v2638_v23 = vmul.f32 0.33, %v2126_v4  ;;  %v10857_v61 = vadd.f32 %v10232_v16, %v10146_v34 }
 0x199   : > { %v2876_v63 = vsel %vm2364_vm7, %v2108_v42, %v2620_v30  ;;  %v2892_v54 = vsel %vm2380_vm8, %v2124_v53, %v2636_v48  ;;  %vm2363_vm11 = vcmp.gt.f32.partialorder %v2107_v49, 0.0  ;;  %v2619_v8 = vmul.f32 0.33, %v2107_v49 }
 0x19a   : > { %v8754_v19 = vpack.c.bf16 %v2892_v54, %v2876_v63  ;;  %v2878_v43 = vsel %vm2366_vm9, %v2110_v20, %v2622_v36  ;;  %v2894_v26 = vsel %vm2382_vm10, %v2126_v4, %v2638_v23  ;;  %vm2379_vm12 = vcmp.gt.f32.partialorder %v2123_v37, 0.0  ;;  %14395 = vst [vmem:[#allocation115_spill] sm:$0xff] %v10857_v61 }
 0x19b   : > { %v8786_v27 = vpack.c.bf16 %v2894_v26, %v2878_v43  ;;  %v2635_v15 = vmul.f32 0.33, %v2123_v37  ;;  %v2875_v24 = vsel %vm2363_vm11, %v2107_v49, %v2619_v8  ;;  %v2109_v42 = vadd.f32 %v10414_v58, %v10851_v45 }
 0x19c   : > { %8755 = vmatprep.subr.bf16.mxu0 %v8754_v19  ;;  %v10863_v53 = vadd.f32 %v10283_v22, %v10136_v29  ;;  %v10867_v54 = vadd.f32 %v10285_v2, %v10136_v29  ;;  %v2125_v43 = vadd.f32 %v10420_v17, %v10857_v61  ;;  %v10873_v63 = vadd.f32 %v10283_v22, %v10148_v18 }
 0x19d   : > { %8787 = vmatprep.subr.bf16.mxu1 %v8786_v27  ;;  %v2891_v26 = vsel %vm2379_vm12, %v2123_v37, %v2635_v15  ;;  %v10877_v8 = vadd.f32 %v10285_v2, %v10148_v18  ;;  %vm2365_vm13 = vcmp.gt.f32.partialorder %v2109_v42, 0.0  ;;  %v2621_v20 = vmul.f32 0.33, %v2109_v42 }
 0x19e   : > { %14396 = vst [vmem:[#allocation116_spill] sm:$0xff] %v10863_v53  ;;  %14397 = vst [vmem:[#allocation117_spill] sm:$0xff] %v10867_v54  ;;  %v8756_v19 = vpack.c.bf16 %v2891_v26, %v2875_v24  ;;  %v2140_v4 = vadd.f32 %v10466_v57, %v10863_v53  ;;  %vm2381_vm14 = vcmp.gt.f32.partialorder %v2125_v43, 0.0  ;;  %v2637_v27 = vmul.f32 0.33, %v2125_v43 }
 0x19f   : > { %14398 = vst [vmem:[#allocation118_spill] sm:$0xff] %v10873_v63  ;;  %14399 = vst [vmem:[#allocation119_spill] sm:$0xff] %v10877_v8  ;;  %v2156_v37 = vadd.f32 %v10472_v21, %v10867_v54  ;;  %v2142_v49 = vadd.f32 %v10466_v57, %v10873_v63  ;;  %v2877_v30 = vsel %vm2365_vm13, %v2109_v42, %v2621_v20 }
 0x1a0   : > { %8757 = vmatpush1.bf16.msra.mxu0 %v8756_v19  ;;  %vm2396_vm15 = vcmp.gt.f32.partialorder %v2140_v4, 0.0  ;;  %v2652_v48 = vmul.f32 0.33, %v2140_v4  ;;  %v2158_v24 = vadd.f32 %v10472_v21, %v10877_v8  ;;  %v2893_v36 = vsel %vm2381_vm14, %v2125_v43, %v2637_v27 }
 0x1a1   : > { %vm2412_vm1 = vcmp.gt.f32.partialorder %v2156_v37, 0.0  ;;  %v2668_v23 = vmul.f32 0.33, %v2156_v37  ;;  %vm2398_vm2 = vcmp.gt.f32.partialorder %v2142_v49, 0.0  ;;  %v8788_v15 = vpack.c.bf16 %v2893_v36, %v2877_v30 }
 0x1a2   : > { %v2908_v26 = vsel %vm2396_vm15, %v2140_v4, %v2652_v48  ;;  %vm2414_vm3 = vcmp.gt.f32.partialorder %v2158_v24, 0.0  ;;  %v2654_v45 = vmul.f32 0.33, %v2142_v49  ;;  %v2670_v53 = vmul.f32 0.33, %v2158_v24 }
 0x1a3   : > { %v2924_v61 = vsel %vm2412_vm1, %v2156_v37, %v2668_v23  ;;  %v10889_v63 = vadd.f32 %v10283_v22, %v10134_v28  ;;  %v10893_v42 = vadd.f32 %v10285_v2, %v10134_v28  ;;  %8789 = vmatpush1.bf16.msra.mxu1 %v8788_v15  ;;  %v10897_v20 = vadd.f32 %v10283_v22, %v10146_v34 }
 0x1a4   : > { %v8758_v19 = vpack.c.bf16 %v2924_v61, %v2908_v26  ;;  %v2910_v43 = vsel %vm2398_vm2, %v2142_v49, %v2654_v45  ;;  %v10901_v4 = vadd.f32 %v10285_v2, %v10146_v34  ;;  %v2926_v27 = vsel %vm2414_vm3, %v2158_v24, %v2670_v53 }
 0x1a5   : > { %14400 = vst [vmem:[#allocation120_spill] sm:$0xff] %v10889_v63  ;;  %14401 = vst [vmem:[#allocation121_spill] sm:$0xff] %v10893_v42  ;;  %v2139_v37 = vadd.f32 %v10466_v57, %v10889_v63  ;;  %v2155_v30 = vadd.f32 %v10472_v21, %v10893_v42  ;;  %v10909_v48 = vadd.f32 %v10270_v3, %v10136_v29 }
 0x1a6   : > { %14402 = vst [vmem:[#allocation122_spill] sm:$0xff] %v10897_v20  ;;  %14403 = vst [vmem:[#allocation123_spill] sm:$0xff] %v10901_v4  ;;  %8759 = vmatprep.subr.bf16.mxu0 %v8758_v19  ;;  %v8790_v61 = vpack.c.bf16 %v2926_v27, %v2910_v43  ;;  %v2141_v45 = vadd.f32 %v10466_v57, %v10897_v20  ;;  %v2157_v49 = vadd.f32 %v10472_v21, %v10901_v4 }
 0x1a7   : > { %14404 = vst [vmem:[#allocation124_spill] sm:$0xff] %v10909_v48  ;;  %v10917_v53 = vadd.f32 %v10279_v10, %v10136_v29  ;;  %vm2395_vm4 = vcmp.gt.f32.partialorder %v2139_v37, 0.0  ;;  %vm2411_vm5 = vcmp.gt.f32.partialorder %v2155_v30, 0.0  ;;  %v2651_v24 = vmul.f32 0.33, %v2139_v37 }
 0x1a8   : > { %v2667_v36 = vmul.f32 0.33, %v2155_v30  ;;  %8791 = vmatprep.subr.bf16.mxu1 %v8790_v61  ;;  %vm2397_vm6 = vcmp.gt.f32.partialorder %v2141_v45, 0.0  ;;  %vm2413_vm7 = vcmp.gt.f32.partialorder %v2157_v49, 0.0  ;;  %v2653_v23 = vmul.f32 0.33, %v2141_v45 }
 0x1a9   : > { %14405 = vst [vmem:[#allocation125_spill] sm:$0xff] %v10917_v53  ;;  %v2669_v15 = vmul.f32 0.33, %v2157_v49  ;;  %v2907_v26 = vsel %vm2395_vm4, %v2139_v37, %v2651_v24  ;;  %v2172_v43 = vadd.f32 %v10518_v14, %v10909_v48  ;;  %v2188_v27 = vadd.f32 %v10524_v62, %v10917_v53 }
 0x1aa   : > { %v2923_v19 = vsel %vm2411_vm5, %v2155_v30, %v2667_v36  ;;  %v2909_v8 = vsel %vm2397_vm6, %v2141_v45, %v2653_v23  ;;  %v10925_v63 = vadd.f32 %v10270_v3, %v10148_v18  ;;  %v10929_v30 = vadd.f32 %v10279_v10, %v10148_v18 }
 0x1ab   : > { %v8760_v20 = vpack.c.bf16 %v2923_v19, %v2907_v26  ;;  %v2925_v4 = vsel %vm2413_vm7, %v2157_v49, %v2669_v15  ;;  %vm2428_vm8 = vcmp.gt.f32.partialorder %v2172_v43, 0.0  ;;  %vm2444_vm9 = vcmp.gt.f32.partialorder %v2188_v27, 0.0 }
 0x1ac   : > { %14406 = vst [vmem:[#allocation126_spill] sm:$0xff] %v10925_v63  ;;  %v8792_v61 = vpack.c.bf16 %v2925_v4, %v2909_v8  ;;  %v2684_v54 = vmul.f32 0.33, %v2172_v43  ;;  %v2700_v37 = vmul.f32 0.33, %v2188_v27  ;;  %14407 = vst [vmem:[#allocation127_spill] sm:$0xff] %v10929_v30  ;;  %v2174_v24 = vadd.f32 %v10518_v14, %v10925_v63 }
 0x1ad   : > { %8761 = vmatpush1.bf16.msra.mxu0 %v8760_v20  ;;  %v10935_v45 = vadd.f32 %v10270_v3, %v10134_v28  ;;  %v10939_v8 = vadd.f32 %v10279_v10, %v10134_v28  ;;  %v10943_v20 = vadd.f32 %v10270_v3, %v10146_v34  ;;  %v10947_v4 = vadd.f32 %v10279_v10, %v10146_v34 }
 0x1ae   : > { %8793 = vmatpush1.bf16.msra.mxu1 %v8792_v61  ;;  %v2940_v49 = vsel %vm2428_vm8, %v2172_v43, %v2684_v54  ;;  %v2956_v36 = vsel %vm2444_vm9, %v2188_v27, %v2700_v37  ;;  %v2190_v23 = vadd.f32 %v10524_v62, %v10929_v30  ;;  %vm2430_vm10 = vcmp.gt.f32.partialorder %v2174_v24, 0.0 }
 0x1af   : > { %14408 = vst [vmem:[#allocation128_spill] sm:$0xff] %v10935_v45  ;;  %14409 = vst [vmem:[#allocation129_spill] sm:$0xff] %v10939_v8  ;;  %v2686_v15 = vmul.f32 0.33, %v2174_v24  ;;  %v8762_v26 = vpack.c.bf16 %v2956_v36, %v2940_v49  ;;  %v2171_v54 = vadd.f32 %v10518_v14, %v10935_v45  ;;  %v2187_v19 = vadd.f32 %v10524_v62, %v10939_v8 }
 0x1b0   : > { %14410 = vst [vmem:[#allocation130_spill] sm:$0xff] %v10943_v20  ;;  %14411 = vst [vmem:[#allocation131_spill] sm:$0xff] %v10947_v4  ;;  %v2173_v43 = vadd.f32 %v10518_v14, %v10943_v20  ;;  %vm2446_vm11 = vcmp.gt.f32.partialorder %v2190_v23, 0.0  ;;  %v2702_v61 = vmul.f32 0.33, %v2190_v23  ;;  %v2189_v27 = vadd.f32 %v10524_v62, %v10947_v4 }
 0x1b1   : > { %v2942_v63 = vsel %vm2430_vm10, %v2174_v24, %v2686_v15  ;;  %8763 = vmatprep.subr.bf16.mxu0 %v8762_v26  ;;  %vm2427_vm12 = vcmp.gt.f32.partialorder %v2171_v54, 0.0  ;;  %vm2443_vm13 = vcmp.gt.f32.partialorder %v2187_v19, 0.0  ;;  %v2683_v37 = vmul.f32 0.33, %v2171_v54 }
 0x1b2   : > { %v2699_v49 = vmul.f32 0.33, %v2187_v19  ;;  %v2958_v36 = vsel %vm2446_vm11, %v2190_v23, %v2702_v61  ;;  %vm2429_vm14 = vcmp.gt.f32.partialorder %v2173_v43, 0.0  ;;  %vm2445_vm15 = vcmp.gt.f32.partialorder %v2189_v27, 0.0 }
 0x1b3   : > { %v2685_v30 = vmul.f32 0.33, %v2173_v43  ;;  %v8794_v48 = vpack.c.bf16 %v2958_v36, %v2942_v63  ;;  %v2939_v45 = vsel %vm2427_vm12, %v2171_v54, %v2683_v37  ;;  %v2701_v8 = vmul.f32 0.33, %v2189_v27 }
 0x1b4   : > { %v2955_v53 = vsel %vm2443_vm13, %v2187_v19, %v2699_v49  ;;  %v10961_v24 = vadd.f32 %v10309_v9, %v10136_v29  ;;  %v10965_v15 = vadd.f32 %v10327_v52, %v10136_v29  ;;  %v10969_v23 = vadd.f32 %v10309_v9, %v10148_v18 }
 0x1b5   : > { %v8764_v20 = vpack.c.bf16 %v2955_v53, %v2939_v45  ;;  %v2941_v42 = vsel %vm2429_vm14, %v2173_v43, %v2685_v30  ;;  %8795 = vmatprep.subr.bf16.mxu1 %v8794_v48  ;;  %v2957_v26 = vsel %vm2445_vm15, %v2189_v27, %v2701_v8  ;;  %v10973_v63 = vadd.f32 %v10327_v52, %v10148_v18 }
 0x1b6   : > { %14412 = vst [vmem:[#allocation132_spill] sm:$0xff] %v10961_v24  ;;  %14413 = vst [vmem:[#allocation133_spill] sm:$0xff] %v10965_v15  ;;  %v10977_v53 = vadd.f32 %v10309_v9, %v10134_v28  ;;  %v8796_v30 = vpack.c.bf16 %v2957_v26, %v2941_v42  ;;  %v2204_v29 = vadd.f32 %v10570_v25, %v10961_v24 }
 0x1b7   : > { %14414 = vst [vmem:[#allocation134_spill] sm:$0xff] %v10969_v23  ;;  %14415 = vst [vmem:[#allocation135_spill] sm:$0xff] %v10973_v63  ;;  %8765 = vmatpush1.bf16.msra.mxu0 %v8764_v20  ;;  %v2220_v48 = vadd.f32 %v10576_v55, %v10965_v15  ;;  %v10985_v45 = vadd.f32 %v10327_v52, %v10134_v28  ;;  %v2206_v18 = vadd.f32 %v10570_v25, %v10969_v23 }
 0x1b8   : > { %14416 = vst [vmem:[#allocation136_spill] sm:$0xff] %v10977_v53  ;;  %v2222_v8 = vadd.f32 %v10576_v55, %v10973_v63  ;;  %v2203_v20 = vadd.f32 %v10570_v25, %v10977_v53  ;;  %v10995_v42 = vadd.f32 %v10309_v9, %v10146_v34  ;;  %8797 = vmatpush1.bf16.msra.mxu1 %v8796_v30  ;;  %vm2460_vm1 = vcmp.gt.f32.partialorder %v2204_v29, 0.0 }
 0x1b9   : > { %14417 = vst [vmem:[#allocation137_spill] sm:$0xff] %v10985_v45  ;;  %vm2476_vm2 = vcmp.gt.f32.partialorder %v2220_v48, 0.0  ;;  %v2716_v54 = vmul.f32 0.33, %v2204_v29  ;;  %v2732_v19 = vmul.f32 0.33, %v2220_v48  ;;  %v2219_v37 = vadd.f32 %v10576_v55, %v10985_v45 }
 0x1ba   : > { %14418 = vst [vmem:[#allocation138_spill] sm:$0xff] %v10995_v42  ;;  %vm2462_vm3 = vcmp.gt.f32.partialorder %v2206_v18, 0.0  ;;  %vm2478_vm4 = vcmp.gt.f32.partialorder %v2222_v8, 0.0  ;;  %v2718_v28 = vmul.f32 0.33, %v2206_v18  ;;  %vm2459_vm5 = vcmp.gt.f32.partialorder %v2203_v20, 0.0 }
 0x1bb   : > { %v2734_v43 = vmul.f32 0.33, %v2222_v8  ;;  %v2972_v61 = vsel %vm2460_vm1, %v2204_v29, %v2716_v54  ;;  %v2988_v27 = vsel %vm2476_vm2, %v2220_v48, %v2732_v19  ;;  %v2715_v23 = vmul.f32 0.33, %v2203_v20 }
 0x1bc   : > { %v8766_v49 = vpack.c.bf16 %v2988_v27, %v2972_v61  ;;  %v2974_v36 = vsel %vm2462_vm3, %v2206_v18, %v2718_v28  ;;  %vm2475_vm6 = vcmp.gt.f32.partialorder %v2219_v37, 0.0  ;;  %v2731_v30 = vmul.f32 0.33, %v2219_v37 }
 0x1bd   : > { %v2990_v26 = vsel %vm2478_vm4, %v2222_v8, %v2734_v43  ;;  %v11001_v4 = vadd.f32 %v10327_v52, %v10146_v34  ;;  %v2971_v24 = vsel %vm2459_vm5, %v2203_v20, %v2715_v23  ;;  %v2205_v29 = vadd.f32 %v10570_v25, %v10995_v42 }
 0x1be   : > { %v8798_v63 = vpack.c.bf16 %v2990_v26, %v2974_v36  ;;  %8767 = vmatprep.subr.bf16.mxu0 %v8766_v49  ;;  %v11007_v48 = vadd.f32 %v10158_v39, %v10144_v33  ;;  %v11011_v18 = vadd.f32 %v10162_v41, %v10144_v33  ;;  %v2987_v8 = vsel %vm2475_vm6, %v2219_v37, %v2731_v30 }
 0x1bf   : > { %14419 = vst [vmem:[#allocation139_spill] sm:$0xff] %v11001_v4  ;;  %v2221_v54 = vadd.f32 %v10576_v55, %v11001_v4  ;;  %v11017_v34 = vadd.f32 %v10158_v39, %v10160_v40  ;;  %v11021_v23 = vadd.f32 %v10162_v41, %v10160_v40  ;;  %v8768_v20 = vpack.c.bf16 %v2987_v8, %v2971_v24 }
 0x1c0   : > { %14420 = vst [vmem:[#allocation140_spill] sm:$0xff] %v11007_v48  ;;  %8799 = vmatprep.subr.bf16.mxu1 %v8798_v63  ;;  %vm2461_vm7 = vcmp.gt.f32.partialorder %v2205_v29, 0.0  ;;  %v2717_v19 = vmul.f32 0.33, %v2205_v29  ;;  %v1984_v28 = vadd.f32 %v10150_v35, %v11007_v48  ;;  %v2000_v43 = vadd.f32 %v10192_v50, %v11011_v18 }
 0x1c1   : > { %14421 = vst [vmem:[#allocation141_spill] sm:$0xff] %v11017_v34  ;;  %14422 = vst [vmem:[#allocation142_spill] sm:$0xff] %v11021_v23  ;;  %vm2477_vm8 = vcmp.gt.f32.partialorder %v2221_v54, 0.0  ;;  %v2733_v63 = vmul.f32 0.33, %v2221_v54  ;;  %v1986_v61 = vadd.f32 %v10150_v35, %v11017_v34  ;;  %8769 = vmatpush1.bf16.msra.mxu0 %v8768_v20  ;;  %v2002_v24 = vadd.f32 %v10192_v50, %v11021_v23 }
 0x1c2   : > { %v2973_v27 = vsel %vm2461_vm7, %v2205_v29, %v2717_v19  ;;  %vm2240_vm9 = vcmp.gt.f32.partialorder %v1984_v28, 0.0  ;;  %v2496_v37 = vmul.f32 0.33, %v1984_v28  ;;  %vm2256_vm10 = vcmp.gt.f32.partialorder %v2000_v43, 0.0 }
 0x1c3   : > { %v2989_v49 = vsel %vm2477_vm8, %v2221_v54, %v2733_v63  ;;  %v2512_v36 = vmul.f32 0.33, %v2000_v43  ;;  %vm2242_vm11 = vcmp.gt.f32.partialorder %v1986_v61, 0.0  ;;  %vm2258_vm12 = vcmp.gt.f32.partialorder %v2002_v24, 0.0 }
 0x1c4   : > { %v8800_v26 = vpack.c.bf16 %v2989_v49, %v2973_v27  ;;  %v2752_v30 = vsel %vm2240_vm9, %v1984_v28, %v2496_v37  ;;  %v2498_v8 = vmul.f32 0.33, %v1986_v61  ;;  %v2514_v4 = vmul.f32 0.33, %v2002_v24  ;;  %4167 = vmatmul.mubr.f32.vlgmr.msra.gmra.mrb[16].mxu0 %v10637_v47 }
 0x1c5   : > { %v2768_v42 = vsel %vm2256_vm10, %v2000_v43, %v2512_v36  ;;  %v11034_v29 = vadd.f32 %v10158_v39, %v10142_v32  ;;  %v11038_v20 = vadd.f32 %v10162_v41, %v10142_v32  ;;  %v11042_v28 = vadd.f32 %v10158_v39, %v10156_v38  ;;  %4308 = vmatprep.mubr.f32.mxu0 %v14363_v31 }
 0x1c6   : > { %8801 = vmatpush1.bf16.msra.mxu1 %v8800_v26  ;;  %v8802_v54 = vpack.c.bf16 %v2768_v42, %v2752_v30  ;;  %v2754_v19 = vsel %vm2242_vm11, %v1986_v61, %v2498_v8  ;;  %v11046_v63 = vadd.f32 %v10162_v41, %v10156_v38  ;;  %v2770_v43 = vsel %vm2258_vm12, %v2002_v24, %v2514_v4 }
 0x1c7   : > { %14423 = vst [vmem:[#allocation143_spill] sm:$0xff] %v11042_v28  ;;  %v1983_v27 = vadd.f32 %v10150_v35, %v11034_v29  ;;  %v1999_v37 = vadd.f32 %v10192_v50, %v11038_v20  ;;  %v11054_v49 = vadd.f32 %v10222_v7, %v10144_v33  ;;  %v8834_v42 = vpack.c.bf16 %v2770_v43, %v2754_v19 }
 0x1c8   : > { %14424 = vst [vmem:[#allocation144_spill] sm:$0xff] %v11046_v63  ;;  %8803 = vmatprep.subr.bf16.mxu0 %v8802_v54  ;;  %v1985_v61 = vadd.f32 %v10150_v35, %v11042_v28  ;;  %v2001_v4 = vadd.f32 %v10192_v50, %v11046_v63  ;;  %v11063_v24 = vadd.f32 %v10228_v12, %v10144_v33 }
 0x1c9   : > { %14425 = vst [vmem:[#allocation145_spill] sm:$0xff] %v11054_v49  ;;  %4238 = vmatmul.mubr.f32.vlgmr.msra.gmra.mrb[20].mxu1 %v10637_v47  ;;  %vm2239_vm13 = vcmp.gt.f32.partialorder %v1983_v27, 0.0  ;;  %vm2255_vm14 = vcmp.gt.f32.partialorder %v1999_v37, 0.0  ;;  %v2495_v36 = vmul.f32 0.33, %v1983_v27  ;;  %8835 = vmatprep.subr.bf16.mxu1 %v8834_v42  ;;  %v2016_v43 = vadd.f32 %v10218_v0, %v11054_v49 }
 0x1ca   : > { %v2511_v26 = vmul.f32 0.33, %v1999_v37  ;;  %vm2241_vm15 = vcmp.gt.f32.partialorder %v1985_v61, 0.0  ;;  %vm2257_vm1 = vcmp.gt.f32.partialorder %v2001_v4, 0.0  ;;  %v2497_v30 = vmul.f32 0.33, %v1985_v61  ;;  %4379 = vmatprep.mubr.f32.mxu1 %v14363_v31 }
 0x1cb   : > { %v2513_v8 = vmul.f32 0.33, %v2001_v4  ;;  %v2751_v54 = vsel %vm2239_vm13, %v1983_v27, %v2495_v36  ;;  %v2032_v53 = vadd.f32 %v10246_v44, %v11063_v24  ;;  %v11073_v42 = vadd.f32 %v10222_v7, %v10160_v40 }
 0x1cc   : > { %v2767_v19 = vsel %vm2255_vm14, %v1999_v37, %v2511_v26  ;;  %v2753_v15 = vsel %vm2241_vm15, %v1985_v61, %v2497_v30  ;;  %vm2272_vm2 = vcmp.gt.f32.partialorder %v2016_v43, 0.0  ;;  %v2528_v34 = vmul.f32 0.33, %v2016_v43 }
 0x1cd   : > { %v8804_v47 = vpack.c.bf16 %v2767_v19, %v2751_v54  ;;  %v2769_v45 = vsel %vm2257_vm1, %v2001_v4, %v2513_v8  ;;  %14426 = vst [vmem:[#allocation146_spill] sm:$0xff] %v11073_v42  ;;  %vm2288_vm3 = vcmp.gt.f32.partialorder %v2032_v53, 0.0  ;;  %v2544_v27 = vmul.f32 0.33, %v2032_v53 }
 0x1ce   : > { %v8836_v46 = vpack.c.bf16 %v2769_v45, %v2753_v15  ;;  %v11077_v37 = vadd.f32 %v10228_v12, %v10160_v40  ;;  %v2018_v36 = vadd.f32 %v10218_v0, %v11073_v42  ;;  %v11083_v61 = vadd.f32 %v10222_v7, %v10142_v32 }
 0x1cf   : > { %8805 = vmatpush1.bf16.msra.mxu0 %v8804_v47  ;;  %v2784_v4 = vsel %vm2272_vm2, %v2016_v43, %v2528_v34  ;;  %v11087_v15 = vadd.f32 %v10228_v12, %v10142_v32  ;;  %v11091_v45 = vadd.f32 %v10222_v7, %v10156_v38  ;;  %v11095_v26 = vadd.f32 %v10228_v12, %v10156_v38 }
 0x1d0   : > { %14427 = vst [vmem:[#allocation147_spill] sm:$0xff] %v11077_v37  ;;  %14428 = vst [vmem:[#allocation148_spill] sm:$0xff] %v11083_v61  ;;  %8837 = vmatpush1.bf16.msra.mxu1 %v8836_v46  ;;  %v2800_v30 = vsel %vm2288_vm3, %v2032_v53, %v2544_v27  ;;  %v2034_v8 = vadd.f32 %v10246_v44, %v11077_v37  ;;  %vm2274_vm4 = vcmp.gt.f32.partialorder %v2018_v36, 0.0  ;;  %v2530_v54 = vmul.f32 0.33, %v2018_v36 }
 0x1d1   : > { %14429 = vst [vmem:[#allocation149_spill] sm:$0xff] %v11091_v45  ;;  %14430 = vst [vmem:[#allocation150_spill] sm:$0xff] %v11095_v26  ;;  %v8806_v46 = vpack.c.bf16 %v2800_v30, %v2784_v4  ;;  %v2015_v34 = vadd.f32 %v10218_v0, %v11083_v61  ;;  %v2031_v19 = vadd.f32 %v10246_v44, %v11087_v15 }
 0x1d2   : > { %v2017_v43 = vadd.f32 %v10218_v0, %v11091_v45  ;;  %vm2290_vm5 = vcmp.gt.f32.partialorder %v2034_v8, 0.0  ;;  %v2546_v47 = vmul.f32 0.33, %v2034_v8  ;;  %v2786_v42 = vsel %vm2274_vm4, %v2018_v36, %v2530_v54 }
 0x1d3   : > { %v2033_v53 = vadd.f32 %v10246_v44, %v11095_v26  ;;  %8807 = vmatprep.subr.bf16.mxu0 %v8806_v46  ;;  %vm2271_vm6 = vcmp.gt.f32.partialorder %v2015_v34, 0.0  ;;  %vm2287_vm7 = vcmp.gt.f32.partialorder %v2031_v19, 0.0  ;;  %v2527_v27 = vmul.f32 0.33, %v2015_v34 }
 0x1d4   : > { %v2543_v4 = vmul.f32 0.33, %v2031_v19  ;;  %v2802_v30 = vsel %vm2290_vm5, %v2034_v8, %v2546_v47  ;;  %vm2273_vm8 = vcmp.gt.f32.partialorder %v2017_v43, 0.0  ;;  %v2529_v28 = vmul.f32 0.33, %v2017_v43 }
 0x1d5   : > { %vm2289_vm9 = vcmp.gt.f32.partialorder %v2033_v53, 0.0  ;;  %v8838_v37 = vpack.c.bf16 %v2802_v30, %v2786_v42  ;;  %v2783_v23 = vsel %vm2271_vm6, %v2015_v34, %v2527_v27  ;;  %v2545_v49 = vmul.f32 0.33, %v2033_v53 }
 0x1d6   : > { %v2799_v63 = vsel %vm2287_vm7, %v2031_v19, %v2543_v4  ;;  %v2785_v61 = vsel %vm2273_vm8, %v2017_v43, %v2529_v28  ;;  %v11109_v36 = vadd.f32 %v10210_v60, %v10144_v33  ;;  %v11113_v54 = vadd.f32 %v10220_v1, %v10144_v33 }
 0x1d7   : > { %v8808_v45 = vpack.c.bf16 %v2799_v63, %v2783_v23  ;;  %8839 = vmatprep.subr.bf16.mxu1 %v8838_v37  ;;  %v2801_v46 = vsel %vm2289_vm9, %v2033_v53, %v2545_v49  ;;  %v11117_v8 = vadd.f32 %v10210_v60, %v10160_v40  ;;  %v11121_v42 = vadd.f32 %v10220_v1, %v10160_v40 }
 0x1d8   : > { %14431 = vst [vmem:[#allocation151_spill] sm:$0xff] %v11109_v36  ;;  %14432 = vst [vmem:[#allocation152_spill] sm:$0xff] %v11113_v54  ;;  %v11125_v23 = vadd.f32 %v10210_v60, %v10142_v32  ;;  %v8840_v28 = vpack.c.bf16 %v2801_v46, %v2785_v61  ;;  %v2048_v63 = vadd.f32 %v10300_v6, %v11109_v36 }
 0x1d9   : > { %14433 = vst [vmem:[#allocation153_spill] sm:$0xff] %v11117_v8  ;;  %14434 = vst [vmem:[#allocation154_spill] sm:$0xff] %v11121_v42  ;;  %8809 = vmatpush1.bf16.msra.mxu0 %v8808_v45  ;;  %v2064_v49 = vadd.f32 %v10325_v51, %v11113_v54  ;;  %v11133_v37 = vadd.f32 %v10220_v1, %v10142_v32  ;;  %v2050_v34 = vadd.f32 %v10300_v6, %v11117_v8 }
 0x1da   : > { %14435 = vst [vmem:[#allocation155_spill] sm:$0xff] %v11125_v23  ;;  %v2066_v19 = vadd.f32 %v10325_v51, %v11121_v42  ;;  %v2047_v45 = vadd.f32 %v10300_v6, %v11125_v23  ;;  %v11143_v61 = vadd.f32 %v10210_v60, %v10156_v38  ;;  %8841 = vmatpush1.bf16.msra.mxu1 %v8840_v28  ;;  %vm2304_vm10 = vcmp.gt.f32.partialorder %v2048_v63, 0.0 }
 0x1db   : > { %14436 = vst [vmem:[#allocation156_spill] sm:$0xff] %v11133_v37  ;;  %vm2320_vm11 = vcmp.gt.f32.partialorder %v2064_v49, 0.0  ;;  %v2560_v43 = vmul.f32 0.33, %v2048_v63  ;;  %v2576_v47 = vmul.f32 0.33, %v2064_v49  ;;  %v2063_v46 = vadd.f32 %v10325_v51, %v11133_v37 }
 0x1dc   : > { %14437 = vst [vmem:[#allocation157_spill] sm:$0xff] %v11143_v61  ;;  %vm2306_vm12 = vcmp.gt.f32.partialorder %v2050_v34, 0.0  ;;  %vm2322_vm13 = vcmp.gt.f32.partialorder %v2066_v19, 0.0  ;;  %v2562_v53 = vmul.f32 0.33, %v2050_v34  ;;  %vm2303_vm14 = vcmp.gt.f32.partialorder %v2047_v45, 0.0 }
 0x1dd   : > { %v2578_v27 = vmul.f32 0.33, %v2066_v19  ;;  %v2816_v4 = vsel %vm2304_vm10, %v2048_v63, %v2560_v43  ;;  %v2832_v30 = vsel %vm2320_vm11, %v2064_v49, %v2576_v47  ;;  %v2559_v23 = vmul.f32 0.33, %v2047_v45 }
 0x1de   : > { %v8810_v8 = vpack.c.bf16 %v2832_v30, %v2816_v4  ;;  %v2818_v42 = vsel %vm2306_vm12, %v2050_v34, %v2562_v53  ;;  %vm2319_vm15 = vcmp.gt.f32.partialorder %v2063_v46, 0.0  ;;  %v2575_v28 = vmul.f32 0.33, %v2063_v46 }
 0x1df   : > { %v2834_v36 = vsel %vm2322_vm13, %v2066_v19, %v2578_v27  ;;  %v11149_v26 = vadd.f32 %v10220_v1, %v10156_v38  ;;  %v2815_v48 = vsel %vm2303_vm14, %v2047_v45, %v2559_v23  ;;  %v2049_v63 = vadd.f32 %v10300_v6, %v11143_v61 }
 0x1e0   : > { %v8842_v54 = vpack.c.bf16 %v2834_v36, %v2818_v42  ;;  %8811 = vmatprep.subr.bf16.mxu0 %v8810_v8  ;;  %v11155_v49 = vadd.f32 %v10259_v56, %v10144_v33  ;;  %v11159_v34 = vadd.f32 %v10272_v5, %v10144_v33  ;;  %v2831_v36 = vsel %vm2319_vm15, %v2063_v46, %v2575_v28 }
 0x1e1   : > { %14438 = vst [vmem:[#allocation158_spill] sm:$0xff] %v11149_v26  ;;  %v2065_v42 = vadd.f32 %v10325_v51, %v11149_v26  ;;  %v11165_v8 = vadd.f32 %v10259_v56, %v10160_v40  ;;  %v11169_v23 = vadd.f32 %v10272_v5, %v10160_v40  ;;  %v8812_v19 = vpack.c.bf16 %v2831_v36, %v2815_v48 }
 0x1e2   : > { %14439 = vst [vmem:[#allocation159_spill] sm:$0xff] %v11155_v49  ;;  %14440 = vst [vmem:[#allocation160_spill] sm:$0xff] %v11159_v34  ;;  %8843 = vmatprep.subr.bf16.mxu1 %v8842_v54  ;;  %vm2305_vm1 = vcmp.gt.f32.partialorder %v2049_v63, 0.0  ;;  %v2561_v45 = vmul.f32 0.33, %v2049_v63  ;;  %v2080_v43 = vadd.f32 %v10374_v13, %v11155_v49  ;;  %v2096_v47 = vadd.f32 %v10376_v59, %v11159_v34 }
 0x1e3   : > { %14441 = vst [vmem:[#allocation161_spill] sm:$0xff] %v11165_v8  ;;  %14442 = vst [vmem:[#allocation162_spill] sm:$0xff] %v11169_v23  ;;  %vm2321_vm2 = vcmp.gt.f32.partialorder %v2065_v42, 0.0  ;;  %v2577_v54 = vmul.f32 0.33, %v2065_v42  ;;  %v2082_v53 = vadd.f32 %v10374_v13, %v11165_v8  ;;  %8813 = vmatpush1.bf16.msra.mxu0 %v8812_v19  ;;  %v2098_v48 = vadd.f32 %v10376_v59, %v11169_v23 }
 0x1e4   : > { %v2817_v27 = vsel %vm2305_vm1, %v2049_v63, %v2561_v45  ;;  %vm2336_vm3 = vcmp.gt.f32.partialorder %v2080_v43, 0.0  ;;  %v2592_v4 = vmul.f32 0.33, %v2080_v43  ;;  %vm2352_vm4 = vcmp.gt.f32.partialorder %v2096_v47, 0.0 }
 0x1e5   : > { %v2833_v30 = vsel %vm2321_vm2, %v2065_v42, %v2577_v54  ;;  %v2608_v46 = vmul.f32 0.33, %v2096_v47  ;;  %vm2338_vm5 = vcmp.gt.f32.partialorder %v2082_v53, 0.0  ;;  %vm2354_vm6 = vcmp.gt.f32.partialorder %v2098_v48, 0.0 }
 0x1e6   : > { %v8844_v28 = vpack.c.bf16 %v2833_v30, %v2817_v27  ;;  %v2848_v36 = vsel %vm2336_vm3, %v2080_v43, %v2592_v4  ;;  %v2594_v61 = vmul.f32 0.33, %v2082_v53  ;;  %v2610_v49 = vmul.f32 0.33, %v2098_v48 }
 0x1e7   : > { %v2864_v26 = vsel %vm2352_vm4, %v2096_v47, %v2608_v46  ;;  %v11181_v8 = vadd.f32 %v10259_v56, %v10142_v32  ;;  %v11185_v63 = vadd.f32 %v10272_v5, %v10142_v32  ;;  %v11189_v45 = vadd.f32 %v10259_v56, %v10156_v38 }
 0x1e8   : > { %8845 = vmatpush1.bf16.msra.mxu1 %v8844_v28  ;;  %v8814_v19 = vpack.c.bf16 %v2864_v26, %v2848_v36  ;;  %v2850_v42 = vsel %vm2338_vm5, %v2082_v53, %v2594_v61  ;;  %v11193_v43 = vadd.f32 %v10272_v5, %v10156_v38  ;;  %v2866_v54 = vsel %vm2354_vm6, %v2098_v48, %v2610_v49 }
 0x1e9   : > { %14443 = vst [vmem:[#allocation163_spill] sm:$0xff] %v11181_v8  ;;  %14444 = vst [vmem:[#allocation164_spill] sm:$0xff] %v11185_v63  ;;  %v2079_v47 = vadd.f32 %v10374_v13, %v11181_v8  ;;  %v2095_v27 = vadd.f32 %v10376_v59, %v11185_v63  ;;  %v11201_v4 = vadd.f32 %v10226_v11, %v10144_v33 }
 0x1ea   : > { %14445 = vst [vmem:[#allocation165_spill] sm:$0xff] %v11189_v45  ;;  %14446 = vst [vmem:[#allocation166_spill] sm:$0xff] %v11193_v43  ;;  %8815 = vmatprep.subr.bf16.mxu0 %v8814_v19  ;;  %v8846_v26 = vpack.c.bf16 %v2866_v54, %v2850_v42  ;;  %v2081_v61 = vadd.f32 %v10374_v13, %v11189_v45  ;;  %v2097_v53 = vadd.f32 %v10376_v59, %v11193_v43 }
 0x1eb   : > { %14447 = vst [vmem:[#allocation167_spill] sm:$0xff] %v11201_v4  ;;  %v1792_v49 = vadd.f32 %v10232_v16, %v10144_v33  ;;  %vm2335_vm7 = vcmp.gt.f32.partialorder %v2079_v47, 0.0  ;;  %vm2351_vm8 = vcmp.gt.f32.partialorder %v2095_v27, 0.0  ;;  %v2591_v48 = vmul.f32 0.33, %v2079_v47 }
 0x1ec   : > { %v2607_v30 = vmul.f32 0.33, %v2095_v27  ;;  %8847 = vmatprep.subr.bf16.mxu1 %v8846_v26  ;;  %vm2337_vm9 = vcmp.gt.f32.partialorder %v2081_v61, 0.0  ;;  %vm2353_vm10 = vcmp.gt.f32.partialorder %v2097_v53, 0.0  ;;  %v2593_v46 = vmul.f32 0.33, %v2081_v61 }
 0x1ed   : > { %v2609_v28 = vmul.f32 0.33, %v2097_v53  ;;  %v2847_v36 = vsel %vm2335_vm7, %v2079_v47, %v2591_v48  ;;  %v2112_v42 = vadd.f32 %v10414_v58, %v11201_v4  ;;  %v2128_v54 = vadd.f32 %v10420_v17, %v1792_v49 }
 0x1ee   : > { %v2863_v19 = vsel %vm2351_vm8, %v2095_v27, %v2607_v30  ;;  %v2849_v23 = vsel %vm2337_vm9, %v2081_v61, %v2593_v46  ;;  %v11214_v8 = vadd.f32 %v10226_v11, %v10160_v40  ;;  %v11218_v47 = vadd.f32 %v10232_v16, %v10160_v40 }
 0x1ef   : > { %v8816_v45 = vpack.c.bf16 %v2863_v19, %v2847_v36  ;;  %v2865_v43 = vsel %vm2353_vm10, %v2097_v53, %v2609_v28  ;;  %vm2368_vm11 = vcmp.gt.f32.partialorder %v2112_v42, 0.0  ;;  %vm2384_vm12 = vcmp.gt.f32.partialorder %v2128_v54, 0.0 }
 0x1f0   : > { %14448 = vst [vmem:[#allocation168_spill] sm:$0xff] %v11214_v8  ;;  %v8848_v34 = vpack.c.bf16 %v2865_v43, %v2849_v23  ;;  %v2624_v26 = vmul.f32 0.33, %v2112_v42  ;;  %v2640_v63 = vmul.f32 0.33, %v2128_v54  ;;  %14449 = vst [vmem:[#allocation169_spill] sm:$0xff] %v11218_v47  ;;  %v2114_v27 = vadd.f32 %v10414_v58, %v11214_v8 }
 0x1f1   : > { %8817 = vmatpush1.bf16.msra.mxu0 %v8816_v45  ;;  %v1775_v61 = vadd.f32 %v10226_v11, %v10142_v32  ;;  %v11226_v23 = vadd.f32 %v10232_v16, %v10142_v32  ;;  %v11230_v45 = vadd.f32 %v10226_v11, %v10156_v38  ;;  %v11234_v43 = vadd.f32 %v10232_v16, %v10156_v38 }
 0x1f2   : > { %8849 = vmatpush1.bf16.msra.mxu1 %v8848_v34  ;;  %v2880_v53 = vsel %vm2368_vm11, %v2112_v42, %v2624_v26  ;;  %v11236_v49 = vsel %vm2384_vm12, %v2128_v54, %v2640_v63  ;;  %v2130_v48 = vadd.f32 %v10420_v17, %v11218_v47  ;;  %vm2370_vm13 = vcmp.gt.f32.partialorder %v2114_v27, 0.0 }
 0x1f3   : > { %14450 = vst [vmem:[#allocation170_spill] sm:$0xff] %v11226_v23  ;;  %14451 = vst [vmem:[#allocation171_spill] sm:$0xff] %v11230_v45  ;;  %v2626_v34 = vmul.f32 0.33, %v2114_v27  ;;  %v8818_v30 = vpack.c.bf16 %v11236_v49, %v2880_v53  ;;  %v2111_v46 = vadd.f32 %v10414_v58, %v1775_v61  ;;  %v2127_v28 = vadd.f32 %v10420_v17, %v11226_v23 }
 0x1f4   : > { %14452 = vst [vmem:[#allocation172_spill] sm:$0xff] %v11234_v43  ;;  %14453 = vst [vmem:[#allocation173_spill] sm:$0xff] %v11236_v49  ;;  %v2113_v36 = vadd.f32 %v10414_v58, %v11230_v45  ;;  %vm2386_vm14 = vcmp.gt.f32.partialorder %v2130_v48, 0.0  ;;  %v2642_v19 = vmul.f32 0.33, %v2130_v48  ;;  %v2129_v63 = vadd.f32 %v10420_v17, %v11234_v43 }
 0x1f5   : > { %v2882_v42 = vsel %vm2370_vm13, %v2114_v27, %v2626_v34  ;;  %8819 = vmatprep.subr.bf16.mxu0 %v8818_v30  ;;  %vm2367_vm15 = vcmp.gt.f32.partialorder %v2111_v46, 0.0  ;;  %vm2383_vm1 = vcmp.gt.f32.partialorder %v2127_v28, 0.0  ;;  %v2623_v54 = vmul.f32 0.33, %v2111_v46 }
 0x1f6   : > { %v2639_v26 = vmul.f32 0.33, %v2127_v28  ;;  %v2898_v53 = vsel %vm2386_vm14, %v2130_v48, %v2642_v19  ;;  %vm2369_vm2 = vcmp.gt.f32.partialorder %v2113_v36, 0.0  ;;  %vm2385_vm3 = vcmp.gt.f32.partialorder %v2129_v63, 0.0 }
 0x1f7   : > { %v2625_v61 = vmul.f32 0.33, %v2113_v36  ;;  %v8850_v8 = vpack.c.bf16 %v2898_v53, %v2882_v42  ;;  %v11248_v47 = vsel %vm2367_vm15, %v2111_v46, %v2623_v54  ;;  %v2641_v45 = vmul.f32 0.33, %v2129_v63 }
 0x1f8   : > { %14454 = vst [vmem:[#allocation174_spill] sm:$0xff] %v11248_v47  ;;  %v2895_v4 = vsel %vm2383_vm1, %v2127_v28, %v2639_v26  ;;  %v11253_v34 = vadd.f32 %v10283_v22, %v10144_v33  ;;  %v11257_v30 = vadd.f32 %v10285_v2, %v10144_v33  ;;  %v11261_v19 = vadd.f32 %v10283_v22, %v10160_v40 }
 0x1f9   : > { %v8820_v49 = vpack.c.bf16 %v2895_v4, %v11248_v47  ;;  %v2881_v27 = vsel %vm2369_vm2, %v2113_v36, %v2625_v61  ;;  %8851 = vmatprep.subr.bf16.mxu1 %v8850_v8  ;;  %v2897_v48 = vsel %vm2385_vm3, %v2129_v63, %v2641_v45  ;;  %v1826_v46 = vadd.f32 %v10285_v2, %v10160_v40 }
 0x1fa   : > { %14455 = vst [vmem:[#allocation175_spill] sm:$0xff] %v11253_v34  ;;  %14456 = vst [vmem:[#allocation176_spill] sm:$0xff] %v11257_v30  ;;  %v11267_v4 = vadd.f32 %v10283_v22, %v10142_v32  ;;  %v8852_v28 = vpack.c.bf16 %v2897_v48, %v2881_v27  ;;  %v2144_v36 = vadd.f32 %v10466_v57, %v11253_v34 }
 0x1fb   : > { %14457 = vst [vmem:[#allocation177_spill] sm:$0xff] %v11261_v19  ;;  %8821 = vmatpush1.bf16.msra.mxu0 %v8820_v49  ;;  %v2160_v8 = vadd.f32 %v10472_v21, %v11257_v30  ;;  %v11275_v45 = vadd.f32 %v10285_v2, %v10142_v32  ;;  %v2146_v42 = vadd.f32 %v10466_v57, %v11261_v19 }
 0x1fc   : > { %14458 = vst [vmem:[#allocation178_spill] sm:$0xff] %v11267_v4  ;;  %v2162_v63 = vadd.f32 %v10472_v21, %v1826_v46  ;;  %v2143_v54 = vadd.f32 %v10466_v57, %v11267_v4  ;;  %v1809_v49 = vadd.f32 %v10283_v22, %v10156_v38  ;;  %8853 = vmatpush1.bf16.msra.mxu1 %v8852_v28  ;;  %vm2400_vm4 = vcmp.gt.f32.partialorder %v2144_v36, 0.0 }
 0x1fd   : > { %14459 = vst [vmem:[#allocation179_spill] sm:$0xff] %v11275_v45  ;;  %vm2416_vm5 = vcmp.gt.f32.partialorder %v2160_v8, 0.0  ;;  %v2656_v26 = vmul.f32 0.33, %v2144_v36  ;;  %v2672_v53 = vmul.f32 0.33, %v2160_v8  ;;  %v2159_v46 = vadd.f32 %v10472_v21, %v11275_v45 }
 0x1fe   : > { %vm2402_vm6 = vcmp.gt.f32.partialorder %v2146_v42, 0.0  ;;  %vm2418_vm7 = vcmp.gt.f32.partialorder %v2162_v63, 0.0  ;;  %v2658_v61 = vmul.f32 0.33, %v2146_v42  ;;  %v2674_v27 = vmul.f32 0.33, %v2162_v63 }
 0x1ff   : > { %v2912_v48 = vsel %vm2400_vm4, %v2144_v36, %v2656_v26  ;;  %v2928_v47 = vsel %vm2416_vm5, %v2160_v8, %v2672_v53  ;;  %vm2399_vm8 = vcmp.gt.f32.partialorder %v2143_v54, 0.0  ;;  %v2655_v4 = vmul.f32 0.33, %v2143_v54 }
 0x200   : > { %v8822_v19 = vpack.c.bf16 %v2928_v47, %v2912_v48  ;;  %v2914_v43 = vsel %vm2402_vm6, %v2146_v42, %v2658_v61  ;;  %v11286_v34 = vsel %vm2418_vm7, %v2162_v63, %v2674_v27  ;;  %vm2415_vm9 = vcmp.gt.f32.partialorder %v2159_v46, 0.0 }
 0x201   : > { %14460 = vst [vmem:[#allocation180_spill] sm:$0xff] %v11286_v34  ;;  %v8854_v28 = vpack.c.bf16 %v11286_v34, %v2914_v43  ;;  %v2671_v30 = vmul.f32 0.33, %v2159_v46  ;;  %v11291_v23 = vadd.f32 %v10285_v2, %v10156_v38  ;;  %v2911_v36 = vsel %vm2399_vm8, %v2143_v54, %v2655_v4 }
 0x202   : > { %8823 = vmatprep.subr.bf16.mxu0 %v8822_v19  ;;  %v2145_v8 = vadd.f32 %v10466_v57, %v1809_v49  ;;  %v11296_v26 = vadd.f32 %v10270_v3, %v10144_v33  ;;  %v11300_v47 = vadd.f32 %v10279_v10, %v10144_v33  ;;  %v11306_v63 = vadd.f32 %v10270_v3, %v10160_v40 }
 0x203   : > { %14461 = vst [vmem:[#allocation181_spill] sm:$0xff] %v11291_v23  ;;  %8855 = vmatprep.subr.bf16.mxu1 %v8854_v28  ;;  %v2927_v43 = vsel %vm2415_vm9, %v2159_v46, %v2671_v30  ;;  %v2161_v42 = vadd.f32 %v10472_v21, %v11291_v23  ;;  %v11310_v19 = vadd.f32 %v10279_v10, %v10160_v40 }
 0x204   : > { %14462 = vst [vmem:[#allocation182_spill] sm:$0xff] %v11296_v26  ;;  %14463 = vst [vmem:[#allocation183_spill] sm:$0xff] %v11300_v47  ;;  %v8824_v4 = vpack.c.bf16 %v2927_v43, %v2911_v36  ;;  %vm2401_vm10 = vcmp.gt.f32.partialorder %v2145_v8, 0.0  ;;  %v2657_v54 = vmul.f32 0.33, %v2145_v8  ;;  %v2176_v49 = vadd.f32 %v10518_v14, %v11296_v26 }
 0x205   : > { %14464 = vst [vmem:[#allocation184_spill] sm:$0xff] %v11306_v63  ;;  %14465 = vst [vmem:[#allocation185_spill] sm:$0xff] %v11310_v19  ;;  %vm2417_vm11 = vcmp.gt.f32.partialorder %v2161_v42, 0.0  ;;  %v2673_v53 = vmul.f32 0.33, %v2161_v42  ;;  %v2192_v30 = vadd.f32 %v10524_v62, %v11300_v47  ;;  %v2178_v61 = vadd.f32 %v10518_v14, %v11306_v63 }
 0x206   : > { %8825 = vmatpush1.bf16.msra.mxu0 %v8824_v4  ;;  %v11318_v27 = vsel %vm2401_vm10, %v2145_v8, %v2657_v54  ;;  %vm2432_vm12 = vcmp.gt.f32.partialorder %v2176_v49, 0.0  ;;  %v2688_v48 = vmul.f32 0.33, %v2176_v49  ;;  %v2194_v46 = vadd.f32 %v10524_v62, %v11310_v19 }
 0x207   : > { %14466 = vst [vmem:[#allocation186_spill] sm:$0xff] %v11318_v27  ;;  %v2929_v28 = vsel %vm2417_vm11, %v2161_v42, %v2673_v53  ;;  %vm2448_vm13 = vcmp.gt.f32.partialorder %v2192_v30, 0.0  ;;  %v2704_v36 = vmul.f32 0.33, %v2192_v30  ;;  %vm2434_vm14 = vcmp.gt.f32.partialorder %v2178_v61, 0.0 }
 0x208   : > { %v8856_v43 = vpack.c.bf16 %v2929_v28, %v11318_v27  ;;  %v2944_v26 = vsel %vm2432_vm12, %v2176_v49, %v2688_v48  ;;  %vm2450_vm15 = vcmp.gt.f32.partialorder %v2194_v46, 0.0  ;;  %v2690_v47 = vmul.f32 0.33, %v2178_v61 }
 0x209   : > { %v2960_v34 = vsel %vm2448_vm13, %v2192_v30, %v2704_v36  ;;  %v2706_v23 = vmul.f32 0.33, %v2194_v46  ;;  %v11325_v8 = vadd.f32 %v10270_v3, %v10142_v32  ;;  %v11329_v4 = vadd.f32 %v10279_v10, %v10142_v32 }
 0x20a   : > { %8857 = vmatpush1.bf16.msra.mxu1 %v8856_v43  ;;  %v8826_v42 = vpack.c.bf16 %v2960_v34, %v2944_v26  ;;  %v2946_v54 = vsel %vm2434_vm14, %v2178_v61, %v2690_v47  ;;  %v11333_v53 = vadd.f32 %v10270_v3, %v10156_v38  ;;  %v11337_v49 = vadd.f32 %v10279_v10, %v10156_v38 }
 0x20b   : > { %14467 = vst [vmem:[#allocation187_spill] sm:$0xff] %v11325_v8  ;;  %14468 = vst [vmem:[#allocation188_spill] sm:$0xff] %v11329_v4  ;;  %v2962_v30 = vsel %vm2450_vm15, %v2194_v46, %v2706_v23  ;;  %v2175_v48 = vadd.f32 %v10518_v14, %v11325_v8  ;;  %v2191_v28 = vadd.f32 %v10524_v62, %v11329_v4 }
 0x20c   : > { %14469 = vst [vmem:[#allocation189_spill] sm:$0xff] %v11333_v53  ;;  %14470 = vst [vmem:[#allocation190_spill] sm:$0xff] %v11337_v49  ;;  %v11345_v36 = vadd.f32 %v10309_v9, %v10144_v33  ;;  %8827 = vmatprep.subr.bf16.mxu0 %v8826_v42  ;;  %v8858_v34 = vpack.c.bf16 %v2962_v30, %v2946_v54  ;;  %v2177_v26 = vadd.f32 %v10518_v14, %v11333_v53 }
 0x20d   : > { %v2193_v47 = vadd.f32 %v10524_v62, %v11337_v49  ;;  %v11353_v23 = vadd.f32 %v10327_v52, %v10144_v33  ;;  %vm2431_vm1 = vcmp.gt.f32.partialorder %v2175_v48, 0.0  ;;  %vm2447_vm2 = vcmp.gt.f32.partialorder %v2191_v28, 0.0 }
 0x20e   : > { %14471 = vst [vmem:[#allocation191_spill] sm:$0xff] %v11345_v36  ;;  %v2687_v61 = vmul.f32 0.33, %v2175_v48  ;;  %v2703_v46 = vmul.f32 0.33, %v2191_v28  ;;  %8859 = vmatprep.subr.bf16.mxu1 %v8858_v34  ;;  %vm2433_vm3 = vcmp.gt.f32.partialorder %v2177_v26, 0.0  ;;  %v2208_v63 = vadd.f32 %v10570_v25, %v11345_v36 }
 0x20f   : > { %14472 = vst [vmem:[#allocation192_spill] sm:$0xff] %v11353_v23  ;;  %vm2449_vm4 = vcmp.gt.f32.partialorder %v2193_v47, 0.0  ;;  %v2689_v43 = vmul.f32 0.33, %v2177_v26  ;;  %v2705_v42 = vmul.f32 0.33, %v2193_v47  ;;  %v2224_v53 = vadd.f32 %v10576_v55, %v11353_v23 }
 0x210   : > { %v2943_v54 = vsel %vm2431_vm1, %v2175_v48, %v2687_v61  ;;  %v2959_v30 = vsel %vm2447_vm2, %v2191_v28, %v2703_v46  ;;  %v11361_v8 = vadd.f32 %v10309_v9, %v10160_v40  ;;  %vm2464_vm5 = vcmp.gt.f32.partialorder %v2208_v63, 0.0  ;;  %v14479_v23 = vld [vmem:[#allocation9_spill] sm:$0xff] }
 0x211   : > { %v8828_v19 = vpack.c.bf16 %v2959_v30, %v2943_v54  ;;  %v2945_v33 = vsel %vm2433_vm3, %v2177_v26, %v2689_v43  ;;  %v2961_v49 = vsel %vm2449_vm4, %v2193_v47, %v2705_v42  ;;  %vm2480_vm6 = vcmp.gt.f32.partialorder %v2224_v53, 0.0 }
 0x212   : > { %14473 = vst [vmem:[#allocation193_spill] sm:$0xff] %v11361_v8  ;;  %v8860_v34 = vpack.c.bf16 %v2961_v49, %v2945_v33  ;;  %v2720_v4 = vmul.f32 0.33, %v2208_v63  ;;  %v2736_v48 = vmul.f32 0.33, %v2224_v53  ;;  %v11365_v28 = vadd.f32 %v10327_v52, %v10160_v40 }
 0x213   : > { %8829 = vmatpush1.bf16.msra.mxu0 %v8828_v19  ;;  %v2210_v61 = vadd.f32 %v10570_v25, %v11361_v8  ;;  %v11371_v26 = vadd.f32 %v10309_v9, %v10142_v32  ;;  %v11375_v49 = vadd.f32 %v10327_v52, %v10142_v32  ;;  %v11379_v19 = vadd.f32 %v10309_v9, %v10156_v38 }
 0x214   : > { %14474 = vst [vmem:[#allocation194_spill] sm:$0xff] %v11365_v28  ;;  %8861 = vmatpush1.bf16.msra.mxu1 %v8860_v34  ;;  %v2976_v47 = vsel %vm2464_vm5, %v2208_v63, %v2720_v4  ;;  %v11383_v40 = vadd.f32 %v10327_v52, %v10156_v38  ;;  %v2992_v46 = vsel %vm2480_vm6, %v2224_v53, %v2736_v48 }
 0x215   : > { %14475 = vst [vmem:[#allocation195_spill] sm:$0xff] %v11371_v26  ;;  %14476 = vst [vmem:[#allocation196_spill] sm:$0xff] %v11375_v49  ;;  %v2226_v43 = vadd.f32 %v10576_v55, %v11365_v28  ;;  %vm2466_vm7 = vcmp.gt.f32.partialorder %v2210_v61, 0.0  ;;  %v2722_v42 = vmul.f32 0.33, %v2210_v61  ;;  %v8830_v54 = vpack.c.bf16 %v2992_v46, %v2976_v47 }
 0x216   : > { %14477 = vst [vmem:[#allocation197_spill] sm:$0xff] %v11379_v19  ;;  %14478 = vst [vmem:[#allocation198_spill] sm:$0xff] %v11383_v40  ;;  %v2207_v63 = vadd.f32 %v10570_v25, %v11371_v26  ;;  %v2223_v32 = vadd.f32 %v10576_v55, %v11375_v49  ;;  %v2209_v4 = vadd.f32 %v10570_v25, %v11379_v19 }
 0x217   : > { %vm2482_vm8 = vcmp.gt.f32.partialorder %v2226_v43, 0.0  ;;  %v2738_v30 = vmul.f32 0.33, %v2226_v43  ;;  %v2978_v38 = vsel %vm2466_vm7, %v2210_v61, %v2722_v42  ;;  %v2225_v53 = vadd.f32 %v10576_v55, %v11383_v40  ;;  %8831 = vmatprep.subr.bf16.mxu0 %v8830_v54  ;;  %v11436_v40 = vld [vmem:[%s14020_s3] sm:$0xff] }
 0x218   : > { %vm2463_vm9 = vcmp.gt.f32.partialorder %v2207_v63, 0.0  ;;  %vm2479_vm10 = vcmp.gt.f32.partialorder %v2223_v32, 0.0  ;;  %v2719_v33 = vmul.f32 0.33, %v2207_v63  ;;  %v2735_v34 = vmul.f32 0.33, %v2223_v32 }
 0x219   : > { %v2994_v48 = vsel %vm2482_vm8, %v2226_v43, %v2738_v30  ;;  %vm2465_vm11 = vcmp.gt.f32.partialorder %v2209_v4, 0.0  ;;  %vm2481_vm12 = vcmp.gt.f32.partialorder %v2225_v53, 0.0  ;;  %v2721_v47 = vmul.f32 0.33, %v2209_v4  ;;  %v14481_v43 = vld [vmem:[#allocation17_spill] sm:$0xff] }
 0x21a   : > { %v8862_v46 = vpack.c.bf16 %v2994_v48, %v2978_v38  ;;  %v2975_v8 = vsel %vm2463_vm9, %v2207_v63, %v2719_v33  ;;  %v2991_v28 = vsel %vm2479_vm10, %v2223_v32, %v2735_v34  ;;  %v2737_v36 = vmul.f32 0.33, %v2225_v53 }
 0x21b   : > { %v8832_v19 = vpack.c.bf16 %v2991_v28, %v2975_v8  ;;  %v2977_v26 = vsel %vm2465_vm11, %v2209_v4, %v2721_v47  ;;  %v11397_v61 = vadd.f32 %v10158_v39, %v14479_v23  ;;  %v11401_v42 = vadd.f32 %v10162_v41, %v14479_v23  ;;  %v14484_v8 = vld [vmem:[#allocation8_spill] sm:$0xff] }
 0x21c   : > { %8863 = vmatprep.subr.bf16.mxu1 %v8862_v46  ;;  %v2993_v54 = vsel %vm2481_vm12, %v2225_v53, %v2737_v36  ;;  %v11405_v30 = vadd.f32 %v10158_v39, %v14481_v43  ;;  %v11409_v63 = vadd.f32 %v10162_v41, %v14481_v43  ;;  %v11413_v28 = vadd.f32 %v10158_v39, %v14484_v8 }
 0x21d   : > { %14480 = vst [vmem:[#allocation9_spill] sm:$0xff] %v11397_v61  ;;  %8833 = vmatpush1.bf16.msra.mxu0 %v8832_v19  ;;  %v8864_v32 = vpack.c.bf16 %v2993_v54, %v2977_v26  ;;  %v1988_v4 = vadd.f32 %v10150_v35, %v11397_v61  ;;  %v2004_v36 = vadd.f32 %v10192_v50, %v11401_v42  ;;  %v14486_v26 = vld [vmem:[#allocation16_spill] sm:$0xff] }
 0x21e   : > { %14482 = vst [vmem:[#allocation17_spill] sm:$0xff] %v11405_v30  ;;  %14483 = vst [vmem:[#allocation199_spill] sm:$0xff] %v11409_v63  ;;  %v11421_v38 = vadd.f32 %v10162_v41, %v14484_v8  ;;  %v1990_v53 = vadd.f32 %v10150_v35, %v11405_v30  ;;  %v2006_v33 = vadd.f32 %v10192_v50, %v11409_v63 }
 0x21f   : > { %14485 = vst [vmem:[#allocation8_spill] sm:$0xff] %v11413_v28  ;;  %v1987_v19 = vadd.f32 %v10150_v35, %v11413_v28  ;;  %v11431_v34 = vadd.f32 %v10158_v39, %v14486_v26  ;;  %8865 = vmatpush1.bf16.msra.mxu1 %v8864_v32  ;;  %vm2244_vm13 = vcmp.gt.f32.partialorder %v1988_v4, 0.0  ;;  %vm2260_vm14 = vcmp.gt.f32.partialorder %v2004_v36, 0.0 }
 0x220   : > { %v2500_v48 = vmul.f32 0.33, %v1988_v4  ;;  %v2516_v47 = vmul.f32 0.33, %v2004_v36  ;;  %vm2246_vm15 = vcmp.gt.f32.partialorder %v1990_v53, 0.0  ;;  %vm2262_vm1 = vcmp.gt.f32.partialorder %v2006_v33, 0.0  ;;  %4309 = vmatmul.mubr.f32.vlgmr.msra.gmra.mrb[18].mxu0 %v11436_v40 }
 0x221   : > { %14487 = vst [vmem:[#allocation16_spill] sm:$0xff] %v11431_v34  ;;  %v2502_v46 = vmul.f32 0.33, %v1990_v53  ;;  %v2518_v54 = vmul.f32 0.33, %v2006_v33  ;;  %v2003_v39 = vadd.f32 %v10192_v50, %v11421_v38  ;;  %vm2243_vm2 = vcmp.gt.f32.partialorder %v1987_v19, 0.0  ;;  %4450 = vmatprep.mubr.f32.mxu0 %v14363_v31 }
 0x222   : > { %v2756_v49 = vsel %vm2244_vm13, %v1988_v4, %v2500_v48  ;;  %v2772_v27 = vsel %vm2260_vm14, %v2004_v36, %v2516_v47  ;;  %4380 = vmatmul.mubr.f32.vlgmr.msra.gmra.mrb[22].mxu1 %v11436_v40  ;;  %v2499_v30 = vmul.f32 0.33, %v1987_v19  ;;  %v11445_v28 = vadd.f32 %v10162_v41, %v14486_v26 }
 0x223   : > { %v8866_v32 = vpack.c.bf16 %v2772_v27, %v2756_v49  ;;  %v2758_v45 = vsel %vm2246_vm15, %v1990_v53, %v2502_v46  ;;  %v2774_v37 = vsel %vm2262_vm1, %v2006_v33, %v2518_v54  ;;  %vm2259_vm3 = vcmp.gt.f32.partialorder %v2003_v39, 0.0  ;;  %4521 = vmatprep.mubr.f32.mxu1 %v14363_v31 }
 0x224   : > { %v8898_v63 = vpack.c.bf16 %v2774_v37, %v2758_v45  ;;  %v2515_v61 = vmul.f32 0.33, %v2003_v39  ;;  %14488 = vst [vmem:[#allocation200_spill] sm:$0xff] %v11445_v28  ;;  %v2755_v4 = vsel %vm2243_vm2, %v1987_v19, %v2499_v30  ;;  %v1989_v36 = vadd.f32 %v10150_v35, %v11431_v34 }
 0x225   : > { %8867 = vmatprep.subr.bf16.mxu0 %v8866_v32  ;;  %v11452_v27 = vadd.f32 %v10222_v7, %v14479_v23  ;;  %v11456_v37 = vadd.f32 %v10228_v12, %v14479_v23  ;;  %v2005_v41 = vadd.f32 %v10192_v50, %v11445_v28  ;;  %v11462_v49 = vadd.f32 %v10222_v7, %v14481_v43 }
 0x226   : > { %8899 = vmatprep.subr.bf16.mxu1 %v8898_v63  ;;  %v2771_v45 = vsel %vm2259_vm3, %v2003_v39, %v2515_v61  ;;  %v11466_v30 = vadd.f32 %v10228_v12, %v14481_v43  ;;  %vm2245_vm4 = vcmp.gt.f32.partialorder %v1989_v36, 0.0  ;;  %v2501_v33 = vmul.f32 0.33, %v1989_v36 }
 0x227   : > { %14489 = vst [vmem:[#allocation201_spill] sm:$0xff] %v11452_v27  ;;  %14490 = vst [vmem:[#allocation202_spill] sm:$0xff] %v11462_v49  ;;  %v8868_v53 = vpack.c.bf16 %v2771_v45, %v2755_v4  ;;  %v2020_v19 = vadd.f32 %v10218_v0, %v11452_v27  ;;  %vm2261_vm5 = vcmp.gt.f32.partialorder %v2005_v41, 0.0  ;;  %v2517_v63 = vmul.f32 0.33, %v2005_v41 }
 0x228   : > { %14491 = vst [vmem:[#allocation203_spill] sm:$0xff] %v11466_v30  ;;  %v2036_v61 = vadd.f32 %v10246_v44, %v11456_v37  ;;  %v2022_v48 = vadd.f32 %v10218_v0, %v11462_v49  ;;  %v2757_v47 = vsel %vm2245_vm4, %v1989_v36, %v2501_v33  ;;  %v2038_v54 = vadd.f32 %v10246_v44, %v11466_v30 }
 0x229   : > { %8869 = vmatpush1.bf16.msra.mxu0 %v8868_v53  ;;  %vm2276_vm6 = vcmp.gt.f32.partialorder %v2020_v19, 0.0  ;;  %v2532_v46 = vmul.f32 0.33, %v2020_v19  ;;  %v2773_v39 = vsel %vm2261_vm5, %v2005_v41, %v2517_v63  ;;  %v11478_v49 = vadd.f32 %v10222_v7, %v14484_v8 }
 0x22a   : > { %vm2292_vm7 = vcmp.gt.f32.partialorder %v2036_v61, 0.0  ;;  %v2548_v32 = vmul.f32 0.33, %v2036_v61  ;;  %vm2278_vm8 = vcmp.gt.f32.partialorder %v2022_v48, 0.0  ;;  %v8900_v4 = vpack.c.bf16 %v2773_v39, %v2757_v47 }
 0x22b   : > { %v2788_v45 = vsel %vm2276_vm6, %v2020_v19, %v2532_v46  ;;  %vm2294_vm9 = vcmp.gt.f32.partialorder %v2038_v54, 0.0  ;;  %v2534_v34 = vmul.f32 0.33, %v2022_v48  ;;  %v2550_v27 = vmul.f32 0.33, %v2038_v54 }
 0x22c   : > { %v2804_v28 = vsel %vm2292_vm7, %v2036_v61, %v2548_v32  ;;  %v11482_v36 = vadd.f32 %v10228_v12, %v14484_v8  ;;  %8901 = vmatpush1.bf16.msra.mxu1 %v8900_v4  ;;  %v11486_v33 = vadd.f32 %v10222_v7, %v14486_v26  ;;  %v11490_v19 = vadd.f32 %v10228_v12, %v14486_v26 }
 0x22d   : > { %v8870_v53 = vpack.c.bf16 %v2804_v28, %v2788_v45  ;;  %v2790_v41 = vsel %vm2278_vm8, %v2022_v48, %v2534_v34  ;;  %v2806_v63 = vsel %vm2294_vm9, %v2038_v54, %v2550_v27  ;;  %v2019_v61 = vadd.f32 %v10218_v0, %v11478_v49 }
 0x22e   : > { %14492 = vst [vmem:[#allocation204_spill] sm:$0xff] %v11486_v33  ;;  %14493 = vst [vmem:[#allocation205_spill] sm:$0xff] %v11490_v19  ;;  %v2035_v47 = vadd.f32 %v10246_v44, %v11482_v36  ;;  %v11498_v46 = vadd.f32 %v10210_v60, %v14479_v23  ;;  %v8902_v28 = vpack.c.bf16 %v2806_v63, %v2790_v41 }
 0x22f   : > { %8871 = vmatprep.subr.bf16.mxu0 %v8870_v53  ;;  %v2021_v7 = vadd.f32 %v10218_v0, %v11486_v33  ;;  %v2037_v12 = vadd.f32 %v10246_v44, %v11490_v19  ;;  %v11506_v34 = vadd.f32 %v10220_v1, %v14479_v23  ;;  %vm2275_vm10 = vcmp.gt.f32.partialorder %v2019_v61, 0.0 }
 0x230   : > { %14494 = vst [vmem:[#allocation206_spill] sm:$0xff] %v11498_v46  ;;  %vm2291_vm11 = vcmp.gt.f32.partialorder %v2035_v47, 0.0  ;;  %v2531_v27 = vmul.f32 0.33, %v2019_v61  ;;  %v2547_v48 = vmul.f32 0.33, %v2035_v47  ;;  %8903 = vmatprep.subr.bf16.mxu1 %v8902_v28  ;;  %v2052_v45 = vadd.f32 %v10300_v6, %v11498_v46 }
 0x231   : > { %14495 = vst [vmem:[#allocation207_spill] sm:$0xff] %v11506_v34  ;;  %vm2277_vm12 = vcmp.gt.f32.partialorder %v2021_v7, 0.0  ;;  %vm2293_vm13 = vcmp.gt.f32.partialorder %v2037_v12, 0.0  ;;  %v2533_v54 = vmul.f32 0.33, %v2021_v7  ;;  %v2068_v53 = vadd.f32 %v10325_v51, %v11506_v34 }
 0x232   : > { %v2549_v39 = vmul.f32 0.33, %v2037_v12  ;;  %v2787_v32 = vsel %vm2275_vm10, %v2019_v61, %v2531_v27  ;;  %v2803_v4 = vsel %vm2291_vm11, %v2035_v47, %v2547_v48  ;;  %v11514_v30 = vadd.f32 %v10210_v60, %v14481_v43 }
 0x233   : > { %v8872_v41 = vpack.c.bf16 %v2803_v4, %v2787_v32  ;;  %v2789_v63 = vsel %vm2277_vm12, %v2021_v7, %v2533_v54  ;;  %vm2308_vm14 = vcmp.gt.f32.partialorder %v2052_v45, 0.0  ;;  %vm2324_vm15 = vcmp.gt.f32.partialorder %v2068_v53, 0.0 }
 0x234   : > { %v2805_v33 = vsel %vm2293_vm13, %v2037_v12, %v2549_v39  ;;  %14496 = vst [vmem:[#allocation208_spill] sm:$0xff] %v11514_v30  ;;  %v2564_v19 = vmul.f32 0.33, %v2052_v45  ;;  %v2580_v61 = vmul.f32 0.33, %v2068_v53  ;;  %v11518_v47 = vadd.f32 %v10220_v1, %v14481_v43 }
 0x235   : > { %v8904_v28 = vpack.c.bf16 %v2805_v33, %v2789_v63  ;;  %8873 = vmatpush1.bf16.msra.mxu0 %v8872_v41  ;;  %v2054_v27 = vadd.f32 %v10300_v6, %v11514_v30  ;;  %v11524_v7 = vadd.f32 %v10210_v60, %v14484_v8  ;;  %v11528_v33 = vadd.f32 %v10220_v1, %v14484_v8 }
 0x236   : > { %14497 = vst [vmem:[#allocation209_spill] sm:$0xff] %v11518_v47  ;;  %v2820_v12 = vsel %vm2308_vm14, %v2052_v45, %v2564_v19  ;;  %v11532_v48 = vadd.f32 %v10210_v60, %v14486_v26  ;;  %v11536_v54 = vadd.f32 %v10220_v1, %v14486_v26  ;;  %v2836_v39 = vsel %vm2324_vm15, %v2068_v53, %v2580_v61 }
 0x237   : > { %14498 = vst [vmem:[#allocation210_spill] sm:$0xff] %v11524_v7  ;;  %8905 = vmatpush1.bf16.msra.mxu1 %v8904_v28  ;;  %v2070_v32 = vadd.f32 %v10325_v51, %v11518_v47  ;;  %vm2310_vm1 = vcmp.gt.f32.partialorder %v2054_v27, 0.0  ;;  %v2566_v4 = vmul.f32 0.33, %v2054_v27  ;;  %v8874_v41 = vpack.c.bf16 %v2836_v39, %v2820_v12 }
 0x238   : > { %14499 = vst [vmem:[#allocation211_spill] sm:$0xff] %v11532_v48  ;;  %14500 = vst [vmem:[#allocation212_spill] sm:$0xff] %v11536_v54  ;;  %v2051_v19 = vadd.f32 %v10300_v6, %v11524_v7  ;;  %v2067_v45 = vadd.f32 %v10325_v51, %v11528_v33  ;;  %v2053_v60 = vadd.f32 %v10300_v6, %v11532_v48 }
 0x239   : > { %vm2326_vm2 = vcmp.gt.f32.partialorder %v2070_v32, 0.0  ;;  %v2582_v63 = vmul.f32 0.33, %v2070_v32  ;;  %v2822_v1 = vsel %vm2310_vm1, %v2054_v27, %v2566_v4  ;;  %v2069_v53 = vadd.f32 %v10325_v51, %v11536_v54  ;;  %8875 = vmatprep.subr.bf16.mxu0 %v8874_v41 }
 0x23a   : > { %vm2307_vm3 = vcmp.gt.f32.partialorder %v2051_v19, 0.0  ;;  %vm2323_vm4 = vcmp.gt.f32.partialorder %v2067_v45, 0.0  ;;  %v2563_v28 = vmul.f32 0.33, %v2051_v19  ;;  %v2579_v61 = vmul.f32 0.33, %v2067_v45 }
 0x23b   : > { %v2838_v12 = vsel %vm2326_vm2, %v2070_v32, %v2582_v63  ;;  %vm2309_vm5 = vcmp.gt.f32.partialorder %v2053_v60, 0.0  ;;  %vm2325_vm6 = vcmp.gt.f32.partialorder %v2069_v53, 0.0  ;;  %v2565_v39 = vmul.f32 0.33, %v2053_v60 }
 0x23c   : > { %v8906_v30 = vpack.c.bf16 %v2838_v12, %v2822_v1  ;;  %v2819_v47 = vsel %vm2307_vm3, %v2051_v19, %v2563_v28  ;;  %v2835_v46 = vsel %vm2323_vm4, %v2067_v45, %v2579_v61  ;;  %v2581_v7 = vmul.f32 0.33, %v2069_v53 }
 0x23d   : > { %v8876_v48 = vpack.c.bf16 %v2835_v46, %v2819_v47  ;;  %v2821_v34 = vsel %vm2309_vm5, %v2053_v60, %v2565_v39  ;;  %v11550_v27 = vadd.f32 %v10259_v56, %v14479_v23  ;;  %v11554_v4 = vadd.f32 %v10272_v5, %v14479_v23 }
 0x23e   : > { %8907 = vmatprep.subr.bf16.mxu1 %v8906_v30  ;;  %v2837_v41 = vsel %vm2325_vm6, %v2069_v53, %v2581_v7  ;;  %v11558_v32 = vadd.f32 %v10259_v56, %v14481_v43  ;;  %v11562_v19 = vadd.f32 %v10272_v5, %v14481_v43  ;;  %v11566_v46 = vadd.f32 %v10259_v56, %v14484_v8 }
 0x23f   : > { %14501 = vst [vmem:[#allocation213_spill] sm:$0xff] %v11550_v27  ;;  %14502 = vst [vmem:[#allocation214_spill] sm:$0xff] %v11554_v4  ;;  %8877 = vmatpush1.bf16.msra.mxu0 %v8876_v48  ;;  %v8908_v47 = vpack.c.bf16 %v2837_v41, %v2821_v34  ;;  %v2084_v45 = vadd.f32 %v10374_v13, %v11550_v27  ;;  %v2100_v30 = vadd.f32 %v10376_v59, %v11554_v4 }
 0x240   : > { %14503 = vst [vmem:[#allocation215_spill] sm:$0xff] %v11558_v32  ;;  %14504 = vst [vmem:[#allocation216_spill] sm:$0xff] %v11562_v19  ;;  %v11574_v7 = vadd.f32 %v10272_v5, %v14484_v8  ;;  %v2086_v60 = vadd.f32 %v10374_v13, %v11558_v32  ;;  %v2102_v63 = vadd.f32 %v10376_v59, %v11562_v19 }
 0x241   : > { %14505 = vst [vmem:[#allocation217_spill] sm:$0xff] %v11566_v46  ;;  %v2083_v48 = vadd.f32 %v10374_v13, %v11566_v46  ;;  %v11584_v34 = vadd.f32 %v10259_v56, %v14486_v26  ;;  %8909 = vmatpush1.bf16.msra.mxu1 %v8908_v47  ;;  %vm2340_vm7 = vcmp.gt.f32.partialorder %v2084_v45, 0.0  ;;  %vm2356_vm8 = vcmp.gt.f32.partialorder %v2100_v30, 0.0 }
 0x242   : > { %v2596_v1 = vmul.f32 0.33, %v2084_v45  ;;  %v2612_v53 = vmul.f32 0.33, %v2100_v30  ;;  %vm2342_vm9 = vcmp.gt.f32.partialorder %v2086_v60, 0.0  ;;  %vm2358_vm10 = vcmp.gt.f32.partialorder %v2102_v63, 0.0 }
 0x243   : > { %v2598_v28 = vmul.f32 0.33, %v2086_v60  ;;  %v2614_v61 = vmul.f32 0.33, %v2102_v63  ;;  %v2099_v41 = vadd.f32 %v10376_v59, %v11574_v7  ;;  %vm2339_vm11 = vcmp.gt.f32.partialorder %v2083_v48, 0.0 }
 0x244   : > { %v2852_v12 = vsel %vm2340_vm7, %v2084_v45, %v2596_v1  ;;  %v2868_v39 = vsel %vm2356_vm8, %v2100_v30, %v2612_v53  ;;  %v2595_v56 = vmul.f32 0.33, %v2083_v48  ;;  %v11590_v46 = vadd.f32 %v10272_v5, %v14486_v26 }
 0x245   : > { %v8878_v32 = vpack.c.bf16 %v2868_v39, %v2852_v12  ;;  %v2854_v19 = vsel %vm2342_vm9, %v2086_v60, %v2598_v28  ;;  %v2870_v54 = vsel %vm2358_vm10, %v2102_v63, %v2614_v61  ;;  %vm2355_vm12 = vcmp.gt.f32.partialorder %v2099_v41, 0.0 }
 0x246   : > { %v8910_v27 = vpack.c.bf16 %v2870_v54, %v2854_v19  ;;  %v2611_v47 = vmul.f32 0.33, %v2099_v41  ;;  %v2851_v4 = vsel %vm2339_vm11, %v2083_v48, %v2595_v56  ;;  %v2085_v45 = vadd.f32 %v10374_v13, %v11584_v34 }
 0x247   : > { %8879 = vmatprep.subr.bf16.mxu0 %v8878_v32  ;;  %v11596_v30 = vadd.f32 %v10226_v11, %v14479_v23  ;;  %v11600_v60 = vadd.f32 %v10232_v16, %v14479_v23  ;;  %v2101_v19 = vadd.f32 %v10376_v59, %v11590_v46  ;;  %v11606_v5 = vadd.f32 %v10226_v11, %v14481_v43 }
 0x248   : > { %8911 = vmatprep.subr.bf16.mxu1 %v8910_v27  ;;  %v2867_v54 = vsel %vm2355_vm12, %v2099_v41, %v2611_v47  ;;  %v11610_v32 = vadd.f32 %v10232_v16, %v14481_v43  ;;  %vm2341_vm13 = vcmp.gt.f32.partialorder %v2085_v45, 0.0  ;;  %v2597_v48 = vmul.f32 0.33, %v2085_v45 }
 0x249   : > { %14506 = vst [vmem:[#allocation218_spill] sm:$0xff] %v11596_v30  ;;  %14507 = vst [vmem:[#allocation219_spill] sm:$0xff] %v11600_v60  ;;  %v8880_v63 = vpack.c.bf16 %v2867_v54, %v2851_v4  ;;  %v2116_v1 = vadd.f32 %v10414_v58, %v11596_v30  ;;  %vm2357_vm14 = vcmp.gt.f32.partialorder %v2101_v19, 0.0  ;;  %v2613_v27 = vmul.f32 0.33, %v2101_v19 }
 0x24a   : > { %14508 = vst [vmem:[#allocation220_spill] sm:$0xff] %v11606_v5  ;;  %14509 = vst [vmem:[#allocation221_spill] sm:$0xff] %v11610_v32  ;;  %v2132_v53 = vadd.f32 %v10420_v17, %v11600_v60  ;;  %v2118_v28 = vadd.f32 %v10414_v58, %v11606_v5  ;;  %v2853_v61 = vsel %vm2341_vm13, %v2085_v45, %v2597_v48 }
 0x24b   : > { %8881 = vmatpush1.bf16.msra.mxu0 %v8880_v63  ;;  %vm2372_vm15 = vcmp.gt.f32.partialorder %v2116_v1, 0.0  ;;  %v2628_v12 = vmul.f32 0.33, %v2116_v1  ;;  %v2134_v4 = vadd.f32 %v10420_v17, %v11610_v32  ;;  %v2869_v39 = vsel %vm2357_vm14, %v2101_v19, %v2613_v27 }
 0x24c   : > { %vm2388_vm1 = vcmp.gt.f32.partialorder %v2132_v53, 0.0  ;;  %v2644_v41 = vmul.f32 0.33, %v2132_v53  ;;  %vm2374_vm2 = vcmp.gt.f32.partialorder %v2118_v28, 0.0  ;;  %v8912_v56 = vpack.c.bf16 %v2869_v39, %v2853_v61 }
 0x24d   : > { %v2884_v47 = vsel %vm2372_vm15, %v2116_v1, %v2628_v12  ;;  %vm2390_vm3 = vcmp.gt.f32.partialorder %v2134_v4, 0.0  ;;  %v2630_v54 = vmul.f32 0.33, %v2118_v28  ;;  %v2646_v60 = vmul.f32 0.33, %v2134_v4 }
 0x24e   : > { %v2900_v30 = vsel %vm2388_vm1, %v2132_v53, %v2644_v41  ;;  %v11622_v5 = vadd.f32 %v10226_v11, %v14484_v8  ;;  %v11626_v45 = vadd.f32 %v10232_v16, %v14484_v8  ;;  %8913 = vmatpush1.bf16.msra.mxu1 %v8912_v56  ;;  %v11630_v48 = vadd.f32 %v10226_v11, %v14486_v26 }
 0x24f   : > { %v8882_v63 = vpack.c.bf16 %v2900_v30, %v2884_v47  ;;  %v2886_v19 = vsel %vm2374_vm2, %v2118_v28, %v2630_v54  ;;  %v11634_v1 = vadd.f32 %v10232_v16, %v14486_v26  ;;  %v2902_v27 = vsel %vm2390_vm3, %v2134_v4, %v2646_v60 }
 0x250   : > { %14510 = vst [vmem:[#allocation222_spill] sm:$0xff] %v11622_v5  ;;  %14511 = vst [vmem:[#allocation223_spill] sm:$0xff] %v11630_v48  ;;  %v2115_v53 = vadd.f32 %v10414_v58, %v11622_v5  ;;  %v2131_v61 = vadd.f32 %v10420_v17, %v11626_v45  ;;  %v11642_v12 = vadd.f32 %v10283_v22, %v14479_v23 }
 0x251   : > { %14512 = vst [vmem:[#allocation224_spill] sm:$0xff] %v11634_v1  ;;  %8883 = vmatprep.subr.bf16.mxu0 %v8882_v63  ;;  %v8914_v30 = vpack.c.bf16 %v2902_v27, %v2886_v19  ;;  %v2117_v11 = vadd.f32 %v10414_v58, %v11630_v48  ;;  %v2133_v16 = vadd.f32 %v10420_v17, %v11634_v1 }
 0x252   : > { %14513 = vst [vmem:[#allocation225_spill] sm:$0xff] %v11642_v12  ;;  %v11650_v60 = vadd.f32 %v10285_v2, %v14479_v23  ;;  %vm2371_vm4 = vcmp.gt.f32.partialorder %v2115_v53, 0.0  ;;  %vm2387_vm5 = vcmp.gt.f32.partialorder %v2131_v61, 0.0  ;;  %v2627_v28 = vmul.f32 0.33, %v2115_v53 }
 0x253   : > { %v2643_v4 = vmul.f32 0.33, %v2131_v61  ;;  %8915 = vmatprep.subr.bf16.mxu1 %v8914_v30  ;;  %vm2373_vm6 = vcmp.gt.f32.partialorder %v2117_v11, 0.0  ;;  %vm2389_vm7 = vcmp.gt.f32.partialorder %v2133_v16, 0.0  ;;  %v2629_v39 = vmul.f32 0.33, %v2117_v11 }
 0x254   : > { %v2645_v41 = vmul.f32 0.33, %v2133_v16  ;;  %v2883_v56 = vsel %vm2371_vm4, %v2115_v53, %v2627_v28  ;;  %v2148_v54 = vadd.f32 %v10466_v57, %v11642_v12  ;;  %v2164_v63 = vadd.f32 %v10472_v21, %v11650_v60 }
 0x255   : > { %v2899_v47 = vsel %vm2387_vm5, %v2131_v61, %v2643_v4  ;;  %v2885_v27 = vsel %vm2373_vm6, %v2117_v11, %v2629_v39  ;;  %v11658_v32 = vadd.f32 %v10283_v22, %v14481_v43  ;;  %v11662_v61 = vadd.f32 %v10285_v2, %v14481_v43 }
 0x256   : > { %v8884_v19 = vpack.c.bf16 %v2899_v47, %v2883_v56  ;;  %v2901_v48 = vsel %vm2389_vm7, %v2133_v16, %v2645_v41  ;;  %vm2404_vm8 = vcmp.gt.f32.partialorder %v2148_v54, 0.0  ;;  %vm2420_vm9 = vcmp.gt.f32.partialorder %v2164_v63, 0.0 }
 0x257   : > { %14514 = vst [vmem:[#allocation226_spill] sm:$0xff] %v11658_v32  ;;  %v8916_v30 = vpack.c.bf16 %v2901_v48, %v2885_v27  ;;  %v2660_v1 = vmul.f32 0.33, %v2148_v54  ;;  %v2676_v53 = vmul.f32 0.33, %v2164_v63  ;;  %14515 = vst [vmem:[#allocation227_spill] sm:$0xff] %v11662_v61  ;;  %v2150_v28 = vadd.f32 %v10466_v57, %v11658_v32 }
 0x258   : > { %8885 = vmatpush1.bf16.msra.mxu0 %v8884_v19  ;;  %v11668_v11 = vadd.f32 %v10283_v22, %v14484_v8  ;;  %v11672_v48 = vadd.f32 %v10285_v2, %v14484_v8  ;;  %v11676_v4 = vadd.f32 %v10283_v22, %v14486_v26  ;;  %v11680_v39 = vadd.f32 %v10285_v2, %v14486_v26 }
 0x259   : > { %8917 = vmatpush1.bf16.msra.mxu1 %v8916_v30  ;;  %v2916_v16 = vsel %vm2404_vm8, %v2148_v54, %v2660_v1  ;;  %v2932_v41 = vsel %vm2420_vm9, %v2164_v63, %v2676_v53  ;;  %v2166_v56 = vadd.f32 %v10472_v21, %v11662_v61  ;;  %vm2406_vm10 = vcmp.gt.f32.partialorder %v2150_v28, 0.0 }
 0x25a   : > { %14516 = vst [vmem:[#allocation228_spill] sm:$0xff] %v11668_v11  ;;  %14517 = vst [vmem:[#allocation229_spill] sm:$0xff] %v11676_v4  ;;  %v2662_v47 = vmul.f32 0.33, %v2150_v28  ;;  %v8886_v19 = vpack.c.bf16 %v2932_v41, %v2916_v16  ;;  %v2147_v1 = vadd.f32 %v10466_v57, %v11668_v11  ;;  %v2163_v54 = vadd.f32 %v10472_v21, %v11672_v48 }
 0x25b   : > { %v2149_v22 = vadd.f32 %v10466_v57, %v11676_v4  ;;  %vm2422_vm11 = vcmp.gt.f32.partialorder %v2166_v56, 0.0  ;;  %v2678_v27 = vmul.f32 0.33, %v2166_v56  ;;  %v2165_v63 = vadd.f32 %v10472_v21, %v11680_v39 }
 0x25c   : > { %v2918_v2 = vsel %vm2406_vm10, %v2150_v28, %v2662_v47  ;;  %8887 = vmatprep.subr.bf16.mxu0 %v8886_v19  ;;  %vm2403_vm12 = vcmp.gt.f32.partialorder %v2147_v1, 0.0  ;;  %vm2419_vm13 = vcmp.gt.f32.partialorder %v2163_v54, 0.0  ;;  %v2659_v30 = vmul.f32 0.33, %v2147_v1 }
 0x25d   : > { %v2675_v53 = vmul.f32 0.33, %v2163_v54  ;;  %v2934_v16 = vsel %vm2422_vm11, %v2166_v56, %v2678_v27  ;;  %vm2405_vm14 = vcmp.gt.f32.partialorder %v2149_v22, 0.0  ;;  %vm2421_vm15 = vcmp.gt.f32.partialorder %v2165_v63, 0.0 }
 0x25e   : > { %v2661_v41 = vmul.f32 0.33, %v2149_v22  ;;  %v8918_v32 = vpack.c.bf16 %v2934_v16, %v2918_v2  ;;  %v2915_v61 = vsel %vm2403_vm12, %v2147_v1, %v2659_v30  ;;  %v2677_v11 = vmul.f32 0.33, %v2165_v63 }
 0x25f   : > { %v2931_v12 = vsel %vm2419_vm13, %v2163_v54, %v2675_v53  ;;  %v11694_v28 = vadd.f32 %v10270_v3, %v14479_v23  ;;  %v1860_v47 = vadd.f32 %v10279_v10, %v14479_v23  ;;  %v11700_v56 = vadd.f32 %v10270_v3, %v14481_v43 }
 0x260   : > { %v8888_v4 = vpack.c.bf16 %v2931_v12, %v2915_v61  ;;  %v2917_v5 = vsel %vm2405_vm14, %v2149_v22, %v2661_v41  ;;  %8919 = vmatprep.subr.bf16.mxu1 %v8918_v32  ;;  %v2933_v19 = vsel %vm2421_vm15, %v2165_v63, %v2677_v11  ;;  %v11704_v1 = vadd.f32 %v10279_v10, %v14481_v43 }
 0x261   : > { %14518 = vst [vmem:[#allocation230_spill] sm:$0xff] %v11694_v28  ;;  %14519 = vst [vmem:[#allocation231_spill] sm:$0xff] %v11700_v56  ;;  %v1843_v12 = vadd.f32 %v10270_v3, %v14484_v8  ;;  %v8920_v61 = vpack.c.bf16 %v2933_v19, %v2917_v5  ;;  %v2180_v54 = vadd.f32 %v10518_v14, %v11694_v28 }
 0x262   : > { %14520 = vst [vmem:[#allocation232_spill] sm:$0xff] %v11704_v1  ;;  %8889 = vmatpush1.bf16.msra.mxu0 %v8888_v4  ;;  %v2196_v22 = vadd.f32 %v10524_v62, %v1860_v47  ;;  %v11713_v32 = vadd.f32 %v10279_v10, %v14484_v8  ;;  %v2182_v11 = vadd.f32 %v10518_v14, %v11700_v56 }
 0x263   : > { %v2198_v27 = vadd.f32 %v10524_v62, %v11704_v1  ;;  %v2179_v2 = vadd.f32 %v10518_v14, %v1843_v12  ;;  %v11722_v5 = vadd.f32 %v10270_v3, %v14486_v26  ;;  %8921 = vmatpush1.bf16.msra.mxu1 %v8920_v61  ;;  %vm2436_vm1 = vcmp.gt.f32.partialorder %v2180_v54, 0.0 }
 0x264   : > { %vm2452_vm2 = vcmp.gt.f32.partialorder %v2196_v22, 0.0  ;;  %v2692_v4 = vmul.f32 0.33, %v2180_v54  ;;  %v2708_v63 = vmul.f32 0.33, %v2196_v22  ;;  %vm2438_vm3 = vcmp.gt.f32.partialorder %v2182_v11, 0.0 }
 0x265   : > { %14521 = vst [vmem:[#allocation233_spill] sm:$0xff] %v11722_v5  ;;  %vm2454_vm4 = vcmp.gt.f32.partialorder %v2198_v27, 0.0  ;;  %v2694_v30 = vmul.f32 0.33, %v2182_v11  ;;  %v2710_v53 = vmul.f32 0.33, %v2198_v27  ;;  %v2195_v47 = vadd.f32 %v10524_v62, %v11713_v32 }
 0x266   : > { %v2948_v16 = vsel %vm2436_vm1, %v2180_v54, %v2692_v4  ;;  %v11724_v41 = vsel %vm2452_vm2, %v2196_v22, %v2708_v63  ;;  %vm2435_vm5 = vcmp.gt.f32.partialorder %v2179_v2, 0.0  ;;  %v2691_v61 = vmul.f32 0.33, %v2179_v2 }
 0x267   : > { %v8890_v19 = vpack.c.bf16 %v11724_v41, %v2948_v16  ;;  %v2950_v3 = vsel %vm2438_vm3, %v2182_v11, %v2694_v30  ;;  %v2966_v12 = vsel %vm2454_vm4, %v2198_v27, %v2710_v53  ;;  %vm2451_vm6 = vcmp.gt.f32.partialorder %v2195_v47, 0.0 }
 0x268   : > { %v8922_v56 = vpack.c.bf16 %v2966_v12, %v2950_v3  ;;  %v2707_v1 = vmul.f32 0.33, %v2195_v47  ;;  %v11731_v28 = vadd.f32 %v10279_v10, %v14486_v26  ;;  %v11733_v54 = vsel %vm2435_vm5, %v2179_v2, %v2691_v61 }
 0x269   : > { %8891 = vmatprep.subr.bf16.mxu0 %v8890_v19  ;;  %14523 = vst [vmem:[#allocation235_spill] sm:$0xff] %v11733_v54  ;;  %v2181_v22 = vadd.f32 %v10518_v14, %v11722_v5  ;;  %v11739_v4 = vadd.f32 %v10309_v9, %v14479_v23  ;;  %v11743_v11 = vadd.f32 %v10327_v52, %v14479_v23 }
 0x26a   : > { %14522 = vst [vmem:[#allocation234_spill] sm:$0xff] %v11731_v28  ;;  %8923 = vmatprep.subr.bf16.mxu1 %v8922_v56  ;;  %v2963_v27 = vsel %vm2451_vm6, %v2195_v47, %v2707_v1  ;;  %v2197_v10 = vadd.f32 %v10524_v62, %v11731_v28  ;;  %v11749_v2 = vadd.f32 %v10309_v9, %v14481_v43 }
 0x26b   : > { %14524 = vst [vmem:[#allocation236_spill] sm:$0xff] %v11739_v4  ;;  %v1894_v63 = vadd.f32 %v10327_v52, %v14481_v43  ;;  %v8892_v30 = vpack.c.bf16 %v2963_v27, %v11733_v54  ;;  %vm2437_vm7 = vcmp.gt.f32.partialorder %v2181_v22, 0.0  ;;  %v2693_v53 = vmul.f32 0.33, %v2181_v22 }
 0x26c   : > { %14525 = vst [vmem:[#allocation237_spill] sm:$0xff] %v11749_v2  ;;  %v2212_v23 = vadd.f32 %v10570_v25, %v11739_v4  ;;  %vm2453_vm8 = vcmp.gt.f32.partialorder %v2197_v10, 0.0  ;;  %v2709_v56 = vmul.f32 0.33, %v2197_v10  ;;  %v2228_v1 = vadd.f32 %v10576_v55, %v11743_v11 }
 0x26d   : > { %v2214_v16 = vadd.f32 %v10570_v25, %v11749_v2  ;;  %8893 = vmatpush1.bf16.msra.mxu0 %v8892_v30  ;;  %v2949_v47 = vsel %vm2437_vm7, %v2181_v22, %v2693_v53  ;;  %v2230_v43 = vadd.f32 %v10576_v55, %v1894_v63  ;;  %v11763_v4 = vadd.f32 %v10309_v9, %v14484_v8  ;;  %v14532_v2 = vld [vmem:[#allocation19_spill] sm:$0xff] }
 0x26e   : > { %vm2468_vm9 = vcmp.gt.f32.partialorder %v2212_v23, 0.0  ;;  %v2724_v19 = vmul.f32 0.33, %v2212_v23  ;;  %v2965_v3 = vsel %vm2453_vm8, %v2197_v10, %v2709_v56  ;;  %vm2484_vm10 = vcmp.gt.f32.partialorder %v2228_v1, 0.0 }
 0x26f   : > { %v2740_v12 = vmul.f32 0.33, %v2228_v1  ;;  %vm2470_vm11 = vcmp.gt.f32.partialorder %v2214_v16, 0.0  ;;  %v8924_v61 = vpack.c.bf16 %v2965_v3, %v2949_v47  ;;  %vm2486_vm12 = vcmp.gt.f32.partialorder %v2230_v43, 0.0 }
 0x270   : > { %v2980_v27 = vsel %vm2468_vm9, %v2212_v23, %v2724_v19  ;;  %v2726_v5 = vmul.f32 0.33, %v2214_v16  ;;  %v2742_v28 = vmul.f32 0.33, %v2230_v43  ;;  %v11767_v22 = vadd.f32 %v10327_v52, %v14484_v8  ;;  %v14528_v8 = vld [vmem:[#allocation14_spill] sm:$0xff] }
 0x271   : > { %v2996_v54 = vsel %vm2484_vm10, %v2228_v1, %v2740_v12  ;;  %8925 = vmatpush1.bf16.msra.mxu1 %v8924_v61  ;;  %v1877_v30 = vadd.f32 %v10309_v9, %v14486_v26  ;;  %v11773_v53 = vadd.f32 %v10327_v52, %v14486_v26  ;;  %v2211_v56 = vadd.f32 %v10570_v25, %v11763_v4  ;;  %v14529_v26 = vld [vmem:[#allocation25_spill] sm:$0xff] }
 0x272   : > { %v8894_v63 = vpack.c.bf16 %v2996_v54, %v2980_v27  ;;  %v2982_v10 = vsel %vm2470_vm11, %v2214_v16, %v2726_v5  ;;  %v11775_v23 = vsel %vm2486_vm12, %v2230_v43, %v2742_v28  ;;  %v2227_v1 = vadd.f32 %v10576_v55, %v11767_v22 }
 0x273   : > { %14526 = vst [vmem:[#allocation238_spill] sm:$0xff] %v11773_v53  ;;  %14527 = vst [vmem:[#allocation239_spill] sm:$0xff] %v11775_v23  ;;  %v2999_v47 = vadd.f32 %v10150_v35, %v14528_v8  ;;  %v8926_v5 = vpack.c.bf16 %v11775_v23, %v2982_v10  ;;  %v2213_v9 = vadd.f32 %v10570_v25, %v1877_v30  ;;  %vm2467_vm13 = vcmp.gt.f32.partialorder %v2211_v56, 0.0  ;;  %v14531_v30 = vld [vmem:[#allocation22_spill] sm:$0xff] }
 0x274   : > { %8895 = vmatprep.subr.bf16.mxu0 %v8894_v63  ;;  %v2229_v52 = vadd.f32 %v10576_v55, %v11773_v53  ;;  %v3001_v28 = vadd.f32 %v10150_v35, %v14529_v26  ;;  %vm2483_vm14 = vcmp.gt.f32.partialorder %v2227_v1, 0.0  ;;  %v2723_v54 = vmul.f32 0.33, %v2211_v56 }
 0x275   : > { %v2739_v16 = vmul.f32 0.33, %v2227_v1  ;;  %8927 = vmatprep.subr.bf16.mxu1 %v8926_v5  ;;  %vm2469_vm15 = vcmp.gt.f32.partialorder %v2213_v9, 0.0  ;;  %v2725_v19 = vmul.f32 0.33, %v2213_v9  ;;  %vm3239_vm2 = vcmp.gt.f32.partialorder %v2999_v47, 0.0 }
 0x276   : > { %vm2485_vm1 = vcmp.gt.f32.partialorder %v2229_v52, 0.0  ;;  %v2741_v43 = vmul.f32 0.33, %v2229_v52  ;;  %v2979_v3 = vsel %vm2467_vm13, %v2211_v56, %v2723_v54  ;;  %v3479_v61 = vmul.f32 0.33, %v2999_v47 }
 0x277   : > { %v2995_v12 = vsel %vm2483_vm14, %v2227_v1, %v2739_v16  ;;  %v11789_v63 = vsel %vm2469_vm15, %v2213_v9, %v2725_v19  ;;  %v3016_v8 = vadd.f32 %v10192_v50, %v14531_v30  ;;  %vm3241_vm3 = vcmp.gt.f32.partialorder %v3001_v28, 0.0  ;;  %v14533_v1 = vld [vmem:[#allocation10_spill] sm:$0xff]  ;;  %v14534_v16 = vld [vmem:[#allocation24_spill] sm:$0xff]  ;;  %v14535_v19 = vld [vmem:[#allocation21_spill] sm:$0xff] }
 0x278   : > { %v8896_v27 = vpack.c.bf16 %v2995_v12, %v2979_v3  ;;  %14530 = vst [vmem:[#allocation14_spill] sm:$0xff] %v11789_v63  ;;  %v2997_v10 = vsel %vm2485_vm1, %v2229_v52, %v2741_v43  ;;  %v3719_v23 = vsel %vm3239_vm2, %v2999_v47, %v3479_v61  ;;  %v3481_v5 = vmul.f32 0.33, %v3001_v28  ;;  %v14536_v3 = vld [vmem:[#allocation15_spill] sm:$0xff] }
 0x279   : > { %v8928_v26 = vpack.c.bf16 %v2997_v10, %v11789_v63  ;;  %v8930_v53 = vpack.c.bf16 %v14532_v2, %v3719_v23  ;;  %vm3256_vm4 = vcmp.gt.f32.partialorder %v3016_v8, 0.0  ;;  %v3496_v56 = vmul.f32 0.33, %v3016_v8  ;;  %v14537_v23 = vld [vmem:[#allocation13_spill] sm:$0xff] }
 0x27a   : > { %8897 = vmatpush1.bf16.msra.mxu0 %v8896_v27  ;;  %v3014_v54 = vadd.f32 %v10192_v50, %v14533_v1  ;;  %v3721_v9 = vsel %vm3241_vm3, %v3001_v28, %v3481_v5  ;;  %v3000_v52 = vadd.f32 %v10150_v35, %v14534_v16  ;;  %v3015_v43 = vadd.f32 %v10192_v50, %v14535_v19  ;;  %v14540_v19 = vld [vmem:[#allocation12_spill] sm:$0xff] }
 0x27b   : > { %8929 = vmatpush1.bf16.msra.mxu1 %v8928_v26  ;;  %v3030_v47 = vadd.f32 %v10218_v0, %v14536_v3  ;;  %8931 = vmatprep.subr.bf16.mxu0 %v8930_v53  ;;  %v3736_v12 = vsel %vm3256_vm4, %v3016_v8, %v3496_v56  ;;  %v3045_v61 = vadd.f32 %v10246_v44, %v14537_v23  ;;  %v14538_v53 = vld [vmem:[#allocation20_spill] sm:$0xff] }
 0x27c   : > { %vm3254_vm5 = vcmp.gt.f32.partialorder %v3014_v54, 0.0  ;;  %v3494_v2 = vmul.f32 0.33, %v3014_v54  ;;  %v8962_v27 = vpack.c.bf16 %v3736_v12, %v3721_v9  ;;  %vm3240_vm6 = vcmp.gt.f32.partialorder %v3000_v52, 0.0  ;;  %v14539_v9 = vld [vmem:[#allocation27_spill] sm:$0xff] }
 0x27d   : > { %4451 = vmatmul.mubr.f32.vlgmr.msra.gmra.mrb[20].mxu0 %v11436_v40  ;;  %vm3255_vm7 = vcmp.gt.f32.partialorder %v3015_v43, 0.0  ;;  %v3480_v28 = vmul.f32 0.33, %v3000_v52  ;;  %v3495_v30 = vmul.f32 0.33, %v3015_v43  ;;  %vm3270_vm8 = vcmp.gt.f32.partialorder %v3030_v47, 0.0 }
 0x27e   : > { %4522 = vmatmul.mubr.f32.vlgmr.msra.gmra.mrb[24].mxu1 %v11436_v40  ;;  %v3734_v10 = vsel %vm3254_vm5, %v3014_v54, %v3494_v2  ;;  %vm3285_vm9 = vcmp.gt.f32.partialorder %v3045_v61, 0.0  ;;  %4593 = vmatprep.mubr.f32.mxu0 %v14363_v31  ;;  %v3510_v5 = vmul.f32 0.33, %v3030_v47  ;;  %v3525_v56 = vmul.f32 0.33, %v3045_v61  ;;  %v14541_v54 = vld [vmem:[#allocation11_spill] sm:$0xff] }
 0x27f   : > { %8963 = vmatprep.subr.bf16.mxu1 %v8962_v27  ;;  %v8932_v8 = vpack.c.bf16 %v3734_v10, %v14538_v53  ;;  %v3720_v26 = vsel %vm3240_vm6, %v3000_v52, %v3480_v28  ;;  %4664 = vmatprep.mubr.f32.mxu1 %v14363_v31  ;;  %v3735_v1 = vsel %vm3255_vm7, %v3015_v43, %v3495_v30  ;;  %v14542_v27 = vld [vmem:[#allocation23_spill] sm:$0xff] }
 0x280   : > { %v3031_v16 = vadd.f32 %v10218_v0, %v14539_v9  ;;  %v3029_v40 = vadd.f32 %v10218_v0, %v14540_v19  ;;  %v3044_v3 = vadd.f32 %v10246_v44, %v14541_v54  ;;  %v8964_v12 = vpack.c.bf16 %v3735_v1, %v3720_v26  ;;  %v14543_v19 = vld [vmem:[#allocation81_spill] sm:$0xff]  ;;  %v14545_v26 = vld [vmem:[#allocation26_spill] sm:$0xff] }
 0x281   : > { %8933 = vmatpush1.bf16.msra.mxu0 %v8932_v8  ;;  %v3750_v2 = vsel %vm3270_vm8, %v3030_v47, %v3510_v5  ;;  %v3765_v23 = vsel %vm3285_vm9, %v3045_v61, %v3525_v56  ;;  %v3046_v52 = vadd.f32 %v10246_v44, %v14542_v27  ;;  %v3060_v8 = vadd.f32 %v10300_v6, %v14543_v19  ;;  %v14544_v47 = vld [vmem:[#allocation77_spill] sm:$0xff] }
 0x282   : > { %v8934_v28 = vpack.c.bf16 %v3765_v23, %v3750_v2  ;;  %vm3271_vm10 = vcmp.gt.f32.partialorder %v3031_v16, 0.0  ;;  %v3511_v10 = vmul.f32 0.33, %v3031_v16  ;;  %vm3269_vm11 = vcmp.gt.f32.partialorder %v3029_v40, 0.0  ;;  %8965 = vmatpush1.bf16.msra.mxu1 %v8964_v12  ;;  %v14546_v54 = vld [vmem:[#allocation89_spill] sm:$0xff] }
 0x283   : > { %vm3284_vm12 = vcmp.gt.f32.partialorder %v3044_v3, 0.0  ;;  %v3509_v43 = vmul.f32 0.33, %v3029_v40  ;;  %v3524_v30 = vmul.f32 0.33, %v3044_v3  ;;  %vm3286_vm13 = vcmp.gt.f32.partialorder %v3046_v52, 0.0 }
 0x284   : > { %8935 = vmatprep.subr.bf16.mxu0 %v8934_v28  ;;  %v3751_v53 = vsel %vm3271_vm10, %v3031_v16, %v3511_v10  ;;  %v3526_v9 = vmul.f32 0.33, %v3046_v52  ;;  %v3075_v61 = vadd.f32 %v10325_v51, %v14544_v47  ;;  %v3062_v12 = vadd.f32 %v10300_v6, %v14546_v54  ;;  %v14547_v16 = vld [vmem:[#allocation33_spill] sm:$0xff] }
 0x285   : > { %v8966_v5 = vpack.c.bf16 %v14545_v26, %v3751_v53  ;;  %v3749_v56 = vsel %vm3269_vm11, %v3029_v40, %v3509_v43  ;;  %v3764_v1 = vsel %vm3284_vm12, %v3044_v3, %v3524_v30  ;;  %vm3300_vm14 = vcmp.gt.f32.partialorder %v3060_v8, 0.0  ;;  %v14548_v19 = vld [vmem:[#allocation85_spill] sm:$0xff]  ;;  %v14549_v40 = vld [vmem:[#allocation80_spill] sm:$0xff]  ;;  %v14550_v43 = vld [vmem:[#allocation18_spill] sm:$0xff] }
 0x286   : > { %v8936_v2 = vpack.c.bf16 %v3764_v1, %v3749_v56  ;;  %v3766_v23 = vsel %vm3286_vm13, %v3046_v52, %v3526_v9  ;;  %vm3315_vm15 = vcmp.gt.f32.partialorder %v3075_v61, 0.0  ;;  %v3540_v28 = vmul.f32 0.33, %v3060_v8 }
 0x287   : > { %8967 = vmatprep.subr.bf16.mxu1 %v8966_v5  ;;  %v8968_v27 = vpack.c.bf16 %v3766_v23, %v14547_v16  ;;  %v3555_v10 = vmul.f32 0.33, %v3075_v61  ;;  %v3077_v63 = vadd.f32 %v10325_v51, %v14548_v19  ;;  %vm3302_vm1 = vcmp.gt.f32.partialorder %v3062_v12, 0.0  ;;  %v14552_v19 = vld [vmem:[#allocation84_spill] sm:$0xff] }
 0x288   : > { %8937 = vmatpush1.bf16.msra.mxu0 %v8936_v2  ;;  %v3542_v53 = vmul.f32 0.33, %v3062_v12  ;;  %v3059_v3 = vadd.f32 %v10300_v6, %v14549_v40  ;;  %v3074_v30 = vadd.f32 %v10325_v51, %v14550_v43  ;;  %v3780_v52 = vsel %vm3300_vm14, %v3060_v8, %v3540_v28  ;;  %v14551_v2 = vld [vmem:[#allocation88_spill] sm:$0xff] }
 0x289   : > { %8969 = vmatpush1.bf16.msra.mxu1 %v8968_v27  ;;  %v3795_v9 = vsel %vm3315_vm15, %v3075_v61, %v3555_v10  ;;  %vm3317_vm2 = vcmp.gt.f32.partialorder %v3077_v63, 0.0  ;;  %v3557_v47 = vmul.f32 0.33, %v3077_v63  ;;  %v3061_v23 = vadd.f32 %v10300_v6, %v14551_v2  ;;  %v14553_v27 = vld [vmem:[#allocation83_spill] sm:$0xff] }
 0x28a   : > { %v8938_v26 = vpack.c.bf16 %v3795_v9, %v3780_v52  ;;  %v3782_v5 = vsel %vm3302_vm1, %v3062_v12, %v3542_v53  ;;  %vm3299_vm3 = vcmp.gt.f32.partialorder %v3059_v3, 0.0  ;;  %vm3314_vm4 = vcmp.gt.f32.partialorder %v3074_v30, 0.0  ;;  %v14554_v61 = vld [vmem:[#allocation79_spill] sm:$0xff] }
 0x28b   : > { %v3797_v56 = vsel %vm3317_vm2, %v3077_v63, %v3557_v47  ;;  %v3539_v1 = vmul.f32 0.33, %v3059_v3  ;;  %v3554_v54 = vmul.f32 0.33, %v3074_v30  ;;  %v3076_v40 = vadd.f32 %v10325_v51, %v14552_v19  ;;  %v14556_v2 = vld [vmem:[#allocation87_spill] sm:$0xff] }
 0x28c   : > { %8939 = vmatprep.subr.bf16.mxu0 %v8938_v26  ;;  %v8970_v16 = vpack.c.bf16 %v3797_v56, %v3782_v5  ;;  %v3090_v8 = vadd.f32 %v10374_v13, %v14553_v27  ;;  %v3105_v28 = vadd.f32 %v10376_v59, %v14554_v61  ;;  %vm3301_vm5 = vcmp.gt.f32.partialorder %v3061_v23, 0.0  ;;  %v14555_v5 = vld [vmem:[#allocation91_spill] sm:$0xff]  ;;  %v14558_v27 = vld [vmem:[#allocation78_spill] sm:$0xff] }
 0x28d   : > { %v3779_v12 = vsel %vm3299_vm3, %v3059_v3, %v3539_v1  ;;  %v3794_v10 = vsel %vm3314_vm4, %v3074_v30, %v3554_v54  ;;  %v3541_v63 = vmul.f32 0.33, %v3061_v23  ;;  %vm3316_vm6 = vcmp.gt.f32.partialorder %v3076_v40, 0.0  ;;  %v14557_v30 = vld [vmem:[#allocation82_spill] sm:$0xff] }
 0x28e   : > { %8971 = vmatprep.subr.bf16.mxu1 %v8970_v16  ;;  %v8940_v53 = vpack.c.bf16 %v3794_v10, %v3779_v12  ;;  %v3556_v43 = vmul.f32 0.33, %v3076_v40  ;;  %vm3330_vm7 = vcmp.gt.f32.partialorder %v3090_v8, 0.0  ;;  %vm3345_vm8 = vcmp.gt.f32.partialorder %v3105_v28, 0.0 }
 0x28f   : > { %v3781_v52 = vsel %vm3301_vm5, %v3061_v23, %v3541_v63  ;;  %v3570_v9 = vmul.f32 0.33, %v3090_v8  ;;  %v3585_v47 = vmul.f32 0.33, %v3105_v28  ;;  %v3092_v56 = vadd.f32 %v10374_v13, %v14555_v5 }
 0x290   : > { %8941 = vmatpush1.bf16.msra.mxu0 %v8940_v53  ;;  %v3796_v26 = vsel %vm3316_vm6, %v3076_v40, %v3556_v43  ;;  %v3107_v3 = vadd.f32 %v10376_v59, %v14556_v2  ;;  %v3089_v1 = vadd.f32 %v10374_v13, %v14557_v30  ;;  %v3104_v23 = vadd.f32 %v10376_v59, %v14558_v27  ;;  %v14559_v43 = vld [vmem:[#allocation90_spill] sm:$0xff] }
 0x291   : > { %v8972_v54 = vpack.c.bf16 %v3796_v26, %v3781_v52  ;;  %v3810_v16 = vsel %vm3330_vm7, %v3090_v8, %v3570_v9  ;;  %v3825_v19 = vsel %vm3345_vm8, %v3105_v28, %v3585_v47  ;;  %vm3332_vm9 = vcmp.gt.f32.partialorder %v3092_v56, 0.0  ;;  %v14560_v8 = vld [vmem:[#allocation86_spill] sm:$0xff] }
 0x292   : > { %v8942_v61 = vpack.c.bf16 %v3825_v19, %v3810_v16  ;;  %vm3347_vm10 = vcmp.gt.f32.partialorder %v3107_v3, 0.0  ;;  %v3572_v12 = vmul.f32 0.33, %v3092_v56  ;;  %v3587_v40 = vmul.f32 0.33, %v3107_v3 }
 0x293   : > { %8973 = vmatpush1.bf16.msra.mxu1 %v8972_v54  ;;  %vm3329_vm11 = vcmp.gt.f32.partialorder %v3089_v1, 0.0  ;;  %vm3344_vm12 = vcmp.gt.f32.partialorder %v3104_v23, 0.0  ;;  %v3569_v10 = vmul.f32 0.33, %v3089_v1  ;;  %v3584_v53 = vmul.f32 0.33, %v3104_v23 }
 0x294   : > { %8943 = vmatprep.subr.bf16.mxu0 %v8942_v61  ;;  %v3812_v63 = vsel %vm3332_vm9, %v3092_v56, %v3572_v12  ;;  %v3091_v52 = vadd.f32 %v10374_v13, %v14559_v43  ;;  %v3106_v28 = vadd.f32 %v10376_v59, %v14560_v8  ;;  %v3827_v9 = vsel %vm3347_vm10, %v3107_v3, %v3587_v40  ;;  %v14561_v43 = vld [vmem:[#allocation140_spill] sm:$0xff] }
 0x295   : > { %v3809_v47 = vsel %vm3329_vm11, %v3089_v1, %v3569_v10  ;;  %v3120_v26 = vadd.f32 %v10414_v58, %v11038_v20  ;;  %v3135_v5 = vadd.f32 %v10420_v17, %v11011_v18  ;;  %v8974_v2 = vpack.c.bf16 %v3827_v9, %v3812_v63  ;;  %v14562_v8 = vld [vmem:[#allocation148_spill] sm:$0xff]  ;;  %v14563_v9 = vld [vmem:[#allocation145_spill] sm:$0xff] }
 0x296   : > { %v3824_v30 = vsel %vm3344_vm12, %v3104_v23, %v3584_v53  ;;  %vm3331_vm13 = vcmp.gt.f32.partialorder %v3091_v52, 0.0  ;;  %vm3346_vm14 = vcmp.gt.f32.partialorder %v3106_v28, 0.0  ;;  %v3571_v54 = vmul.f32 0.33, %v3091_v52 }
 0x297   : > { %v8944_v56 = vpack.c.bf16 %v3824_v30, %v3809_v47  ;;  %v3586_v16 = vmul.f32 0.33, %v3106_v28  ;;  %vm3360_vm15 = vcmp.gt.f32.partialorder %v3120_v26, 0.0  ;;  %8975 = vmatprep.subr.bf16.mxu1 %v8974_v2  ;;  %vm3375_vm1 = vcmp.gt.f32.partialorder %v3135_v5, 0.0 }
 0x298   : > { %v3600_v19 = vmul.f32 0.33, %v3120_v26  ;;  %v3615_v27 = vmul.f32 0.33, %v3135_v5  ;;  %v3122_v3 = vadd.f32 %v10414_v58, %v11087_v15  ;;  %v3811_v20 = vsel %vm3331_vm13, %v3091_v52, %v3571_v54 }
 0x299   : > { %8945 = vmatpush1.bf16.msra.mxu0 %v8944_v56  ;;  %v3826_v1 = vsel %vm3346_vm14, %v3106_v28, %v3586_v16  ;;  %v3137_v18 = vadd.f32 %v10420_v17, %v11063_v24  ;;  %v3119_v23 = vadd.f32 %v10414_v58, %v11034_v29  ;;  %v3134_v15 = vadd.f32 %v10420_v17, %v14561_v43 }
 0x29a   : > { %v8976_v61 = vpack.c.bf16 %v3826_v1, %v3811_v20  ;;  %v3840_v12 = vsel %vm3360_vm15, %v3120_v26, %v3600_v19  ;;  %v3855_v40 = vsel %vm3375_vm1, %v3135_v5, %v3615_v27  ;;  %vm3362_vm2 = vcmp.gt.f32.partialorder %v3122_v3, 0.0  ;;  %v14564_v26 = vld [vmem:[#allocation144_spill] sm:$0xff]  ;;  %v14565_v27 = vld [vmem:[#allocation142_spill] sm:$0xff] }
 0x29b   : > { %v8946_v10 = vpack.c.bf16 %v3855_v40, %v3840_v12  ;;  %vm3377_vm3 = vcmp.gt.f32.partialorder %v3137_v18, 0.0  ;;  %v3602_v63 = vmul.f32 0.33, %v3122_v3  ;;  %v3617_v53 = vmul.f32 0.33, %v3137_v18  ;;  %v14566_v12 = vld [vmem:[#allocation150_spill] sm:$0xff] }
 0x29c   : > { %8977 = vmatpush1.bf16.msra.mxu1 %v8976_v61  ;;  %vm3359_vm4 = vcmp.gt.f32.partialorder %v3119_v23, 0.0  ;;  %v3599_v52 = vmul.f32 0.33, %v3119_v23  ;;  %v3121_v24 = vadd.f32 %v10414_v58, %v14562_v8  ;;  %v3136_v47 = vadd.f32 %v10420_v17, %v14563_v9  ;;  %v14570_v9 = vld [vmem:[#allocation149_spill] sm:$0xff] }
 0x29d   : > { %8947 = vmatprep.subr.bf16.mxu0 %v8946_v10  ;;  %v3842_v28 = vsel %vm3362_vm2, %v3122_v3, %v3602_v63  ;;  %v3857_v29 = vsel %vm3377_vm3, %v3137_v18, %v3617_v53  ;;  %v3150_v5 = vadd.f32 %v10466_v57, %v14564_v26  ;;  %vm3374_vm5 = vcmp.gt.f32.partialorder %v3134_v15, 0.0  ;;  %v14567_v53 = vld [vmem:[#allocation147_spill] sm:$0xff]  ;;  %v14571_v26 = vld [vmem:[#allocation146_spill] sm:$0xff] }
 0x29e   : > { %v8978_v2 = vpack.c.bf16 %v3857_v29, %v3842_v28  ;;  %v3614_v30 = vmul.f32 0.33, %v3134_v15  ;;  %v3839_v56 = vsel %vm3359_vm4, %v3119_v23, %v3599_v52  ;;  %vm3361_vm6 = vcmp.gt.f32.partialorder %v3121_v24, 0.0  ;;  %v14568_v52 = vld [vmem:[#allocation143_spill] sm:$0xff] }
 0x29f   : > { %vm3376_vm7 = vcmp.gt.f32.partialorder %v3136_v47, 0.0  ;;  %v3601_v54 = vmul.f32 0.33, %v3121_v24  ;;  %v3616_v16 = vmul.f32 0.33, %v3136_v47  ;;  %v3165_v3 = vadd.f32 %v10472_v21, %v14565_v27 }
 0x2a0   : > { %8979 = vmatprep.subr.bf16.mxu1 %v8978_v2  ;;  %v3854_v19 = vsel %vm3374_vm5, %v3134_v15, %v3614_v30  ;;  %vm3390_vm8 = vcmp.gt.f32.partialorder %v3150_v5, 0.0  ;;  %v3630_v20 = vmul.f32 0.33, %v3150_v5  ;;  %v3152_v40 = vadd.f32 %v10466_v57, %v14566_v12 }
 0x2a1   : > { %v8948_v1 = vpack.c.bf16 %v3854_v19, %v3839_v56  ;;  %v3841_v18 = vsel %vm3361_vm6, %v3121_v24, %v3601_v54  ;;  %v3856_v61 = vsel %vm3376_vm7, %v3136_v47, %v3616_v16  ;;  %vm3405_vm9 = vcmp.gt.f32.partialorder %v3165_v3, 0.0  ;;  %v14569_v24 = vld [vmem:[#allocation141_spill] sm:$0xff] }
 0x2a2   : > { %v8980_v10 = vpack.c.bf16 %v3856_v61, %v3841_v18  ;;  %v3645_v23 = vmul.f32 0.33, %v3165_v3  ;;  %v3870_v63 = vsel %vm3390_vm8, %v3150_v5, %v3630_v20  ;;  %v3167_v43 = vadd.f32 %v10472_v21, %v14567_v53 }
 0x2a3   : > { %8949 = vmatpush1.bf16.msra.mxu0 %v8948_v1  ;;  %vm3392_vm10 = vcmp.gt.f32.partialorder %v3152_v40, 0.0  ;;  %v3632_v15 = vmul.f32 0.33, %v3152_v40  ;;  %v3149_v8 = vadd.f32 %v10466_v57, %v14568_v52  ;;  %v3164_v29 = vadd.f32 %v10472_v21, %v14569_v24 }
 0x2a4   : > { %8981 = vmatpush1.bf16.msra.mxu1 %v8980_v10  ;;  %v3885_v28 = vsel %vm3405_vm9, %v3165_v3, %v3645_v23  ;;  %v3151_v47 = vadd.f32 %v10466_v57, %v14570_v9  ;;  %v3166_v5 = vadd.f32 %v10472_v21, %v14571_v26  ;;  %vm3407_vm11 = vcmp.gt.f32.partialorder %v3167_v43, 0.0 }
 0x2a5   : > { %v8950_v2 = vpack.c.bf16 %v3885_v28, %v3870_v63  ;;  %v3647_v30 = vmul.f32 0.33, %v3167_v43  ;;  %v3872_v56 = vsel %vm3392_vm10, %v3152_v40, %v3632_v15  ;;  %vm3389_vm12 = vcmp.gt.f32.partialorder %v3149_v8, 0.0 }
 0x2a6   : > { %vm3404_vm13 = vcmp.gt.f32.partialorder %v3164_v29, 0.0  ;;  %v3629_v54 = vmul.f32 0.33, %v3149_v8  ;;  %v3644_v16 = vmul.f32 0.33, %v3164_v29  ;;  %vm3391_vm14 = vcmp.gt.f32.partialorder %v3151_v47, 0.0 }
 0x2a7   : > { %8951 = vmatprep.subr.bf16.mxu0 %v8950_v2  ;;  %v3887_v19 = vsel %vm3407_vm11, %v3167_v43, %v3647_v30  ;;  %vm3406_vm15 = vcmp.gt.f32.partialorder %v3166_v5, 0.0  ;;  %v3631_v27 = vmul.f32 0.33, %v3151_v47  ;;  %v3646_v18 = vmul.f32 0.33, %v3166_v5  ;;  %v14572_v43 = vld [vmem:[#allocation8_spill] sm:$0xff] }
 0x2a8   : > { %v8982_v3 = vpack.c.bf16 %v3887_v19, %v3872_v56  ;;  %v3869_v20 = vsel %vm3389_vm12, %v3149_v8, %v3629_v54  ;;  %v3884_v1 = vsel %vm3404_vm13, %v3164_v29, %v3644_v16  ;;  %v3180_v10 = vadd.f32 %v10518_v14, %v11421_v38  ;;  %v14573_v29 = vld [vmem:[#allocation9_spill] sm:$0xff] }
 0x2a9   : > { %v8952_v61 = vpack.c.bf16 %v3884_v1, %v3869_v20  ;;  %v3871_v12 = vsel %vm3391_vm14, %v3151_v47, %v3631_v27  ;;  %v3195_v40 = vadd.f32 %v10524_v62, %v11401_v42  ;;  %v3886_v23 = vsel %vm3406_vm15, %v3166_v5, %v3646_v18  ;;  %v14574_v16 = vld [vmem:[#allocation201_spill] sm:$0xff]  ;;  %v14575_v20 = vld [vmem:[#allocation200_spill] sm:$0xff]  ;;  %v14576_v18 = vld [vmem:[#allocation199_spill] sm:$0xff] }
 0x2aa   : > { %8983 = vmatprep.subr.bf16.mxu1 %v8982_v3  ;;  %v3182_v63 = vadd.f32 %v10518_v14, %v11482_v36  ;;  %v3197_v53 = vadd.f32 %v10524_v62, %v11456_v37  ;;  %v3179_v15 = vadd.f32 %v10518_v14, %v14572_v43  ;;  %v8984_v52 = vpack.c.bf16 %v3886_v23, %v3871_v12 }
 0x2ab   : > { %8953 = vmatpush1.bf16.msra.mxu0 %v8952_v61  ;;  %vm3420_vm1 = vcmp.gt.f32.partialorder %v3180_v10, 0.0  ;;  %vm3435_vm2 = vcmp.gt.f32.partialorder %v3195_v40, 0.0  ;;  %v3660_v8 = vmul.f32 0.33, %v3180_v10  ;;  %v3675_v38 = vmul.f32 0.33, %v3195_v40 }
 0x2ac   : > { %vm3422_vm3 = vcmp.gt.f32.partialorder %v3182_v63, 0.0  ;;  %vm3437_vm4 = vcmp.gt.f32.partialorder %v3197_v53, 0.0  ;;  %v3662_v42 = vmul.f32 0.33, %v3182_v63  ;;  %8985 = vmatpush1.bf16.msra.mxu1 %v8984_v52  ;;  %v3677_v24 = vmul.f32 0.33, %v3197_v53 }
 0x2ad   : > { %v3900_v28 = vsel %vm3420_vm1, %v3180_v10, %v3660_v8  ;;  %v3194_v36 = vadd.f32 %v10524_v62, %v14573_v29  ;;  %vm3419_vm5 = vcmp.gt.f32.partialorder %v3179_v15, 0.0  ;;  %v3915_v37 = vsel %vm3435_vm2, %v3195_v40, %v3675_v38  ;;  %v14577_v10 = vld [vmem:[#allocation205_spill] sm:$0xff] }
 0x2ae   : > { %v3902_v9 = vsel %vm3422_vm3, %v3182_v63, %v3662_v42  ;;  %v3659_v47 = vmul.f32 0.33, %v3179_v15  ;;  %v3181_v26 = vadd.f32 %v10518_v14, %v11478_v49  ;;  %v8954_v5 = vpack.c.bf16 %v3915_v37, %v3900_v28  ;;  %v14579_v28 = vld [vmem:[#allocation16_spill] sm:$0xff]  ;;  %v14580_v37 = vld [vmem:[#allocation17_spill] sm:$0xff] }
 0x2af   : > { %v3917_v2 = vsel %vm3437_vm4, %v3197_v53, %v3677_v24  ;;  %vm3434_vm6 = vcmp.gt.f32.partialorder %v3194_v36, 0.0  ;;  %v3674_v30 = vmul.f32 0.33, %v3194_v36  ;;  %v3196_v19 = vadd.f32 %v10524_v62, %v14574_v16 }
 0x2b0   : > { %v8986_v56 = vpack.c.bf16 %v3917_v2, %v3902_v9  ;;  %v3899_v54 = vsel %vm3419_vm5, %v3179_v15, %v3659_v47  ;;  %vm3421_vm7 = vcmp.gt.f32.partialorder %v3181_v26, 0.0  ;;  %8955 = vmatprep.subr.bf16.mxu0 %v8954_v5  ;;  %v3661_v3 = vmul.f32 0.33, %v3181_v26  ;;  %v14578_v15 = vld [vmem:[#allocation203_spill] sm:$0xff] }
 0x2b1   : > { %v3914_v27 = vsel %vm3434_vm6, %v3194_v36, %v3674_v30  ;;  %v3210_v1 = vadd.f32 %v10570_v25, %v14575_v20  ;;  %v3225_v61 = vadd.f32 %v10576_v55, %v14576_v18  ;;  %vm3436_vm8 = vcmp.gt.f32.partialorder %v3196_v19, 0.0  ;;  %v14583_v20 = vld [vmem:[#allocation34_spill] sm:$0xff] }
 0x2b2   : > { %8987 = vmatprep.subr.bf16.mxu1 %v8986_v56  ;;  %v8956_v49 = vpack.c.bf16 %v3914_v27, %v3899_v54  ;;  %v3676_v12 = vmul.f32 0.33, %v3196_v19  ;;  %v3212_v40 = vadd.f32 %v10570_v25, %v14577_v10  ;;  %v3901_v23 = vsel %vm3421_vm7, %v3181_v26, %v3661_v3  ;;  %v14581_v56 = vld [vmem:[#allocation204_spill] sm:$0xff]  ;;  %v14582_v27 = vld [vmem:[#allocation202_spill] sm:$0xff] }
 0x2b3   : > { %vm3450_vm9 = vcmp.gt.f32.partialorder %v3210_v1, 0.0  ;;  %vm3465_vm10 = vcmp.gt.f32.partialorder %v3225_v61, 0.0  ;;  %v3690_v63 = vmul.f32 0.33, %v3210_v1  ;;  %v3705_v43 = vmul.f32 0.33, %v3225_v61 }
 0x2b4   : > { %8957 = vmatpush1.bf16.msra.mxu0 %v8956_v49  ;;  %v3916_v53 = vsel %vm3436_vm8, %v3196_v19, %v3676_v12  ;;  %v3227_v52 = vadd.f32 %v10576_v55, %v14578_v15  ;;  %vm3452_vm11 = vcmp.gt.f32.partialorder %v3212_v40, 0.0  ;;  %v3692_v42 = vmul.f32 0.33, %v3212_v40  ;;  %v14584_v49 = vld [vmem:[#allocation29_spill] sm:$0xff]  ;;  %v14585_v15 = vld [vmem:[#allocation42_spill] sm:$0xff] }
 0x2b5   : > { %v8988_v8 = vpack.c.bf16 %v3916_v53, %v3901_v23  ;;  %v3930_v38 = vsel %vm3450_vm9, %v3210_v1, %v3690_v63  ;;  %v3209_v24 = vadd.f32 %v10570_v25, %v14579_v28  ;;  %v3945_v29 = vsel %vm3465_vm10, %v3225_v61, %v3705_v43  ;;  %v14587_v28 = vld [vmem:[#allocation32_spill] sm:$0xff] }
 0x2b6   : > { %vm3467_vm12 = vcmp.gt.f32.partialorder %v3227_v52, 0.0  ;;  %v3707_v36 = vmul.f32 0.33, %v3227_v52  ;;  %v3224_v9 = vadd.f32 %v10576_v55, %v14580_v37  ;;  %v8958_v47 = vpack.c.bf16 %v3945_v29, %v3930_v38 }
 0x2b7   : > { %8989 = vmatpush1.bf16.msra.mxu1 %v8988_v8  ;;  %v3932_v26 = vsel %vm3452_vm11, %v3212_v40, %v3692_v42  ;;  %vm3449_vm13 = vcmp.gt.f32.partialorder %v3209_v24, 0.0  ;;  %v3689_v5 = vmul.f32 0.33, %v3209_v24  ;;  %v3211_v54 = vadd.f32 %v10570_v25, %v14581_v56  ;;  %v14586_v8 = vld [vmem:[#allocation38_spill] sm:$0xff]  ;;  %v11927_v42 = vld [vmem:[%s14020_s3 + $0x8] sm:$0xff] }
 0x2b8   : > { %v3947_v2 = vsel %vm3467_vm12, %v3227_v52, %v3707_v36  ;;  %vm3464_vm14 = vcmp.gt.f32.partialorder %v3224_v9, 0.0  ;;  %v3704_v30 = vmul.f32 0.33, %v3224_v9  ;;  %8959 = vmatprep.subr.bf16.mxu0 %v8958_v47  ;;  %v3226_v3 = vadd.f32 %v10576_v55, %v14582_v27  ;;  %v14590_v27 = vld [vmem:[#allocation37_spill] sm:$0xff] }
 0x2b9   : > { %v8990_v16 = vpack.c.bf16 %v3947_v2, %v3932_v26  ;;  %v3929_v19 = vsel %vm3449_vm13, %v3209_v24, %v3689_v5  ;;  %v3003_v1 = vadd.f32 %v10150_v35, %v14583_v20  ;;  %vm3451_vm15 = vcmp.gt.f32.partialorder %v3211_v54, 0.0 }
 0x2ba   : > { %v3944_v18 = vsel %vm3464_vm14, %v3224_v9, %v3704_v30  ;;  %v3691_v61 = vmul.f32 0.33, %v3211_v54  ;;  %v3018_v12 = vadd.f32 %v10192_v50, %v14584_v49  ;;  %vm3466_vm1 = vcmp.gt.f32.partialorder %v3226_v3, 0.0  ;;  %v14588_v9 = vld [vmem:[#allocation28_spill] sm:$0xff]  ;;  %v14592_v49 = vld [vmem:[#allocation31_spill] sm:$0xff] }
 0x2bb   : > { %8991 = vmatprep.subr.bf16.mxu1 %v8990_v16  ;;  %v8960_v10 = vpack.c.bf16 %v3944_v18, %v3929_v19  ;;  %v3706_v40 = vmul.f32 0.33, %v3226_v3  ;;  %vm3243_vm2 = vcmp.gt.f32.partialorder %v3003_v1, 0.0  ;;  %v3483_v63 = vmul.f32 0.33, %v3003_v1  ;;  %v14589_v16 = vld [vmem:[#allocation41_spill] sm:$0xff] }
 0x2bc   : > { %v3931_v23 = vsel %vm3451_vm15, %v3211_v54, %v3691_v61  ;;  %vm3258_vm3 = vcmp.gt.f32.partialorder %v3018_v12, 0.0  ;;  %v3498_v53 = vmul.f32 0.33, %v3018_v12  ;;  %v3005_v52 = vadd.f32 %v10150_v35, %v14585_v15  ;;  %v14591_v18 = vld [vmem:[#allocation36_spill] sm:$0xff] }
 0x2bd   : > { %8961 = vmatpush1.bf16.msra.mxu0 %v8960_v10  ;;  %v3946_v43 = vsel %vm3466_vm1, %v3226_v3, %v3706_v40  ;;  %v3020_v38 = vadd.f32 %v10192_v50, %v14586_v8  ;;  %v3002_v24 = vadd.f32 %v10150_v35, %v14587_v28  ;;  %v3723_v36 = vsel %vm3243_vm2, %v3003_v1, %v3483_v63 }
 0x2be   : > { %v8992_v29 = vpack.c.bf16 %v3946_v43, %v3931_v23  ;;  %v3738_v37 = vsel %vm3258_vm3, %v3018_v12, %v3498_v53  ;;  %v3017_v47 = vadd.f32 %v10192_v50, %v14588_v9  ;;  %vm3245_vm4 = vcmp.gt.f32.partialorder %v3005_v52, 0.0 }
 0x2bf   : > { %v8994_v26 = vpack.c.bf16 %v3738_v37, %v3723_v36  ;;  %vm3260_vm5 = vcmp.gt.f32.partialorder %v3020_v38, 0.0  ;;  %v3485_v5 = vmul.f32 0.33, %v3005_v52  ;;  %v3500_v2 = vmul.f32 0.33, %v3020_v38  ;;  %v14595_v36 = vld [vmem:[#allocation35_spill] sm:$0xff] }
 0x2c0   : > { %8993 = vmatpush1.bf16.msra.mxu1 %v8992_v29  ;;  %4594 = vmatmul.mubr.f32.vlgmr.msra.gmra.mrb[22].mxu0 %v11927_v42  ;;  %vm3242_vm6 = vcmp.gt.f32.partialorder %v3002_v24, 0.0  ;;  %vm3257_vm7 = vcmp.gt.f32.partialorder %v3017_v47, 0.0  ;;  %v3482_v30 = vmul.f32 0.33, %v3002_v24  ;;  %v3497_v54 = vmul.f32 0.33, %v3017_v47 }
 0x2c1   : > { %8995 = vmatprep.subr.bf16.mxu0 %v8994_v26  ;;  %v3725_v56 = vsel %vm3245_vm4, %v3005_v52, %v3485_v5  ;;  %v3004_v19 = vadd.f32 %v10150_v35, %v14589_v16  ;;  %v3019_v3 = vadd.f32 %v10192_v50, %v14590_v27  ;;  %4735 = vmatprep.mubr.f32.mxu0 %v14363_v31  ;;  %v14593_v52 = vld [vmem:[#allocation44_spill] sm:$0xff] }
 0x2c2   : > { %v3740_v20 = vsel %vm3260_vm5, %v3020_v38, %v3500_v2  ;;  %v3722_v1 = vsel %vm3242_vm6, %v3002_v24, %v3482_v30  ;;  %v3033_v61 = vadd.f32 %v10218_v0, %v14591_v18  ;;  %v3048_v12 = vadd.f32 %v10246_v44, %v14592_v49  ;;  %v14594_v24 = vld [vmem:[#allocation40_spill] sm:$0xff] }
 0x2c3   : > { %v9026_v10 = vpack.c.bf16 %v3740_v20, %v3725_v56  ;;  %4665 = vmatmul.mubr.f32.vlgmr.msra.gmra.mrb[26].mxu1 %v11927_v42  ;;  %v3737_v40 = vsel %vm3257_vm7, %v3017_v47, %v3497_v54  ;;  %vm3244_vm8 = vcmp.gt.f32.partialorder %v3004_v19, 0.0  ;;  %vm3259_vm9 = vcmp.gt.f32.partialorder %v3019_v3, 0.0  ;;  %v14596_v56 = vld [vmem:[#allocation30_spill] sm:$0xff] }
 0x2c4   : > { %v8996_v23 = vpack.c.bf16 %v3737_v40, %v3722_v1  ;;  %v3484_v63 = vmul.f32 0.33, %v3004_v19  ;;  %v3499_v53 = vmul.f32 0.33, %v3019_v3  ;;  %vm3273_vm10 = vcmp.gt.f32.partialorder %v3033_v61, 0.0  ;;  %4806 = vmatprep.mubr.f32.mxu1 %v14363_v31  ;;  %v14598_v1 = vld [vmem:[#allocation39_spill] sm:$0xff] }
 0x2c5   : > { %9027 = vmatprep.subr.bf16.mxu1 %v9026_v10  ;;  %vm3288_vm11 = vcmp.gt.f32.partialorder %v3048_v12, 0.0  ;;  %v3513_v43 = vmul.f32 0.33, %v3033_v61  ;;  %v3528_v15 = vmul.f32 0.33, %v3048_v12  ;;  %v3035_v8 = vadd.f32 %v10218_v0, %v14593_v52 }
 0x2c6   : > { %8997 = vmatpush1.bf16.msra.mxu0 %v8996_v23  ;;  %v3724_v38 = vsel %vm3244_vm8, %v3004_v19, %v3484_v63  ;;  %v3739_v28 = vsel %vm3259_vm9, %v3019_v3, %v3499_v53  ;;  %v3050_v29 = vadd.f32 %v10246_v44, %v14594_v24  ;;  %v3032_v37 = vadd.f32 %v10218_v0, %v14595_v36  ;;  %v14597_v19 = vld [vmem:[#allocation43_spill] sm:$0xff]  ;;  %v14601_v24 = vld [vmem:[#allocation100_spill] sm:$0xff] }
 0x2c7   : > { %v9028_v9 = vpack.c.bf16 %v3739_v28, %v3724_v38  ;;  %v3753_v47 = vsel %vm3273_vm10, %v3033_v61, %v3513_v43  ;;  %v3768_v26 = vsel %vm3288_vm11, %v3048_v12, %v3528_v15  ;;  %vm3275_vm12 = vcmp.gt.f32.partialorder %v3035_v8, 0.0  ;;  %v14599_v61 = vld [vmem:[#allocation96_spill] sm:$0xff] }
 0x2c8   : > { %v8998_v5 = vpack.c.bf16 %v3768_v26, %v3753_v47  ;;  %vm3290_vm13 = vcmp.gt.f32.partialorder %v3050_v29, 0.0  ;;  %v3515_v2 = vmul.f32 0.33, %v3035_v8  ;;  %v3530_v30 = vmul.f32 0.33, %v3050_v29  ;;  %v14600_v15 = vld [vmem:[#allocation104_spill] sm:$0xff] }
 0x2c9   : > { %9029 = vmatpush1.bf16.msra.mxu1 %v9028_v9  ;;  %v3047_v54 = vadd.f32 %v10246_v44, %v14596_v56  ;;  %vm3272_vm14 = vcmp.gt.f32.partialorder %v3032_v37, 0.0  ;;  %v3512_v16 = vmul.f32 0.33, %v3032_v37  ;;  %v3034_v27 = vadd.f32 %v10218_v0, %v14597_v19  ;;  %v14602_v47 = vld [vmem:[#allocation95_spill] sm:$0xff] }
 0x2ca   : > { %8999 = vmatprep.subr.bf16.mxu0 %v8998_v5  ;;  %v3755_v3 = vsel %vm3275_vm12, %v3035_v8, %v3515_v2  ;;  %v3770_v20 = vsel %vm3290_vm13, %v3050_v29, %v3530_v30  ;;  %v3049_v18 = vadd.f32 %v10246_v44, %v14598_v1  ;;  %v3063_v49 = vadd.f32 %v10300_v6, %v14599_v61  ;;  %v14603_v2 = vld [vmem:[#allocation92_spill] sm:$0xff]  ;;  %v14605_v19 = vld [vmem:[#allocation99_spill] sm:$0xff]  ;;  %v14607_v61 = vld [vmem:[#allocation94_spill] sm:$0xff] }
 0x2cb   : > { %v9030_v12 = vpack.c.bf16 %v3770_v20, %v3755_v3  ;;  %vm3287_vm15 = vcmp.gt.f32.partialorder %v3047_v54, 0.0  ;;  %v3527_v10 = vmul.f32 0.33, %v3047_v54  ;;  %v3752_v40 = vsel %vm3272_vm14, %v3032_v37, %v3512_v16  ;;  %v14606_v3 = vld [vmem:[#allocation98_spill] sm:$0xff] }
 0x2cc   : > { %vm3274_vm1 = vcmp.gt.f32.partialorder %v3034_v27, 0.0  ;;  %vm3289_vm2 = vcmp.gt.f32.partialorder %v3049_v18, 0.0  ;;  %v3514_v23 = vmul.f32 0.33, %v3034_v27  ;;  %v3529_v63 = vmul.f32 0.33, %v3049_v18 }
 0x2cd   : > { %9031 = vmatprep.subr.bf16.mxu1 %v9030_v12  ;;  %v3767_v53 = vsel %vm3287_vm15, %v3047_v54, %v3527_v10  ;;  %vm3303_vm3 = vcmp.gt.f32.partialorder %v3063_v49, 0.0  ;;  %v3543_v43 = vmul.f32 0.33, %v3063_v49  ;;  %v3065_v52 = vadd.f32 %v10300_v6, %v14600_v15  ;;  %v14604_v54 = vld [vmem:[#allocation103_spill] sm:$0xff] }
 0x2ce   : > { %v9000_v8 = vpack.c.bf16 %v3767_v53, %v3752_v40  ;;  %v3754_v38 = vsel %vm3274_vm1, %v3034_v27, %v3514_v23  ;;  %v3769_v28 = vsel %vm3289_vm2, %v3049_v18, %v3529_v63  ;;  %v3080_v29 = vadd.f32 %v10325_v51, %v14601_v24  ;;  %v14608_v63 = vld [vmem:[#allocation101_spill] sm:$0xff] }
 0x2cf   : > { %v9032_v36 = vpack.c.bf16 %v3769_v28, %v3754_v38  ;;  %v3783_v9 = vsel %vm3303_vm3, %v3063_v49, %v3543_v43  ;;  %vm3305_vm4 = vcmp.gt.f32.partialorder %v3065_v52, 0.0  ;;  %v3545_v37 = vmul.f32 0.33, %v3065_v52  ;;  %v14609_v38 = vld [vmem:[#allocation105_spill] sm:$0xff] }
 0x2d0   : > { %9001 = vmatpush1.bf16.msra.mxu0 %v9000_v8  ;;  %v9002_v26 = vpack.c.bf16 %v14602_v47, %v3783_v9  ;;  %vm3320_vm5 = vcmp.gt.f32.partialorder %v3080_v29, 0.0  ;;  %v3560_v5 = vmul.f32 0.33, %v3080_v29  ;;  %v3078_v30 = vadd.f32 %v10325_v51, %v14603_v2  ;;  %v14610_v24 = vld [vmem:[#allocation97_spill] sm:$0xff] }
 0x2d1   : > { %9033 = vmatpush1.bf16.msra.mxu1 %v9032_v36  ;;  %v3785_v56 = vsel %vm3305_vm4, %v3065_v52, %v3545_v37  ;;  %v3064_v16 = vadd.f32 %v10300_v6, %v14604_v54  ;;  %v3079_v27 = vadd.f32 %v10325_v51, %v14605_v19  ;;  %v3094_v20 = vadd.f32 %v10374_v13, %v14606_v3  ;;  %v14611_v36 = vld [vmem:[#allocation93_spill] sm:$0xff]  ;;  %v14613_v3 = vld [vmem:[#allocation156_spill] sm:$0xff] }
 0x2d2   : > { %9003 = vmatprep.subr.bf16.mxu0 %v9002_v26  ;;  %v3800_v1 = vsel %vm3320_vm5, %v3080_v29, %v3560_v5  ;;  %vm3318_vm6 = vcmp.gt.f32.partialorder %v3078_v30, 0.0  ;;  %v3558_v18 = vmul.f32 0.33, %v3078_v30  ;;  %v3109_v49 = vadd.f32 %v10376_v59, %v14607_v61  ;;  %v14612_v5 = vld [vmem:[#allocation102_spill] sm:$0xff] }
 0x2d3   : > { %v9034_v12 = vpack.c.bf16 %v3800_v1, %v3785_v56  ;;  %vm3304_vm7 = vcmp.gt.f32.partialorder %v3064_v16, 0.0  ;;  %vm3319_vm8 = vcmp.gt.f32.partialorder %v3079_v27, 0.0  ;;  %v3544_v10 = vmul.f32 0.33, %v3064_v16  ;;  %v14615_v61 = vld [vmem:[#allocation106_spill] sm:$0xff] }
 0x2d4   : > { %v3798_v40 = vsel %vm3318_vm6, %v3078_v30, %v3558_v18  ;;  %v3559_v23 = vmul.f32 0.33, %v3079_v27  ;;  %vm3334_vm9 = vcmp.gt.f32.partialorder %v3094_v20, 0.0  ;;  %vm3349_vm10 = vcmp.gt.f32.partialorder %v3109_v49, 0.0 }
 0x2d5   : > { %9035 = vmatprep.subr.bf16.mxu1 %v9034_v12  ;;  %v9004_v53 = vpack.c.bf16 %v3798_v40, %v14608_v63  ;;  %v3784_v43 = vsel %vm3304_vm7, %v3064_v16, %v3544_v10  ;;  %v3574_v15 = vmul.f32 0.33, %v3094_v20  ;;  %v3589_v52 = vmul.f32 0.33, %v3109_v49  ;;  %v14616_v40 = vld [vmem:[#allocation164_spill] sm:$0xff] }
 0x2d6   : > { %v3799_v8 = vsel %vm3319_vm8, %v3079_v27, %v3559_v23  ;;  %v3095_v28 = vadd.f32 %v10374_v13, %v14609_v38  ;;  %v3093_v29 = vadd.f32 %v10374_v13, %v14610_v24  ;;  %v3108_v9 = vadd.f32 %v10376_v59, %v14611_v36  ;;  %v14618_v38 = vld [vmem:[#allocation160_spill] sm:$0xff] }
 0x2d7   : > { %9005 = vmatpush1.bf16.msra.mxu0 %v9004_v53  ;;  %v9036_v37 = vpack.c.bf16 %v3799_v8, %v3784_v43  ;;  %v3814_v47 = vsel %vm3334_vm9, %v3094_v20, %v3574_v15  ;;  %v3829_v26 = vsel %vm3349_vm10, %v3109_v49, %v3589_v52  ;;  %v3110_v2 = vadd.f32 %v10376_v59, %v14612_v5  ;;  %v14614_v20 = vld [vmem:[#allocation152_spill] sm:$0xff]  ;;  %v14617_v43 = vld [vmem:[#allocation107_spill] sm:$0xff] }
 0x2d8   : > { %v9006_v30 = vpack.c.bf16 %v3829_v26, %v3814_v47  ;;  %vm3335_vm11 = vcmp.gt.f32.partialorder %v3095_v28, 0.0  ;;  %v3575_v56 = vmul.f32 0.33, %v3095_v28  ;;  %vm3333_vm12 = vcmp.gt.f32.partialorder %v3093_v29, 0.0 }
 0x2d9   : > { %9037 = vmatpush1.bf16.msra.mxu1 %v9036_v37  ;;  %vm3348_vm13 = vcmp.gt.f32.partialorder %v3108_v9, 0.0  ;;  %v3573_v54 = vmul.f32 0.33, %v3093_v29  ;;  %v3588_v16 = vmul.f32 0.33, %v3108_v9  ;;  %vm3350_vm14 = vcmp.gt.f32.partialorder %v3110_v2, 0.0 }
 0x2da   : > { %9007 = vmatprep.subr.bf16.mxu0 %v9006_v30  ;;  %v3815_v19 = vsel %vm3335_vm11, %v3095_v28, %v3575_v56  ;;  %v3590_v27 = vmul.f32 0.33, %v3110_v2  ;;  %v3124_v1 = vadd.f32 %v10414_v58, %v14613_v3  ;;  %v3139_v18 = vadd.f32 %v10420_v17, %v14614_v20  ;;  %v14622_v20 = vld [vmem:[#allocation159_spill] sm:$0xff] }
 0x2db   : > { %v9038_v49 = vpack.c.bf16 %v14615_v61, %v3815_v19  ;;  %v3813_v12 = vsel %vm3333_vm12, %v3093_v29, %v3573_v54  ;;  %v3828_v10 = vsel %vm3348_vm13, %v3108_v9, %v3588_v16  ;;  %v3126_v23 = vadd.f32 %v10414_v58, %v14616_v40  ;;  %v14619_v29 = vld [vmem:[#allocation155_spill] sm:$0xff] }
 0x2dc   : > { %v9008_v63 = vpack.c.bf16 %v3828_v10, %v3813_v12  ;;  %v3830_v53 = vsel %vm3350_vm14, %v3110_v2, %v3590_v27  ;;  %vm3364_vm15 = vcmp.gt.f32.partialorder %v3124_v1, 0.0  ;;  %vm3379_vm1 = vcmp.gt.f32.partialorder %v3139_v18, 0.0  ;;  %v14620_v9 = vld [vmem:[#allocation151_spill] sm:$0xff] }
 0x2dd   : > { %9039 = vmatprep.subr.bf16.mxu1 %v9038_v49  ;;  %v9040_v15 = vpack.c.bf16 %v3830_v53, %v14617_v43  ;;  %v3604_v52 = vmul.f32 0.33, %v3124_v1  ;;  %v3619_v8 = vmul.f32 0.33, %v3139_v18  ;;  %v3141_v28 = vadd.f32 %v10420_v17, %v14618_v38  ;;  %v14621_v19 = vld [vmem:[#allocation163_spill] sm:$0xff]  ;;  %v14623_v49 = vld [vmem:[#allocation158_spill] sm:$0xff] }
 0x2de   : > { %9009 = vmatpush1.bf16.msra.mxu0 %v9008_v63  ;;  %vm3366_vm2 = vcmp.gt.f32.partialorder %v3126_v23, 0.0  ;;  %v3606_v24 = vmul.f32 0.33, %v3126_v23  ;;  %v3123_v36 = vadd.f32 %v10414_v58, %v14619_v29  ;;  %v3138_v37 = vadd.f32 %v10420_v17, %v14620_v9  ;;  %v14625_v38 = vld [vmem:[#allocation166_spill] sm:$0xff] }
 0x2df   : > { %9041 = vmatpush1.bf16.msra.mxu1 %v9040_v15  ;;  %v3844_v47 = vsel %vm3364_vm15, %v3124_v1, %v3604_v52  ;;  %v3859_v26 = vsel %vm3379_vm1, %v3139_v18, %v3619_v8  ;;  %vm3381_vm3 = vcmp.gt.f32.partialorder %v3141_v28, 0.0  ;;  %v3621_v5 = vmul.f32 0.33, %v3141_v28  ;;  %v14624_v18 = vld [vmem:[#allocation154_spill] sm:$0xff] }
 0x2e0   : > { %v9010_v2 = vpack.c.bf16 %v3859_v26, %v3844_v47  ;;  %v3846_v30 = vsel %vm3366_vm2, %v3126_v23, %v3606_v24  ;;  %vm3363_vm4 = vcmp.gt.f32.partialorder %v3123_v36, 0.0  ;;  %vm3378_vm5 = vcmp.gt.f32.partialorder %v3138_v37, 0.0  ;;  %v14626_v24 = vld [vmem:[#allocation162_spill] sm:$0xff] }
 0x2e1   : > { %v3861_v56 = vsel %vm3381_vm3, %v3141_v28, %v3621_v5  ;;  %v3603_v54 = vmul.f32 0.33, %v3123_v36  ;;  %v3618_v16 = vmul.f32 0.33, %v3138_v37  ;;  %v3125_v27 = vadd.f32 %v10414_v58, %v14621_v19  ;;  %v14628_v5 = vld [vmem:[#allocation153_spill] sm:$0xff] }
 0x2e2   : > { %9011 = vmatprep.subr.bf16.mxu0 %v9010_v2  ;;  %v9042_v3 = vpack.c.bf16 %v3861_v56, %v3846_v30  ;;  %v3140_v61 = vadd.f32 %v10420_v17, %v14622_v20  ;;  %v3154_v1 = vadd.f32 %v10466_v57, %v14623_v49  ;;  %v3169_v12 = vadd.f32 %v10472_v21, %v14624_v18 }
 0x2e3   : > { %v3843_v10 = vsel %vm3363_vm4, %v3123_v36, %v3603_v54  ;;  %v3858_v40 = vsel %vm3378_vm5, %v3138_v37, %v3618_v16  ;;  %vm3365_vm6 = vcmp.gt.f32.partialorder %v3125_v27, 0.0  ;;  %v3605_v23 = vmul.f32 0.33, %v3125_v27  ;;  %v14627_v36 = vld [vmem:[#allocation157_spill] sm:$0xff] }
 0x2e4   : > { %9043 = vmatprep.subr.bf16.mxu1 %v9042_v3  ;;  %v9012_v63 = vpack.c.bf16 %v3858_v40, %v3843_v10  ;;  %vm3380_vm7 = vcmp.gt.f32.partialorder %v3140_v61, 0.0  ;;  %v3620_v53 = vmul.f32 0.33, %v3140_v61  ;;  %vm3394_vm8 = vcmp.gt.f32.partialorder %v3154_v1, 0.0  ;;  %v14629_v3 = vld [vmem:[#allocation165_spill] sm:$0xff]  ;;  %v14631_v10 = vld [vmem:[#allocation207_spill] sm:$0xff] }
 0x2e5   : > { %v3845_v43 = vsel %vm3365_vm6, %v3125_v27, %v3605_v23  ;;  %vm3409_vm9 = vcmp.gt.f32.partialorder %v3169_v12, 0.0  ;;  %v3634_v15 = vmul.f32 0.33, %v3154_v1  ;;  %v3649_v52 = vmul.f32 0.33, %v3169_v12 }
 0x2e6   : > { %9013 = vmatpush1.bf16.msra.mxu0 %v9012_v63  ;;  %v3860_v8 = vsel %vm3380_vm7, %v3140_v61, %v3620_v53  ;;  %v3156_v28 = vadd.f32 %v10466_v57, %v14625_v38  ;;  %v3171_v29 = vadd.f32 %v10472_v21, %v14626_v24  ;;  %v3153_v9 = vadd.f32 %v10466_v57, %v14627_v36  ;;  %v14630_v61 = vld [vmem:[#allocation161_spill] sm:$0xff]  ;;  %v14632_v24 = vld [vmem:[#allocation214_spill] sm:$0xff] }
 0x2e7   : > { %v9044_v37 = vpack.c.bf16 %v3860_v8, %v3845_v43  ;;  %v3874_v47 = vsel %vm3394_vm8, %v3154_v1, %v3634_v15  ;;  %v3889_v26 = vsel %vm3409_vm9, %v3169_v12, %v3649_v52  ;;  %v3168_v2 = vadd.f32 %v10472_v21, %v14628_v5  ;;  %v14633_v36 = vld [vmem:[#allocation210_spill] sm:$0xff] }
 0x2e8   : > { %v9014_v30 = vpack.c.bf16 %v3889_v26, %v3874_v47  ;;  %vm3396_vm10 = vcmp.gt.f32.partialorder %v3156_v28, 0.0  ;;  %vm3411_vm11 = vcmp.gt.f32.partialorder %v3171_v29, 0.0  ;;  %v3636_v56 = vmul.f32 0.33, %v3156_v28 }
 0x2e9   : > { %9045 = vmatpush1.bf16.msra.mxu1 %v9044_v37  ;;  %v3651_v54 = vmul.f32 0.33, %v3171_v29  ;;  %vm3393_vm12 = vcmp.gt.f32.partialorder %v3153_v9, 0.0  ;;  %vm3408_vm13 = vcmp.gt.f32.partialorder %v3168_v2, 0.0  ;;  %v3633_v16 = vmul.f32 0.33, %v3153_v9 }
 0x2ea   : > { %9015 = vmatprep.subr.bf16.mxu0 %v9014_v30  ;;  %v3876_v19 = vsel %vm3396_vm10, %v3156_v28, %v3636_v56  ;;  %v3648_v27 = vmul.f32 0.33, %v3168_v2  ;;  %v3155_v20 = vadd.f32 %v10466_v57, %v14629_v3  ;;  %v3170_v49 = vadd.f32 %v10472_v21, %v14630_v61  ;;  %v14634_v56 = vld [vmem:[#allocation206_spill] sm:$0xff] }
 0x2eb   : > { %v3891_v1 = vsel %vm3411_vm11, %v3171_v29, %v3651_v54  ;;  %v3873_v18 = vsel %vm3393_vm12, %v3153_v9, %v3633_v16  ;;  %v3184_v12 = vadd.f32 %v10518_v14, %v11528_v33  ;;  %v3199_v40 = vadd.f32 %v10524_v62, %v14631_v10  ;;  %v14635_v16 = vld [vmem:[#allocation217_spill] sm:$0xff] }
 0x2ec   : > { %v9046_v23 = vpack.c.bf16 %v3891_v1, %v3876_v19  ;;  %v3888_v63 = vsel %vm3408_vm13, %v3168_v2, %v3648_v27  ;;  %vm3395_vm14 = vcmp.gt.f32.partialorder %v3155_v20, 0.0  ;;  %vm3410_vm15 = vcmp.gt.f32.partialorder %v3170_v49, 0.0 }
 0x2ed   : > { %v9016_v53 = vpack.c.bf16 %v3888_v63, %v3873_v18  ;;  %v3635_v43 = vmul.f32 0.33, %v3155_v20  ;;  %v3650_v15 = vmul.f32 0.33, %v3170_v49  ;;  %vm3424_vm1 = vcmp.gt.f32.partialorder %v3184_v12, 0.0 }
 0x2ee   : > { %9047 = vmatprep.subr.bf16.mxu1 %v9046_v23  ;;  %vm3439_vm2 = vcmp.gt.f32.partialorder %v3199_v40, 0.0  ;;  %v3664_v52 = vmul.f32 0.33, %v3184_v12  ;;  %v3679_v8 = vmul.f32 0.33, %v3199_v40  ;;  %v3186_v38 = vadd.f32 %v10518_v14, %v11574_v7 }
 0x2ef   : > { %9017 = vmatpush1.bf16.msra.mxu0 %v9016_v53  ;;  %v3875_v33 = vsel %vm3395_vm14, %v3155_v20, %v3635_v43  ;;  %v3890_v28 = vsel %vm3410_vm15, %v3170_v49, %v3650_v15  ;;  %v3201_v29 = vadd.f32 %v10524_v62, %v14632_v24  ;;  %v3183_v9 = vadd.f32 %v10518_v14, %v14633_v36  ;;  %v14636_v20 = vld [vmem:[#allocation213_spill] sm:$0xff]  ;;  %v14637_v49 = vld [vmem:[#allocation212_spill] sm:$0xff] }
 0x2f0   : > { %v9048_v37 = vpack.c.bf16 %v3890_v28, %v3875_v33  ;;  %v3904_v47 = vsel %vm3424_vm1, %v3184_v12, %v3664_v52  ;;  %v3919_v26 = vsel %vm3439_vm2, %v3199_v40, %v3679_v8  ;;  %vm3426_vm3 = vcmp.gt.f32.partialorder %v3186_v38, 0.0  ;;  %v14638_v53 = vld [vmem:[#allocation209_spill] sm:$0xff]  ;;  %v14639_v36 = vld [vmem:[#allocation216_spill] sm:$0xff] }
 0x2f1   : > { %v9018_v5 = vpack.c.bf16 %v3919_v26, %v3904_v47  ;;  %vm3441_vm4 = vcmp.gt.f32.partialorder %v3201_v29, 0.0  ;;  %v3666_v2 = vmul.f32 0.33, %v3186_v38  ;;  %v3681_v30 = vmul.f32 0.33, %v3201_v29  ;;  %v14640_v47 = vld [vmem:[#allocation211_spill] sm:$0xff] }
 0x2f2   : > { %9049 = vmatpush1.bf16.msra.mxu1 %v9048_v37  ;;  %v3198_v7 = vadd.f32 %v10524_v62, %v14634_v56  ;;  %vm3423_vm5 = vcmp.gt.f32.partialorder %v3183_v9, 0.0  ;;  %v3663_v54 = vmul.f32 0.33, %v3183_v9  ;;  %v3185_v19 = vadd.f32 %v10518_v14, %v14635_v16 }
 0x2f3   : > { %9019 = vmatprep.subr.bf16.mxu0 %v9018_v5  ;;  %v3906_v27 = vsel %vm3426_vm3, %v3186_v38, %v3666_v2  ;;  %v3921_v3 = vsel %vm3441_vm4, %v3201_v29, %v3681_v30  ;;  %v3200_v61 = vadd.f32 %v10524_v62, %v14636_v20  ;;  %v3214_v1 = vadd.f32 %v10570_v25, %v14637_v49  ;;  %v12043_v5 = vpop.f32.mrb[14].mxu0  ;;  %v14641_v30 = vld [vmem:[#allocation208_spill] sm:$0xff] }
 0x2f4   : > { %v9050_v18 = vpack.c.bf16 %v3921_v3, %v3906_v27  ;;  %vm3438_vm6 = vcmp.gt.f32.partialorder %v3198_v7, 0.0  ;;  %v3678_v12 = vmul.f32 0.33, %v3198_v7  ;;  %v3903_v10 = vsel %vm3423_vm5, %v3183_v9, %v3663_v54  ;;  %v12051_v16 = vpop.f32.mrb[15].mxu0 }
 0x2f5   : > { %vm3425_vm7 = vcmp.gt.f32.partialorder %v3185_v19, 0.0  ;;  %vm3440_vm8 = vcmp.gt.f32.partialorder %v3200_v61, 0.0  ;;  %v3665_v40 = vmul.f32 0.33, %v3185_v19  ;;  %v3680_v23 = vmul.f32 0.33, %v3200_v61 }
 0x2f6   : > { %9051 = vmatprep.subr.bf16.mxu1 %v9050_v18  ;;  %v3918_v63 = vsel %vm3438_vm6, %v3198_v7, %v3678_v12  ;;  %v3229_v43 = vadd.f32 %v10576_v55, %v14638_v53  ;;  %vm3454_vm9 = vcmp.gt.f32.partialorder %v3214_v1, 0.0  ;;  %v3694_v15 = vmul.f32 0.33, %v3214_v1  ;;  %v14642_v7 = vld [vmem:[#allocation215_spill] sm:$0xff] }
 0x2f7   : > { %v9020_v52 = vpack.c.bf16 %v3918_v63, %v3903_v10  ;;  %v3905_v8 = vsel %vm3425_vm7, %v3185_v19, %v3665_v40  ;;  %v3920_v38 = vsel %vm3440_vm8, %v3200_v61, %v3680_v23  ;;  %v3216_v33 = vadd.f32 %v10570_v25, %v11590_v46  ;;  %v14643_v63 = vld [vmem:[#allocation50_spill] sm:$0xff] }
 0x2f8   : > { %v9052_v28 = vpack.c.bf16 %v3920_v38, %v3905_v8  ;;  %vm3469_vm10 = vcmp.gt.f32.partialorder %v3229_v43, 0.0  ;;  %v3709_v24 = vmul.f32 0.33, %v3229_v43  ;;  %v3934_v29 = vsel %vm3454_vm9, %v3214_v1, %v3694_v15  ;;  %v14645_v8 = vld [vmem:[#allocation58_spill] sm:$0xff] }
 0x2f9   : > { %9021 = vmatpush1.bf16.msra.mxu0 %v9020_v52  ;;  %v3231_v9 = vadd.f32 %v10576_v55, %v14639_v36  ;;  %vm3456_vm11 = vcmp.gt.f32.partialorder %v3216_v33, 0.0  ;;  %v3696_v37 = vmul.f32 0.33, %v3216_v33  ;;  %v3213_v26 = vadd.f32 %v10570_v25, %v14640_v47 }
 0x2fa   : > { %9053 = vmatpush1.bf16.msra.mxu1 %v9052_v28  ;;  %v3949_v2 = vsel %vm3469_vm10, %v3229_v43, %v3709_v24  ;;  %v3228_v46 = vadd.f32 %v10576_v55, %v14641_v30  ;;  %v3215_v56 = vadd.f32 %v10570_v25, %v11584_v34  ;;  %v3230_v54 = vadd.f32 %v10576_v55, %v14642_v7  ;;  %v14644_v43 = vld [vmem:[#allocation46_spill] sm:$0xff]  ;;  %v14647_v24 = vld [vmem:[#allocation49_spill] sm:$0xff] }
 0x2fb   : > { %v9022_v19 = vpack.c.bf16 %v3949_v2, %v3934_v29  ;;  %vm3471_vm12 = vcmp.gt.f32.partialorder %v3231_v9, 0.0  ;;  %v3711_v27 = vmul.f32 0.33, %v3231_v9  ;;  %v3936_v3 = vsel %vm3456_vm11, %v3216_v33, %v3696_v37  ;;  %v14646_v33 = vld [vmem:[#allocation54_spill] sm:$0xff]  ;;  %v14648_v30 = vld [vmem:[#allocation45_spill] sm:$0xff] }
 0x2fc   : > { %vm3453_vm13 = vcmp.gt.f32.partialorder %v3213_v26, 0.0  ;;  %vm3468_vm14 = vcmp.gt.f32.partialorder %v3228_v46, 0.0  ;;  %v3693_v20 = vmul.f32 0.33, %v3213_v26  ;;  %v3708_v61 = vmul.f32 0.33, %v3228_v46 }
 0x2fd   : > { %9023 = vmatprep.subr.bf16.mxu0 %v9022_v19  ;;  %v3951_v49 = vsel %vm3471_vm12, %v3231_v9, %v3711_v27  ;;  %vm3455_vm15 = vcmp.gt.f32.partialorder %v3215_v56, 0.0  ;;  %vm3470_vm1 = vcmp.gt.f32.partialorder %v3230_v54, 0.0  ;;  %v3695_v1 = vmul.f32 0.33, %v3215_v56  ;;  %v14649_v19 = vld [vmem:[#allocation57_spill] sm:$0xff] }
 0x2fe   : > { %v9054_v18 = vpack.c.bf16 %v3951_v49, %v3936_v3  ;;  %v3933_v34 = vsel %vm3453_vm13, %v3213_v26, %v3693_v20  ;;  %v3948_v12 = vsel %vm3468_vm14, %v3228_v46, %v3708_v61  ;;  %v3710_v10 = vmul.f32 0.33, %v3230_v54 }
 0x2ff   : > { %v9024_v40 = vpack.c.bf16 %v3948_v12, %v3933_v34  ;;  %v3935_v23 = vsel %vm3455_vm15, %v3215_v56, %v3695_v1  ;;  %v3007_v53 = vadd.f32 %v10150_v35, %v14643_v63  ;;  %v3022_v15 = vadd.f32 %v10192_v50, %v14644_v43  ;;  %v14652_v63 = vld [vmem:[#allocation48_spill] sm:$0xff] }
 0x300   : > { %9055 = vmatprep.subr.bf16.mxu1 %v9054_v18  ;;  %v3950_v52 = vsel %vm3470_vm1, %v3230_v54, %v3710_v10  ;;  %v3009_v38 = vadd.f32 %v10150_v35, %v14645_v8  ;;  %v3024_v28 = vadd.f32 %v10192_v50, %v14646_v33  ;;  %v3006_v29 = vadd.f32 %v10150_v35, %v14647_v24  ;;  %v14650_v18 = vld [vmem:[#allocation53_spill] sm:$0xff]  ;;  %v14654_v24 = vld [vmem:[#allocation56_spill] sm:$0xff] }
 0x301   : > { %9025 = vmatpush1.bf16.msra.mxu0 %v9024_v40  ;;  %v9056_v36 = vpack.c.bf16 %v3950_v52, %v3935_v23  ;;  %vm3247_vm2 = vcmp.gt.f32.partialorder %v3007_v53, 0.0  ;;  %vm3262_vm3 = vcmp.gt.f32.partialorder %v3022_v15, 0.0  ;;  %v3487_v9 = vmul.f32 0.33, %v3007_v53  ;;  %v14651_v40 = vld [vmem:[#allocation52_spill] sm:$0xff] }
 0x302   : > { %v3502_v37 = vmul.f32 0.33, %v3022_v15  ;;  %vm3249_vm4 = vcmp.gt.f32.partialorder %v3009_v38, 0.0  ;;  %vm3264_vm5 = vcmp.gt.f32.partialorder %v3024_v28, 0.0  ;;  %v3489_v47 = vmul.f32 0.33, %v3009_v38 }
 0x303   : > { %9057 = vmatpush1.bf16.msra.mxu1 %v9056_v36  ;;  %v3727_v26 = vsel %vm3247_vm2, %v3007_v53, %v3487_v9  ;;  %v3504_v2 = vmul.f32 0.33, %v3024_v28  ;;  %v3021_v46 = vadd.f32 %v10192_v50, %v14648_v30  ;;  %vm3246_vm6 = vcmp.gt.f32.partialorder %v3006_v29, 0.0 }
 0x304   : > { %v3742_v56 = vsel %vm3262_vm3, %v3022_v15, %v3502_v37  ;;  %v3729_v7 = vsel %vm3249_vm4, %v3009_v38, %v3489_v47  ;;  %4736 = vmatmul.mubr.f32.vlgmr.msra.gmra.mrb[24].mxu0 %v11927_v42  ;;  %v3486_v54 = vmul.f32 0.33, %v3006_v29  ;;  %v3008_v27 = vadd.f32 %v10150_v35, %v14649_v19  ;;  %v14653_v15 = vld [vmem:[#allocation60_spill] sm:$0xff]  ;;  %v14655_v47 = vld [vmem:[#allocation51_spill] sm:$0xff] }
 0x305   : > { %v9058_v3 = vpack.c.bf16 %v3742_v56, %v3727_v26  ;;  %v3744_v20 = vsel %vm3264_vm5, %v3024_v28, %v3504_v2  ;;  %vm3261_vm7 = vcmp.gt.f32.partialorder %v3021_v46, 0.0  ;;  %v3501_v61 = vmul.f32 0.33, %v3021_v46  ;;  %4877 = vmatprep.mubr.f32.mxu0 %v14363_v31  ;;  %v12083_v2 = vpop.f32.mrb[18].mxu1  ;;  %v14656_v56 = vld [vmem:[#allocation47_spill] sm:$0xff] }
 0x306   : > { %v9090_v49 = vpack.c.bf16 %v3744_v20, %v3729_v7  ;;  %4807 = vmatmul.mubr.f32.vlgmr.msra.gmra.mrb[28].mxu1 %v11927_v42  ;;  %v3726_v1 = vsel %vm3246_vm6, %v3006_v29, %v3486_v54  ;;  %v3023_v34 = vadd.f32 %v10192_v50, %v14650_v18  ;;  %vm3248_vm8 = vcmp.gt.f32.partialorder %v3008_v27, 0.0  ;;  %v12091_v18 = vpop.f32.mrb[16].mxu0 }
 0x307   : > { %9059 = vmatprep.subr.bf16.mxu0 %v9058_v3  ;;  %v3741_v12 = vsel %vm3261_vm7, %v3021_v46, %v3501_v61  ;;  %v3488_v10 = vmul.f32 0.33, %v3008_v27  ;;  %v3037_v23 = vadd.f32 %v10218_v0, %v14651_v40  ;;  %v3052_v53 = vadd.f32 %v10246_v44, %v14652_v63  ;;  %4948 = vmatprep.mubr.f32.mxu1 %v14363_v31  ;;  %v14657_v61 = vld [vmem:[#allocation59_spill] sm:$0xff] }
 0x308   : > { %9091 = vmatprep.subr.bf16.mxu1 %v9090_v49  ;;  %v9060_v43 = vpack.c.bf16 %v3741_v12, %v3726_v1  ;;  %vm3263_vm9 = vcmp.gt.f32.partialorder %v3023_v34, 0.0  ;;  %v3503_v42 = vmul.f32 0.33, %v3023_v34  ;;  %v3039_v52 = vadd.f32 %v10218_v0, %v14653_v15  ;;  %v12089_v1 = vpop.f32.mrb[19].mxu1 }
 0x309   : > { %v3728_v8 = vsel %vm3248_vm8, %v3008_v27, %v3488_v10  ;;  %vm3277_vm10 = vcmp.gt.f32.partialorder %v3037_v23, 0.0  ;;  %vm3292_vm11 = vcmp.gt.f32.partialorder %v3052_v53, 0.0  ;;  %v3517_v38 = vmul.f32 0.33, %v3037_v23  ;;  %v14658_v10 = vld [vmem:[#allocation55_spill] sm:$0xff] }
 0x30a   : > { %9061 = vmatpush1.bf16.msra.mxu0 %v9060_v43  ;;  %v3743_v33 = vsel %vm3263_vm9, %v3023_v34, %v3503_v42  ;;  %v3532_v28 = vmul.f32 0.33, %v3052_v53  ;;  %v3054_v29 = vadd.f32 %v10246_v44, %v14654_v24  ;;  %vm3279_vm12 = vcmp.gt.f32.partialorder %v3039_v52, 0.0  ;;  %v12099_v43 = vpop.f32.mrb[20].mxu1 }
 0x30b   : > { %v9092_v36 = vpack.c.bf16 %v3743_v33, %v3728_v8  ;;  %v3757_v9 = vsel %vm3277_vm10, %v3037_v23, %v3517_v38  ;;  %v3519_v37 = vmul.f32 0.33, %v3039_v52  ;;  %v3036_v26 = vadd.f32 %v10218_v0, %v14655_v47  ;;  %v14659_v23 = vld [vmem:[#allocation113_spill] sm:$0xff]  ;;  %14660 = vst [vmem:[#allocation25_spill] sm:$0xff] %v12099_v43  ;;  %v12103_v38 = vpop.f32.mrb[21].mxu1 }
 0x30c   : > { %v3772_v30 = vsel %vm3292_vm11, %v3052_v53, %v3532_v28  ;;  %vm3294_vm13 = vcmp.gt.f32.partialorder %v3054_v29, 0.0  ;;  %v3534_v46 = vmul.f32 0.33, %v3054_v29  ;;  %v3051_v7 = vadd.f32 %v10246_v44, %v14656_v56  ;;  %v12097_v53 = vpop.f32.mrb[17].mxu0 }
 0x30d   : > { %9093 = vmatpush1.bf16.msra.mxu1 %v9092_v36  ;;  %v9062_v54 = vpack.c.bf16 %v3772_v30, %v3757_v9  ;;  %v3759_v19 = vsel %vm3279_vm12, %v3039_v52, %v3519_v37  ;;  %vm3276_vm14 = vcmp.gt.f32.partialorder %v3036_v26, 0.0  ;;  %v3516_v27 = vmul.f32 0.33, %v3036_v26  ;;  %v14661_v52 = vld [vmem:[#allocation109_spill] sm:$0xff]  ;;  %v12105_v33 = vpop.f32.mrb[18].mxu0  ;;  %v12109_v36 = vpop.f32.mrb[22].mxu1 }
 0x30e   : > { %v3774_v3 = vsel %vm3294_vm13, %v3054_v29, %v3534_v46  ;;  %vm3291_vm15 = vcmp.gt.f32.partialorder %v3051_v7, 0.0  ;;  %v3531_v20 = vmul.f32 0.33, %v3051_v7  ;;  %v3038_v49 = vadd.f32 %v10218_v0, %v14657_v61  ;;  %v12107_v29 = vpop.f32.mrb[19].mxu0  ;;  %v14662_v46 = vld [vmem:[#allocation121_spill] sm:$0xff] }
 0x30f   : > { %9063 = vmatprep.subr.bf16.mxu0 %v9062_v54  ;;  %v9094_v34 = vpack.c.bf16 %v3774_v3, %v3759_v19  ;;  %v3756_v12 = vsel %vm3276_vm14, %v3036_v26, %v3516_v27  ;;  %v3053_v40 = vadd.f32 %v10246_v44, %v14658_v10  ;;  %v3067_v63 = vadd.f32 %v10300_v6, %v14659_v23  ;;  %v12111_v26 = vpop.f32.mrb[23].mxu1  ;;  %v14664_v19 = vld [vmem:[#allocation112_spill] sm:$0xff] }
 0x310   : > { %v3771_v42 = vsel %vm3291_vm15, %v3051_v7, %v3531_v20  ;;  %vm3278_vm1 = vcmp.gt.f32.partialorder %v3038_v49, 0.0  ;;  %v3518_v15 = vmul.f32 0.33, %v3038_v49  ;;  %v3082_v8 = vadd.f32 %v10325_v51, %v14661_v52  ;;  %v14663_v7 = vld [vmem:[#allocation117_spill] sm:$0xff]  ;;  %v14666_v52 = vld [vmem:[#allocation120_spill] sm:$0xff] }
 0x311   : > { %9095 = vmatprep.subr.bf16.mxu1 %v9094_v34  ;;  %v9064_v28 = vpack.c.bf16 %v3771_v42, %v3756_v12  ;;  %vm3293_vm2 = vcmp.gt.f32.partialorder %v3053_v40, 0.0  ;;  %v3533_v24 = vmul.f32 0.33, %v3053_v40  ;;  %vm3307_vm3 = vcmp.gt.f32.partialorder %v3067_v63, 0.0 }
 0x312   : > { %v3758_v9 = vsel %vm3278_vm1, %v3038_v49, %v3518_v15  ;;  %vm3322_vm4 = vcmp.gt.f32.partialorder %v3082_v8, 0.0  ;;  %v3547_v37 = vmul.f32 0.33, %v3067_v63  ;;  %v3562_v47 = vmul.f32 0.33, %v3082_v8  ;;  %v14665_v49 = vld [vmem:[#allocation108_spill] sm:$0xff] }
 0x313   : > { %9065 = vmatpush1.bf16.msra.mxu0 %v9064_v28  ;;  %v3773_v30 = vsel %vm3293_vm2, %v3053_v40, %v3533_v24  ;;  %v3069_v56 = vadd.f32 %v10300_v6, %v14662_v46  ;;  %v3084_v54 = vadd.f32 %v10325_v51, %v14663_v7  ;;  %v3066_v27 = vadd.f32 %v10300_v6, %v14664_v19 }
 0x314   : > { %v9096_v3 = vpack.c.bf16 %v3773_v30, %v3758_v9  ;;  %v3787_v20 = vsel %vm3307_vm3, %v3067_v63, %v3547_v37  ;;  %v3802_v61 = vsel %vm3322_vm4, %v3082_v8, %v3562_v47  ;;  %v3081_v34 = vadd.f32 %v10325_v51, %v14665_v49  ;;  %v14667_v63 = vld [vmem:[#allocation116_spill] sm:$0xff]  ;;  %v14668_v37 = vld [vmem:[#allocation115_spill] sm:$0xff] }
 0x315   : > { %v9066_v12 = vpack.c.bf16 %v3802_v61, %v3787_v20  ;;  %vm3309_vm5 = vcmp.gt.f32.partialorder %v3069_v56, 0.0  ;;  %vm3324_vm6 = vcmp.gt.f32.partialorder %v3084_v54, 0.0  ;;  %v3549_v10 = vmul.f32 0.33, %v3069_v56  ;;  %v14669_v30 = vld [vmem:[#allocation111_spill] sm:$0xff] }
 0x316   : > { %9097 = vmatpush1.bf16.msra.mxu1 %v9096_v3  ;;  %v3564_v40 = vmul.f32 0.33, %v3084_v54  ;;  %vm3306_vm7 = vcmp.gt.f32.partialorder %v3066_v27, 0.0  ;;  %vm3321_vm8 = vcmp.gt.f32.partialorder %v3081_v34, 0.0  ;;  %v3546_v23 = vmul.f32 0.33, %v3066_v27 }
 0x317   : > { %9067 = vmatprep.subr.bf16.mxu0 %v9066_v12  ;;  %v3789_v42 = vsel %vm3309_vm5, %v3069_v56, %v3549_v10  ;;  %v3561_v15 = vmul.f32 0.33, %v3081_v34  ;;  %v3068_v28 = vadd.f32 %v10300_v6, %v14666_v52  ;;  %v3083_v8 = vadd.f32 %v10325_v51, %v14667_v63 }
 0x318   : > { %v3804_v24 = vsel %vm3324_vm6, %v3084_v54, %v3564_v40  ;;  %v3786_v9 = vsel %vm3306_vm7, %v3066_v27, %v3546_v23  ;;  %v3097_v47 = vadd.f32 %v10374_v13, %v14668_v37  ;;  %v3112_v46 = vadd.f32 %v10376_v59, %v14669_v30  ;;  %v14670_v54 = vld [vmem:[#allocation123_spill] sm:$0xff]  ;;  %v14673_v30 = vld [vmem:[#allocation110_spill] sm:$0xff] }
 0x319   : > { %v9098_v7 = vpack.c.bf16 %v3804_v24, %v3789_v42  ;;  %v3801_v19 = vsel %vm3321_vm8, %v3081_v34, %v3561_v15  ;;  %vm3308_vm9 = vcmp.gt.f32.partialorder %v3068_v28, 0.0  ;;  %vm3323_vm10 = vcmp.gt.f32.partialorder %v3083_v8, 0.0  ;;  %v14671_v40 = vld [vmem:[#allocation119_spill] sm:$0xff]  ;;  %v14672_v34 = vld [vmem:[#allocation114_spill] sm:$0xff] }
 0x31a   : > { %v9068_v56 = vpack.c.bf16 %v3801_v19, %v3786_v9  ;;  %v3548_v3 = vmul.f32 0.33, %v3068_v28  ;;  %v3563_v20 = vmul.f32 0.33, %v3083_v8  ;;  %vm3337_vm11 = vcmp.gt.f32.partialorder %v3097_v47, 0.0 }
 0x31b   : > { %9099 = vmatprep.subr.bf16.mxu1 %v9098_v7  ;;  %vm3352_vm12 = vcmp.gt.f32.partialorder %v3112_v46, 0.0  ;;  %v3577_v61 = vmul.f32 0.33, %v3097_v47  ;;  %v3592_v49 = vmul.f32 0.33, %v3112_v46  ;;  %v3099_v27 = vadd.f32 %v10374_v13, %v14670_v54 }
 0x31c   : > { %9069 = vmatpush1.bf16.msra.mxu0 %v9068_v56  ;;  %v3788_v12 = vsel %vm3308_vm9, %v3068_v28, %v3548_v3  ;;  %v3803_v10 = vsel %vm3323_vm10, %v3083_v8, %v3563_v20  ;;  %v3114_v23 = vadd.f32 %v10376_v59, %v14671_v40  ;;  %v3096_v42 = vadd.f32 %v10374_v13, %v14672_v34  ;;  %v14674_v8 = vld [vmem:[#allocation122_spill] sm:$0xff] }
 0x31d   : > { %v9100_v15 = vpack.c.bf16 %v3803_v10, %v3788_v12  ;;  %v3817_v52 = vsel %vm3337_vm11, %v3097_v47, %v3577_v61  ;;  %v3832_v63 = vsel %vm3352_vm12, %v3112_v46, %v3592_v49  ;;  %vm3339_vm13 = vcmp.gt.f32.partialorder %v3099_v27, 0.0  ;;  %v14675_v20 = vld [vmem:[#allocation118_spill] sm:$0xff] }
 0x31e   : > { %v9070_v24 = vpack.c.bf16 %v3832_v63, %v3817_v52  ;;  %vm3354_vm14 = vcmp.gt.f32.partialorder %v3114_v23, 0.0  ;;  %v3579_v9 = vmul.f32 0.33, %v3099_v27  ;;  %v3594_v37 = vmul.f32 0.33, %v3114_v23  ;;  %v14676_v46 = vld [vmem:[#allocation170_spill] sm:$0xff] }
 0x31f   : > { %9101 = vmatpush1.bf16.msra.mxu1 %v9100_v15  ;;  %v3111_v7 = vadd.f32 %v10376_v59, %v14673_v30  ;;  %vm3336_vm15 = vcmp.gt.f32.partialorder %v3096_v42, 0.0  ;;  %v3576_v28 = vmul.f32 0.33, %v3096_v42  ;;  %v3098_v19 = vadd.f32 %v10374_v13, %v14674_v8 }
 0x320   : > { %9071 = vmatprep.subr.bf16.mxu0 %v9070_v24  ;;  %v3819_v56 = vsel %vm3339_vm13, %v3099_v27, %v3579_v9  ;;  %v3834_v3 = vsel %vm3354_vm14, %v3114_v23, %v3594_v37  ;;  %v3113_v47 = vadd.f32 %v10376_v59, %v14675_v20  ;;  %v3127_v61 = vadd.f32 %v10414_v58, %v14676_v46  ;;  %v14677_v27 = vld [vmem:[#allocation179_spill] sm:$0xff]  ;;  %v14678_v9 = vld [vmem:[#allocation176_spill] sm:$0xff] }
 0x321   : > { %v9102_v49 = vpack.c.bf16 %v3834_v3, %v3819_v56  ;;  %vm3351_vm1 = vcmp.gt.f32.partialorder %v3111_v7, 0.0  ;;  %v3591_v54 = vmul.f32 0.33, %v3111_v7  ;;  %v3816_v12 = vsel %vm3336_vm15, %v3096_v42, %v3576_v28  ;;  %v14679_v28 = vld [vmem:[#allocation173_spill] sm:$0xff]  ;;  %v14680_v3 = vld [vmem:[#allocation167_spill] sm:$0xff] }
 0x322   : > { %vm3338_vm2 = vcmp.gt.f32.partialorder %v3098_v19, 0.0  ;;  %vm3353_vm3 = vcmp.gt.f32.partialorder %v3113_v47, 0.0  ;;  %v3578_v10 = vmul.f32 0.33, %v3098_v19  ;;  %v3593_v40 = vmul.f32 0.33, %v3113_v47 }
 0x323   : > { %9103 = vmatprep.subr.bf16.mxu1 %v9102_v49  ;;  %v3831_v34 = vsel %vm3351_vm1, %v3111_v7, %v3591_v54  ;;  %vm3367_vm4 = vcmp.gt.f32.partialorder %v3127_v61, 0.0  ;;  %v3607_v15 = vmul.f32 0.33, %v3127_v61  ;;  %v3129_v23 = vadd.f32 %v10414_v58, %v14677_v27  ;;  %v14681_v49 = vld [vmem:[#allocation178_spill] sm:$0xff] }
 0x324   : > { %v9072_v52 = vpack.c.bf16 %v3831_v34, %v3816_v12  ;;  %v3818_v63 = vsel %vm3338_vm2, %v3098_v19, %v3578_v10  ;;  %v3833_v24 = vsel %vm3353_vm3, %v3113_v47, %v3593_v40  ;;  %v3144_v37 = vadd.f32 %v10420_v17, %v14678_v9  ;;  %v14682_v47 = vld [vmem:[#allocation175_spill] sm:$0xff]  ;;  %v14683_v12 = vld [vmem:[#allocation172_spill] sm:$0xff]  ;;  %v14684_v34 = vld [vmem:[#allocation169_spill] sm:$0xff] }
 0x325   : > { %v9104_v30 = vpack.c.bf16 %v3833_v24, %v3818_v63  ;;  %v3847_v8 = vsel %vm3367_vm4, %v3127_v61, %v3607_v15  ;;  %vm3369_vm5 = vcmp.gt.f32.partialorder %v3129_v23, 0.0  ;;  %v3609_v42 = vmul.f32 0.33, %v3129_v23  ;;  %v14685_v24 = vld [vmem:[#allocation174_spill] sm:$0xff] }
 0x326   : > { %9073 = vmatpush1.bf16.msra.mxu0 %v9072_v52  ;;  %v9074_v56 = vpack.c.bf16 %v14679_v28, %v3847_v8  ;;  %vm3384_vm6 = vcmp.gt.f32.partialorder %v3144_v37, 0.0  ;;  %v3624_v7 = vmul.f32 0.33, %v3144_v37  ;;  %v3142_v20 = vadd.f32 %v10420_v17, %v14680_v3  ;;  %v14686_v28 = vld [vmem:[#allocation181_spill] sm:$0xff] }
 0x327   : > { %9105 = vmatpush1.bf16.msra.mxu1 %v9104_v30  ;;  %v3849_v46 = vsel %vm3369_vm5, %v3129_v23, %v3609_v42  ;;  %v3128_v19 = vadd.f32 %v10414_v58, %v14681_v49  ;;  %v3143_v54 = vadd.f32 %v10420_v17, %v14682_v47  ;;  %v3158_v61 = vadd.f32 %v10466_v57, %v14683_v12 }
 0x328   : > { %9075 = vmatprep.subr.bf16.mxu0 %v9074_v56  ;;  %v3864_v10 = vsel %vm3384_vm6, %v3144_v37, %v3624_v7  ;;  %vm3382_vm7 = vcmp.gt.f32.partialorder %v3142_v20, 0.0  ;;  %v3622_v40 = vmul.f32 0.33, %v3142_v20  ;;  %v3173_v15 = vadd.f32 %v10472_v21, %v14684_v34  ;;  %v14687_v7 = vld [vmem:[#allocation171_spill] sm:$0xff] }
 0x329   : > { %v9106_v27 = vpack.c.bf16 %v3864_v10, %v3849_v46  ;;  %vm3368_vm8 = vcmp.gt.f32.partialorder %v3128_v19, 0.0  ;;  %vm3383_vm9 = vcmp.gt.f32.partialorder %v3143_v54, 0.0  ;;  %v3608_v23 = vmul.f32 0.33, %v3128_v19  ;;  %v14688_v46 = vld [vmem:[#allocation168_spill] sm:$0xff]  ;;  %v14689_v10 = vld [vmem:[#allocation177_spill] sm:$0xff] }
 0x32a   : > { %v3862_v52 = vsel %vm3382_vm7, %v3142_v20, %v3622_v40  ;;  %v3623_v63 = vmul.f32 0.33, %v3143_v54  ;;  %vm3398_vm10 = vcmp.gt.f32.partialorder %v3158_v61, 0.0  ;;  %vm3413_vm11 = vcmp.gt.f32.partialorder %v3173_v15, 0.0 }
 0x32b   : > { %9107 = vmatprep.subr.bf16.mxu1 %v9106_v27  ;;  %v9076_v9 = vpack.c.bf16 %v3862_v52, %v14685_v24  ;;  %v3848_v30 = vsel %vm3368_vm8, %v3128_v19, %v3608_v23  ;;  %v3638_v8 = vmul.f32 0.33, %v3158_v61  ;;  %v3653_v42 = vmul.f32 0.33, %v3173_v15  ;;  %v14691_v24 = vld [vmem:[#allocation180_spill] sm:$0xff] }
 0x32c   : > { %v3863_v37 = vsel %vm3383_vm9, %v3143_v54, %v3623_v63  ;;  %v3159_v56 = vadd.f32 %v10466_v57, %v14686_v28  ;;  %v3157_v3 = vadd.f32 %v10466_v57, %v14687_v7  ;;  %v3172_v49 = vadd.f32 %v10472_v21, %v14688_v46 }
 0x32d   : > { %9077 = vmatpush1.bf16.msra.mxu0 %v9076_v9  ;;  %v9108_v20 = vpack.c.bf16 %v3863_v37, %v3848_v30  ;;  %v3878_v47 = vsel %vm3398_vm10, %v3158_v61, %v3638_v8  ;;  %v3893_v12 = vsel %vm3413_vm11, %v3173_v15, %v3653_v42  ;;  %v3174_v40 = vadd.f32 %v10472_v21, %v14689_v10  ;;  %v14690_v61 = vld [vmem:[#allocation219_spill] sm:$0xff] }
 0x32e   : > { %v9078_v19 = vpack.c.bf16 %v3893_v12, %v3878_v47  ;;  %vm3399_vm12 = vcmp.gt.f32.partialorder %v3159_v56, 0.0  ;;  %v3639_v34 = vmul.f32 0.33, %v3159_v56  ;;  %vm3397_vm13 = vcmp.gt.f32.partialorder %v3157_v3, 0.0  ;;  %v14694_v12 = vld [vmem:[#allocation218_spill] sm:$0xff] }
 0x32f   : > { %9109 = vmatpush1.bf16.msra.mxu1 %v9108_v20  ;;  %vm3412_vm14 = vcmp.gt.f32.partialorder %v3172_v49, 0.0  ;;  %v3637_v54 = vmul.f32 0.33, %v3157_v3  ;;  %v3652_v27 = vmul.f32 0.33, %v3172_v49  ;;  %vm3414_vm15 = vcmp.gt.f32.partialorder %v3174_v40, 0.0 }
 0x330   : > { %9079 = vmatprep.subr.bf16.mxu0 %v9078_v19  ;;  %v3879_v23 = vsel %vm3399_vm12, %v3159_v56, %v3639_v34  ;;  %v3654_v52 = vmul.f32 0.33, %v3174_v40  ;;  %v3188_v63 = vadd.f32 %v10518_v14, %v11626_v45  ;;  %v3203_v15 = vadd.f32 %v10524_v62, %v14690_v61  ;;  %v14692_v56 = vld [vmem:[#allocation186_spill] sm:$0xff] }
 0x331   : > { %v9110_v9 = vpack.c.bf16 %v14691_v24, %v3879_v23  ;;  %v3877_v30 = vsel %vm3397_vm13, %v3157_v3, %v3637_v54  ;;  %v3892_v8 = vsel %vm3412_vm14, %v3172_v49, %v3652_v27  ;;  %v3190_v42 = vadd.f32 %v10518_v14, %v11672_v48  ;;  %v14693_v3 = vld [vmem:[#allocation222_spill] sm:$0xff] }
 0x332   : > { %v9080_v37 = vpack.c.bf16 %v3892_v8, %v3877_v30  ;;  %v3894_v28 = vsel %vm3414_vm15, %v3174_v40, %v3654_v52  ;;  %vm3428_vm1 = vcmp.gt.f32.partialorder %v3188_v63, 0.0  ;;  %vm3443_vm2 = vcmp.gt.f32.partialorder %v3203_v15, 0.0  ;;  %v14695_v52 = vld [vmem:[#allocation228_spill] sm:$0xff] }
 0x333   : > { %9111 = vmatprep.subr.bf16.mxu1 %v9110_v9  ;;  %v9112_v7 = vpack.c.bf16 %v3894_v28, %v14692_v56  ;;  %v3668_v46 = vmul.f32 0.33, %v3188_v63  ;;  %v3683_v20 = vmul.f32 0.33, %v3203_v15  ;;  %v3205_v45 = vadd.f32 %v10524_v62, %v11650_v60  ;;  %v14696_v9 = vld [vmem:[#allocation225_spill] sm:$0xff]  ;;  %v14697_v8 = vld [vmem:[#allocation224_spill] sm:$0xff] }
 0x334   : > { %9081 = vmatpush1.bf16.msra.mxu0 %v9080_v37  ;;  %vm3430_vm3 = vcmp.gt.f32.partialorder %v3190_v42, 0.0  ;;  %v3670_v47 = vmul.f32 0.33, %v3190_v42  ;;  %v3187_v49 = vadd.f32 %v10518_v14, %v14693_v3  ;;  %v3202_v48 = vadd.f32 %v10524_v62, %v14694_v12 }
 0x335   : > { %9113 = vmatpush1.bf16.msra.mxu1 %v9112_v7  ;;  %v3908_v10 = vsel %vm3428_vm1, %v3188_v63, %v3668_v46  ;;  %v3923_v40 = vsel %vm3443_vm2, %v3203_v15, %v3683_v20  ;;  %vm3445_vm4 = vcmp.gt.f32.partialorder %v3205_v45, 0.0  ;;  %v3685_v19 = vmul.f32 0.33, %v3205_v45  ;;  %v14698_v15 = vld [vmem:[#allocation221_spill] sm:$0xff] }
 0x336   : > { %v9082_v34 = vpack.c.bf16 %v3923_v40, %v3908_v10  ;;  %v3910_v54 = vsel %vm3430_vm3, %v3190_v42, %v3670_v47  ;;  %vm3427_vm5 = vcmp.gt.f32.partialorder %v3187_v49, 0.0  ;;  %vm3442_vm6 = vcmp.gt.f32.partialorder %v3202_v48, 0.0  ;;  %v14699_v10 = vld [vmem:[#allocation227_spill] sm:$0xff] }
 0x337   : > { %v3925_v27 = vsel %vm3445_vm4, %v3205_v45, %v3685_v19  ;;  %v3667_v60 = vmul.f32 0.33, %v3187_v49  ;;  %v3682_v23 = vmul.f32 0.33, %v3202_v48  ;;  %v3189_v61 = vadd.f32 %v10518_v14, %v14695_v52 }
 0x338   : > { %9083 = vmatprep.subr.bf16.mxu0 %v9082_v34  ;;  %v9114_v24 = vpack.c.bf16 %v3925_v27, %v3910_v54  ;;  %v3204_v30 = vadd.f32 %v10524_v62, %v14696_v9  ;;  %v3218_v63 = vadd.f32 %v10570_v25, %v14697_v8  ;;  %v3233_v37 = vadd.f32 %v10576_v55, %v14698_v15  ;;  %v14701_v27 = vld [vmem:[#allocation220_spill] sm:$0xff] }
 0x339   : > { %v3907_v42 = vsel %vm3427_vm5, %v3187_v49, %v3667_v60  ;;  %v3922_v28 = vsel %vm3442_vm6, %v3202_v48, %v3682_v23  ;;  %vm3429_vm7 = vcmp.gt.f32.partialorder %v3189_v61, 0.0  ;;  %v3669_v56 = vmul.f32 0.33, %v3189_v61  ;;  %v14700_v48 = vld [vmem:[#allocation223_spill] sm:$0xff] }
 0x33a   : > { %9115 = vmatprep.subr.bf16.mxu1 %v9114_v24  ;;  %v9084_v7 = vpack.c.bf16 %v3922_v28, %v3907_v42  ;;  %vm3444_vm8 = vcmp.gt.f32.partialorder %v3204_v30, 0.0  ;;  %v3684_v46 = vmul.f32 0.33, %v3204_v30  ;;  %vm3458_vm9 = vcmp.gt.f32.partialorder %v3218_v63, 0.0  ;;  %v14704_v28 = vld [vmem:[#allocation66_spill] sm:$0xff] }
 0x33b   : > { %v3909_v20 = vsel %vm3429_vm7, %v3189_v61, %v3669_v56  ;;  %vm3473_vm10 = vcmp.gt.f32.partialorder %v3233_v37, 0.0  ;;  %v3698_v45 = vmul.f32 0.33, %v3218_v63  ;;  %v3713_v47 = vmul.f32 0.33, %v3233_v37 }
 0x33c   : > { %9085 = vmatpush1.bf16.msra.mxu0 %v9084_v7  ;;  %v3924_v3 = vsel %vm3444_vm8, %v3204_v30, %v3684_v46  ;;  %v3220_v12 = vadd.f32 %v10570_v25, %v11680_v39  ;;  %v3235_v49 = vadd.f32 %v10576_v55, %v14699_v10  ;;  %v3217_v40 = vadd.f32 %v10570_v25, %v14700_v48  ;;  %v14702_v30 = vld [vmem:[#allocation229_spill] sm:$0xff]  ;;  %v14705_v7 = vld [vmem:[#allocation62_spill] sm:$0xff] }
 0x33d   : > { %v9116_v19 = vpack.c.bf16 %v3924_v3, %v3909_v20  ;;  %v3938_v34 = vsel %vm3458_vm9, %v3218_v63, %v3698_v45  ;;  %v3953_v54 = vsel %vm3473_vm10, %v3233_v37, %v3713_v47  ;;  %v3232_v60 = vadd.f32 %v10576_v55, %v14701_v27  ;;  %v14703_v63 = vld [vmem:[#allocation226_spill] sm:$0xff] }
 0x33e   : > { %v9086_v23 = vpack.c.bf16 %v3953_v54, %v3938_v34  ;;  %vm3460_vm11 = vcmp.gt.f32.partialorder %v3220_v12, 0.0  ;;  %vm3475_vm12 = vcmp.gt.f32.partialorder %v3235_v49, 0.0  ;;  %v3700_v52 = vmul.f32 0.33, %v3220_v12  ;;  %v14707_v54 = vld [vmem:[#allocation70_spill] sm:$0xff] }
 0x33f   : > { %9117 = vmatpush1.bf16.msra.mxu1 %v9116_v19  ;;  %v3715_v61 = vmul.f32 0.33, %v3235_v49  ;;  %vm3457_vm13 = vcmp.gt.f32.partialorder %v3217_v40, 0.0  ;;  %vm3472_vm14 = vcmp.gt.f32.partialorder %v3232_v60, 0.0  ;;  %v3697_v39 = vmul.f32 0.33, %v3217_v40 }
 0x340   : > { %9087 = vmatprep.subr.bf16.mxu0 %v9086_v23  ;;  %v3940_v24 = vsel %vm3460_vm11, %v3220_v12, %v3700_v52  ;;  %v3712_v9 = vmul.f32 0.33, %v3232_v60  ;;  %v3219_v8 = vadd.f32 %v10570_v25, %v14702_v30  ;;  %v3234_v15 = vadd.f32 %v10576_v55, %v14703_v63  ;;  %v14709_v63 = vld [vmem:[#allocation61_spill] sm:$0xff] }
 0x341   : > { %v3955_v37 = vsel %vm3475_vm12, %v3235_v49, %v3715_v61  ;;  %v3937_v42 = vsel %vm3457_vm13, %v3217_v40, %v3697_v39  ;;  %v3011_v56 = vadd.f32 %v10150_v35, %v14704_v28  ;;  %v3026_v46 = vadd.f32 %v10192_v50, %v14705_v7  ;;  %v14706_v49 = vld [vmem:[#allocation74_spill] sm:$0xff] }
 0x342   : > { %v9118_v20 = vpack.c.bf16 %v3955_v37, %v3940_v24  ;;  %v3952_v45 = vsel %vm3472_vm14, %v3232_v60, %v3712_v9  ;;  %vm3459_vm15 = vcmp.gt.f32.partialorder %v3219_v8, 0.0  ;;  %vm3474_vm1 = vcmp.gt.f32.partialorder %v3234_v15, 0.0  ;;  %v14708_v60 = vld [vmem:[#allocation65_spill] sm:$0xff] }
 0x343   : > { %v9088_v47 = vpack.c.bf16 %v3952_v45, %v3937_v42  ;;  %v3699_v3 = vmul.f32 0.33, %v3219_v8  ;;  %v3714_v12 = vmul.f32 0.33, %v3234_v15  ;;  %vm3251_vm2 = vcmp.gt.f32.partialorder %v3011_v56, 0.0  ;;  %v14710_v42 = vld [vmem:[#allocation73_spill] sm:$0xff] }
 0x344   : > { %9119 = vmatprep.subr.bf16.mxu1 %v9118_v20  ;;  %vm3266_vm3 = vcmp.gt.f32.partialorder %v3026_v46, 0.0  ;;  %v3491_v10 = vmul.f32 0.33, %v3011_v56  ;;  %v3506_v48 = vmul.f32 0.33, %v3026_v46  ;;  %v3013_v40 = vadd.f32 %v10150_v35, %v14706_v49  ;;  %v14712_v45 = vld [vmem:[#allocation68_spill] sm:$0xff] }
 0x345   : > { %9089 = vmatpush1.bf16.msra.mxu0 %v9088_v47  ;;  %v3939_v19 = vsel %vm3459_vm15, %v3219_v8, %v3699_v3  ;;  %v3954_v34 = vsel %vm3474_vm1, %v3234_v15, %v3714_v12  ;;  %v3028_v27 = vadd.f32 %v10192_v50, %v14707_v54  ;;  %v3010_v23 = vadd.f32 %v10150_v35, %v14708_v60  ;;  %v12214_v8 = vld [vmem:[%s14020_s3 + $0x8] sm:$0xff] }
 0x346   : > { %v9120_v52 = vpack.c.bf16 %v3954_v34, %v3939_v19  ;;  %v3731_v61 = vsel %vm3251_vm2, %v3011_v56, %v3491_v10  ;;  %v3746_v39 = vsel %vm3266_vm3, %v3026_v46, %v3506_v48  ;;  %vm3253_vm4 = vcmp.gt.f32.partialorder %v3013_v40, 0.0  ;;  %v14711_v46 = vld [vmem:[#allocation69_spill] sm:$0xff]  ;;  %v14714_v60 = vld [vmem:[#allocation76_spill] sm:$0xff] }
 0x347   : > { %v9122_v24 = vpack.c.bf16 %v3746_v39, %v3731_v61  ;;  %vm3268_vm5 = vcmp.gt.f32.partialorder %v3028_v27, 0.0  ;;  %v3493_v9 = vmul.f32 0.33, %v3013_v40  ;;  %v3508_v30 = vmul.f32 0.33, %v3028_v27 }
 0x348   : > { %9121 = vmatpush1.bf16.msra.mxu1 %v9120_v52  ;;  %4878 = vmatmul.mubr.f32.vlgmr.msra.gmra.mrb[26].mxu0 %v12214_v8  ;;  %v3025_v15 = vadd.f32 %v10192_v50, %v14709_v63  ;;  %vm3250_vm6 = vcmp.gt.f32.partialorder %v3010_v23, 0.0  ;;  %v3490_v37 = vmul.f32 0.33, %v3010_v23  ;;  %v3012_v28 = vadd.f32 %v10150_v35, %v14710_v42  ;;  %v14716_v63 = vld [vmem:[#allocation67_spill] sm:$0xff] }
 0x349   : > { %9123 = vmatprep.subr.bf16.mxu0 %v9122_v24  ;;  %v3733_v56 = vsel %vm3253_vm4, %v3013_v40, %v3493_v9  ;;  %v3748_v7 = vsel %vm3268_vm5, %v3028_v27, %v3508_v30  ;;  %v3027_v20 = vadd.f32 %v10192_v50, %v14711_v46  ;;  %v3041_v47 = vadd.f32 %v10218_v0, %v14712_v45  ;;  %v14713_v40 = vld [vmem:[#allocation64_spill] sm:$0xff]  ;;  %v14717_v42 = vld [vmem:[#allocation63_spill] sm:$0xff] }
 0x34a   : > { %v9154_v3 = vpack.c.bf16 %v3748_v7, %v3733_v56  ;;  %vm3265_vm7 = vcmp.gt.f32.partialorder %v3025_v15, 0.0  ;;  %v3505_v12 = vmul.f32 0.33, %v3025_v15  ;;  %v3730_v10 = vsel %vm3250_vm6, %v3010_v23, %v3490_v37  ;;  %5019 = vmatprep.mubr.f32.mxu0 %v14363_v31  ;;  %v14715_v24 = vld [vmem:[#allocation72_spill] sm:$0xff]  ;;  %v14718_v56 = vld [vmem:[#allocation75_spill] sm:$0xff] }
 0x34b   : > { %4949 = vmatmul.mubr.f32.vlgmr.msra.gmra.mrb[30].mxu1 %v12214_v8  ;;  %vm3252_vm8 = vcmp.gt.f32.partialorder %v3012_v28, 0.0  ;;  %vm3267_vm9 = vcmp.gt.f32.partialorder %v3027_v20, 0.0  ;;  %v3492_v35 = vmul.f32 0.33, %v3012_v28  ;;  %v3507_v48 = vmul.f32 0.33, %v3027_v20 }
 0x34c   : > { %9155 = vmatprep.subr.bf16.mxu1 %v9154_v3  ;;  %v3745_v49 = vsel %vm3265_vm7, %v3025_v15, %v3505_v12  ;;  %v3056_v50 = vadd.f32 %v10246_v44, %v14713_v40  ;;  %vm3281_vm10 = vcmp.gt.f32.partialorder %v3041_v47, 0.0  ;;  %v3521_v19 = vmul.f32 0.33, %v3041_v47  ;;  %5090 = vmatprep.mubr.f32.mxu1 %v14363_v31  ;;  %v14719_v46 = vld [vmem:[#allocation71_spill] sm:$0xff] }
 0x34d   : > { %v9124_v34 = vpack.c.bf16 %v3745_v49, %v3730_v10  ;;  %v3732_v54 = vsel %vm3252_vm8, %v3012_v28, %v3492_v35  ;;  %v3747_v27 = vsel %vm3267_vm9, %v3027_v20, %v3507_v48  ;;  %v3043_v23 = vadd.f32 %v10218_v0, %v14714_v60 }
 0x34e   : > { %v9156_v52 = vpack.c.bf16 %v3747_v27, %v3732_v54  ;;  %vm3296_vm11 = vcmp.gt.f32.partialorder %v3056_v50, 0.0  ;;  %v3536_v61 = vmul.f32 0.33, %v3056_v50  ;;  %v3761_v39 = vsel %vm3281_vm10, %v3041_v47, %v3521_v19 }
 0x34f   : > { %9125 = vmatpush1.bf16.msra.mxu0 %v9124_v34  ;;  %v3058_v9 = vadd.f32 %v10246_v44, %v14715_v24  ;;  %vm3283_vm12 = vcmp.gt.f32.partialorder %v3043_v23, 0.0  ;;  %v3523_v30 = vmul.f32 0.33, %v3043_v23  ;;  %v3040_v15 = vadd.f32 %v10218_v0, %v14716_v63  ;;  %v14724_v63 = vld [vmem:[#allocation133_spill] sm:$0xff] }
 0x350   : > { %9157 = vmatpush1.bf16.msra.mxu1 %v9156_v52  ;;  %v3776_v37 = vsel %vm3296_vm11, %v3056_v50, %v3536_v61  ;;  %v3055_v28 = vadd.f32 %v10246_v44, %v14717_v42  ;;  %v3042_v7 = vadd.f32 %v10218_v0, %v14718_v56  ;;  %v3057_v20 = vadd.f32 %v10246_v44, %v14719_v46  ;;  %v12242_v45 = vpop.f32.mrb[20].mxu0  ;;  %v14722_v61 = vld [vmem:[#allocation125_spill] sm:$0xff]  ;;  %v14725_v42 = vld [vmem:[#allocation128_spill] sm:$0xff] }
 0x351   : > { %14720 = vst [vmem:[#allocation22_spill] sm:$0xff] %v12242_v45  ;;  %v9126_v47 = vpack.c.bf16 %v3776_v37, %v3761_v39  ;;  %vm3298_vm13 = vcmp.gt.f32.partialorder %v3058_v9, 0.0  ;;  %v3538_v3 = vmul.f32 0.33, %v3058_v9  ;;  %v3763_v12 = vsel %vm3283_vm12, %v3043_v23, %v3523_v30  ;;  %v12244_v10 = vpop.f32.mrb[21].mxu0  ;;  %v12246_v35 = vpop.f32.mrb[24].mxu1 }
 0x352   : > { %vm3280_vm14 = vcmp.gt.f32.partialorder %v3040_v15, 0.0  ;;  %vm3295_vm15 = vcmp.gt.f32.partialorder %v3055_v28, 0.0  ;;  %v3520_v48 = vmul.f32 0.33, %v3040_v15  ;;  %v3535_v49 = vmul.f32 0.33, %v3055_v28 }
 0x353   : > { %9127 = vmatprep.subr.bf16.mxu0 %v9126_v47  ;;  %v3778_v40 = vsel %vm3298_vm13, %v3058_v9, %v3538_v3  ;;  %vm3282_vm1 = vcmp.gt.f32.partialorder %v3042_v7, 0.0  ;;  %vm3297_vm2 = vcmp.gt.f32.partialorder %v3057_v20, 0.0  ;;  %v3522_v0 = vmul.f32 0.33, %v3042_v7  ;;  %v12248_v44 = vpop.f32.mrb[25].mxu1  ;;  %v14721_v23 = vld [vmem:[#allocation129_spill] sm:$0xff] }
 0x354   : > { %v9158_v50 = vpack.c.bf16 %v3778_v40, %v3763_v12  ;;  %v3760_v19 = vsel %vm3280_vm14, %v3040_v15, %v3520_v48  ;;  %v3775_v34 = vsel %vm3295_vm15, %v3055_v28, %v3535_v49  ;;  %v3537_v54 = vmul.f32 0.33, %v3057_v20  ;;  %v14723_v9 = vld [vmem:[#allocation137_spill] sm:$0xff]  ;;  %v14726_v3 = vld [vmem:[#allocation124_spill] sm:$0xff] }
 0x355   : > { %v9128_v27 = vpack.c.bf16 %v3775_v34, %v3760_v19  ;;  %v3762_v60 = vsel %vm3282_vm1, %v3042_v7, %v3522_v0  ;;  %v3071_v52 = vadd.f32 %v10300_v6, %v14721_v23  ;;  %v3086_v39 = vadd.f32 %v10325_v51, %v14722_v61  ;;  %v14727_v0 = vld [vmem:[#allocation136_spill] sm:$0xff] }
 0x356   : > { %9159 = vmatprep.subr.bf16.mxu1 %v9158_v50  ;;  %v3777_v24 = vsel %vm3297_vm2, %v3057_v20, %v3537_v54  ;;  %v3073_v30 = vadd.f32 %v10300_v6, %v14723_v9  ;;  %v3088_v37 = vadd.f32 %v10325_v51, %v14724_v63  ;;  %v3070_v15 = vadd.f32 %v10300_v6, %v14725_v42  ;;  %v14728_v23 = vld [vmem:[#allocation132_spill] sm:$0xff]  ;;  %v14729_v9 = vld [vmem:[#allocation131_spill] sm:$0xff] }
 0x357   : > { %9129 = vmatpush1.bf16.msra.mxu0 %v9128_v27  ;;  %v9160_v28 = vpack.c.bf16 %v3777_v24, %v3762_v60  ;;  %vm3311_vm3 = vcmp.gt.f32.partialorder %v3071_v52, 0.0  ;;  %vm3326_vm4 = vcmp.gt.f32.partialorder %v3086_v39, 0.0  ;;  %v3551_v56 = vmul.f32 0.33, %v3071_v52  ;;  %v14731_v42 = vld [vmem:[#allocation139_spill] sm:$0xff] }
 0x358   : > { %v3566_v7 = vmul.f32 0.33, %v3086_v39  ;;  %vm3313_vm5 = vcmp.gt.f32.partialorder %v3073_v30, 0.0  ;;  %vm3328_vm6 = vcmp.gt.f32.partialorder %v3088_v37, 0.0  ;;  %v3553_v46 = vmul.f32 0.33, %v3073_v30 }
 0x359   : > { %9161 = vmatpush1.bf16.msra.mxu1 %v9160_v28  ;;  %v3791_v20 = vsel %vm3311_vm3, %v3071_v52, %v3551_v56  ;;  %v3568_v47 = vmul.f32 0.33, %v3088_v37  ;;  %v3085_v12 = vadd.f32 %v10325_v51, %v14726_v3  ;;  %vm3310_vm7 = vcmp.gt.f32.partialorder %v3070_v15, 0.0 }
 0x35a   : > { %v3806_v48 = vsel %vm3326_vm4, %v3086_v39, %v3566_v7  ;;  %v3793_v49 = vsel %vm3313_vm5, %v3073_v30, %v3553_v46  ;;  %v3550_v40 = vmul.f32 0.33, %v3070_v15  ;;  %v3072_v50 = vadd.f32 %v10300_v6, %v14727_v0  ;;  %v14730_v30 = vld [vmem:[#allocation127_spill] sm:$0xff] }
 0x35b   : > { %v9130_v19 = vpack.c.bf16 %v3806_v48, %v3791_v20  ;;  %v3808_v34 = vsel %vm3328_vm6, %v3088_v37, %v3568_v47  ;;  %vm3325_vm8 = vcmp.gt.f32.partialorder %v3085_v12, 0.0  ;;  %v3565_v54 = vmul.f32 0.33, %v3085_v12  ;;  %v14732_v46 = vld [vmem:[#allocation135_spill] sm:$0xff]  ;;  %v14733_v48 = vld [vmem:[#allocation130_spill] sm:$0xff] }
 0x35c   : > { %v9162_v27 = vpack.c.bf16 %v3808_v34, %v3793_v49  ;;  %v3790_v60 = vsel %vm3310_vm7, %v3070_v15, %v3550_v40  ;;  %v3087_v52 = vadd.f32 %v10325_v51, %v14728_v23  ;;  %vm3312_vm9 = vcmp.gt.f32.partialorder %v3072_v50, 0.0 }
 0x35d   : > { %9131 = vmatprep.subr.bf16.mxu0 %v9130_v19  ;;  %v3805_v61 = vsel %vm3325_vm8, %v3085_v12, %v3565_v54  ;;  %v3552_v24 = vmul.f32 0.33, %v3072_v50  ;;  %v3101_v39 = vadd.f32 %v10374_v13, %v14729_v9  ;;  %v3116_v63 = vadd.f32 %v10376_v59, %v14730_v30 }
 0x35e   : > { %9163 = vmatprep.subr.bf16.mxu1 %v9162_v27  ;;  %v9132_v6 = vpack.c.bf16 %v3805_v61, %v3790_v60  ;;  %vm3327_vm10 = vcmp.gt.f32.partialorder %v3087_v52, 0.0  ;;  %v3567_v37 = vmul.f32 0.33, %v3087_v52  ;;  %v3103_v15 = vadd.f32 %v10374_v13, %v14731_v42 }
 0x35f   : > { %v3792_v28 = vsel %vm3312_vm9, %v3072_v50, %v3552_v24  ;;  %vm3341_vm11 = vcmp.gt.f32.partialorder %v3101_v39, 0.0  ;;  %vm3356_vm12 = vcmp.gt.f32.partialorder %v3116_v63, 0.0  ;;  %v3581_v51 = vmul.f32 0.33, %v3101_v39  ;;  %v14734_v50 = vld [vmem:[#allocation126_spill] sm:$0xff] }
 0x360   : > { %9133 = vmatpush1.bf16.msra.mxu0 %v9132_v6  ;;  %v3807_v56 = vsel %vm3327_vm10, %v3087_v52, %v3567_v37  ;;  %v3596_v7 = vmul.f32 0.33, %v3116_v63  ;;  %v3118_v20 = vadd.f32 %v10376_v59, %v14732_v46  ;;  %vm3343_vm13 = vcmp.gt.f32.partialorder %v3103_v15, 0.0  ;;  %v14735_v52 = vld [vmem:[#allocation138_spill] sm:$0xff] }
 0x361   : > { %v9164_v47 = vpack.c.bf16 %v3807_v56, %v3792_v28  ;;  %v3821_v3 = vsel %vm3341_vm11, %v3101_v39, %v3581_v51  ;;  %v3583_v12 = vmul.f32 0.33, %v3103_v15  ;;  %v3100_v49 = vadd.f32 %v10374_v13, %v14733_v48  ;;  %v14736_v39 = vld [vmem:[#allocation134_spill] sm:$0xff]  ;;  %v14741_v48 = vld [vmem:[#allocation187_spill] sm:$0xff] }
 0x362   : > { %v3836_v40 = vsel %vm3356_vm12, %v3116_v63, %v3596_v7  ;;  %vm3358_vm14 = vcmp.gt.f32.partialorder %v3118_v20, 0.0  ;;  %v3598_v0 = vmul.f32 0.33, %v3118_v20  ;;  %v3115_v19 = vadd.f32 %v10376_v59, %v14734_v50  ;;  %v14737_v63 = vld [vmem:[#allocation188_spill] sm:$0xff] }
 0x363   : > { %9165 = vmatpush1.bf16.msra.mxu1 %v9164_v47  ;;  %v9134_v34 = vpack.c.bf16 %v3836_v40, %v3821_v3  ;;  %v3823_v54 = vsel %vm3343_vm13, %v3103_v15, %v3583_v12  ;;  %vm3340_vm15 = vcmp.gt.f32.partialorder %v3100_v49, 0.0  ;;  %v3580_v27 = vmul.f32 0.33, %v3100_v49  ;;  %v14738_v15 = vld [vmem:[#allocation183_spill] sm:$0xff]  ;;  %v14740_v3 = vld [vmem:[#allocation192_spill] sm:$0xff] }
 0x364   : > { %v3838_v60 = vsel %vm3358_vm14, %v3118_v20, %v3598_v0  ;;  %vm3355_vm1 = vcmp.gt.f32.partialorder %v3115_v19, 0.0  ;;  %v3595_v23 = vmul.f32 0.33, %v3115_v19  ;;  %v3102_v61 = vadd.f32 %v10374_v13, %v14735_v52  ;;  %v14739_v20 = vld [vmem:[#allocation196_spill] sm:$0xff] }
 0x365   : > { %9135 = vmatprep.subr.bf16.mxu0 %v9134_v34  ;;  %v9166_v24 = vpack.c.bf16 %v3838_v60, %v3823_v54  ;;  %v3820_v9 = vsel %vm3340_vm15, %v3100_v49, %v3580_v27  ;;  %v3117_v30 = vadd.f32 %v10376_v59, %v14736_v39  ;;  %v3131_v6 = vadd.f32 %v10414_v58, %v14737_v63  ;;  %v14744_v39 = vld [vmem:[#allocation191_spill] sm:$0xff] }
 0x366   : > { %v3835_v37 = vsel %vm3355_vm1, %v3115_v19, %v3595_v23  ;;  %vm3342_vm2 = vcmp.gt.f32.partialorder %v3102_v61, 0.0  ;;  %v3582_v42 = vmul.f32 0.33, %v3102_v61  ;;  %v3146_v28 = vadd.f32 %v10420_v17, %v14738_v15  ;;  %v14742_v19 = vld [vmem:[#allocation182_spill] sm:$0xff]  ;;  %v14746_v15 = vld [vmem:[#allocation185_spill] sm:$0xff] }
 0x367   : > { %9167 = vmatprep.subr.bf16.mxu1 %v9166_v24  ;;  %v9136_v51 = vpack.c.bf16 %v3835_v37, %v3820_v9  ;;  %vm3357_vm3 = vcmp.gt.f32.partialorder %v3117_v30, 0.0  ;;  %v3597_v56 = vmul.f32 0.33, %v3117_v30  ;;  %vm3371_vm4 = vcmp.gt.f32.partialorder %v3131_v6, 0.0  ;;  %v14743_v24 = vld [vmem:[#allocation195_spill] sm:$0xff]  ;;  %v14745_v37 = vld [vmem:[#allocation190_spill] sm:$0xff] }
 0x368   : > { %v3822_v13 = vsel %vm3342_vm2, %v3102_v61, %v3582_v42  ;;  %vm3386_vm5 = vcmp.gt.f32.partialorder %v3146_v28, 0.0  ;;  %v3611_v7 = vmul.f32 0.33, %v3131_v6  ;;  %v3626_v46 = vmul.f32 0.33, %v3146_v28 }
 0x369   : > { %9137 = vmatpush1.bf16.msra.mxu0 %v9136_v51  ;;  %v3837_v59 = vsel %vm3357_vm3, %v3117_v30, %v3597_v56  ;;  %v3133_v47 = vadd.f32 %v10414_v58, %v14739_v20  ;;  %v3148_v12 = vadd.f32 %v10420_v17, %v14740_v3  ;;  %v3130_v49 = vadd.f32 %v10414_v58, %v14741_v48 }
 0x36a   : > { %v9168_v40 = vpack.c.bf16 %v3837_v59, %v3822_v13  ;;  %v3851_v0 = vsel %vm3371_vm4, %v3131_v6, %v3611_v7  ;;  %v3866_v50 = vsel %vm3386_vm5, %v3146_v28, %v3626_v46  ;;  %v3145_v34 = vadd.f32 %v10420_v17, %v14742_v19  ;;  %v14747_v59 = vld [vmem:[#allocation198_spill] sm:$0xff] }
 0x36b   : > { %v9138_v54 = vpack.c.bf16 %v3866_v50, %v3851_v0  ;;  %vm3373_vm6 = vcmp.gt.f32.partialorder %v3133_v47, 0.0  ;;  %vm3388_vm7 = vcmp.gt.f32.partialorder %v3148_v12, 0.0  ;;  %v3613_v27 = vmul.f32 0.33, %v3133_v47 }
 0x36c   : > { %9169 = vmatpush1.bf16.msra.mxu1 %v9168_v40  ;;  %v3628_v60 = vmul.f32 0.33, %v3148_v12  ;;  %vm3370_vm8 = vcmp.gt.f32.partialorder %v3130_v49, 0.0  ;;  %vm3385_vm9 = vcmp.gt.f32.partialorder %v3145_v34, 0.0  ;;  %v3610_v23 = vmul.f32 0.33, %v3130_v49 }
 0x36d   : > { %9139 = vmatprep.subr.bf16.mxu0 %v9138_v54  ;;  %v3853_v52 = vsel %vm3373_vm6, %v3133_v47, %v3613_v27  ;;  %v3625_v61 = vmul.f32 0.33, %v3145_v34  ;;  %v3132_v9 = vadd.f32 %v10414_v58, %v14743_v24  ;;  %v3147_v30 = vadd.f32 %v10420_v17, %v14744_v39 }
 0x36e   : > { %v3868_v63 = vsel %vm3388_vm7, %v3148_v12, %v3628_v60  ;;  %v3850_v6 = vsel %vm3370_vm8, %v3130_v49, %v3610_v23  ;;  %v3161_v42 = vadd.f32 %v10466_v57, %v14745_v37  ;;  %v3176_v28 = vadd.f32 %v10472_v21, %v14746_v15  ;;  %v14748_v12 = vld [vmem:[#allocation194_spill] sm:$0xff]  ;;  %v14749_v49 = vld [vmem:[#allocation189_spill] sm:$0xff]  ;;  %v14750_v60 = vld [vmem:[#allocation184_spill] sm:$0xff] }
 0x36f   : > { %v9170_v51 = vpack.c.bf16 %v3868_v63, %v3853_v52  ;;  %v3865_v56 = vsel %vm3385_vm9, %v3145_v34, %v3625_v61  ;;  %vm3372_vm10 = vcmp.gt.f32.partialorder %v3132_v9, 0.0  ;;  %vm3387_vm11 = vcmp.gt.f32.partialorder %v3147_v30, 0.0  ;;  %v14751_v61 = vld [vmem:[#allocation197_spill] sm:$0xff] }
 0x370   : > { %v9140_v13 = vpack.c.bf16 %v3865_v56, %v3850_v6  ;;  %v3612_v7 = vmul.f32 0.33, %v3132_v9  ;;  %v3627_v46 = vmul.f32 0.33, %v3147_v30  ;;  %vm3401_vm12 = vcmp.gt.f32.partialorder %v3161_v42, 0.0 }
 0x371   : > { %9171 = vmatprep.subr.bf16.mxu1 %v9170_v51  ;;  %vm3416_vm13 = vcmp.gt.f32.partialorder %v3176_v28, 0.0  ;;  %v3641_v58 = vmul.f32 0.33, %v3161_v42  ;;  %v3656_v17 = vmul.f32 0.33, %v3176_v28  ;;  %v3163_v20 = vadd.f32 %v10466_v57, %v14747_v59 }
 0x372   : > { %9141 = vmatpush1.bf16.msra.mxu0 %v9140_v13  ;;  %v3852_v47 = vsel %vm3372_vm10, %v3132_v9, %v3612_v7  ;;  %v3867_v3 = vsel %vm3387_vm11, %v3147_v30, %v3627_v46  ;;  %v3178_v48 = vadd.f32 %v10472_v21, %v14748_v12  ;;  %v3160_v40 = vadd.f32 %v10466_v57, %v14749_v49  ;;  %v14752_v30 = vld [vmem:[#allocation193_spill] sm:$0xff]  ;;  %v14754_v49 = vld [vmem:[#allocation236_spill] sm:$0xff] }
 0x373   : > { %v9172_v0 = vpack.c.bf16 %v3867_v3, %v3852_v47  ;;  %v3881_v50 = vsel %vm3401_vm12, %v3161_v42, %v3641_v58  ;;  %v3896_v19 = vsel %vm3416_vm13, %v3176_v28, %v3656_v17  ;;  %vm3403_vm14 = vcmp.gt.f32.partialorder %v3163_v20, 0.0  ;;  %v14753_v3 = vld [vmem:[#allocation230_spill] sm:$0xff] }
 0x374   : > { %v9142_v34 = vpack.c.bf16 %v3896_v19, %v3881_v50  ;;  %vm3418_vm15 = vcmp.gt.f32.partialorder %v3178_v48, 0.0  ;;  %v3643_v54 = vmul.f32 0.33, %v3163_v20  ;;  %v3658_v27 = vmul.f32 0.33, %v3178_v48  ;;  %v14756_v19 = vld [vmem:[#allocation232_spill] sm:$0xff] }
 0x375   : > { %9173 = vmatpush1.bf16.msra.mxu1 %v9172_v0  ;;  %v3175_v23 = vadd.f32 %v10472_v21, %v14750_v60  ;;  %vm3400_vm1 = vcmp.gt.f32.partialorder %v3160_v40, 0.0  ;;  %v3640_v52 = vmul.f32 0.33, %v3160_v40  ;;  %v3162_v24 = vadd.f32 %v10466_v57, %v14751_v61 }
 0x376   : > { %9143 = vmatprep.subr.bf16.mxu0 %v9142_v34  ;;  %v3883_v9 = vsel %vm3403_vm14, %v3163_v20, %v3643_v54  ;;  %v3898_v39 = vsel %vm3418_vm15, %v3178_v48, %v3658_v27  ;;  %v3177_v63 = vadd.f32 %v10472_v21, %v14752_v30  ;;  %v3191_v6 = vadd.f32 %v10518_v14, %v11713_v32  ;;  %v14759_v30 = vld [vmem:[#allocation233_spill] sm:$0xff] }
 0x377   : > { %v9174_v37 = vpack.c.bf16 %v3898_v39, %v3883_v9  ;;  %vm3415_vm2 = vcmp.gt.f32.partialorder %v3175_v23, 0.0  ;;  %v3655_v42 = vmul.f32 0.33, %v3175_v23  ;;  %v3880_v15 = vsel %vm3400_vm1, %v3160_v40, %v3640_v52  ;;  %v14755_v40 = vld [vmem:[#allocation234_spill] sm:$0xff] }
 0x378   : > { %vm3402_vm3 = vcmp.gt.f32.partialorder %v3162_v24, 0.0  ;;  %vm3417_vm4 = vcmp.gt.f32.partialorder %v3177_v63, 0.0  ;;  %v3642_v28 = vmul.f32 0.33, %v3162_v24  ;;  %v3657_v51 = vmul.f32 0.33, %v3177_v63 }
 0x379   : > { %9175 = vmatprep.subr.bf16.mxu1 %v9174_v37  ;;  %v3895_v56 = vsel %vm3415_vm2, %v3175_v23, %v3655_v42  ;;  %vm3431_vm5 = vcmp.gt.f32.partialorder %v3191_v6, 0.0  ;;  %v3671_v57 = vmul.f32 0.33, %v3191_v6  ;;  %v3193_v13 = vadd.f32 %v10518_v14, %v11767_v22  ;;  %v14758_v9 = vld [vmem:[#allocation238_spill] sm:$0xff] }
 0x37a   : > { %v9144_v7 = vpack.c.bf16 %v3895_v56, %v3880_v15  ;;  %v3882_v21 = vsel %vm3402_vm3, %v3162_v24, %v3642_v28  ;;  %v3897_v46 = vsel %vm3417_vm4, %v3177_v63, %v3657_v51  ;;  %v3208_v32 = vadd.f32 %v10524_v62, %v11743_v11  ;;  %v14761_v51 = vld [vmem:[#allocation237_spill] sm:$0xff] }
 0x37b   : > { %v9176_v58 = vpack.c.bf16 %v3897_v46, %v3882_v21  ;;  %v3911_v17 = vsel %vm3431_vm5, %v3191_v6, %v3671_v57  ;;  %vm3433_vm6 = vcmp.gt.f32.partialorder %v3193_v13, 0.0  ;;  %v3673_v59 = vmul.f32 0.33, %v3193_v13  ;;  %v14760_v6 = vld [vmem:[#allocation231_spill] sm:$0xff] }
 0x37c   : > { %9145 = vmatpush1.bf16.msra.mxu0 %v9144_v7  ;;  %v9146_v20 = vpack.c.bf16 %v11724_v41, %v3911_v17  ;;  %vm3448_vm7 = vcmp.gt.f32.partialorder %v3208_v32, 0.0  ;;  %v3688_v47 = vmul.f32 0.33, %v3208_v32  ;;  %v3206_v12 = vadd.f32 %v10524_v62, %v14753_v3 }
 0x37d   : > { %9177 = vmatpush1.bf16.msra.mxu1 %v9176_v58  ;;  %v3913_v22 = vsel %vm3433_vm6, %v3193_v13, %v3673_v59  ;;  %v3192_v48 = vadd.f32 %v10518_v14, %v11763_v4  ;;  %v3207_v11 = vadd.f32 %v10524_v62, %v14754_v49  ;;  %v3222_v0 = vadd.f32 %v10570_v25, %v14755_v40  ;;  %v14757_v14 = vld [vmem:[#allocation235_spill] sm:$0xff] }
 0x37e   : > { %9147 = vmatprep.subr.bf16.mxu0 %v9146_v20  ;;  %v3928_v50 = vsel %vm3448_vm7, %v3208_v32, %v3688_v47  ;;  %vm3446_vm8 = vcmp.gt.f32.partialorder %v3206_v12, 0.0  ;;  %v3686_v41 = vmul.f32 0.33, %v3206_v12  ;;  %v3237_v34 = vadd.f32 %v10576_v55, %v14756_v19  ;;  %v14762_v32 = vld [vmem:[#allocation239_spill] sm:$0xff] }
 0x37f   : > { %v9178_v54 = vpack.c.bf16 %v3928_v50, %v3913_v22  ;;  %vm3432_vm9 = vcmp.gt.f32.partialorder %v3192_v48, 0.0  ;;  %vm3447_vm10 = vcmp.gt.f32.partialorder %v3207_v11, 0.0  ;;  %v3672_v27 = vmul.f32 0.33, %v3192_v48  ;;  %v12347_v22 = vpop.permute.xlu1 %5376 }
 0x380   : > { %v3926_v60 = vsel %vm3446_vm8, %v3206_v12, %v3686_v41  ;;  %v3687_v23 = vmul.f32 0.33, %v3207_v11  ;;  %vm3462_vm11 = vcmp.gt.f32.partialorder %v3222_v0, 0.0  ;;  %vm3477_vm12 = vcmp.gt.f32.partialorder %v3237_v34, 0.0  ;;  %v12345_v12 = vpop.permute.xlu0 %5371 }
 0x381   : > { %9179 = vmatprep.subr.bf16.mxu1 %v9178_v54  ;;  %v9148_v62 = vpack.c.bf16 %v3926_v60, %v14757_v14  ;;  %v3912_v4 = vsel %vm3432_vm9, %v3192_v48, %v3672_v27  ;;  %v3702_v52 = vmul.f32 0.33, %v3222_v0  ;;  %v3717_v61 = vmul.f32 0.33, %v3237_v34 }
 0x382   : > { %v3927_v24 = vsel %vm3447_vm10, %v3207_v11, %v3687_v23  ;;  %v3223_v39 = vadd.f32 %v10570_v25, %v14758_v9  ;;  %v3221_v63 = vadd.f32 %v10570_v25, %v14759_v30  ;;  %v3236_v37 = vadd.f32 %v10576_v55, %v14760_v6 }
 0x383   : > { %9149 = vmatpush1.bf16.msra.mxu0 %v9148_v62  ;;  %v9180_v42 = vpack.c.bf16 %v3927_v24, %v3912_v4  ;;  %v3942_v15 = vsel %vm3462_vm11, %v3222_v0, %v3702_v52  ;;  %v3957_v28 = vsel %vm3477_vm12, %v3237_v34, %v3717_v61  ;;  %v3238_v56 = vadd.f32 %v10576_v55, %v14761_v51  ;;  %v14763_v55 = vld [vmem:[#allocation14_spill] sm:$0xff]  ;;  %v12364_v41 = vpop.permute.xlu1 %5386 }
 0x384   : > { %v9150_v57 = vpack.c.bf16 %v3957_v28, %v3942_v15  ;;  %vm3463_vm13 = vcmp.gt.f32.partialorder %v3223_v39, 0.0  ;;  %v3703_v13 = vmul.f32 0.33, %v3223_v39  ;;  %vm3461_vm14 = vcmp.gt.f32.partialorder %v3221_v63, 0.0  ;;  %v12362_v50 = vpop.permute.xlu0 %5381 }
 0x385   : > { %9181 = vmatpush1.bf16.msra.mxu1 %v9180_v42  ;;  %vm3476_vm15 = vcmp.gt.f32.partialorder %v3236_v37, 0.0  ;;  %v3701_v7 = vmul.f32 0.33, %v3221_v63  ;;  %v3716_v21 = vmul.f32 0.33, %v3236_v37  ;;  %vm3478_vm1 = vcmp.gt.f32.partialorder %v3238_v56, 0.0 }
 0x386   : > { %9151 = vmatprep.subr.bf16.mxu0 %v9150_v57  ;;  %v3943_v25 = vsel %vm3463_vm13, %v3223_v39, %v3703_v13  ;;  %v3718_v46 = vmul.f32 0.33, %v3238_v56 }
 0x387   : > { %v9182_v58 = vpack.c.bf16 %v14762_v32, %v3943_v25  ;;  %v3941_v17 = vsel %vm3461_vm14, %v3221_v63, %v3701_v7  ;;  %v3956_v59 = vsel %vm3476_vm15, %v3236_v37, %v3716_v21 }
 0x388   : > { %v9152_v20 = vpack.c.bf16 %v3956_v59, %v3941_v17  ;;  %v3958_v47 = vsel %vm3478_vm1, %v3238_v56, %v3718_v46 }
 0x389   : > { %9183 = vmatprep.subr.bf16.mxu1 %v9182_v58  ;;  %v9184_v3 = vpack.c.bf16 %v3958_v47, %v14763_v55 }
 0x38a   : > { %9153 = vmatpush1.bf16.msra.mxu0 %v9152_v20 }
 0x38b   : > { %9185 = vmatpush1.bf16.msra.mxu1 %v9184_v3 }
 0x38d   : > { %5020 = vmatmul.mubr.f32.vlgmr.msra.gmra.mrb[28].mxu0 %v12214_v8 }
 0x38e   : > { %5091 = vmatmul.mubr.f32.vlgmr.msra.gmra.mrb[32].mxu1 %v12214_v8  ;;  %6579 = vmatprep.mubr.f32.mxu0 %v14363_v31 }
 0x38f   : > { %6680 = vmatprep.mubr.f32.mxu1 %v14363_v31 }
 0x393   : > { %v12350_v48 = vpop.f32.mrb[22].mxu0 }
 0x394   : > { %v12352_v49 = vpop.f32.mrb[23].mxu0  ;;  %v5113_v11 = vadd.f32 %v12350_v48, %v12043_v5  ;;  %v5129_v40 = vadd.f32 %v12350_v48, %v12051_v16  ;;  %v5145_v8 = vadd.f32 %v12350_v48, %v12083_v2  ;;  %v5161_v0 = vadd.f32 %v12350_v48, %v12089_v1 }
 0x395   : > { %v5114_v19 = vadd.f32 %v12352_v49, %v12043_v5  ;;  %v5130_v34 = vadd.f32 %v12352_v49, %v12051_v16  ;;  %v5146_v54 = vadd.f32 %v12352_v49, %v12083_v2  ;;  %v5162_v27 = vadd.f32 %v12352_v49, %v12089_v1 }
 0x396   : > { %v12374_v60 = vpop.f32.mrb[26].mxu1  ;;  %v5449_v23 = vadd.f32 %v12345_v12, %v5113_v11  ;;  %v5465_v14 = vadd.f32 %v12347_v22, %v5129_v40  ;;  %v12379_v62 = vadd.f32 %v12362_v50, %v5145_v8  ;;  %v12382_v4 = vadd.f32 %v12364_v41, %v5161_v0 }
 0x397   : > { %v12384_v52 = vpop.f32.mrb[27].mxu1  ;;  %v5450_v61 = vadd.f32 %v12345_v12, %v5114_v19  ;;  %v5466_v24 = vadd.f32 %v12347_v22, %v5130_v34  ;;  %v5115_v9 = vadd.f32 %v12374_v60, %v12043_v5  ;;  %v5131_v39 = vadd.f32 %v12374_v60, %v12051_v16 }
 0x398   : > { %v5116_v30 = vadd.f32 %v12384_v52, %v12043_v5  ;;  %v5132_v63 = vadd.f32 %v12384_v52, %v12051_v16  ;;  %vm5705_vm2 = vcmp.gt.f32.partialorder %v5449_v23, 0.0  ;;  %vm5721_vm3 = vcmp.gt.f32.partialorder %v5465_v14, 0.0 }
 0x399   : > { %vm5706_vm4 = vcmp.gt.f32.partialorder %v5450_v61, 0.0  ;;  %vm5722_vm5 = vcmp.gt.f32.partialorder %v5466_v24, 0.0  ;;  %v5962_v6 = vmul.f32 0.33, %v5450_v61  ;;  %v5978_v37 = vmul.f32 0.33, %v5466_v24 }
 0x39a   : > { %v5452_v42 = vadd.f32 %v12345_v12, %v5116_v30  ;;  %v5468_v15 = vadd.f32 %v12347_v22, %v5132_v63  ;;  %v5961_v28 = vmul.f32 0.33, %v5449_v23  ;;  %v5977_v51 = vmul.f32 0.33, %v5465_v14 }
 0x39b   : > { %v6218_v56 = vsel %vm5706_vm4, %v5450_v61, %v5962_v6  ;;  %v6234_v57 = vsel %vm5722_vm5, %v5466_v24, %v5978_v37  ;;  %v5451_v13 = vadd.f32 %v12345_v12, %v5115_v9  ;;  %v5467_v7 = vadd.f32 %v12347_v22, %v5131_v39 }
 0x39c   : > { %v9186_v21 = vpack.c.bf16 %v6234_v57, %v6218_v56  ;;  %vm5708_vm6 = vcmp.gt.f32.partialorder %v5452_v42, 0.0  ;;  %vm5724_vm7 = vcmp.gt.f32.partialorder %v5468_v15, 0.0  ;;  %v5964_v25 = vmul.f32 0.33, %v5452_v42 }
 0x39d   : > { %v5980_v46 = vmul.f32 0.33, %v5468_v15  ;;  %v6217_v32 = vsel %vm5705_vm2, %v5449_v23, %v5961_v28  ;;  %v6233_v58 = vsel %vm5721_vm3, %v5465_v14, %v5977_v51  ;;  %vm5707_vm8 = vcmp.gt.f32.partialorder %v5451_v13, 0.0 }
 0x39e   : > { %9187 = vmatprep.subr.bf16.mxu0 %v9186_v21  ;;  %v6220_v17 = vsel %vm5708_vm6, %v5452_v42, %v5964_v25  ;;  %v9188_v59 = vpack.c.bf16 %v6233_v58, %v6217_v32  ;;  %vm5723_vm9 = vcmp.gt.f32.partialorder %v5467_v7, 0.0  ;;  %v5963_v20 = vmul.f32 0.33, %v5451_v13  ;;  %v12428_v21 = vpop.permute.xlu0 %5391  ;;  %v12430_v25 = vpop.permute.xlu1 %5396 }
 0x39f   : > { %v6236_v47 = vsel %vm5724_vm7, %v5468_v15, %v5980_v46  ;;  %v5979_v55 = vmul.f32 0.33, %v5467_v7  ;;  %v5482_v3 = vadd.f32 %v12362_v50, %v5146_v54  ;;  %v5498_v11 = vadd.f32 %v12364_v41, %v5162_v27 }
 0x3a0   : > { %v9218_v40 = vpack.c.bf16 %v6236_v47, %v6220_v17  ;;  %9189 = vmatpush1.bf16.msra.mxu0 %v9188_v59  ;;  %v6219_v8 = vsel %vm5707_vm8, %v5451_v13, %v5963_v20  ;;  %v5148_v0 = vadd.f32 %v12384_v52, %v12083_v2  ;;  %v5164_v19 = vadd.f32 %v12384_v52, %v12089_v1 }
 0x3a1   : > { %v6235_v34 = vsel %vm5723_vm9, %v5467_v7, %v5979_v55  ;;  %vm5738_vm10 = vcmp.gt.f32.partialorder %v5482_v3, 0.0  ;;  %vm5754_vm11 = vcmp.gt.f32.partialorder %v5498_v11, 0.0  ;;  %v5994_v23 = vmul.f32 0.33, %v5482_v3 }
 0x3a2   : > { %9219 = vmatprep.subr.bf16.mxu1 %v9218_v40  ;;  %v9220_v14 = vpack.c.bf16 %v6235_v34, %v6219_v8  ;;  %v6010_v61 = vmul.f32 0.33, %v5498_v11  ;;  %v5484_v54 = vadd.f32 %v12362_v50, %v5148_v0  ;;  %v5500_v27 = vadd.f32 %v12364_v41, %v5164_v19 }
 0x3a3   : > { %v6250_v24 = vsel %vm5738_vm10, %v5482_v3, %v5994_v23  ;;  %vm5737_vm12 = vcmp.gt.f32.partialorder %v12379_v62, 0.0  ;;  %vm5753_vm13 = vcmp.gt.f32.partialorder %v12382_v4, 0.0  ;;  %v5993_v9 = vmul.f32 0.33, %v12379_v62 }
 0x3a4   : > { %9221 = vmatpush1.bf16.msra.mxu1 %v9220_v14  ;;  %v6266_v39 = vsel %vm5754_vm11, %v5498_v11, %v6010_v61  ;;  %vm5740_vm14 = vcmp.gt.f32.partialorder %v5484_v54, 0.0  ;;  %vm5756_vm15 = vcmp.gt.f32.partialorder %v5500_v27, 0.0  ;;  %v5996_v30 = vmul.f32 0.33, %v5484_v54 }
 0x3a5   : > { %v9190_v63 = vpack.c.bf16 %v6266_v39, %v6250_v24  ;;  %v6012_v6 = vmul.f32 0.33, %v5500_v27  ;;  %v6009_v37 = vmul.f32 0.33, %v12382_v4  ;;  %v6249_v42 = vsel %vm5737_vm12, %v12379_v62, %v5993_v9 }
 0x3a6   : > { %v6252_v15 = vsel %vm5740_vm14, %v5484_v54, %v5996_v30  ;;  %v5147_v28 = vadd.f32 %v12374_v60, %v12083_v2  ;;  %v5163_v51 = vadd.f32 %v12374_v60, %v12089_v1  ;;  %v5178_v56 = vadd.f32 %v12352_v49, %v12091_v18 }
 0x3a7   : > { %9191 = vmatprep.subr.bf16.mxu0 %v9190_v63  ;;  %v6268_v57 = vsel %vm5756_vm15, %v5500_v27, %v6012_v6  ;;  %v6265_v13 = vsel %vm5753_vm13, %v12382_v4, %v6009_v37  ;;  %v5194_v7 = vadd.f32 %v12352_v49, %v12097_v53  ;;  %v5180_v62 = vadd.f32 %v12384_v52, %v12091_v18 }
 0x3a8   : > { %v9222_v46 = vpack.c.bf16 %v6268_v57, %v6252_v15  ;;  %v9192_v32 = vpack.c.bf16 %v6265_v13, %v6249_v42  ;;  %v5483_v58 = vadd.f32 %v12362_v50, %v5147_v28  ;;  %v5499_v17 = vadd.f32 %v12364_v41, %v5163_v51  ;;  %v12453_v28 = vpop.permute.xlu0 %5401  ;;  %v12455_v51 = vpop.permute.xlu1 %5406 }
 0x3a9   : > { %v5514_v59 = vadd.f32 %v12428_v21, %v5178_v56  ;;  %v5530_v4 = vadd.f32 %v12430_v25, %v5194_v7  ;;  %v5196_v20 = vadd.f32 %v12384_v52, %v12097_v53  ;;  %v5516_v47 = vadd.f32 %v12428_v21, %v5180_v62 }
 0x3aa   : > { %9223 = vmatprep.subr.bf16.mxu1 %v9222_v46  ;;  %9193 = vmatpush1.bf16.msra.mxu0 %v9192_v32  ;;  %vm5739_vm1 = vcmp.gt.f32.partialorder %v5483_v58, 0.0  ;;  %vm5755_vm2 = vcmp.gt.f32.partialorder %v5499_v17, 0.0  ;;  %v5995_v55 = vmul.f32 0.33, %v5483_v58  ;;  %v6011_v3 = vmul.f32 0.33, %v5499_v17 }
 0x3ab   : > { %vm5770_vm3 = vcmp.gt.f32.partialorder %v5514_v59, 0.0  ;;  %vm5786_vm4 = vcmp.gt.f32.partialorder %v5530_v4, 0.0  ;;  %v6026_v11 = vmul.f32 0.33, %v5514_v59  ;;  %v6042_v40 = vmul.f32 0.33, %v5530_v4 }
 0x3ac   : > { %v6251_v8 = vsel %vm5739_vm1, %v5483_v58, %v5995_v55  ;;  %v6267_v0 = vsel %vm5755_vm2, %v5499_v17, %v6011_v3  ;;  %v5532_v19 = vadd.f32 %v12430_v25, %v5196_v20  ;;  %vm5772_vm5 = vcmp.gt.f32.partialorder %v5516_v47, 0.0 }
 0x3ad   : > { %v9224_v34 = vpack.c.bf16 %v6267_v0, %v6251_v8  ;;  %v6282_v23 = vsel %vm5770_vm3, %v5514_v59, %v6026_v11  ;;  %v6298_v14 = vsel %vm5786_vm4, %v5530_v4, %v6042_v40  ;;  %v6028_v61 = vmul.f32 0.33, %v5516_v47 }
 0x3ae   : > { %v9194_v54 = vpack.c.bf16 %v6298_v14, %v6282_v23  ;;  %vm5788_vm6 = vcmp.gt.f32.partialorder %v5532_v19, 0.0  ;;  %v6044_v27 = vmul.f32 0.33, %v5532_v19  ;;  %v5177_v24 = vadd.f32 %v12350_v48, %v12091_v18 }
 0x3af   : > { %9225 = vmatpush1.bf16.msra.mxu1 %v9224_v34  ;;  %v6284_v9 = vsel %vm5772_vm5, %v5516_v47, %v6028_v61  ;;  %v5193_v39 = vadd.f32 %v12350_v48, %v12097_v53  ;;  %v5179_v30 = vadd.f32 %v12374_v60, %v12091_v18  ;;  %v5195_v63 = vadd.f32 %v12374_v60, %v12097_v53 }
 0x3b0   : > { %9195 = vmatprep.subr.bf16.mxu0 %v9194_v54  ;;  %v6300_v6 = vsel %vm5788_vm6, %v5532_v19, %v6044_v27  ;;  %v5513_v37 = vadd.f32 %v12428_v21, %v5177_v24  ;;  %v5210_v42 = vadd.f32 %v12352_v49, %v12099_v43  ;;  %v5226_v15 = vadd.f32 %v12352_v49, %v12103_v38 }
 0x3b1   : > { %v9226_v56 = vpack.c.bf16 %v6300_v6, %v6284_v9  ;;  %v5529_v57 = vadd.f32 %v12430_v25, %v5193_v39  ;;  %v5515_v13 = vadd.f32 %v12428_v21, %v5179_v30  ;;  %v5531_v7 = vadd.f32 %v12430_v25, %v5195_v63 }
 0x3b2   : > { %vm5769_vm7 = vcmp.gt.f32.partialorder %v5513_v37, 0.0  ;;  %v6025_v62 = vmul.f32 0.33, %v5513_v37  ;;  %v5546_v46 = vadd.f32 %v12453_v28, %v5210_v42  ;;  %v5562_v32 = vadd.f32 %v12455_v51, %v5226_v15 }
 0x3b3   : > { %9227 = vmatprep.subr.bf16.mxu1 %v9226_v56  ;;  %vm5785_vm8 = vcmp.gt.f32.partialorder %v5529_v57, 0.0  ;;  %v6041_v58 = vmul.f32 0.33, %v5529_v57  ;;  %vm5771_vm9 = vcmp.gt.f32.partialorder %v5515_v13, 0.0  ;;  %vm5787_vm10 = vcmp.gt.f32.partialorder %v5531_v7, 0.0 }
 0x3b4   : > { %v6281_v17 = vsel %vm5769_vm7, %v5513_v37, %v6025_v62  ;;  %v6027_v59 = vmul.f32 0.33, %v5515_v13  ;;  %v6043_v4 = vmul.f32 0.33, %v5531_v7  ;;  %vm5802_vm11 = vcmp.gt.f32.partialorder %v5546_v46, 0.0 }
 0x3b5   : > { %v6297_v20 = vsel %vm5785_vm8, %v5529_v57, %v6041_v58  ;;  %vm5818_vm12 = vcmp.gt.f32.partialorder %v5562_v32, 0.0  ;;  %v6058_v47 = vmul.f32 0.33, %v5546_v46  ;;  %v6074_v55 = vmul.f32 0.33, %v5562_v32 }
 0x3b6   : > { %v9196_v3 = vpack.c.bf16 %v6297_v20, %v6281_v17  ;;  %v6283_v11 = vsel %vm5771_vm9, %v5515_v13, %v6027_v59  ;;  %v6299_v40 = vsel %vm5787_vm10, %v5531_v7, %v6043_v4  ;;  %v5212_v8 = vadd.f32 %v12384_v52, %v12099_v43 }
 0x3b7   : > { %v9228_v0 = vpack.c.bf16 %v6299_v40, %v6283_v11  ;;  %v6314_v19 = vsel %vm5802_vm11, %v5546_v46, %v6058_v47  ;;  %v6330_v34 = vsel %vm5818_vm12, %v5562_v32, %v6074_v55  ;;  %v5228_v23 = vadd.f32 %v12384_v52, %v12103_v38  ;;  %v12482_v46 = vpop.permute.xlu0 %5411 }
 0x3b8   : > { %9197 = vmatpush1.bf16.msra.mxu0 %v9196_v3  ;;  %v9198_v14 = vpack.c.bf16 %v6330_v34, %v6314_v19  ;;  %v5548_v61 = vadd.f32 %v12453_v28, %v5212_v8  ;;  %v5209_v54 = vadd.f32 %v12350_v48, %v12099_v43  ;;  %v5225_v27 = vadd.f32 %v12350_v48, %v12103_v38  ;;  %v12489_v3 = vpop.permute.xlu1 %5416 }
 0x3b9   : > { %9229 = vmatpush1.bf16.msra.mxu1 %v9228_v0  ;;  %v5564_v24 = vadd.f32 %v12455_v51, %v5228_v23  ;;  %v5211_v9 = vadd.f32 %v12374_v60, %v12099_v43  ;;  %v5227_v39 = vadd.f32 %v12374_v60, %v12103_v38  ;;  %v5242_v30 = vadd.f32 %v12352_v49, %v12105_v33 }
 0x3ba   : > { %9199 = vmatprep.subr.bf16.mxu0 %v9198_v14  ;;  %vm5804_vm13 = vcmp.gt.f32.partialorder %v5548_v61, 0.0  ;;  %v6060_v63 = vmul.f32 0.33, %v5548_v61  ;;  %v5545_v6 = vadd.f32 %v12453_v28, %v5209_v54  ;;  %v5561_v37 = vadd.f32 %v12455_v51, %v5225_v27  ;;  %14764 = vst [vmem:[#allocation19_spill] sm:$0xff] %v12482_v46  ;;  %14765 = vst [vmem:[#allocation10_spill] sm:$0xff] %v12489_v3 }
 0x3bb   : > { %vm5820_vm14 = vcmp.gt.f32.partialorder %v5564_v24, 0.0  ;;  %v6076_v42 = vmul.f32 0.33, %v5564_v24  ;;  %v5547_v15 = vadd.f32 %v12453_v28, %v5211_v9  ;;  %v5563_v56 = vadd.f32 %v12455_v51, %v5227_v39 }
 0x3bc   : > { %v6316_v57 = vsel %vm5804_vm13, %v5548_v61, %v6060_v63  ;;  %vm5801_vm15 = vcmp.gt.f32.partialorder %v5545_v6, 0.0  ;;  %vm5817_vm1 = vcmp.gt.f32.partialorder %v5561_v37, 0.0  ;;  %v6057_v13 = vmul.f32 0.33, %v5545_v6 }
 0x3bd   : > { %v6332_v7 = vsel %vm5820_vm14, %v5564_v24, %v6076_v42  ;;  %v6073_v62 = vmul.f32 0.33, %v5561_v37  ;;  %vm5803_vm2 = vcmp.gt.f32.partialorder %v5547_v15, 0.0  ;;  %vm5819_vm3 = vcmp.gt.f32.partialorder %v5563_v56, 0.0 }
 0x3be   : > { %v9230_v32 = vpack.c.bf16 %v6332_v7, %v6316_v57  ;;  %v6313_v58 = vsel %vm5801_vm15, %v5545_v6, %v6057_v13  ;;  %v6059_v17 = vmul.f32 0.33, %v5547_v15  ;;  %v6075_v59 = vmul.f32 0.33, %v5563_v56 }
 0x3bf   : > { %v6329_v4 = vsel %vm5817_vm1, %v5561_v37, %v6073_v62  ;;  %v5258_v20 = vadd.f32 %v12352_v49, %v12107_v29  ;;  %v5578_v47 = vadd.f32 %v12482_v46, %v5242_v30  ;;  %v5244_v55 = vadd.f32 %v12384_v52, %v12105_v33 }
 0x3c0   : > { %9231 = vmatprep.subr.bf16.mxu1 %v9230_v32  ;;  %v9200_v11 = vpack.c.bf16 %v6329_v4, %v6313_v58  ;;  %v6315_v40 = vsel %vm5803_vm2, %v5547_v15, %v6059_v17  ;;  %v6331_v8 = vsel %vm5819_vm3, %v5563_v56, %v6075_v59  ;;  %v5260_v0 = vadd.f32 %v12384_v52, %v12107_v29 }
 0x3c1   : > { %v9232_v19 = vpack.c.bf16 %v6331_v8, %v6315_v40  ;;  %v5594_v34 = vadd.f32 %v12489_v3, %v5258_v20  ;;  %vm5834_vm4 = vcmp.gt.f32.partialorder %v5578_v47, 0.0  ;;  %v6090_v23 = vmul.f32 0.33, %v5578_v47  ;;  %v12516_v40 = vpop.permute.xlu1 %5426 }
 0x3c2   : > { %9201 = vmatpush1.bf16.msra.mxu0 %v9200_v11  ;;  %v5580_v14 = vadd.f32 %v12482_v46, %v5244_v55  ;;  %v5596_v61 = vadd.f32 %v12489_v3, %v5260_v0  ;;  %v5241_v54 = vadd.f32 %v12350_v48, %v12105_v33  ;;  %v5257_v27 = vadd.f32 %v12350_v48, %v12107_v29  ;;  %v12514_v11 = vpop.permute.xlu0 %5421 }
 0x3c3   : > { %9233 = vmatpush1.bf16.msra.mxu1 %v9232_v19  ;;  %vm5850_vm5 = vcmp.gt.f32.partialorder %v5594_v34, 0.0  ;;  %v6106_v24 = vmul.f32 0.33, %v5594_v34  ;;  %v6346_v9 = vsel %vm5834_vm4, %v5578_v47, %v6090_v23  ;;  %v5243_v39 = vadd.f32 %v12374_v60, %v12105_v33  ;;  %14766 = vst [vmem:[#allocation24_spill] sm:$0xff] %v12516_v40 }
 0x3c4   : > { %vm5836_vm6 = vcmp.gt.f32.partialorder %v5580_v14, 0.0  ;;  %vm5852_vm7 = vcmp.gt.f32.partialorder %v5596_v61, 0.0  ;;  %v6092_v30 = vmul.f32 0.33, %v5580_v14  ;;  %v6108_v63 = vmul.f32 0.33, %v5596_v61 }
 0x3c5   : > { %v6362_v6 = vsel %vm5850_vm5, %v5594_v34, %v6106_v24  ;;  %v5577_v37 = vadd.f32 %v12482_v46, %v5241_v54  ;;  %v5593_v42 = vadd.f32 %v12489_v3, %v5257_v27  ;;  %v5259_v15 = vadd.f32 %v12374_v60, %v12107_v29 }
 0x3c6   : > { %v9202_v56 = vpack.c.bf16 %v6362_v6, %v6346_v9  ;;  %v6348_v57 = vsel %vm5836_vm6, %v5580_v14, %v6092_v30  ;;  %v6364_v13 = vsel %vm5852_vm7, %v5596_v61, %v6108_v63  ;;  %v5579_v7 = vadd.f32 %v12482_v46, %v5243_v39 }
 0x3c7   : > { %v9234_v62 = vpack.c.bf16 %v6364_v13, %v6348_v57  ;;  %vm5833_vm8 = vcmp.gt.f32.partialorder %v5577_v37, 0.0  ;;  %vm5849_vm9 = vcmp.gt.f32.partialorder %v5593_v42, 0.0  ;;  %v6089_v32 = vmul.f32 0.33, %v5577_v37 }
 0x3c8   : > { %9203 = vmatprep.subr.bf16.mxu0 %v9202_v56  ;;  %v6105_v58 = vmul.f32 0.33, %v5593_v42  ;;  %v5595_v17 = vadd.f32 %v12489_v3, %v5259_v15  ;;  %vm5835_vm10 = vcmp.gt.f32.partialorder %v5579_v7, 0.0  ;;  %v6091_v59 = vmul.f32 0.33, %v5579_v7 }
 0x3c9   : > { %9235 = vmatprep.subr.bf16.mxu1 %v9234_v62  ;;  %v6345_v4 = vsel %vm5833_vm8, %v5577_v37, %v6089_v32  ;;  %v5274_v20 = vadd.f32 %v12352_v49, %v12109_v36  ;;  %v5290_v47 = vadd.f32 %v12352_v49, %v12111_v26  ;;  %v5276_v55 = vadd.f32 %v12384_v52, %v12109_v36 }
 0x3ca   : > { %v6361_v8 = vsel %vm5849_vm9, %v5593_v42, %v6105_v58  ;;  %vm5851_vm11 = vcmp.gt.f32.partialorder %v5595_v17, 0.0  ;;  %v6107_v0 = vmul.f32 0.33, %v5595_v17  ;;  %v6347_v19 = vsel %vm5835_vm10, %v5579_v7, %v6091_v59 }
 0x3cb   : > { %v9204_v34 = vpack.c.bf16 %v6361_v8, %v6345_v4  ;;  %v5610_v23 = vadd.f32 %v12514_v11, %v5274_v20  ;;  %v5626_v14 = vadd.f32 %v12516_v40, %v5290_v47  ;;  %v5292_v61 = vadd.f32 %v12384_v52, %v12111_v26 }
 0x3cc   : > { %v6363_v54 = vsel %vm5851_vm11, %v5595_v17, %v6107_v0  ;;  %v5612_v27 = vadd.f32 %v12514_v11, %v5276_v55  ;;  %v5273_v24 = vadd.f32 %v12350_v48, %v12109_v36  ;;  %v5289_v9 = vadd.f32 %v12350_v48, %v12111_v26 }
 0x3cd   : > { %9205 = vmatpush1.bf16.msra.mxu0 %v9204_v34  ;;  %v9236_v39 = vpack.c.bf16 %v6363_v54, %v6347_v19  ;;  %vm5866_vm12 = vcmp.gt.f32.partialorder %v5610_v23, 0.0  ;;  %vm5882_vm13 = vcmp.gt.f32.partialorder %v5626_v14, 0.0  ;;  %v6122_v30 = vmul.f32 0.33, %v5610_v23  ;;  %v12539_v19 = vpop.permute.xlu0 %5431  ;;  %v12541_v34 = vpop.permute.xlu1 %5436 }
 0x3ce   : > { %v6138_v63 = vmul.f32 0.33, %v5626_v14  ;;  %v5628_v6 = vadd.f32 %v12516_v40, %v5292_v61  ;;  %vm5868_vm14 = vcmp.gt.f32.partialorder %v5612_v27, 0.0  ;;  %v6124_v37 = vmul.f32 0.33, %v5612_v27 }
 0x3cf   : > { %9237 = vmatpush1.bf16.msra.mxu1 %v9236_v39  ;;  %v6378_v42 = vsel %vm5866_vm12, %v5610_v23, %v6122_v30  ;;  %v5609_v15 = vadd.f32 %v12514_v11, %v5273_v24  ;;  %v5625_v56 = vadd.f32 %v12516_v40, %v5289_v9  ;;  %v5275_v57 = vadd.f32 %v12374_v60, %v12109_v36 }
 0x3d0   : > { %v6394_v13 = vsel %vm5882_vm13, %v5626_v14, %v6138_v63  ;;  %vm5884_vm15 = vcmp.gt.f32.partialorder %v5628_v6, 0.0  ;;  %v6140_v7 = vmul.f32 0.33, %v5628_v6  ;;  %v6380_v62 = vsel %vm5868_vm14, %v5612_v27, %v6124_v37 }
 0x3d1   : > { %v9206_v32 = vpack.c.bf16 %v6394_v13, %v6378_v42  ;;  %vm5865_vm1 = vcmp.gt.f32.partialorder %v5609_v15, 0.0  ;;  %vm5881_vm2 = vcmp.gt.f32.partialorder %v5625_v56, 0.0  ;;  %v6121_v58 = vmul.f32 0.33, %v5609_v15 }
 0x3d2   : > { %v6396_v17 = vsel %vm5884_vm15, %v5628_v6, %v6140_v7  ;;  %v6137_v59 = vmul.f32 0.33, %v5625_v56  ;;  %v5291_v4 = vadd.f32 %v12374_v60, %v12111_v26  ;;  %v5611_v20 = vadd.f32 %v12514_v11, %v5275_v57 }
 0x3d3   : > { %9207 = vmatprep.subr.bf16.mxu0 %v9206_v32  ;;  %v9238_v47 = vpack.c.bf16 %v6396_v17, %v6380_v62  ;;  %v6377_v55 = vsel %vm5865_vm1, %v5609_v15, %v6121_v58  ;;  %v5306_v8 = vadd.f32 %v12352_v49, %v12242_v45  ;;  %v5322_v0 = vadd.f32 %v12352_v49, %v12244_v10 }
 0x3d4   : > { %v6393_v23 = vsel %vm5881_vm2, %v5625_v56, %v6137_v59  ;;  %v5627_v14 = vadd.f32 %v12516_v40, %v5291_v4  ;;  %vm5867_vm3 = vcmp.gt.f32.partialorder %v5611_v20, 0.0  ;;  %v6123_v61 = vmul.f32 0.33, %v5611_v20 }
 0x3d5   : > { %9239 = vmatprep.subr.bf16.mxu1 %v9238_v47  ;;  %v9208_v54 = vpack.c.bf16 %v6393_v23, %v6377_v55  ;;  %v5642_v27 = vadd.f32 %v12539_v19, %v5306_v8  ;;  %v5658_v24 = vadd.f32 %v12541_v34, %v5322_v0  ;;  %v5308_v9 = vadd.f32 %v12384_v52, %v12242_v45 }
 0x3d6   : > { %vm5883_vm4 = vcmp.gt.f32.partialorder %v5627_v14, 0.0  ;;  %v6139_v39 = vmul.f32 0.33, %v5627_v14  ;;  %v6379_v30 = vsel %vm5867_vm3, %v5611_v20, %v6123_v61  ;;  %v5324_v63 = vadd.f32 %v12384_v52, %v12244_v10 }
 0x3d7   : > { %v12550_v6 = vpop.f32.mrb[24].mxu0  ;;  %9209 = vmatpush1.bf16.msra.mxu0 %v9208_v54  ;;  %vm5898_vm5 = vcmp.gt.f32.partialorder %v5642_v27, 0.0  ;;  %vm5914_vm6 = vcmp.gt.f32.partialorder %v5658_v24, 0.0  ;;  %v6154_v37 = vmul.f32 0.33, %v5642_v27  ;;  %v5644_v42 = vadd.f32 %v12539_v19, %v5308_v9 }
 0x3d8   : > { %v6395_v15 = vsel %vm5883_vm4, %v5627_v14, %v6139_v39  ;;  %v12553_v56 = vpop.f32.mrb[25].mxu0  ;;  %v6170_v57 = vmul.f32 0.33, %v5658_v24  ;;  %v5660_v13 = vadd.f32 %v12541_v34, %v5324_v63  ;;  %v5305_v7 = vadd.f32 %v12350_v48, %v12242_v45 }
 0x3d9   : > { %v12558_v62 = vpop.f32.mrb[28].mxu1  ;;  %v9240_v32 = vpack.c.bf16 %v6395_v15, %v6379_v30  ;;  %v6410_v58 = vsel %vm5898_vm5, %v5642_v27, %v6154_v37  ;;  %vm5900_vm7 = vcmp.gt.f32.partialorder %v5644_v42, 0.0  ;;  %v6156_v17 = vmul.f32 0.33, %v5644_v42  ;;  %v12573_v30 = vpop.permute.xlu0 %5441 }
 0x3da   : > { %v12560_v59 = vpop.f32.mrb[29].mxu1  ;;  %v6426_v4 = vsel %vm5914_vm6, %v5658_v24, %v6170_v57  ;;  %vm5916_vm8 = vcmp.gt.f32.partialorder %v5660_v13, 0.0  ;;  %v6172_v20 = vmul.f32 0.33, %v5660_v13  ;;  %v5321_v47 = vadd.f32 %v12350_v48, %v12244_v10  ;;  %v12578_v15 = vpop.permute.xlu1 %5446 }
 0x3db   : > { %9241 = vmatpush1.bf16.msra.mxu1 %v9240_v32  ;;  %v9210_v55 = vpack.c.bf16 %v6426_v4, %v6410_v58  ;;  %v6412_v8 = vsel %vm5900_vm7, %v5644_v42, %v6156_v17  ;;  %v5641_v0 = vadd.f32 %v12539_v19, %v5305_v7  ;;  %v5307_v23 = vadd.f32 %v12374_v60, %v12242_v45 }
 0x3dc   : > { %v6428_v14 = vsel %vm5916_vm8, %v5660_v13, %v6172_v20  ;;  %v5657_v61 = vadd.f32 %v12541_v34, %v5321_v47  ;;  %v5323_v54 = vadd.f32 %v12374_v60, %v12244_v10  ;;  %v5338_v27 = vadd.f32 %v12352_v49, %v12246_v35 }
 0x3dd   : > { %9211 = vmatprep.subr.bf16.mxu0 %v9210_v55  ;;  %v9242_v24 = vpack.c.bf16 %v6428_v14, %v6412_v8  ;;  %vm5897_vm9 = vcmp.gt.f32.partialorder %v5641_v0, 0.0  ;;  %v6153_v9 = vmul.f32 0.33, %v5641_v0  ;;  %v5643_v39 = vadd.f32 %v12539_v19, %v5307_v23 }
 0x3de   : > { %vm5913_vm10 = vcmp.gt.f32.partialorder %v5657_v61, 0.0  ;;  %v6169_v63 = vmul.f32 0.33, %v5657_v61  ;;  %v5659_v37 = vadd.f32 %v12541_v34, %v5323_v54  ;;  %v5354_v42 = vadd.f32 %v12352_v49, %v12248_v44 }
 0x3df   : > { %9243 = vmatprep.subr.bf16.mxu1 %v9242_v24  ;;  %v6409_v57 = vsel %vm5897_vm9, %v5641_v0, %v6153_v9  ;;  %vm5899_vm11 = vcmp.gt.f32.partialorder %v5643_v39, 0.0  ;;  %v6155_v13 = vmul.f32 0.33, %v5643_v39  ;;  %v5674_v7 = vadd.f32 %v12573_v30, %v5338_v27 }
 0x3e0   : > { %v6425_v32 = vsel %vm5913_vm10, %v5657_v61, %v6169_v63  ;;  %vm5915_vm12 = vcmp.gt.f32.partialorder %v5659_v37, 0.0  ;;  %v6171_v58 = vmul.f32 0.33, %v5659_v37  ;;  %v5690_v17 = vadd.f32 %v12578_v15, %v5354_v42 }
 0x3e1   : > { %v9212_v4 = vpack.c.bf16 %v6425_v32, %v6409_v57  ;;  %v6411_v20 = vsel %vm5899_vm11, %v5643_v39, %v6155_v13  ;;  %vm5930_vm13 = vcmp.gt.f32.partialorder %v5674_v7, 0.0  ;;  %v6186_v47 = vmul.f32 0.33, %v5674_v7 }
 0x3e2   : > { %v6427_v55 = vsel %vm5915_vm12, %v5659_v37, %v6171_v58  ;;  %vm5946_vm14 = vcmp.gt.f32.partialorder %v5690_v17, 0.0  ;;  %v6202_v49 = vmul.f32 0.33, %v5690_v17  ;;  %v5340_v8 = vadd.f32 %v12384_v52, %v12246_v35 }
 0x3e3   : > { %9213 = vmatpush1.bf16.msra.mxu0 %v9212_v4  ;;  %v9244_v0 = vpack.c.bf16 %v6427_v55, %v6411_v20  ;;  %v6442_v23 = vsel %vm5930_vm13, %v5674_v7, %v6186_v47  ;;  %v5356_v14 = vadd.f32 %v12384_v52, %v12248_v44  ;;  %v5337_v61 = vadd.f32 %v12350_v48, %v12246_v35 }
 0x3e4   : > { %v6458_v54 = vsel %vm5946_vm14, %v5690_v17, %v6202_v49  ;;  %v5676_v27 = vadd.f32 %v12573_v30, %v5340_v8  ;;  %v5353_v24 = vadd.f32 %v12350_v48, %v12248_v44  ;;  %v5339_v9 = vadd.f32 %v12374_v60, %v12246_v35 }
 0x3e5   : > { %9245 = vmatpush1.bf16.msra.mxu1 %v9244_v0  ;;  %v9214_v39 = vpack.c.bf16 %v6458_v54, %v6442_v23  ;;  %v5692_v63 = vadd.f32 %v12578_v15, %v5356_v14  ;;  %v5673_v37 = vadd.f32 %v12573_v30, %v5337_v61  ;;  %v5355_v52 = vadd.f32 %v12374_v60, %v12248_v44 }
 0x3e6   : > { %vm5932_vm15 = vcmp.gt.f32.partialorder %v5676_v27, 0.0  ;;  %v6188_v42 = vmul.f32 0.33, %v5676_v27  ;;  %v5689_v57 = vadd.f32 %v12578_v15, %v5353_v24  ;;  %v5675_v13 = vadd.f32 %v12573_v30, %v5339_v9 }
 0x3e7   : > { %9215 = vmatprep.subr.bf16.mxu0 %v9214_v39  ;;  %vm5948_vm1 = vcmp.gt.f32.partialorder %v5692_v63, 0.0  ;;  %v6204_v48 = vmul.f32 0.33, %v5692_v63  ;;  %vm5929_vm2 = vcmp.gt.f32.partialorder %v5673_v37, 0.0  ;;  %v6185_v7 = vmul.f32 0.33, %v5673_v37 }
 0x3e8   : > { %v6444_v32 = vsel %vm5932_vm15, %v5676_v27, %v6188_v42  ;;  %vm5945_vm3 = vcmp.gt.f32.partialorder %v5689_v57, 0.0  ;;  %v6201_v58 = vmul.f32 0.33, %v5689_v57  ;;  %v5691_v17 = vadd.f32 %v12578_v15, %v5355_v52  ;;  %v12613_v39 = vld [vmem:[%s14021_s4] sm:$0xff] }
 0x3e9   : > { %v6460_v4 = vsel %vm5948_vm1, %v5692_v63, %v6204_v48  ;;  %v6441_v20 = vsel %vm5929_vm2, %v5673_v37, %v6185_v7  ;;  %vm5931_vm4 = vcmp.gt.f32.partialorder %v5675_v13, 0.0  ;;  %v6187_v60 = vmul.f32 0.33, %v5675_v13 }
 0x3ea   : > { %v9246_v47 = vpack.c.bf16 %v6460_v4, %v6444_v32  ;;  %v6457_v55 = vsel %vm5945_vm3, %v5689_v57, %v6201_v58  ;;  %vm5947_vm5 = vcmp.gt.f32.partialorder %v5691_v17, 0.0  ;;  %v6203_v49 = vmul.f32 0.33, %v5691_v17 }
 0x3eb   : > { %v9216_v8 = vpack.c.bf16 %v6457_v55, %v6441_v20  ;;  %v6443_v0 = vsel %vm5931_vm4, %v5675_v13, %v6187_v60  ;;  %v5118_v23 = vadd.f32 %v12553_v56, %v12043_v5  ;;  %v5134_v14 = vadd.f32 %v12553_v56, %v12051_v16 }
 0x3ec   : > { %9247 = vmatprep.subr.bf16.mxu1 %v9246_v47  ;;  %v6459_v61 = vsel %vm5947_vm5, %v5691_v17, %v6203_v49  ;;  %v5120_v54 = vadd.f32 %v12560_v59, %v12043_v5  ;;  %v5136_v27 = vadd.f32 %v12560_v59, %v12051_v16  ;;  %v5117_v24 = vadd.f32 %v12550_v6, %v12043_v5 }
 0x3ed   : > { %9217 = vmatpush1.bf16.msra.mxu0 %v9216_v8  ;;  %v9248_v9 = vpack.c.bf16 %v6459_v61, %v6443_v0  ;;  %v5454_v63 = vadd.f32 %v12345_v12, %v5118_v23  ;;  %v5470_v37 = vadd.f32 %v12347_v22, %v5134_v14  ;;  %v5133_v52 = vadd.f32 %v12550_v6, %v12051_v16  ;;  %v12634_v61 = vld [vmem:[%s14021_s4 + $0x8] sm:$0xff] }
 0x3ee   : > { %v5456_v42 = vadd.f32 %v12345_v12, %v5120_v54  ;;  %v5472_v57 = vadd.f32 %v12347_v22, %v5136_v27  ;;  %v5453_v13 = vadd.f32 %v12345_v12, %v5117_v24  ;;  %v5119_v48 = vadd.f32 %v12558_v62, %v12043_v5 }
 0x3ef   : > { %9249 = vmatpush1.bf16.msra.mxu1 %v9248_v9  ;;  %vm5710_vm6 = vcmp.gt.f32.partialorder %v5454_v63, 0.0  ;;  %vm5726_vm7 = vcmp.gt.f32.partialorder %v5470_v37, 0.0  ;;  %v5966_v7 = vmul.f32 0.33, %v5454_v63  ;;  %v5982_v32 = vmul.f32 0.33, %v5470_v37 }
 0x3f0   : > { %6580 = vmatmul.mubr.f32.vlgmr.msra.gmra.mrb[30].mxu0 %v12613_v39  ;;  %vm5712_vm8 = vcmp.gt.f32.partialorder %v5456_v42, 0.0  ;;  %vm5728_vm9 = vcmp.gt.f32.partialorder %v5472_v57, 0.0  ;;  %v5968_v58 = vmul.f32 0.33, %v5456_v42  ;;  %v5984_v17 = vmul.f32 0.33, %v5472_v57 }
 0x3f1   : > { %v6222_v4 = vsel %vm5710_vm6, %v5454_v63, %v5966_v7  ;;  %v6238_v20 = vsel %vm5726_vm7, %v5470_v37, %v5982_v32  ;;  %v5469_v60 = vadd.f32 %v12347_v22, %v5133_v52  ;;  %vm5709_vm10 = vcmp.gt.f32.partialorder %v5453_v13, 0.0  ;;  %6585 = vmatprep.mubr.f32.mxu0 %v14363_v31 }
 0x3f2   : > { %6681 = vmatmul.mubr.f32.vlgmr.msra.gmra.mrb[34].mxu1 %v12613_v39  ;;  %v9250_v47 = vpack.c.bf16 %v6238_v20, %v6222_v4  ;;  %v6224_v55 = vsel %vm5712_vm8, %v5456_v42, %v5968_v58  ;;  %v6240_v49 = vsel %vm5728_vm9, %v5472_v57, %v5984_v17  ;;  %v5965_v8 = vmul.f32 0.33, %v5453_v13  ;;  %v12656_v17 = vld [vmem:[%s14021_s4 + $0x10] sm:$0xff] }
 0x3f3   : > { %v9282_v0 = vpack.c.bf16 %v6240_v49, %v6224_v55  ;;  %vm5725_vm11 = vcmp.gt.f32.partialorder %v5469_v60, 0.0  ;;  %v5981_v23 = vmul.f32 0.33, %v5469_v60  ;;  %v5135_v14 = vadd.f32 %v12558_v62, %v12051_v16  ;;  %6686 = vmatprep.mubr.f32.mxu1 %v14363_v31 }
 0x3f4   : > { %9251 = vmatprep.subr.bf16.mxu0 %v9250_v47  ;;  %v6221_v54 = vsel %vm5709_vm10, %v5453_v13, %v5965_v8  ;;  %v5455_v27 = vadd.f32 %v12345_v12, %v5119_v48  ;;  %v5150_v24 = vadd.f32 %v12553_v56, %v12083_v2  ;;  %v5166_v9 = vadd.f32 %v12553_v56, %v12089_v1 }
 0x3f5   : > { %9283 = vmatprep.subr.bf16.mxu1 %v9282_v0  ;;  %v6237_v63 = vsel %vm5725_vm11, %v5469_v60, %v5981_v23  ;;  %v5471_v37 = vadd.f32 %v12347_v22, %v5135_v14  ;;  %v5152_v52 = vadd.f32 %v12560_v59, %v12083_v2  ;;  %v5168_v42 = vadd.f32 %v12560_v59, %v12089_v1 }
 0x3f6   : > { %v9252_v57 = vpack.c.bf16 %v6237_v63, %v6221_v54  ;;  %vm5711_vm12 = vcmp.gt.f32.partialorder %v5455_v27, 0.0  ;;  %v5967_v13 = vmul.f32 0.33, %v5455_v27  ;;  %v5486_v48 = vadd.f32 %v12362_v50, %v5150_v24  ;;  %6586 = vmatmul.mubr.f32.gmra.mrb[32].mxu0 %v12634_v61  ;;  %6687 = vmatmul.mubr.f32.gmra.mrb[36].mxu1 %v12634_v61 }
 0x3f7   : > { %vm5727_vm13 = vcmp.gt.f32.partialorder %v5471_v37, 0.0  ;;  %v5983_v7 = vmul.f32 0.33, %v5471_v37  ;;  %v5502_v32 = vadd.f32 %v12364_v41, %v5166_v9  ;;  %v5488_v58 = vadd.f32 %v12362_v50, %v5152_v52  ;;  %6591 = vmatprep.mubr.f32.mxu0 %v14363_v31  ;;  %6692 = vmatprep.mubr.f32.mxu1 %v14363_v31  ;;  %v12674_v52 = vld [vmem:[%s14021_s4 + $0x18] sm:$0xff] }
 0x3f8   : > { %9253 = vmatpush1.bf16.msra.mxu0 %v9252_v57  ;;  %v6223_v4 = vsel %vm5711_vm12, %v5455_v27, %v5967_v13  ;;  %vm5742_vm14 = vcmp.gt.f32.partialorder %v5486_v48, 0.0  ;;  %v5998_v20 = vmul.f32 0.33, %v5486_v48  ;;  %v5504_v60 = vadd.f32 %v12364_v41, %v5168_v42 }
 0x3f9   : > { %v6239_v47 = vsel %vm5727_vm13, %v5471_v37, %v5983_v7  ;;  %vm5758_vm15 = vcmp.gt.f32.partialorder %v5502_v32, 0.0  ;;  %v6014_v55 = vmul.f32 0.33, %v5502_v32  ;;  %vm5744_vm1 = vcmp.gt.f32.partialorder %v5488_v58, 0.0 }
 0x3fa   : > { %v9284_v49 = vpack.c.bf16 %v6239_v47, %v6223_v4  ;;  %v6254_v8 = vsel %vm5742_vm14, %v5486_v48, %v5998_v20  ;;  %vm5760_vm2 = vcmp.gt.f32.partialorder %v5504_v60, 0.0  ;;  %v6000_v0 = vmul.f32 0.33, %v5488_v58  ;;  %6592 = vmatmul.mubr.f32.gmra.mrb[34].mxu0 %v12656_v17  ;;  %6693 = vmatmul.mubr.f32.gmra.mrb[38].mxu1 %v12656_v17  ;;  %v12688_v20 = vld [vmem:[%s14021_s4 + $0x20] sm:$0xff] }
 0x3fb   : > { %v6270_v23 = vsel %vm5758_vm15, %v5502_v32, %v6014_v55  ;;  %v6016_v14 = vmul.f32 0.33, %v5504_v60  ;;  %v5149_v54 = vadd.f32 %v12550_v6, %v12083_v2  ;;  %v5165_v27 = vadd.f32 %v12550_v6, %v12089_v1  ;;  %6597 = vmatprep.mubr.f32.mxu0 %v14363_v31  ;;  %6698 = vmatprep.mubr.f32.mxu1 %v14363_v31 }
 0x3fc   : > { %9285 = vmatpush1.bf16.msra.mxu1 %v9284_v49  ;;  %v9254_v24 = vpack.c.bf16 %v6270_v23, %v6254_v8  ;;  %v6256_v9 = vsel %vm5744_vm1, %v5488_v58, %v6000_v0  ;;  %v5151_v63 = vadd.f32 %v12558_v62, %v12083_v2  ;;  %v5167_v37 = vadd.f32 %v12558_v62, %v12089_v1 }
 0x3fd   : > { %v6272_v42 = vsel %vm5760_vm2, %v5504_v60, %v6016_v14  ;;  %v5485_v57 = vadd.f32 %v12362_v50, %v5149_v54  ;;  %v5501_v13 = vadd.f32 %v12364_v41, %v5165_v27  ;;  %v5182_v48 = vadd.f32 %v12553_v56, %v12091_v18 }
 0x3fe   : > { %9255 = vmatprep.subr.bf16.mxu0 %v9254_v24  ;;  %v9286_v7 = vpack.c.bf16 %v6272_v42, %v6256_v9  ;;  %v5487_v32 = vadd.f32 %v12362_v50, %v5151_v63  ;;  %v5503_v58 = vadd.f32 %v12364_v41, %v5167_v37  ;;  %v5198_v4 = vadd.f32 %v12553_v56, %v12097_v53 }
 0x3ff   : > { %vm5741_vm3 = vcmp.gt.f32.partialorder %v5485_v57, 0.0  ;;  %vm5757_vm4 = vcmp.gt.f32.partialorder %v5501_v13, 0.0  ;;  %v5997_v60 = vmul.f32 0.33, %v5485_v57  ;;  %v6013_v47 = vmul.f32 0.33, %v5501_v13  ;;  %6598 = vmatmul.mubr.f32.gmra.mrb[36].mxu0 %v12674_v52  ;;  %6699 = vmatmul.mubr.f32.gmra.mrb[40].mxu1 %v12674_v52 }
 0x400   : > { %9287 = vmatprep.subr.bf16.mxu1 %v9286_v7  ;;  %vm5743_vm5 = vcmp.gt.f32.partialorder %v5487_v32, 0.0  ;;  %vm5759_vm6 = vcmp.gt.f32.partialorder %v5503_v58, 0.0  ;;  %v5999_v55 = vmul.f32 0.33, %v5487_v32  ;;  %v6015_v49 = vmul.f32 0.33, %v5503_v58  ;;  %6603 = vmatprep.mubr.f32.mxu0 %v14363_v31 }
 0x401   : > { %v6253_v8 = vsel %vm5741_vm3, %v5485_v57, %v5997_v60  ;;  %v6269_v0 = vsel %vm5757_vm4, %v5501_v13, %v6013_v47  ;;  %v5518_v23 = vadd.f32 %v12428_v21, %v5182_v48  ;;  %v5534_v14 = vadd.f32 %v12430_v25, %v5198_v4  ;;  %6704 = vmatprep.mubr.f32.mxu1 %v14363_v31  ;;  %v12709_v7 = vld [vmem:[%s14021_s4 + $0x28] sm:$0xff] }
 0x402   : > { %v9256_v54 = vpack.c.bf16 %v6269_v0, %v6253_v8  ;;  %v6255_v27 = vsel %vm5743_vm5, %v5487_v32, %v5999_v55  ;;  %v6271_v24 = vsel %vm5759_vm6, %v5503_v58, %v6015_v49  ;;  %v5184_v9 = vadd.f32 %v12560_v59, %v12091_v18  ;;  %14767 = vst [vmem:[#allocation21_spill] sm:$0xff] %v12709_v7 }
 0x403   : > { %v9288_v63 = vpack.c.bf16 %v6271_v24, %v6255_v27  ;;  %vm5774_vm7 = vcmp.gt.f32.partialorder %v5518_v23, 0.0  ;;  %vm5790_vm8 = vcmp.gt.f32.partialorder %v5534_v14, 0.0  ;;  %v6030_v37 = vmul.f32 0.33, %v5518_v23  ;;  %6604 = vmatmul.mubr.f32.gmra.mrb[38].mxu0 %v12688_v20  ;;  %6705 = vmatmul.mubr.f32.gmra.mrb[42].mxu1 %v12688_v20 }
 0x404   : > { %9257 = vmatpush1.bf16.msra.mxu0 %v9256_v54  ;;  %v6046_v42 = vmul.f32 0.33, %v5534_v14  ;;  %v5200_v57 = vadd.f32 %v12560_v59, %v12097_v53  ;;  %v5520_v13 = vadd.f32 %v12428_v21, %v5184_v9  ;;  %v5181_v48 = vadd.f32 %v12550_v6, %v12091_v18  ;;  %6609 = vmatprep.mubr.f32.mxu0 %v14363_v31 }
 0x405   : > { %9289 = vmatpush1.bf16.msra.mxu1 %v9288_v63  ;;  %v6286_v32 = vsel %vm5774_vm7, %v5518_v23, %v6030_v37  ;;  %v5197_v58 = vadd.f32 %v12550_v6, %v12097_v53  ;;  %v5183_v4 = vadd.f32 %v12558_v62, %v12091_v18  ;;  %v5199_v60 = vadd.f32 %v12558_v62, %v12097_v53 }
 0x406   : > { %v6302_v47 = vsel %vm5790_vm8, %v5534_v14, %v6046_v42  ;;  %v5536_v55 = vadd.f32 %v12430_v25, %v5200_v57  ;;  %vm5776_vm9 = vcmp.gt.f32.partialorder %v5520_v13, 0.0  ;;  %v6032_v49 = vmul.f32 0.33, %v5520_v13  ;;  %6710 = vmatprep.mubr.f32.mxu1 %v14363_v31 }
 0x407   : > { %v9258_v8 = vpack.c.bf16 %v6302_v47, %v6286_v32  ;;  %v5517_v0 = vadd.f32 %v12428_v21, %v5181_v48  ;;  %v5533_v23 = vadd.f32 %v12430_v25, %v5197_v58  ;;  %v5519_v54 = vadd.f32 %v12428_v21, %v5183_v4  ;;  %6610 = vmatmul.mubr.f32.gmra.mrb[40].mxu0 %v12709_v7 }
 0x408   : > { %vm5792_vm10 = vcmp.gt.f32.partialorder %v5536_v55, 0.0  ;;  %v6048_v27 = vmul.f32 0.33, %v5536_v55  ;;  %v6288_v24 = vsel %vm5776_vm9, %v5520_v13, %v6032_v49  ;;  %v5535_v14 = vadd.f32 %v12430_v25, %v5199_v60  ;;  %6711 = vmatmul.mubr.f32.gmra.mrb[44].mxu1 %v12709_v7  ;;  %6781 = vmatprep.mubr.f32.mxu0 %v14363_v31 }
 0x409   : > { %9259 = vmatprep.subr.bf16.mxu0 %v9258_v8  ;;  %vm5773_vm11 = vcmp.gt.f32.partialorder %v5517_v0, 0.0  ;;  %vm5789_vm12 = vcmp.gt.f32.partialorder %v5533_v23, 0.0  ;;  %v6029_v9 = vmul.f32 0.33, %v5517_v0  ;;  %v6045_v63 = vmul.f32 0.33, %v5533_v23  ;;  %6882 = vmatprep.mubr.f32.mxu1 %v14363_v31 }
 0x40a   : > { %v6304_v37 = vsel %vm5792_vm10, %v5536_v55, %v6048_v27  ;;  %vm5775_vm13 = vcmp.gt.f32.partialorder %v5519_v54, 0.0  ;;  %vm5791_vm14 = vcmp.gt.f32.partialorder %v5535_v14, 0.0  ;;  %v6031_v42 = vmul.f32 0.33, %v5519_v54 }
 0x40b   : > { %v9290_v57 = vpack.c.bf16 %v6304_v37, %v6288_v24  ;;  %v6285_v48 = vsel %vm5773_vm11, %v5517_v0, %v6029_v9  ;;  %v6301_v13 = vsel %vm5789_vm12, %v5533_v23, %v6045_v63  ;;  %v6047_v32 = vmul.f32 0.33, %v5535_v14 }
 0x40c   : > { %v9260_v58 = vpack.c.bf16 %v6301_v13, %v6285_v48  ;;  %v6287_v4 = vsel %vm5775_vm13, %v5519_v54, %v6031_v42  ;;  %v5214_v60 = vadd.f32 %v12553_v56, %v12099_v43  ;;  %v5230_v47 = vadd.f32 %v12553_v56, %v12103_v38 }
 0x40d   : > { %9291 = vmatprep.subr.bf16.mxu1 %v9290_v57  ;;  %v6303_v49 = vsel %vm5791_vm14, %v5535_v14, %v6047_v32  ;;  %v5216_v55 = vadd.f32 %v12560_v59, %v12099_v43  ;;  %v5232_v8 = vadd.f32 %v12560_v59, %v12103_v38  ;;  %v5213_v0 = vadd.f32 %v12550_v6, %v12099_v43 }
 0x40e   : > { %9261 = vmatpush1.bf16.msra.mxu0 %v9260_v58  ;;  %v9292_v23 = vpack.c.bf16 %v6303_v49, %v6287_v4  ;;  %v5550_v54 = vadd.f32 %v12453_v28, %v5214_v60  ;;  %v5566_v27 = vadd.f32 %v12455_v51, %v5230_v47  ;;  %v5229_v24 = vadd.f32 %v12550_v6, %v12103_v38 }
 0x40f   : > { %v5552_v14 = vadd.f32 %v12453_v28, %v5216_v55  ;;  %v5568_v9 = vadd.f32 %v12455_v51, %v5232_v8  ;;  %v5549_v63 = vadd.f32 %v12453_v28, %v5213_v0  ;;  %v5215_v37 = vadd.f32 %v12558_v62, %v12099_v43 }
 0x410   : > { %9293 = vmatpush1.bf16.msra.mxu1 %v9292_v23  ;;  %vm5806_vm15 = vcmp.gt.f32.partialorder %v5550_v54, 0.0  ;;  %vm5822_vm1 = vcmp.gt.f32.partialorder %v5566_v27, 0.0  ;;  %v6062_v42 = vmul.f32 0.33, %v5550_v54  ;;  %v6078_v57 = vmul.f32 0.33, %v5566_v27 }
 0x411   : > { %vm5808_vm2 = vcmp.gt.f32.partialorder %v5552_v14, 0.0  ;;  %vm5824_vm3 = vcmp.gt.f32.partialorder %v5568_v9, 0.0  ;;  %v6064_v48 = vmul.f32 0.33, %v5552_v14  ;;  %v6080_v13 = vmul.f32 0.33, %v5568_v9 }
 0x412   : > { %v6318_v32 = vsel %vm5806_vm15, %v5550_v54, %v6062_v42  ;;  %v6334_v58 = vsel %vm5822_vm1, %v5566_v27, %v6078_v57  ;;  %v5565_v4 = vadd.f32 %v12455_v51, %v5229_v24  ;;  %vm5805_vm4 = vcmp.gt.f32.partialorder %v5549_v63, 0.0 }
 0x413   : > { %v9262_v60 = vpack.c.bf16 %v6334_v58, %v6318_v32  ;;  %v6320_v47 = vsel %vm5808_vm2, %v5552_v14, %v6064_v48  ;;  %v6336_v49 = vsel %vm5824_vm3, %v5568_v9, %v6080_v13  ;;  %v6061_v55 = vmul.f32 0.33, %v5549_v63 }
 0x414   : > { %v9294_v8 = vpack.c.bf16 %v6336_v49, %v6320_v47  ;;  %vm5821_vm5 = vcmp.gt.f32.partialorder %v5565_v4, 0.0  ;;  %v6077_v0 = vmul.f32 0.33, %v5565_v4  ;;  %v5231_v23 = vadd.f32 %v12558_v62, %v12103_v38 }
 0x415   : > { %9263 = vmatprep.subr.bf16.mxu0 %v9262_v60  ;;  %v6317_v7 = vsel %vm5805_vm4, %v5549_v63, %v6061_v55  ;;  %v5551_v43 = vadd.f32 %v12453_v28, %v5215_v37  ;;  %v5246_v54 = vadd.f32 %v12553_v56, %v12105_v33  ;;  %v5262_v27 = vadd.f32 %v12553_v56, %v12107_v29 }
 0x416   : > { %9295 = vmatprep.subr.bf16.mxu1 %v9294_v8  ;;  %v6333_v24 = vsel %vm5821_vm5, %v5565_v4, %v6077_v0  ;;  %v5567_v14 = vadd.f32 %v12455_v51, %v5231_v23  ;;  %v5248_v9 = vadd.f32 %v12560_v59, %v12105_v33  ;;  %v5264_v42 = vadd.f32 %v12560_v59, %v12107_v29 }
 0x417   : > { %v9264_v57 = vpack.c.bf16 %v6333_v24, %v6317_v7  ;;  %vm5807_vm6 = vcmp.gt.f32.partialorder %v5551_v43, 0.0  ;;  %v6063_v63 = vmul.f32 0.33, %v5551_v43  ;;  %v5582_v37 = vadd.f32 %v12482_v46, %v5246_v54 }
 0x418   : > { %vm5823_vm7 = vcmp.gt.f32.partialorder %v5567_v14, 0.0  ;;  %v6079_v48 = vmul.f32 0.33, %v5567_v14  ;;  %v5598_v13 = vadd.f32 %v12489_v3, %v5262_v27  ;;  %v5584_v32 = vadd.f32 %v12482_v46, %v5248_v9 }
 0x419   : > { %9265 = vmatpush1.bf16.msra.mxu0 %v9264_v57  ;;  %v6319_v58 = vsel %vm5807_vm6, %v5551_v43, %v6063_v63  ;;  %vm5838_vm8 = vcmp.gt.f32.partialorder %v5582_v37, 0.0  ;;  %v6094_v4 = vmul.f32 0.33, %v5582_v37  ;;  %v5600_v60 = vadd.f32 %v12489_v3, %v5264_v42 }
 0x41a   : > { %v6335_v47 = vsel %vm5823_vm7, %v5567_v14, %v6079_v48  ;;  %vm5854_vm9 = vcmp.gt.f32.partialorder %v5598_v13, 0.0  ;;  %v6110_v49 = vmul.f32 0.33, %v5598_v13  ;;  %vm5840_vm10 = vcmp.gt.f32.partialorder %v5584_v32, 0.0 }
 0x41b   : > { %v9296_v7 = vpack.c.bf16 %v6335_v47, %v6319_v58  ;;  %v6350_v55 = vsel %vm5838_vm8, %v5582_v37, %v6094_v4  ;;  %vm5856_vm11 = vcmp.gt.f32.partialorder %v5600_v60, 0.0  ;;  %v6096_v8 = vmul.f32 0.33, %v5584_v32  ;;  %v12764_v0 = vpop.f32.mrb[26].mxu0 }
 0x41c   : > { %v6366_v23 = vsel %vm5854_vm9, %v5598_v13, %v6110_v49  ;;  %v6112_v54 = vmul.f32 0.33, %v5600_v60  ;;  %v5245_v27 = vadd.f32 %v12550_v6, %v12105_v33  ;;  %v5261_v43 = vadd.f32 %v12550_v6, %v12107_v29  ;;  %v12770_v24 = vpop.f32.mrb[27].mxu0 }
 0x41d   : > { %9297 = vmatpush1.bf16.msra.mxu1 %v9296_v7  ;;  %v9266_v14 = vpack.c.bf16 %v6366_v23, %v6350_v55  ;;  %v6352_v9 = vsel %vm5840_vm10, %v5584_v32, %v6096_v8  ;;  %v5247_v42 = vadd.f32 %v12558_v62, %v12105_v33  ;;  %v5263_v57 = vadd.f32 %v12558_v62, %v12107_v29 }
 0x41e   : > { %v6368_v63 = vsel %vm5856_vm11, %v5600_v60, %v6112_v54  ;;  %v5581_v37 = vadd.f32 %v12482_v46, %v5245_v27  ;;  %v5597_v48 = vadd.f32 %v12489_v3, %v5261_v43  ;;  %v5278_v13 = vadd.f32 %v12553_v56, %v12109_v36  ;;  %v12780_v58 = vpop.f32.mrb[30].mxu1 }
 0x41f   : > { %9267 = vmatprep.subr.bf16.mxu0 %v9266_v14  ;;  %v9298_v4 = vpack.c.bf16 %v6368_v63, %v6352_v9  ;;  %v5583_v32 = vadd.f32 %v12482_v46, %v5247_v42  ;;  %v5599_v47 = vadd.f32 %v12489_v3, %v5263_v57  ;;  %v5294_v49 = vadd.f32 %v12553_v56, %v12111_v26  ;;  %v12786_v7 = vpop.f32.mrb[31].mxu1 }
 0x420   : > { %vm5837_vm12 = vcmp.gt.f32.partialorder %v5581_v37, 0.0  ;;  %vm5853_vm13 = vcmp.gt.f32.partialorder %v5597_v48, 0.0  ;;  %v6093_v60 = vmul.f32 0.33, %v5581_v37  ;;  %v6109_v55 = vmul.f32 0.33, %v5597_v48 }
 0x421   : > { %9299 = vmatprep.subr.bf16.mxu1 %v9298_v4  ;;  %vm5839_vm14 = vcmp.gt.f32.partialorder %v5583_v32, 0.0  ;;  %vm5855_vm15 = vcmp.gt.f32.partialorder %v5599_v47, 0.0  ;;  %v6095_v8 = vmul.f32 0.33, %v5583_v32  ;;  %v6111_v23 = vmul.f32 0.33, %v5599_v47 }
 0x422   : > { %v6349_v54 = vsel %vm5837_vm12, %v5581_v37, %v6093_v60  ;;  %v6365_v27 = vsel %vm5853_vm13, %v5597_v48, %v6109_v55  ;;  %v5614_v43 = vadd.f32 %v12514_v11, %v5278_v13  ;;  %v5630_v14 = vadd.f32 %v12516_v40, %v5294_v49 }
 0x423   : > { %v9268_v9 = vpack.c.bf16 %v6365_v27, %v6349_v54  ;;  %v6351_v42 = vsel %vm5839_vm14, %v5583_v32, %v6095_v8  ;;  %v6367_v57 = vsel %vm5855_vm15, %v5599_v47, %v6111_v23  ;;  %v5280_v63 = vadd.f32 %v12560_v59, %v12109_v36 }
 0x424   : > { %v9300_v3 = vpack.c.bf16 %v6367_v57, %v6351_v42  ;;  %vm5870_vm1 = vcmp.gt.f32.partialorder %v5614_v43, 0.0  ;;  %vm5886_vm2 = vcmp.gt.f32.partialorder %v5630_v14, 0.0  ;;  %v6126_v4 = vmul.f32 0.33, %v5614_v43 }
 0x425   : > { %9269 = vmatpush1.bf16.msra.mxu0 %v9268_v9  ;;  %v6142_v46 = vmul.f32 0.33, %v5630_v14  ;;  %v5296_v37 = vadd.f32 %v12560_v59, %v12111_v26  ;;  %v5616_v48 = vadd.f32 %v12514_v11, %v5280_v63  ;;  %v5277_v13 = vadd.f32 %v12550_v6, %v12109_v36 }
 0x426   : > { %9301 = vmatpush1.bf16.msra.mxu1 %v9300_v3  ;;  %v6382_v32 = vsel %vm5870_vm1, %v5614_v43, %v6126_v4  ;;  %v5293_v47 = vadd.f32 %v12550_v6, %v12111_v26  ;;  %v5279_v49 = vadd.f32 %v12558_v62, %v12109_v36  ;;  %v5295_v60 = vadd.f32 %v12558_v62, %v12111_v26 }
 0x427   : > { %v6398_v55 = vsel %vm5886_vm2, %v5630_v14, %v6142_v46  ;;  %v5632_v8 = vadd.f32 %v12516_v40, %v5296_v37  ;;  %vm5872_vm3 = vcmp.gt.f32.partialorder %v5616_v48, 0.0  ;;  %v6128_v23 = vmul.f32 0.33, %v5616_v48 }
 0x428   : > { %v9270_v54 = vpack.c.bf16 %v6398_v55, %v6382_v32  ;;  %v5613_v27 = vadd.f32 %v12514_v11, %v5277_v13  ;;  %v5629_v3 = vadd.f32 %v12516_v40, %v5293_v47  ;;  %v5615_v43 = vadd.f32 %v12514_v11, %v5279_v49 }
 0x429   : > { %vm5888_vm4 = vcmp.gt.f32.partialorder %v5632_v8, 0.0  ;;  %v6144_v9 = vmul.f32 0.33, %v5632_v8  ;;  %v6384_v42 = vsel %vm5872_vm3, %v5616_v48, %v6128_v23  ;;  %v5631_v57 = vadd.f32 %v12516_v40, %v5295_v60 }
 0x42a   : > { %9271 = vmatprep.subr.bf16.mxu0 %v9270_v54  ;;  %vm5869_vm5 = vcmp.gt.f32.partialorder %v5613_v27, 0.0  ;;  %vm5885_vm6 = vcmp.gt.f32.partialorder %v5629_v3, 0.0  ;;  %v6125_v46 = vmul.f32 0.33, %v5613_v27  ;;  %v6141_v14 = vmul.f32 0.33, %v5629_v3 }
 0x42b   : > { %v6400_v63 = vsel %vm5888_vm4, %v5632_v8, %v6144_v9  ;;  %vm5871_vm7 = vcmp.gt.f32.partialorder %v5615_v43, 0.0  ;;  %vm5887_vm8 = vcmp.gt.f32.partialorder %v5631_v57, 0.0  ;;  %v6127_v4 = vmul.f32 0.33, %v5615_v43 }
 0x42c   : > { %v9302_v37 = vpack.c.bf16 %v6400_v63, %v6384_v42  ;;  %v6381_v13 = vsel %vm5869_vm5, %v5613_v27, %v6125_v46  ;;  %v6397_v32 = vsel %vm5885_vm6, %v5629_v3, %v6141_v14  ;;  %v6143_v47 = vmul.f32 0.33, %v5631_v57 }
 0x42d   : > { %v9272_v55 = vpack.c.bf16 %v6397_v32, %v6381_v13  ;;  %v6383_v49 = vsel %vm5871_vm7, %v5615_v43, %v6127_v4  ;;  %v5310_v48 = vadd.f32 %v12553_v56, %v12242_v45  ;;  %v5326_v60 = vadd.f32 %v12553_v56, %v12244_v10 }
 0x42e   : > { %9303 = vmatprep.subr.bf16.mxu1 %v9302_v37  ;;  %v6399_v23 = vsel %vm5887_vm8, %v5631_v57, %v6143_v47  ;;  %v5312_v8 = vadd.f32 %v12560_v59, %v12242_v45  ;;  %v5328_v54 = vadd.f32 %v12560_v59, %v12244_v10  ;;  %v5309_v27 = vadd.f32 %v12550_v6, %v12242_v45 }
 0x42f   : > { %9273 = vmatpush1.bf16.msra.mxu0 %v9272_v55  ;;  %v9304_v3 = vpack.c.bf16 %v6399_v23, %v6383_v49  ;;  %v5646_v43 = vadd.f32 %v12539_v19, %v5310_v48  ;;  %v5662_v9 = vadd.f32 %v12541_v34, %v5326_v60  ;;  %v5325_v42 = vadd.f32 %v12550_v6, %v12244_v10 }
 0x430   : > { %v5648_v57 = vadd.f32 %v12539_v19, %v5312_v8  ;;  %v5664_v46 = vadd.f32 %v12541_v34, %v5328_v54  ;;  %v5645_v14 = vadd.f32 %v12539_v19, %v5309_v27  ;;  %v5311_v63 = vadd.f32 %v12558_v62, %v12242_v45 }
 0x431   : > { %9305 = vmatpush1.bf16.msra.mxu1 %v9304_v3  ;;  %vm5902_vm9 = vcmp.gt.f32.partialorder %v5646_v43, 0.0  ;;  %vm5918_vm10 = vcmp.gt.f32.partialorder %v5662_v9, 0.0  ;;  %v6158_v4 = vmul.f32 0.33, %v5646_v43  ;;  %v6174_v37 = vmul.f32 0.33, %v5662_v9 }
 0x432   : > { %vm5904_vm11 = vcmp.gt.f32.partialorder %v5648_v57, 0.0  ;;  %vm5920_vm12 = vcmp.gt.f32.partialorder %v5664_v46, 0.0  ;;  %v6160_v13 = vmul.f32 0.33, %v5648_v57  ;;  %v6176_v32 = vmul.f32 0.33, %v5664_v46 }
 0x433   : > { %v6414_v47 = vsel %vm5902_vm9, %v5646_v43, %v6158_v4  ;;  %v6430_v55 = vsel %vm5918_vm10, %v5662_v9, %v6174_v37  ;;  %v5661_v49 = vadd.f32 %v12541_v34, %v5325_v42  ;;  %vm5901_vm13 = vcmp.gt.f32.partialorder %v5645_v14, 0.0 }
 0x434   : > { %v9274_v48 = vpack.c.bf16 %v6430_v55, %v6414_v47  ;;  %v6416_v60 = vsel %vm5904_vm11, %v5648_v57, %v6160_v13  ;;  %v6432_v23 = vsel %vm5920_vm12, %v5664_v46, %v6176_v32  ;;  %v6157_v8 = vmul.f32 0.33, %v5645_v14 }
 0x435   : > { %v9306_v54 = vpack.c.bf16 %v6432_v23, %v6416_v60  ;;  %vm5917_vm14 = vcmp.gt.f32.partialorder %v5661_v49, 0.0  ;;  %v6173_v27 = vmul.f32 0.33, %v5661_v49  ;;  %v5327_v3 = vadd.f32 %v12558_v62, %v12244_v10 }
 0x436   : > { %9275 = vmatprep.subr.bf16.mxu0 %v9274_v48  ;;  %v6413_v45 = vsel %vm5901_vm13, %v5645_v14, %v6157_v8  ;;  %v5647_v40 = vadd.f32 %v12539_v19, %v5311_v63  ;;  %v5342_v43 = vadd.f32 %v12553_v56, %v12246_v35  ;;  %v5358_v9 = vadd.f32 %v12553_v56, %v12248_v44 }
 0x437   : > { %9307 = vmatprep.subr.bf16.mxu1 %v9306_v54  ;;  %v6429_v42 = vsel %vm5917_vm14, %v5661_v49, %v6173_v27  ;;  %v5663_v57 = vadd.f32 %v12541_v34, %v5327_v3  ;;  %v5344_v46 = vadd.f32 %v12560_v59, %v12246_v35  ;;  %v5360_v4 = vadd.f32 %v12560_v59, %v12248_v44 }
 0x438   : > { %v9276_v37 = vpack.c.bf16 %v6429_v42, %v6413_v45  ;;  %vm5903_vm15 = vcmp.gt.f32.partialorder %v5647_v40, 0.0  ;;  %v6159_v14 = vmul.f32 0.33, %v5647_v40  ;;  %v5678_v63 = vadd.f32 %v12573_v30, %v5342_v43 }
 0x439   : > { %vm5919_vm1 = vcmp.gt.f32.partialorder %v5663_v57, 0.0  ;;  %v6175_v13 = vmul.f32 0.33, %v5663_v57  ;;  %v5694_v32 = vadd.f32 %v12578_v15, %v5358_v9  ;;  %v5680_v56 = vadd.f32 %v12573_v30, %v5344_v46 }
 0x43a   : > { %9277 = vmatpush1.bf16.msra.mxu0 %v9276_v37  ;;  %v6415_v47 = vsel %vm5903_vm15, %v5647_v40, %v6159_v14  ;;  %vm5934_vm2 = vcmp.gt.f32.partialorder %v5678_v63, 0.0  ;;  %v6190_v55 = vmul.f32 0.33, %v5678_v63  ;;  %v5696_v49 = vadd.f32 %v12578_v15, %v5360_v4 }
 0x43b   : > { %v6431_v48 = vsel %vm5919_vm1, %v5663_v57, %v6175_v13  ;;  %vm5950_vm3 = vcmp.gt.f32.partialorder %v5694_v32, 0.0  ;;  %v6206_v59 = vmul.f32 0.33, %v5694_v32  ;;  %vm5936_vm4 = vcmp.gt.f32.partialorder %v5680_v56, 0.0 }
 0x43c   : > { %v9308_v45 = vpack.c.bf16 %v6431_v48, %v6415_v47  ;;  %v6446_v60 = vsel %vm5934_vm2, %v5678_v63, %v6190_v55  ;;  %vm5952_vm5 = vcmp.gt.f32.partialorder %v5696_v49, 0.0  ;;  %v6192_v23 = vmul.f32 0.33, %v5680_v56 }
 0x43d   : > { %v6462_v8 = vsel %vm5950_vm3, %v5694_v32, %v6206_v59  ;;  %v6208_v54 = vmul.f32 0.33, %v5696_v49  ;;  %v5341_v27 = vadd.f32 %v12550_v6, %v12246_v35  ;;  %v5357_v40 = vadd.f32 %v12550_v6, %v12248_v44 }
 0x43e   : > { %9309 = vmatpush1.bf16.msra.mxu1 %v9308_v45  ;;  %v9278_v3 = vpack.c.bf16 %v6462_v8, %v6446_v60  ;;  %v6448_v43 = vsel %vm5936_vm4, %v5680_v56, %v6192_v23  ;;  %v5343_v9 = vadd.f32 %v12558_v62, %v12246_v35  ;;  %v5359_v42 = vadd.f32 %v12558_v62, %v12248_v44 }
 0x43f   : > { %v6464_v57 = vsel %vm5952_vm5, %v5696_v49, %v6208_v54  ;;  %v5677_v46 = vadd.f32 %v12573_v30, %v5341_v27  ;;  %v5693_v4 = vadd.f32 %v12578_v15, %v5357_v40  ;;  %v5122_v37 = vadd.f32 %v12770_v24, %v12043_v5 }
 0x440   : > { %9279 = vmatprep.subr.bf16.mxu0 %v9278_v3  ;;  %v9310_v14 = vpack.c.bf16 %v6464_v57, %v6448_v43  ;;  %v5679_v6 = vadd.f32 %v12573_v30, %v5343_v9  ;;  %v5695_v63 = vadd.f32 %v12578_v15, %v5359_v42  ;;  %v5138_v13 = vadd.f32 %v12770_v24, %v12051_v16 }
 0x441   : > { %vm5933_vm6 = vcmp.gt.f32.partialorder %v5677_v46, 0.0  ;;  %vm5949_vm7 = vcmp.gt.f32.partialorder %v5693_v4, 0.0  ;;  %v6189_v62 = vmul.f32 0.33, %v5677_v46  ;;  %v6205_v32 = vmul.f32 0.33, %v5693_v4 }
 0x442   : > { %9311 = vmatprep.subr.bf16.mxu1 %v9310_v14  ;;  %vm5935_vm8 = vcmp.gt.f32.partialorder %v5679_v6, 0.0  ;;  %vm5951_vm9 = vcmp.gt.f32.partialorder %v5695_v63, 0.0  ;;  %v6191_v56 = vmul.f32 0.33, %v5679_v6  ;;  %v6207_v47 = vmul.f32 0.33, %v5695_v63 }
 0x443   : > { %v6445_v55 = vsel %vm5933_vm6, %v5677_v46, %v6189_v62  ;;  %v6461_v49 = vsel %vm5949_vm7, %v5693_v4, %v6205_v32  ;;  %v5458_v48 = vadd.f32 %v12345_v12, %v5122_v37  ;;  %v5474_v59 = vadd.f32 %v12347_v22, %v5138_v13 }
 0x444   : > { %v9280_v45 = vpack.c.bf16 %v6461_v49, %v6445_v55  ;;  %v6447_v60 = vsel %vm5935_vm8, %v5679_v6, %v6191_v56  ;;  %v6463_v23 = vsel %vm5951_vm9, %v5695_v63, %v6207_v47  ;;  %v5124_v8 = vadd.f32 %v12786_v7, %v12043_v5 }
 0x445   : > { %v9312_v54 = vpack.c.bf16 %v6463_v23, %v6447_v60  ;;  %vm5714_vm10 = vcmp.gt.f32.partialorder %v5458_v48, 0.0  ;;  %vm5730_vm11 = vcmp.gt.f32.partialorder %v5474_v59, 0.0  ;;  %v5970_v27 = vmul.f32 0.33, %v5458_v48 }
 0x446   : > { %9281 = vmatpush1.bf16.msra.mxu0 %v9280_v45  ;;  %v5986_v40 = vmul.f32 0.33, %v5474_v59  ;;  %v5140_v3 = vadd.f32 %v12786_v7, %v12051_v16  ;;  %v5460_v43 = vadd.f32 %v12345_v12, %v5124_v8  ;;  %v5121_v9 = vadd.f32 %v12764_v0, %v12043_v5 }
 0x447   : > { %9313 = vmatpush1.bf16.msra.mxu1 %v9312_v54  ;;  %v6226_v42 = vsel %vm5714_vm10, %v5458_v48, %v5970_v27  ;;  %v5137_v57 = vadd.f32 %v12764_v0, %v12051_v16  ;;  %v5123_v46 = vadd.f32 %v12780_v58, %v12043_v5  ;;  %v5139_v4 = vadd.f32 %v12780_v58, %v12051_v16 }
 0x448   : > { %v6242_v37 = vsel %vm5730_vm11, %v5474_v59, %v5986_v40  ;;  %v5476_v14 = vadd.f32 %v12347_v22, %v5140_v3  ;;  %vm5716_vm12 = vcmp.gt.f32.partialorder %v5460_v43, 0.0  ;;  %v5972_v6 = vmul.f32 0.33, %v5460_v43 }
 0x449   : > { %6782 = vmatmul.mubr.f32.vlgmr.msra.gmra.mrb[42].mxu0 %v12613_v39  ;;  %v9314_v63 = vpack.c.bf16 %v6242_v37, %v6226_v42  ;;  %v5457_v13 = vadd.f32 %v12345_v12, %v5121_v9  ;;  %v5473_v62 = vadd.f32 %v12347_v22, %v5137_v57  ;;  %v5459_v32 = vadd.f32 %v12345_v12, %v5123_v46 }
 0x44a   : > { %6883 = vmatmul.mubr.f32.vlgmr.msra.gmra.mrb[46].mxu1 %v12613_v39  ;;  %vm5732_vm13 = vcmp.gt.f32.partialorder %v5476_v14, 0.0  ;;  %v5988_v56 = vmul.f32 0.33, %v5476_v14  ;;  %v6228_v47 = vsel %vm5716_vm12, %v5460_v43, %v5972_v6  ;;  %v5475_v55 = vadd.f32 %v12347_v22, %v5139_v4  ;;  %6787 = vmatprep.mubr.f32.mxu0 %v14363_v31 }
 0x44b   : > { %9315 = vmatprep.subr.bf16.mxu0 %v9314_v63  ;;  %vm5713_vm14 = vcmp.gt.f32.partialorder %v5457_v13, 0.0  ;;  %vm5729_vm15 = vcmp.gt.f32.partialorder %v5473_v62, 0.0  ;;  %v5969_v49 = vmul.f32 0.33, %v5457_v13  ;;  %v5985_v48 = vmul.f32 0.33, %v5473_v62  ;;  %6888 = vmatprep.mubr.f32.mxu1 %v14363_v31 }
 0x44c   : > { %v6244_v59 = vsel %vm5732_vm13, %v5476_v14, %v5988_v56  ;;  %vm5715_vm1 = vcmp.gt.f32.partialorder %v5459_v32, 0.0  ;;  %vm5731_vm2 = vcmp.gt.f32.partialorder %v5475_v55, 0.0  ;;  %v5971_v45 = vmul.f32 0.33, %v5459_v32 }
 0x44d   : > { %v9346_v60 = vpack.c.bf16 %v6244_v59, %v6228_v47  ;;  %v6225_v39 = vsel %vm5713_vm14, %v5457_v13, %v5969_v49  ;;  %v6241_v23 = vsel %vm5729_vm15, %v5473_v62, %v5985_v48  ;;  %v5987_v8 = vmul.f32 0.33, %v5475_v55  ;;  %6788 = vmatmul.mubr.f32.gmra.mrb[44].mxu0 %v12634_v61 }
 0x44e   : > { %v9316_v54 = vpack.c.bf16 %v6241_v23, %v6225_v39  ;;  %v6227_v27 = vsel %vm5715_vm1, %v5459_v32, %v5971_v45  ;;  %v5154_v40 = vadd.f32 %v12770_v24, %v12083_v2  ;;  %v5170_v3 = vadd.f32 %v12770_v24, %v12089_v1  ;;  %6889 = vmatmul.mubr.f32.gmra.mrb[48].mxu1 %v12634_v61 }
 0x44f   : > { %9347 = vmatprep.subr.bf16.mxu1 %v9346_v60  ;;  %v6243_v43 = vsel %vm5731_vm2, %v5475_v55, %v5987_v8  ;;  %v5156_v9 = vadd.f32 %v12786_v7, %v12083_v2  ;;  %v5172_v42 = vadd.f32 %v12786_v7, %v12089_v1  ;;  %v5153_v57 = vadd.f32 %v12764_v0, %v12083_v2 }
 0x450   : > { %9317 = vmatpush1.bf16.msra.mxu0 %v9316_v54  ;;  %v9348_v46 = vpack.c.bf16 %v6243_v43, %v6227_v27  ;;  %v5490_v4 = vadd.f32 %v12362_v50, %v5154_v40  ;;  %v5506_v37 = vadd.f32 %v12364_v41, %v5170_v3  ;;  %v5169_v61 = vadd.f32 %v12764_v0, %v12089_v1 }
 0x451   : > { %v5492_v14 = vadd.f32 %v12362_v50, %v5156_v9  ;;  %v5508_v6 = vadd.f32 %v12364_v41, %v5172_v42  ;;  %v5489_v63 = vadd.f32 %v12362_v50, %v5153_v57  ;;  %v5155_v13 = vadd.f32 %v12780_v58, %v12083_v2  ;;  %6793 = vmatprep.mubr.f32.mxu0 %v14363_v31 }
 0x452   : > { %9349 = vmatpush1.bf16.msra.mxu1 %v9348_v46  ;;  %vm5746_vm3 = vcmp.gt.f32.partialorder %v5490_v4, 0.0  ;;  %vm5762_vm4 = vcmp.gt.f32.partialorder %v5506_v37, 0.0  ;;  %v6002_v62 = vmul.f32 0.33, %v5490_v4  ;;  %v6018_v32 = vmul.f32 0.33, %v5506_v37  ;;  %6894 = vmatprep.mubr.f32.mxu1 %v14363_v31 }
 0x453   : > { %vm5748_vm5 = vcmp.gt.f32.partialorder %v5492_v14, 0.0  ;;  %vm5764_vm6 = vcmp.gt.f32.partialorder %v5508_v6, 0.0  ;;  %v6004_v56 = vmul.f32 0.33, %v5492_v14  ;;  %v6020_v47 = vmul.f32 0.33, %v5508_v6  ;;  %6794 = vmatmul.mubr.f32.gmra.mrb[46].mxu0 %v12656_v17  ;;  %6895 = vmatmul.mubr.f32.gmra.mrb[50].mxu1 %v12656_v17 }
 0x454   : > { %v6258_v55 = vsel %vm5746_vm3, %v5490_v4, %v6002_v62  ;;  %v6274_v49 = vsel %vm5762_vm4, %v5506_v37, %v6018_v32  ;;  %v5505_v48 = vadd.f32 %v12364_v41, %v5169_v61  ;;  %vm5745_vm7 = vcmp.gt.f32.partialorder %v5489_v63, 0.0  ;;  %6799 = vmatprep.mubr.f32.mxu0 %v14363_v31  ;;  %6900 = vmatprep.mubr.f32.mxu1 %v14363_v31 }
 0x455   : > { %v9318_v59 = vpack.c.bf16 %v6274_v49, %v6258_v55  ;;  %v6260_v45 = vsel %vm5748_vm5, %v5492_v14, %v6004_v56  ;;  %v6276_v60 = vsel %vm5764_vm6, %v5508_v6, %v6020_v47  ;;  %v6001_v39 = vmul.f32 0.33, %v5489_v63 }
 0x456   : > { %v9350_v23 = vpack.c.bf16 %v6276_v60, %v6260_v45  ;;  %vm5761_vm8 = vcmp.gt.f32.partialorder %v5505_v48, 0.0  ;;  %v6017_v8 = vmul.f32 0.33, %v5505_v48  ;;  %v5171_v54 = vadd.f32 %v12780_v58, %v12089_v1 }
 0x457   : > { %9319 = vmatprep.subr.bf16.mxu0 %v9318_v59  ;;  %v6257_v17 = vsel %vm5745_vm7, %v5489_v63, %v6001_v39  ;;  %v5491_v27 = vadd.f32 %v12362_v50, %v5155_v13  ;;  %v5186_v40 = vadd.f32 %v12770_v24, %v12091_v18  ;;  %v5202_v3 = vadd.f32 %v12770_v24, %v12097_v53 }
 0x458   : > { %9351 = vmatprep.subr.bf16.mxu1 %v9350_v23  ;;  %v6273_v43 = vsel %vm5761_vm8, %v5505_v48, %v6017_v8  ;;  %v5507_v9 = vadd.f32 %v12364_v41, %v5171_v54  ;;  %v5188_v42 = vadd.f32 %v12786_v7, %v12091_v18  ;;  %v5204_v57 = vadd.f32 %v12786_v7, %v12097_v53 }
 0x459   : > { %v9320_v46 = vpack.c.bf16 %v6273_v43, %v6257_v17  ;;  %vm5747_vm9 = vcmp.gt.f32.partialorder %v5491_v27, 0.0  ;;  %v6003_v4 = vmul.f32 0.33, %v5491_v27  ;;  %v5522_v37 = vadd.f32 %v12428_v21, %v5186_v40  ;;  %6800 = vmatmul.mubr.f32.gmra.mrb[48].mxu0 %v12674_v52  ;;  %6901 = vmatmul.mubr.f32.gmra.mrb[52].mxu1 %v12674_v52 }
 0x45a   : > { %vm5763_vm10 = vcmp.gt.f32.partialorder %v5507_v9, 0.0  ;;  %v6019_v61 = vmul.f32 0.33, %v5507_v9  ;;  %v5538_v14 = vadd.f32 %v12430_v25, %v5202_v3  ;;  %v5524_v6 = vadd.f32 %v12428_v21, %v5188_v42  ;;  %6805 = vmatprep.mubr.f32.mxu0 %v14363_v31  ;;  %6906 = vmatprep.mubr.f32.mxu1 %v14363_v31 }
 0x45b   : > { %9321 = vmatpush1.bf16.msra.mxu0 %v9320_v46  ;;  %v6259_v63 = vsel %vm5747_vm9, %v5491_v27, %v6003_v4  ;;  %vm5778_vm11 = vcmp.gt.f32.partialorder %v5522_v37, 0.0  ;;  %v6034_v13 = vmul.f32 0.33, %v5522_v37  ;;  %v5540_v62 = vadd.f32 %v12430_v25, %v5204_v57  ;;  %v14768_v27 = vld [vmem:[#allocation25_spill] sm:$0xff] }
 0x45c   : > { %v6275_v32 = vsel %vm5763_vm10, %v5507_v9, %v6019_v61  ;;  %vm5794_vm12 = vcmp.gt.f32.partialorder %v5538_v14, 0.0  ;;  %v6050_v56 = vmul.f32 0.33, %v5538_v14  ;;  %vm5780_vm13 = vcmp.gt.f32.partialorder %v5524_v6, 0.0 }
 0x45d   : > { %v9352_v52 = vpack.c.bf16 %v6275_v32, %v6259_v63  ;;  %v6290_v47 = vsel %vm5778_vm11, %v5522_v37, %v6034_v13  ;;  %vm5796_vm14 = vcmp.gt.f32.partialorder %v5540_v62, 0.0  ;;  %v6036_v55 = vmul.f32 0.33, %v5524_v6  ;;  %6806 = vmatmul.mubr.f32.gmra.mrb[50].mxu0 %v12688_v20  ;;  %6907 = vmatmul.mubr.f32.gmra.mrb[54].mxu1 %v12688_v20 }
 0x45e   : > { %v6306_v49 = vsel %vm5794_vm12, %v5538_v14, %v6050_v56  ;;  %v6052_v48 = vmul.f32 0.33, %v5540_v62  ;;  %v5185_v59 = vadd.f32 %v12764_v0, %v12091_v18  ;;  %v5201_v45 = vadd.f32 %v12764_v0, %v12097_v53  ;;  %6811 = vmatprep.mubr.f32.mxu0 %v14363_v31  ;;  %6912 = vmatprep.mubr.f32.mxu1 %v14363_v31  ;;  %v14769_v14 = vld [vmem:[#allocation21_spill] sm:$0xff] }
 0x45f   : > { %9353 = vmatpush1.bf16.msra.mxu1 %v9352_v52  ;;  %v9322_v60 = vpack.c.bf16 %v6306_v49, %v6290_v47  ;;  %v6292_v39 = vsel %vm5780_vm13, %v5524_v6, %v6036_v55  ;;  %v5187_v23 = vadd.f32 %v12780_v58, %v12091_v18  ;;  %v5203_v20 = vadd.f32 %v12780_v58, %v12097_v53 }
 0x460   : > { %v6308_v8 = vsel %vm5796_vm14, %v5540_v62, %v6052_v48  ;;  %v5521_v54 = vadd.f32 %v12428_v21, %v5185_v59  ;;  %v5537_v17 = vadd.f32 %v12430_v25, %v5201_v45  ;;  %v5218_v40 = vadd.f32 %v12770_v24, %v14768_v27  ;;  %v12948_v3 = vpop.f32.mrb[28].mxu0 }
 0x461   : > { %9323 = vmatprep.subr.bf16.mxu0 %v9322_v60  ;;  %v9354_v43 = vpack.c.bf16 %v6308_v8, %v6292_v39  ;;  %v5523_v9 = vadd.f32 %v12428_v21, %v5187_v23  ;;  %v5539_v42 = vadd.f32 %v12430_v25, %v5203_v20  ;;  %v5234_v57 = vadd.f32 %v12770_v24, %v12103_v38  ;;  %v12954_v46 = vpop.f32.mrb[32].mxu1  ;;  %v12956_v4 = vpop.f32.mrb[29].mxu0 }
 0x462   : > { %vm5777_vm15 = vcmp.gt.f32.partialorder %v5521_v54, 0.0  ;;  %vm5793_vm1 = vcmp.gt.f32.partialorder %v5537_v17, 0.0  ;;  %v6033_v37 = vmul.f32 0.33, %v5521_v54  ;;  %v6049_v61 = vmul.f32 0.33, %v5537_v17  ;;  %6812 = vmatmul.mubr.f32.gmra.mrb[52].mxu0 %v14769_v14  ;;  %6913 = vmatmul.mubr.f32.gmra.mrb[56].mxu1 %v14769_v14 }
 0x463   : > { %9355 = vmatprep.subr.bf16.mxu1 %v9354_v43  ;;  %vm5779_vm2 = vcmp.gt.f32.partialorder %v5523_v9, 0.0  ;;  %vm5795_vm3 = vcmp.gt.f32.partialorder %v5539_v42, 0.0  ;;  %v6035_v6 = vmul.f32 0.33, %v5523_v9  ;;  %v6051_v63 = vmul.f32 0.33, %v5539_v42  ;;  %6983 = vmatprep.mubr.f32.mxu0 %v14363_v31 }
 0x464   : > { %v6289_v13 = vsel %vm5777_vm15, %v5521_v54, %v6033_v37  ;;  %v6305_v62 = vsel %vm5793_vm1, %v5537_v17, %v6049_v61  ;;  %v5554_v32 = vadd.f32 %v12453_v28, %v5218_v40  ;;  %v5570_v56 = vadd.f32 %v12455_v51, %v5234_v57  ;;  %v12963_v52 = vpop.f32.mrb[33].mxu1  ;;  %7084 = vmatprep.mubr.f32.mxu1 %v14363_v31 }
 0x465   : > { %v9324_v47 = vpack.c.bf16 %v6305_v62, %v6289_v13  ;;  %v6291_v55 = vsel %vm5779_vm2, %v5523_v9, %v6035_v6  ;;  %v6307_v49 = vsel %vm5795_vm3, %v5539_v42, %v6051_v63  ;;  %v5220_v48 = vadd.f32 %v12786_v7, %v14768_v27 }
 0x466   : > { %v9356_v59 = vpack.c.bf16 %v6307_v49, %v6291_v55  ;;  %vm5810_vm4 = vcmp.gt.f32.partialorder %v5554_v32, 0.0  ;;  %vm5826_vm5 = vcmp.gt.f32.partialorder %v5570_v56, 0.0  ;;  %v6066_v45 = vmul.f32 0.33, %v5554_v32 }
 0x467   : > { %9325 = vmatpush1.bf16.msra.mxu0 %v9324_v47  ;;  %v6082_v60 = vmul.f32 0.33, %v5570_v56  ;;  %v5236_v39 = vadd.f32 %v12786_v7, %v12103_v38  ;;  %v5556_v23 = vadd.f32 %v12453_v28, %v5220_v48  ;;  %v5217_v20 = vadd.f32 %v12764_v0, %v14768_v27 }
 0x468   : > { %9357 = vmatpush1.bf16.msra.mxu1 %v9356_v59  ;;  %v6322_v8 = vsel %vm5810_vm4, %v5554_v32, %v6066_v45  ;;  %v5233_v54 = vadd.f32 %v12764_v0, %v12103_v38  ;;  %v5219_v17 = vadd.f32 %v12780_v58, %v14768_v27  ;;  %v5235_v40 = vadd.f32 %v12780_v58, %v12103_v38 }
 0x469   : > { %v6338_v43 = vsel %vm5826_vm5, %v5570_v56, %v6082_v60  ;;  %v5572_v9 = vadd.f32 %v12455_v51, %v5236_v39  ;;  %vm5812_vm6 = vcmp.gt.f32.partialorder %v5556_v23, 0.0  ;;  %v6068_v42 = vmul.f32 0.33, %v5556_v23 }
 0x46a   : > { %v9326_v57 = vpack.c.bf16 %v6338_v43, %v6322_v8  ;;  %v5553_v37 = vadd.f32 %v12453_v28, %v5217_v20  ;;  %v5569_v61 = vadd.f32 %v12455_v51, %v5233_v54  ;;  %v5555_v14 = vadd.f32 %v12453_v28, %v5219_v17  ;;  %v14770_v43 = vld [vmem:[#allocation19_spill] sm:$0xff] }
 0x46b   : > { %vm5828_vm7 = vcmp.gt.f32.partialorder %v5572_v9, 0.0  ;;  %v6084_v6 = vmul.f32 0.33, %v5572_v9  ;;  %v6324_v63 = vsel %vm5812_vm6, %v5556_v23, %v6068_v42  ;;  %v5571_v13 = vadd.f32 %v12455_v51, %v5235_v40  ;;  %v14771_v42 = vld [vmem:[#allocation10_spill] sm:$0xff] }
 0x46c   : > { %9327 = vmatprep.subr.bf16.mxu0 %v9326_v57  ;;  %vm5809_vm8 = vcmp.gt.f32.partialorder %v5553_v37, 0.0  ;;  %vm5825_vm9 = vcmp.gt.f32.partialorder %v5569_v61, 0.0  ;;  %v6065_v62 = vmul.f32 0.33, %v5553_v37  ;;  %v6081_v32 = vmul.f32 0.33, %v5569_v61 }
 0x46d   : > { %v6340_v56 = vsel %vm5828_vm7, %v5572_v9, %v6084_v6  ;;  %vm5811_vm10 = vcmp.gt.f32.partialorder %v5555_v14, 0.0  ;;  %vm5827_vm11 = vcmp.gt.f32.partialorder %v5571_v13, 0.0  ;;  %v6067_v47 = vmul.f32 0.33, %v5555_v14 }
 0x46e   : > { %v9358_v55 = vpack.c.bf16 %v6340_v56, %v6324_v63  ;;  %v6321_v49 = vsel %vm5809_vm8, %v5553_v37, %v6065_v62  ;;  %v6337_v48 = vsel %vm5825_vm9, %v5569_v61, %v6081_v32  ;;  %v6083_v59 = vmul.f32 0.33, %v5571_v13 }
 0x46f   : > { %v9328_v45 = vpack.c.bf16 %v6337_v48, %v6321_v49  ;;  %v6323_v60 = vsel %vm5811_vm10, %v5555_v14, %v6067_v47  ;;  %v5250_v39 = vadd.f32 %v12770_v24, %v12105_v33  ;;  %v5266_v23 = vadd.f32 %v12770_v24, %v12107_v29 }
 0x470   : > { %9359 = vmatprep.subr.bf16.mxu1 %v9358_v55  ;;  %v6339_v20 = vsel %vm5827_vm11, %v5571_v13, %v6083_v59  ;;  %v5252_v8 = vadd.f32 %v12786_v7, %v12105_v33  ;;  %v5268_v54 = vadd.f32 %v12786_v7, %v12107_v29  ;;  %v5249_v17 = vadd.f32 %v12764_v0, %v12105_v33 }
 0x471   : > { %9329 = vmatpush1.bf16.msra.mxu0 %v9328_v45  ;;  %v9360_v40 = vpack.c.bf16 %v6339_v20, %v6323_v60  ;;  %v5586_v9 = vadd.f32 %v14770_v43, %v5250_v39  ;;  %v5602_v57 = vadd.f32 %v14771_v42, %v5266_v23  ;;  %v5265_v37 = vadd.f32 %v12764_v0, %v12107_v29 }
 0x472   : > { %v5588_v61 = vadd.f32 %v14770_v43, %v5252_v8  ;;  %v5604_v14 = vadd.f32 %v14771_v42, %v5268_v54  ;;  %v5585_v6 = vadd.f32 %v14770_v43, %v5249_v17  ;;  %v5251_v63 = vadd.f32 %v12780_v58, %v12105_v33 }
 0x473   : > { %9361 = vmatpush1.bf16.msra.mxu1 %v9360_v40  ;;  %vm5842_vm12 = vcmp.gt.f32.partialorder %v5586_v9, 0.0  ;;  %vm5858_vm13 = vcmp.gt.f32.partialorder %v5602_v57, 0.0  ;;  %v6098_v13 = vmul.f32 0.33, %v5586_v9  ;;  %v6114_v62 = vmul.f32 0.33, %v5602_v57 }
 0x474   : > { %vm5844_vm14 = vcmp.gt.f32.partialorder %v5588_v61, 0.0  ;;  %vm5860_vm15 = vcmp.gt.f32.partialorder %v5604_v14, 0.0  ;;  %v6100_v32 = vmul.f32 0.33, %v5588_v61  ;;  %v6116_v56 = vmul.f32 0.33, %v5604_v14 }
 0x475   : > { %v6354_v47 = vsel %vm5842_vm12, %v5586_v9, %v6098_v13  ;;  %v6370_v55 = vsel %vm5858_vm13, %v5602_v57, %v6114_v62  ;;  %v5601_v49 = vadd.f32 %v14771_v42, %v5265_v37  ;;  %vm5841_vm1 = vcmp.gt.f32.partialorder %v5585_v6, 0.0  ;;  %v14772_v62 = vld [vmem:[#allocation24_spill] sm:$0xff] }
 0x476   : > { %v9330_v48 = vpack.c.bf16 %v6370_v55, %v6354_v47  ;;  %v6356_v59 = vsel %vm5844_vm14, %v5588_v61, %v6100_v32  ;;  %v6372_v45 = vsel %vm5860_vm15, %v5604_v14, %v6116_v56  ;;  %v6097_v60 = vmul.f32 0.33, %v5585_v6 }
 0x477   : > { %v9362_v39 = vpack.c.bf16 %v6372_v45, %v6356_v59  ;;  %vm5857_vm2 = vcmp.gt.f32.partialorder %v5601_v49, 0.0  ;;  %v6113_v23 = vmul.f32 0.33, %v5601_v49  ;;  %v5267_v20 = vadd.f32 %v12780_v58, %v12107_v29 }
 0x478   : > { %9331 = vmatprep.subr.bf16.mxu0 %v9330_v48  ;;  %v6353_v8 = vsel %vm5841_vm1, %v5585_v6, %v6097_v60  ;;  %v5587_v54 = vadd.f32 %v14770_v43, %v5251_v63  ;;  %v5282_v17 = vadd.f32 %v12770_v24, %v12109_v36  ;;  %v5298_v40 = vadd.f32 %v12770_v24, %v12111_v26 }
 0x479   : > { %9363 = vmatprep.subr.bf16.mxu1 %v9362_v39  ;;  %v6369_v9 = vsel %vm5857_vm2, %v5601_v49, %v6113_v23  ;;  %v5603_v57 = vadd.f32 %v14771_v42, %v5267_v20  ;;  %v5284_v37 = vadd.f32 %v12786_v7, %v12109_v36  ;;  %v5300_v61 = vadd.f32 %v12786_v7, %v12111_v26 }
 0x47a   : > { %v9332_v14 = vpack.c.bf16 %v6369_v9, %v6353_v8  ;;  %vm5843_vm3 = vcmp.gt.f32.partialorder %v5587_v54, 0.0  ;;  %v6099_v6 = vmul.f32 0.33, %v5587_v54  ;;  %v5618_v63 = vadd.f32 %v12514_v11, %v5282_v17 }
 0x47b   : > { %vm5859_vm4 = vcmp.gt.f32.partialorder %v5603_v57, 0.0  ;;  %v6115_v13 = vmul.f32 0.33, %v5603_v57  ;;  %v5634_v32 = vadd.f32 %v14772_v62, %v5298_v40  ;;  %v5620_v56 = vadd.f32 %v12514_v11, %v5284_v37 }
 0x47c   : > { %9333 = vmatpush1.bf16.msra.mxu0 %v9332_v14  ;;  %v6355_v47 = vsel %vm5843_vm3, %v5587_v54, %v6099_v6  ;;  %vm5874_vm5 = vcmp.gt.f32.partialorder %v5618_v63, 0.0  ;;  %v6130_v55 = vmul.f32 0.33, %v5618_v63  ;;  %v5636_v49 = vadd.f32 %v14772_v62, %v5300_v61  ;;  %v14773_v6 = vld [vmem:[#allocation22_spill] sm:$0xff] }
 0x47d   : > { %v6371_v48 = vsel %vm5859_vm4, %v5603_v57, %v6115_v13  ;;  %vm5890_vm6 = vcmp.gt.f32.partialorder %v5634_v32, 0.0  ;;  %v6146_v59 = vmul.f32 0.33, %v5634_v32  ;;  %vm5876_vm7 = vcmp.gt.f32.partialorder %v5620_v56, 0.0 }
 0x47e   : > { %v9364_v45 = vpack.c.bf16 %v6371_v48, %v6355_v47  ;;  %v6386_v60 = vsel %vm5874_vm5, %v5618_v63, %v6130_v55  ;;  %vm5892_vm8 = vcmp.gt.f32.partialorder %v5636_v49, 0.0  ;;  %v6132_v39 = vmul.f32 0.33, %v5620_v56 }
 0x47f   : > { %v6402_v23 = vsel %vm5890_vm6, %v5634_v32, %v6146_v59  ;;  %v6148_v20 = vmul.f32 0.33, %v5636_v49  ;;  %v5281_v8 = vadd.f32 %v12764_v0, %v12109_v36  ;;  %v5297_v54 = vadd.f32 %v12764_v0, %v12111_v26 }
 0x480   : > { %9365 = vmatpush1.bf16.msra.mxu1 %v9364_v45  ;;  %v9334_v17 = vpack.c.bf16 %v6402_v23, %v6386_v60  ;;  %v6388_v40 = vsel %vm5876_vm7, %v5620_v56, %v6132_v39  ;;  %v5283_v9 = vadd.f32 %v12780_v58, %v12109_v36  ;;  %v5299_v57 = vadd.f32 %v12780_v58, %v12111_v26 }
 0x481   : > { %v6404_v37 = vsel %vm5892_vm8, %v5636_v49, %v6148_v20  ;;  %v5617_v61 = vadd.f32 %v12514_v11, %v5281_v8  ;;  %v5633_v14 = vadd.f32 %v14772_v62, %v5297_v54  ;;  %v5314_v63 = vadd.f32 %v12770_v24, %v14773_v6 }
 0x482   : > { %9335 = vmatprep.subr.bf16.mxu0 %v9334_v17  ;;  %v9366_v13 = vpack.c.bf16 %v6404_v37, %v6388_v40  ;;  %v5619_v32 = vadd.f32 %v12514_v11, %v5283_v9  ;;  %v5635_v56 = vadd.f32 %v14772_v62, %v5299_v57  ;;  %v5330_v47 = vadd.f32 %v12770_v24, %v12244_v10 }
 0x483   : > { %vm5873_vm9 = vcmp.gt.f32.partialorder %v5617_v61, 0.0  ;;  %vm5889_vm10 = vcmp.gt.f32.partialorder %v5633_v14, 0.0  ;;  %v6129_v55 = vmul.f32 0.33, %v5617_v61  ;;  %v6145_v49 = vmul.f32 0.33, %v5633_v14 }
 0x484   : > { %9367 = vmatprep.subr.bf16.mxu1 %v9366_v13  ;;  %vm5875_vm11 = vcmp.gt.f32.partialorder %v5619_v32, 0.0  ;;  %vm5891_vm12 = vcmp.gt.f32.partialorder %v5635_v56, 0.0  ;;  %v6131_v48 = vmul.f32 0.33, %v5619_v32  ;;  %v6147_v59 = vmul.f32 0.33, %v5635_v56 }
 0x485   : > { %v6385_v45 = vsel %vm5873_vm9, %v5617_v61, %v6129_v55  ;;  %v6401_v60 = vsel %vm5889_vm10, %v5633_v14, %v6145_v49  ;;  %v5650_v39 = vadd.f32 %v12539_v19, %v5314_v63  ;;  %v5666_v23 = vadd.f32 %v12541_v34, %v5330_v47 }
 0x486   : > { %v9336_v20 = vpack.c.bf16 %v6401_v60, %v6385_v45  ;;  %v6387_v8 = vsel %vm5875_vm11, %v5619_v32, %v6131_v48  ;;  %v6403_v54 = vsel %vm5891_vm12, %v5635_v56, %v6147_v59  ;;  %v5316_v17 = vadd.f32 %v12786_v7, %v14773_v6 }
 0x487   : > { %v9368_v40 = vpack.c.bf16 %v6403_v54, %v6387_v8  ;;  %vm5906_vm13 = vcmp.gt.f32.partialorder %v5650_v39, 0.0  ;;  %vm5922_vm14 = vcmp.gt.f32.partialorder %v5666_v23, 0.0  ;;  %v6162_v9 = vmul.f32 0.33, %v5650_v39 }
 0x488   : > { %9337 = vmatpush1.bf16.msra.mxu0 %v9336_v20  ;;  %v6178_v57 = vmul.f32 0.33, %v5666_v23  ;;  %v5332_v37 = vadd.f32 %v12786_v7, %v12244_v10  ;;  %v5652_v61 = vadd.f32 %v12539_v19, %v5316_v17  ;;  %v5313_v14 = vadd.f32 %v12764_v0, %v14773_v6 }
 0x489   : > { %9369 = vmatpush1.bf16.msra.mxu1 %v9368_v40  ;;  %v6418_v63 = vsel %vm5906_vm13, %v5650_v39, %v6162_v9  ;;  %v5329_v13 = vadd.f32 %v12764_v0, %v12244_v10  ;;  %v5315_v32 = vadd.f32 %v12780_v58, %v14773_v6  ;;  %v5331_v56 = vadd.f32 %v12780_v58, %v12244_v10 }
 0x48a   : > { %v6434_v47 = vsel %vm5922_vm14, %v5666_v23, %v6178_v57  ;;  %v5668_v55 = vadd.f32 %v12541_v34, %v5332_v37  ;;  %vm5908_vm15 = vcmp.gt.f32.partialorder %v5652_v61, 0.0  ;;  %v6164_v49 = vmul.f32 0.33, %v5652_v61 }
 0x48b   : > { %v9338_v48 = vpack.c.bf16 %v6434_v47, %v6418_v63  ;;  %v5649_v59 = vadd.f32 %v12539_v19, %v5313_v14  ;;  %v5665_v45 = vadd.f32 %v12541_v34, %v5329_v13  ;;  %v5651_v60 = vadd.f32 %v12539_v19, %v5315_v32 }
 0x48c   : > { %vm5924_vm1 = vcmp.gt.f32.partialorder %v5668_v55, 0.0  ;;  %v6180_v39 = vmul.f32 0.33, %v5668_v55  ;;  %v6420_v20 = vsel %vm5908_vm15, %v5652_v61, %v6164_v49  ;;  %v5667_v8 = vadd.f32 %v12541_v34, %v5331_v56 }
 0x48d   : > { %9339 = vmatprep.subr.bf16.mxu0 %v9338_v48  ;;  %vm5905_vm2 = vcmp.gt.f32.partialorder %v5649_v59, 0.0  ;;  %vm5921_vm3 = vcmp.gt.f32.partialorder %v5665_v45, 0.0  ;;  %v6161_v23 = vmul.f32 0.33, %v5649_v59  ;;  %v6177_v54 = vmul.f32 0.33, %v5665_v45 }
 0x48e   : > { %v6436_v17 = vsel %vm5924_vm1, %v5668_v55, %v6180_v39  ;;  %vm5907_vm4 = vcmp.gt.f32.partialorder %v5651_v60, 0.0  ;;  %vm5923_vm5 = vcmp.gt.f32.partialorder %v5667_v8, 0.0  ;;  %v6163_v40 = vmul.f32 0.33, %v5651_v60 }
 0x48f   : > { %v9370_v9 = vpack.c.bf16 %v6436_v17, %v6420_v20  ;;  %v6417_v57 = vsel %vm5905_vm2, %v5649_v59, %v6161_v23  ;;  %v6433_v37 = vsel %vm5921_vm3, %v5665_v45, %v6177_v54  ;;  %v6179_v14 = vmul.f32 0.33, %v5667_v8 }
 0x490   : > { %v9340_v63 = vpack.c.bf16 %v6433_v37, %v6417_v57  ;;  %v6419_v13 = vsel %vm5907_vm4, %v5651_v60, %v6163_v40  ;;  %v5346_v61 = vadd.f32 %v12770_v24, %v12246_v35  ;;  %v5362_v32 = vadd.f32 %v12770_v24, %v12248_v44 }
 0x491   : > { %9371 = vmatprep.subr.bf16.mxu1 %v9370_v9  ;;  %v6435_v56 = vsel %vm5923_vm5, %v5667_v8, %v6179_v14  ;;  %v5348_v47 = vadd.f32 %v12786_v7, %v12246_v35  ;;  %v5364_v55 = vadd.f32 %v12786_v7, %v12248_v44  ;;  %v5345_v49 = vadd.f32 %v12764_v0, %v12246_v35 }
 0x492   : > { %9341 = vmatpush1.bf16.msra.mxu0 %v9340_v63  ;;  %v9372_v48 = vpack.c.bf16 %v6435_v56, %v6419_v13  ;;  %v5682_v59 = vadd.f32 %v12573_v30, %v5346_v61  ;;  %v5698_v45 = vadd.f32 %v12578_v15, %v5362_v32  ;;  %v5361_v24 = vadd.f32 %v12764_v0, %v12248_v44 }
 0x493   : > { %v5684_v60 = vadd.f32 %v12573_v30, %v5348_v47  ;;  %v5700_v39 = vadd.f32 %v12578_v15, %v5364_v55  ;;  %v5681_v20 = vadd.f32 %v12573_v30, %v5345_v49  ;;  %v5347_v7 = vadd.f32 %v12780_v58, %v12246_v35 }
 0x494   : > { %9373 = vmatpush1.bf16.msra.mxu1 %v9372_v48  ;;  %vm5938_vm6 = vcmp.gt.f32.partialorder %v5682_v59, 0.0  ;;  %vm5954_vm7 = vcmp.gt.f32.partialorder %v5698_v45, 0.0  ;;  %v6194_v8 = vmul.f32 0.33, %v5682_v59  ;;  %v6210_v23 = vmul.f32 0.33, %v5698_v45 }
 0x495   : > { %vm5940_vm8 = vcmp.gt.f32.partialorder %v5684_v60, 0.0  ;;  %vm5956_vm9 = vcmp.gt.f32.partialorder %v5700_v39, 0.0  ;;  %v6196_v54 = vmul.f32 0.33, %v5684_v60  ;;  %v6212_v17 = vmul.f32 0.33, %v5700_v39 }
 0x496   : > { %v6450_v40 = vsel %vm5938_vm6, %v5682_v59, %v6194_v8  ;;  %v6466_v0 = vsel %vm5954_vm7, %v5698_v45, %v6210_v23  ;;  %v5697_v9 = vadd.f32 %v12578_v15, %v5361_v24  ;;  %vm5937_vm10 = vcmp.gt.f32.partialorder %v5681_v20, 0.0 }
 0x497   : > { %v9342_v57 = vpack.c.bf16 %v6466_v0, %v6450_v40  ;;  %v6452_v37 = vsel %vm5940_vm8, %v5684_v60, %v6196_v54  ;;  %v6468_v14 = vsel %vm5956_vm9, %v5700_v39, %v6212_v17  ;;  %v6193_v63 = vmul.f32 0.33, %v5681_v20 }
 0x498   : > { %v9374_v13 = vpack.c.bf16 %v6468_v14, %v6452_v37  ;;  %vm5953_vm11 = vcmp.gt.f32.partialorder %v5697_v9, 0.0  ;;  %v6209_v61 = vmul.f32 0.33, %v5697_v9  ;;  %v5363_v32 = vadd.f32 %v12780_v58, %v12248_v44  ;;  %v13095_v14 = vld [vmem:[%s14021_s4] sm:$0xff] }
 0x499   : > { %9343 = vmatprep.subr.bf16.mxu0 %v9342_v57  ;;  %v6449_v56 = vsel %vm5937_vm10, %v5681_v20, %v6193_v63  ;;  %v5683_v47 = vadd.f32 %v12573_v30, %v5347_v7  ;;  %v5126_v55 = vadd.f32 %v12956_v4, %v12043_v5  ;;  %v5142_v49 = vadd.f32 %v12956_v4, %v12051_v16 }
 0x49a   : > { %9375 = vmatprep.subr.bf16.mxu1 %v9374_v13  ;;  %v6465_v48 = vsel %vm5953_vm11, %v5697_v9, %v6209_v61  ;;  %v5699_v59 = vadd.f32 %v12578_v15, %v5363_v32  ;;  %v5128_v45 = vadd.f32 %v12963_v52, %v12043_v5  ;;  %v5144_v58 = vadd.f32 %v12963_v52, %v12051_v16 }
 0x49b   : > { %v9344_v24 = vpack.c.bf16 %v6465_v48, %v6449_v56  ;;  %vm5939_vm12 = vcmp.gt.f32.partialorder %v5683_v47, 0.0  ;;  %v6195_v60 = vmul.f32 0.33, %v5683_v47  ;;  %v5462_v39 = vadd.f32 %v12345_v12, %v5126_v55 }
 0x49c   : > { %vm5955_vm13 = vcmp.gt.f32.partialorder %v5699_v59, 0.0  ;;  %v6211_v20 = vmul.f32 0.33, %v5699_v59  ;;  %v5478_v7 = vadd.f32 %v12347_v22, %v5142_v49  ;;  %v5464_v8 = vadd.f32 %v12345_v12, %v5128_v45 }
 0x49d   : > { %9345 = vmatpush1.bf16.msra.mxu0 %v9344_v24  ;;  %v6451_v23 = vsel %vm5939_vm12, %v5683_v47, %v6195_v60  ;;  %vm5718_vm14 = vcmp.gt.f32.partialorder %v5462_v39, 0.0  ;;  %v5974_v54 = vmul.f32 0.33, %v5462_v39  ;;  %v5480_v17 = vadd.f32 %v12347_v22, %v5144_v58 }
 0x49e   : > { %v6467_v40 = vsel %vm5955_vm13, %v5699_v59, %v6211_v20  ;;  %vm5734_vm15 = vcmp.gt.f32.partialorder %v5478_v7, 0.0  ;;  %v5990_v0 = vmul.f32 0.33, %v5478_v7  ;;  %vm5720_vm1 = vcmp.gt.f32.partialorder %v5464_v8, 0.0 }
 0x49f   : > { %v9376_v9 = vpack.c.bf16 %v6467_v40, %v6451_v23  ;;  %v6230_v57 = vsel %vm5718_vm14, %v5462_v39, %v5974_v54  ;;  %vm5736_vm2 = vcmp.gt.f32.partialorder %v5480_v17, 0.0  ;;  %v5976_v37 = vmul.f32 0.33, %v5464_v8 }
 0x4a0   : > { %6984 = vmatmul.mubr.f32.vlgmr.msra.gmra.mrb[54].mxu0 %v13095_v14  ;;  %v6246_v63 = vsel %vm5734_vm15, %v5478_v7, %v5990_v0  ;;  %v5992_v13 = vmul.f32 0.33, %v5480_v17  ;;  %v5125_v61 = vadd.f32 %v12948_v3, %v12043_v5  ;;  %v5141_v32 = vadd.f32 %v12948_v3, %v12051_v16  ;;  %v13119_v7 = vld [vmem:[%s14021_s4 + $0x8] sm:$0xff] }
 0x4a1   : > { %9377 = vmatpush1.bf16.msra.mxu1 %v9376_v9  ;;  %v9378_v56 = vpack.c.bf16 %v6246_v63, %v6230_v57  ;;  %v6232_v47 = vsel %vm5720_vm1, %v5464_v8, %v5976_v37  ;;  %v5127_v55 = vadd.f32 %v12954_v46, %v12043_v5  ;;  %v5143_v49 = vadd.f32 %v12954_v46, %v12051_v16 }
 0x4a2   : > { %v6248_v48 = vsel %vm5736_vm2, %v5480_v17, %v5992_v13  ;;  %v5461_v59 = vadd.f32 %v12345_v12, %v5125_v61  ;;  %v5477_v45 = vadd.f32 %v12347_v22, %v5141_v32  ;;  %v5158_v58 = vadd.f32 %v12956_v4, %v12083_v2  ;;  %6989 = vmatprep.mubr.f32.mxu0 %v14363_v31  ;;  %v13132_v13 = vld [vmem:[%s14021_s4 + $0x10] sm:$0xff] }
 0x4a3   : > { %9379 = vmatprep.subr.bf16.mxu0 %v9378_v56  ;;  %v9410_v24 = vpack.c.bf16 %v6248_v48, %v6232_v47  ;;  %v5463_v60 = vadd.f32 %v12345_v12, %v5127_v55  ;;  %v5479_v39 = vadd.f32 %v12347_v22, %v5143_v49  ;;  %v5174_v5 = vadd.f32 %v12956_v4, %v12089_v1 }
 0x4a4   : > { %7085 = vmatmul.mubr.f32.vlgmr.msra.gmra.mrb[58].mxu1 %v13095_v14  ;;  %vm5717_vm3 = vcmp.gt.f32.partialorder %v5461_v59, 0.0  ;;  %vm5733_vm4 = vcmp.gt.f32.partialorder %v5477_v45, 0.0  ;;  %v5973_v16 = vmul.f32 0.33, %v5461_v59  ;;  %v5989_v20 = vmul.f32 0.33, %v5477_v45  ;;  %6990 = vmatmul.mubr.f32.gmra.mrb[56].mxu0 %v13119_v7 }
 0x4a5   : > { %9411 = vmatprep.subr.bf16.mxu1 %v9410_v24  ;;  %vm5719_vm5 = vcmp.gt.f32.partialorder %v5463_v60, 0.0  ;;  %vm5735_vm6 = vcmp.gt.f32.partialorder %v5479_v39, 0.0  ;;  %v5975_v12 = vmul.f32 0.33, %v5463_v60  ;;  %v5991_v22 = vmul.f32 0.33, %v5479_v39  ;;  %7090 = vmatprep.mubr.f32.mxu1 %v14363_v31 }
 0x4a6   : > { %v6229_v8 = vsel %vm5717_vm3, %v5461_v59, %v5973_v16  ;;  %v6245_v23 = vsel %vm5733_vm4, %v5477_v45, %v5989_v20  ;;  %v5494_v54 = vadd.f32 %v12362_v50, %v5158_v58  ;;  %v5510_v17 = vadd.f32 %v12364_v41, %v5174_v5  ;;  %6995 = vmatprep.mubr.f32.mxu0 %v14363_v31 }
 0x4a7   : > { %v9380_v40 = vpack.c.bf16 %v6245_v23, %v6229_v8  ;;  %v6231_v0 = vsel %vm5719_vm5, %v5463_v60, %v5975_v12  ;;  %v6247_v9 = vsel %vm5735_vm6, %v5479_v39, %v5991_v22  ;;  %v5160_v57 = vadd.f32 %v12963_v52, %v12083_v2  ;;  %v13159_v12 = vld [vmem:[%s14021_s4 + $0x18] sm:$0xff] }
 0x4a8   : > { %v9412_v37 = vpack.c.bf16 %v6247_v9, %v6231_v0  ;;  %vm5750_vm7 = vcmp.gt.f32.partialorder %v5494_v54, 0.0  ;;  %vm5766_vm8 = vcmp.gt.f32.partialorder %v5510_v17, 0.0  ;;  %v6006_v63 = vmul.f32 0.33, %v5494_v54  ;;  %7091 = vmatmul.mubr.f32.gmra.mrb[60].mxu1 %v13119_v7  ;;  %6996 = vmatmul.mubr.f32.gmra.mrb[58].mxu0 %v13132_v13 }
 0x4a9   : > { %9381 = vmatpush1.bf16.msra.mxu0 %v9380_v40  ;;  %v6022_v61 = vmul.f32 0.33, %v5510_v17  ;;  %v5176_v32 = vadd.f32 %v12963_v52, %v12089_v1  ;;  %v5496_v56 = vadd.f32 %v12362_v50, %v5160_v57  ;;  %v5157_v47 = vadd.f32 %v12948_v3, %v12083_v2  ;;  %7096 = vmatprep.mubr.f32.mxu1 %v14363_v31 }
 0x4aa   : > { %9413 = vmatpush1.bf16.msra.mxu1 %v9412_v37  ;;  %v6262_v55 = vsel %vm5750_vm7, %v5494_v54, %v6006_v63  ;;  %v5173_v49 = vadd.f32 %v12948_v3, %v12089_v1  ;;  %v5159_v48 = vadd.f32 %v12954_v46, %v12083_v2  ;;  %v5175_v59 = vadd.f32 %v12954_v46, %v12089_v1 }
 0x4ab   : > { %v6278_v45 = vsel %vm5766_vm8, %v5510_v17, %v6022_v61  ;;  %v5512_v58 = vadd.f32 %v12364_v41, %v5176_v32  ;;  %vm5752_vm9 = vcmp.gt.f32.partialorder %v5496_v56, 0.0  ;;  %v6008_v24 = vmul.f32 0.33, %v5496_v56  ;;  %7001 = vmatprep.mubr.f32.mxu0 %v14363_v31 }
 0x4ac   : > { %v9382_v60 = vpack.c.bf16 %v6278_v45, %v6262_v55  ;;  %v5493_v39 = vadd.f32 %v12362_v50, %v5157_v47  ;;  %v5509_v5 = vadd.f32 %v12364_v41, %v5173_v49  ;;  %v5495_v16 = vadd.f32 %v12362_v50, %v5159_v48  ;;  %7097 = vmatmul.mubr.f32.gmra.mrb[62].mxu1 %v13132_v13 }
 0x4ad   : > { %vm5768_vm10 = vcmp.gt.f32.partialorder %v5512_v58, 0.0  ;;  %v6024_v2 = vmul.f32 0.33, %v5512_v58  ;;  %v6264_v1 = vsel %vm5752_vm9, %v5496_v56, %v6008_v24  ;;  %v5511_v20 = vadd.f32 %v12364_v41, %v5175_v59  ;;  %7102 = vmatprep.mubr.f32.mxu1 %v14363_v31  ;;  %7002 = vmatmul.mubr.f32.gmra.mrb[60].mxu0 %v13159_v12 }
 0x4ae   : > { %9383 = vmatprep.subr.bf16.mxu0 %v9382_v60  ;;  %vm5749_vm11 = vcmp.gt.f32.partialorder %v5493_v39, 0.0  ;;  %vm5765_vm12 = vcmp.gt.f32.partialorder %v5509_v5, 0.0  ;;  %v6005_v50 = vmul.f32 0.33, %v5493_v39  ;;  %v6021_v22 = vmul.f32 0.33, %v5509_v5  ;;  %7007 = vmatprep.mubr.f32.mxu0 %v14363_v31 }
 0x4af   : > { %v6280_v8 = vsel %vm5768_vm10, %v5512_v58, %v6024_v2  ;;  %vm5751_vm13 = vcmp.gt.f32.partialorder %v5495_v16, 0.0  ;;  %vm5767_vm14 = vcmp.gt.f32.partialorder %v5511_v20, 0.0  ;;  %v6007_v41 = vmul.f32 0.33, %v5495_v16  ;;  %v13187_v60 = vld [vmem:[%s14021_s4 + $0x20] sm:$0xff] }
 0x4b0   : > { %v9414_v23 = vpack.c.bf16 %v6280_v8, %v6264_v1  ;;  %v6261_v54 = vsel %vm5749_vm11, %v5493_v39, %v6005_v50  ;;  %v6277_v17 = vsel %vm5765_vm12, %v5509_v5, %v6021_v22  ;;  %v6023_v40 = vmul.f32 0.33, %v5511_v20  ;;  %7103 = vmatmul.mubr.f32.gmra.mrb[64].mxu1 %v13159_v12 }
 0x4b1   : > { %v9384_v0 = vpack.c.bf16 %v6277_v17, %v6261_v54  ;;  %v6263_v9 = vsel %vm5751_vm13, %v5495_v16, %v6007_v41  ;;  %v5190_v57 = vadd.f32 %v12956_v4, %v12091_v18  ;;  %v5206_v37 = vadd.f32 %v12956_v4, %v12097_v53  ;;  %7108 = vmatprep.mubr.f32.mxu1 %v14363_v31 }
 0x4b2   : > { %9415 = vmatprep.subr.bf16.mxu1 %v9414_v23  ;;  %v6279_v63 = vsel %vm5767_vm14, %v5511_v20, %v6023_v40  ;;  %v5192_v61 = vadd.f32 %v12963_v52, %v12091_v18  ;;  %v5208_v32 = vadd.f32 %v12963_v52, %v12097_v53  ;;  %v5189_v56 = vadd.f32 %v12948_v3, %v12091_v18  ;;  %v13197_v23 = vld [vmem:[%s14021_s4 + $0x28] sm:$0xff] }
 0x4b3   : > { %9385 = vmatpush1.bf16.msra.mxu0 %v9384_v0  ;;  %v9416_v47 = vpack.c.bf16 %v6279_v63, %v6263_v9  ;;  %v5526_v55 = vadd.f32 %v12428_v21, %v5190_v57  ;;  %v5542_v49 = vadd.f32 %v12430_v25, %v5206_v37  ;;  %v5205_v48 = vadd.f32 %v12948_v3, %v12097_v53 }
 0x4b4   : > { %v5528_v59 = vadd.f32 %v12428_v21, %v5192_v61  ;;  %v5544_v45 = vadd.f32 %v12430_v25, %v5208_v32  ;;  %v5525_v58 = vadd.f32 %v12428_v21, %v5189_v56  ;;  %v5191_v24 = vadd.f32 %v12954_v46, %v12091_v18  ;;  %7008 = vmatmul.mubr.f32.gmra.mrb[62].mxu0 %v13187_v60 }
 0x4b5   : > { %9417 = vmatpush1.bf16.msra.mxu1 %v9416_v47  ;;  %vm5782_vm15 = vcmp.gt.f32.partialorder %v5526_v55, 0.0  ;;  %vm5798_vm1 = vcmp.gt.f32.partialorder %v5542_v49, 0.0  ;;  %v6038_v39 = vmul.f32 0.33, %v5526_v55  ;;  %v6054_v5 = vmul.f32 0.33, %v5542_v49  ;;  %7013 = vmatprep.mubr.f32.mxu0 %v14363_v31 }
 0x4b6   : > { %vm5784_vm2 = vcmp.gt.f32.partialorder %v5528_v59, 0.0  ;;  %vm5800_vm3 = vcmp.gt.f32.partialorder %v5544_v45, 0.0  ;;  %v6040_v16 = vmul.f32 0.33, %v5528_v59  ;;  %v6056_v2 = vmul.f32 0.33, %v5544_v45  ;;  %7109 = vmatmul.mubr.f32.gmra.mrb[66].mxu1 %v13187_v60 }
 0x4b7   : > { %v6294_v18 = vsel %vm5782_vm15, %v5526_v55, %v6038_v39  ;;  %v6310_v1 = vsel %vm5798_vm1, %v5542_v49, %v6054_v5  ;;  %v5541_v20 = vadd.f32 %v12430_v25, %v5205_v48  ;;  %vm5781_vm4 = vcmp.gt.f32.partialorder %v5525_v58, 0.0  ;;  %7114 = vmatprep.mubr.f32.mxu1 %v14363_v31 }
 0x4b8   : > { %v9386_v50 = vpack.c.bf16 %v6310_v1, %v6294_v18  ;;  %v6296_v22 = vsel %vm5784_vm2, %v5528_v59, %v6040_v16  ;;  %v6312_v8 = vsel %vm5800_vm3, %v5544_v45, %v6056_v2  ;;  %v6037_v41 = vmul.f32 0.33, %v5525_v58  ;;  %7014 = vmatmul.mubr.f32.gmra.mrb[64].mxu0 %v13197_v23 }
 0x4b9   : > { %v9418_v54 = vpack.c.bf16 %v6312_v8, %v6296_v22  ;;  %vm5797_vm5 = vcmp.gt.f32.partialorder %v5541_v20, 0.0  ;;  %v6053_v17 = vmul.f32 0.33, %v5541_v20  ;;  %v5207_v40 = vadd.f32 %v12954_v46, %v12097_v53  ;;  %7185 = vmatprep.mubr.f32.mxu0 %v14363_v31 }
 0x4ba   : > { %9387 = vmatprep.subr.bf16.mxu0 %v9386_v50  ;;  %v6293_v0 = vsel %vm5781_vm4, %v5525_v58, %v6037_v41  ;;  %v5527_v9 = vadd.f32 %v12428_v21, %v5191_v24  ;;  %v5222_v57 = vadd.f32 %v12956_v4, %v14768_v27  ;;  %v5238_v37 = vadd.f32 %v12956_v4, %v12103_v38 }
 0x4bb   : > { %9419 = vmatprep.subr.bf16.mxu1 %v9418_v54  ;;  %v6309_v63 = vsel %vm5797_vm5, %v5541_v20, %v6053_v17  ;;  %v5543_v61 = vadd.f32 %v12430_v25, %v5207_v40  ;;  %v5224_v32 = vadd.f32 %v12963_v52, %v14768_v27  ;;  %v5240_v53 = vadd.f32 %v12963_v52, %v12103_v38 }
 0x4bc   : > { %v9388_v56 = vpack.c.bf16 %v6309_v63, %v6293_v0  ;;  %vm5783_vm6 = vcmp.gt.f32.partialorder %v5527_v9, 0.0  ;;  %v6039_v47 = vmul.f32 0.33, %v5527_v9  ;;  %v5558_v21 = vadd.f32 %v12453_v28, %v5222_v57  ;;  %7115 = vmatmul.mubr.f32.gmra.mrb[68].mxu1 %v13197_v23 }
 0x4bd   : > { %vm5799_vm7 = vcmp.gt.f32.partialorder %v5543_v61, 0.0  ;;  %v6055_v55 = vmul.f32 0.33, %v5543_v61  ;;  %v5574_v49 = vadd.f32 %v12455_v51, %v5238_v37  ;;  %v5560_v48 = vadd.f32 %v12453_v28, %v5224_v32  ;;  %7286 = vmatprep.mubr.f32.mxu1 %v14363_v31 }
 0x4be   : > { %9389 = vmatpush1.bf16.msra.mxu0 %v9388_v56  ;;  %v6295_v25 = vsel %vm5783_vm6, %v5527_v9, %v6039_v47  ;;  %vm5814_vm8 = vcmp.gt.f32.partialorder %v5558_v21, 0.0  ;;  %v6070_v59 = vmul.f32 0.33, %v5558_v21  ;;  %v5576_v45 = vadd.f32 %v12455_v51, %v5240_v53 }
 0x4bf   : > { %v6311_v58 = vsel %vm5799_vm7, %v5543_v61, %v6055_v55  ;;  %vm5830_vm9 = vcmp.gt.f32.partialorder %v5574_v49, 0.0  ;;  %v6086_v24 = vmul.f32 0.33, %v5574_v49  ;;  %vm5816_vm10 = vcmp.gt.f32.partialorder %v5560_v48, 0.0 }
 0x4c0   : > { %v9420_v39 = vpack.c.bf16 %v6311_v58, %v6295_v25  ;;  %v6326_v5 = vsel %vm5814_vm8, %v5558_v21, %v6070_v59  ;;  %vm5832_vm11 = vcmp.gt.f32.partialorder %v5576_v45, 0.0  ;;  %v6072_v16 = vmul.f32 0.33, %v5560_v48 }
 0x4c1   : > { %v6342_v2 = vsel %vm5830_vm9, %v5574_v49, %v6086_v24  ;;  %v6088_v18 = vmul.f32 0.33, %v5576_v45  ;;  %v5221_v1 = vadd.f32 %v12948_v3, %v14768_v27  ;;  %v5237_v20 = vadd.f32 %v12948_v3, %v12103_v38 }
 0x4c2   : > { %9421 = vmatpush1.bf16.msra.mxu1 %v9420_v39  ;;  %v9390_v50 = vpack.c.bf16 %v6342_v2, %v6326_v5  ;;  %v6328_v22 = vsel %vm5816_vm10, %v5560_v48, %v6072_v16  ;;  %v5223_v8 = vadd.f32 %v12954_v46, %v14768_v27  ;;  %v5239_v41 = vadd.f32 %v12954_v46, %v12103_v38 }
 0x4c3   : > { %v6344_v54 = vsel %vm5832_vm11, %v5576_v45, %v6088_v18  ;;  %v5557_v17 = vadd.f32 %v12453_v28, %v5221_v1  ;;  %v5573_v40 = vadd.f32 %v12455_v51, %v5237_v20  ;;  %v5254_v0 = vadd.f32 %v12956_v4, %v12105_v33  ;;  %v13231_v9 = vpop.f32.mrb[30].mxu0 }
 0x4c4   : > { %9391 = vmatprep.subr.bf16.mxu0 %v9390_v50  ;;  %v9422_v57 = vpack.c.bf16 %v6344_v54, %v6328_v22  ;;  %v5559_v37 = vadd.f32 %v12453_v28, %v5223_v8  ;;  %v5575_v63 = vadd.f32 %v12455_v51, %v5239_v41  ;;  %v5270_v27 = vadd.f32 %v12956_v4, %v12107_v29  ;;  %v13237_v38 = vpop.f32.mrb[31].mxu0 }
 0x4c5   : > { %vm5813_vm12 = vcmp.gt.f32.partialorder %v5557_v17, 0.0  ;;  %vm5829_vm13 = vcmp.gt.f32.partialorder %v5573_v40, 0.0  ;;  %v6069_v61 = vmul.f32 0.33, %v5557_v17  ;;  %v6085_v32 = vmul.f32 0.33, %v5573_v40 }
 0x4c6   : > { %9423 = vmatprep.subr.bf16.mxu1 %v9422_v57  ;;  %vm5815_vm14 = vcmp.gt.f32.partialorder %v5559_v37, 0.0  ;;  %vm5831_vm15 = vcmp.gt.f32.partialorder %v5575_v63, 0.0  ;;  %v6071_v53 = vmul.f32 0.33, %v5559_v37  ;;  %v6087_v56 = vmul.f32 0.33, %v5575_v63 }
 0x4c7   : > { %v6325_v47 = vsel %vm5813_vm12, %v5557_v17, %v6069_v61  ;;  %v6341_v21 = vsel %vm5829_vm13, %v5573_v40, %v6085_v32  ;;  %v5590_v28 = vadd.f32 %v14770_v43, %v5254_v0  ;;  %v5606_v51 = vadd.f32 %v14771_v42, %v5270_v27  ;;  %v13241_v55 = vpop.f32.mrb[34].mxu1 }
 0x4c8   : > { %v9392_v49 = vpack.c.bf16 %v6341_v21, %v6325_v47  ;;  %v6327_v48 = vsel %vm5815_vm14, %v5559_v37, %v6071_v53  ;;  %v6343_v25 = vsel %vm5831_vm15, %v5575_v63, %v6087_v56  ;;  %v5256_v59 = vadd.f32 %v12963_v52, %v12105_v33  ;;  %v13245_v45 = vpop.f32.mrb[35].mxu1 }
 0x4c9   : > { %v9424_v58 = vpack.c.bf16 %v6343_v25, %v6327_v48  ;;  %vm5846_vm1 = vcmp.gt.f32.partialorder %v5590_v28, 0.0  ;;  %vm5862_vm2 = vcmp.gt.f32.partialorder %v5606_v51, 0.0  ;;  %v6102_v24 = vmul.f32 0.33, %v5590_v28  ;;  %v13247_v39 = vpop.f32.mrb[32].mxu0  ;;  %v13249_v5 = vpop.f32.mrb[36].mxu1 }
 0x4ca   : > { %9393 = vmatpush1.bf16.msra.mxu0 %v9392_v49  ;;  %v6118_v16 = vmul.f32 0.33, %v5606_v51  ;;  %v5272_v2 = vadd.f32 %v12963_v52, %v12107_v29  ;;  %v5592_v18 = vadd.f32 %v14770_v43, %v5256_v59  ;;  %v5253_v1 = vadd.f32 %v12948_v3, %v12105_v33  ;;  %v13256_v20 = vpop.f32.mrb[33].mxu0  ;;  %v13258_v50 = vpop.f32.mrb[37].mxu1 }
 0x4cb   : > { %9425 = vmatpush1.bf16.msra.mxu1 %v9424_v58  ;;  %v6358_v22 = vsel %vm5846_vm1, %v5590_v28, %v6102_v24  ;;  %v5269_v8 = vadd.f32 %v12948_v3, %v12107_v29  ;;  %v5255_v41 = vadd.f32 %v12954_v46, %v12105_v33  ;;  %v5271_v54 = vadd.f32 %v12954_v46, %v12107_v29 }
 0x4cc   : > { %v6374_v17 = vsel %vm5862_vm2, %v5606_v51, %v6118_v16  ;;  %v5608_v40 = vadd.f32 %v14771_v42, %v5272_v2  ;;  %vm5848_vm3 = vcmp.gt.f32.partialorder %v5592_v18, 0.0  ;;  %v6104_v0 = vmul.f32 0.33, %v5592_v18 }
 0x4cd   : > { %v9394_v57 = vpack.c.bf16 %v6374_v17, %v6358_v22  ;;  %v5589_v37 = vadd.f32 %v14770_v43, %v5253_v1  ;;  %v5605_v63 = vadd.f32 %v14771_v42, %v5269_v8  ;;  %v5591_v27 = vadd.f32 %v14770_v43, %v5255_v41  ;;  %v13271_v61 = vpop.f32.mrb[34].mxu0  ;;  %v13273_v32 = vpop.f32.mrb[38].mxu1 }
 0x4ce   : > { %vm5864_vm4 = vcmp.gt.f32.partialorder %v5608_v40, 0.0  ;;  %v6120_v33 = vmul.f32 0.33, %v5608_v40  ;;  %v6360_v29 = vsel %vm5848_vm3, %v5592_v18, %v6104_v0  ;;  %v5607_v53 = vadd.f32 %v14771_v42, %v5271_v54  ;;  %v13276_v56 = vpop.f32.mrb[35].mxu0  ;;  %v13278_v47 = vpop.f32.mrb[39].mxu1 }
 0x4cf   : > { %9395 = vmatprep.subr.bf16.mxu0 %v9394_v57  ;;  %vm5845_vm5 = vcmp.gt.f32.partialorder %v5589_v37, 0.0  ;;  %vm5861_vm6 = vcmp.gt.f32.partialorder %v5605_v63, 0.0  ;;  %v6101_v21 = vmul.f32 0.33, %v5589_v37  ;;  %v6117_v28 = vmul.f32 0.33, %v5605_v63 }
 0x4d0   : > { %v6376_v51 = vsel %vm5864_vm4, %v5608_v40, %v6120_v33  ;;  %vm5847_vm7 = vcmp.gt.f32.partialorder %v5591_v27, 0.0  ;;  %vm5863_vm8 = vcmp.gt.f32.partialorder %v5607_v53, 0.0  ;;  %v6103_v43 = vmul.f32 0.33, %v5591_v27 }
 0x4d1   : > { %v9426_v49 = vpack.c.bf16 %v6376_v51, %v6360_v29  ;;  %v6357_v48 = vsel %vm5845_vm5, %v5589_v37, %v6101_v21  ;;  %v6373_v25 = vsel %vm5861_vm6, %v5605_v63, %v6117_v28  ;;  %v6119_v59 = vmul.f32 0.33, %v5607_v53 }
 0x4d2   : > { %v9396_v58 = vpack.c.bf16 %v6373_v25, %v6357_v48  ;;  %v6359_v24 = vsel %vm5847_vm7, %v5591_v27, %v6103_v43  ;;  %v5286_v42 = vadd.f32 %v12956_v4, %v12109_v36  ;;  %v5302_v16 = vadd.f32 %v12956_v4, %v12111_v26  ;;  %v13284_v2 = vpop.f32.mrb[36].mxu0  ;;  %v13286_v18 = vpop.f32.mrb[40].mxu1 }
 0x4d3   : > { %9427 = vmatprep.subr.bf16.mxu1 %v9426_v49  ;;  %v6375_v1 = vsel %vm5863_vm8, %v5607_v53, %v6119_v59  ;;  %v5288_v22 = vadd.f32 %v12963_v52, %v12109_v36  ;;  %v5304_v8 = vadd.f32 %v12963_v52, %v12111_v26  ;;  %v5285_v41 = vadd.f32 %v12948_v3, %v12109_v36  ;;  %v13294_v54 = vpop.f32.mrb[37].mxu0  ;;  %v13296_v17 = vpop.f32.mrb[41].mxu1 }
 0x4d4   : > { %9397 = vmatpush1.bf16.msra.mxu0 %v9396_v58  ;;  %v9428_v40 = vpack.c.bf16 %v6375_v1, %v6359_v24  ;;  %v5622_v0 = vadd.f32 %v12514_v11, %v5286_v42  ;;  %v5638_v57 = vadd.f32 %v14772_v62, %v5302_v16  ;;  %v5301_v37 = vadd.f32 %v12948_v3, %v12111_v26 }
 0x4d5   : > { %v5624_v63 = vadd.f32 %v12514_v11, %v5288_v22  ;;  %v5640_v27 = vadd.f32 %v14772_v62, %v5304_v8  ;;  %v5621_v33 = vadd.f32 %v12514_v11, %v5285_v41  ;;  %v5287_v29 = vadd.f32 %v12954_v46, %v12109_v36 }
 0x4d6   : > { %9429 = vmatpush1.bf16.msra.mxu1 %v9428_v40  ;;  %vm5878_vm9 = vcmp.gt.f32.partialorder %v5622_v0, 0.0  ;;  %vm5894_vm10 = vcmp.gt.f32.partialorder %v5638_v57, 0.0  ;;  %v6134_v53 = vmul.f32 0.33, %v5622_v0  ;;  %v6150_v21 = vmul.f32 0.33, %v5638_v57 }
 0x4d7   : > { %vm5880_vm11 = vcmp.gt.f32.partialorder %v5624_v63, 0.0  ;;  %vm5896_vm12 = vcmp.gt.f32.partialorder %v5640_v27, 0.0  ;;  %v6136_v28 = vmul.f32 0.33, %v5624_v63  ;;  %v6152_v51 = vmul.f32 0.33, %v5640_v27 }
 0x4d8   : > { %v6390_v43 = vsel %vm5878_vm9, %v5622_v0, %v6134_v53  ;;  %v6406_v49 = vsel %vm5894_vm10, %v5638_v57, %v6150_v21  ;;  %v5637_v48 = vadd.f32 %v14772_v62, %v5301_v37  ;;  %vm5877_vm13 = vcmp.gt.f32.partialorder %v5621_v33, 0.0  ;;  %v13308_v25 = vpop.f32.mrb[38].mxu0  ;;  %v13310_v59 = vpop.f32.mrb[42].mxu1 }
 0x4d9   : > { %v9398_v58 = vpack.c.bf16 %v6406_v49, %v6390_v43  ;;  %v6392_v36 = vsel %vm5880_vm11, %v5624_v63, %v6136_v28  ;;  %v6408_v24 = vsel %vm5896_vm12, %v5640_v27, %v6152_v51  ;;  %v6133_v42 = vmul.f32 0.33, %v5621_v33  ;;  %v13312_v16 = vpop.f32.mrb[39].mxu0  ;;  %v13314_v1 = vpop.f32.mrb[43].mxu1 }
 0x4da   : > { %v9430_v22 = vpack.c.bf16 %v6408_v24, %v6392_v36  ;;  %vm5893_vm14 = vcmp.gt.f32.partialorder %v5637_v48, 0.0  ;;  %v6149_v8 = vmul.f32 0.33, %v5637_v48  ;;  %v5303_v41 = vadd.f32 %v12954_v46, %v12111_v26  ;;  %v13318_v40 = vpop.f32.mrb[40].mxu0 }
 0x4db   : > { %9399 = vmatprep.subr.bf16.mxu0 %v9398_v58  ;;  %v6389_v0 = vsel %vm5877_vm13, %v5621_v33, %v6133_v42  ;;  %v5623_v57 = vadd.f32 %v12514_v11, %v5287_v29  ;;  %v5318_v37 = vadd.f32 %v12956_v4, %v14773_v6  ;;  %v5334_v63 = vadd.f32 %v12956_v4, %v12244_v10  ;;  %v13325_v27 = vpop.f32.mrb[44].mxu1  ;;  %v13327_v53 = vpop.f32.mrb[41].mxu0 }
 0x4dc   : > { %9431 = vmatprep.subr.bf16.mxu1 %v9430_v22  ;;  %v6405_v21 = vsel %vm5893_vm14, %v5637_v48, %v6149_v8  ;;  %v5639_v26 = vadd.f32 %v14772_v62, %v5303_v41  ;;  %v5320_v28 = vadd.f32 %v12963_v52, %v14773_v6  ;;  %v5336_v11 = vadd.f32 %v12963_v52, %v12244_v10  ;;  %v13334_v33 = vpop.f32.mrb[45].mxu1 }
 0x4dd   : > { %v9400_v29 = vpack.c.bf16 %v6405_v21, %v6389_v0  ;;  %vm5879_vm15 = vcmp.gt.f32.partialorder %v5623_v57, 0.0  ;;  %v6135_v51 = vmul.f32 0.33, %v5623_v57  ;;  %v5654_v43 = vadd.f32 %v12539_v19, %v5318_v37 }
 0x4de   : > { %vm5895_vm1 = vcmp.gt.f32.partialorder %v5639_v26, 0.0  ;;  %v6151_v49 = vmul.f32 0.33, %v5639_v26  ;;  %v5670_v58 = vadd.f32 %v12541_v34, %v5334_v63  ;;  %v5656_v48 = vadd.f32 %v12539_v19, %v5320_v28 }
 0x4df   : > { %9401 = vmatpush1.bf16.msra.mxu0 %v9400_v29  ;;  %v6391_v62 = vsel %vm5879_vm15, %v5623_v57, %v6135_v51  ;;  %vm5910_vm2 = vcmp.gt.f32.partialorder %v5654_v43, 0.0  ;;  %v6166_v36 = vmul.f32 0.33, %v5654_v43  ;;  %v5672_v24 = vadd.f32 %v12541_v34, %v5336_v11 }
 0x4e0   : > { %v6407_v42 = vsel %vm5895_vm1, %v5639_v26, %v6151_v49  ;;  %vm5926_vm3 = vcmp.gt.f32.partialorder %v5670_v58, 0.0  ;;  %v6182_v22 = vmul.f32 0.33, %v5670_v58  ;;  %vm5912_vm4 = vcmp.gt.f32.partialorder %v5656_v48, 0.0 }
 0x4e1   : > { %v9432_v8 = vpack.c.bf16 %v6407_v42, %v6391_v62  ;;  %v6422_v41 = vsel %vm5910_vm2, %v5654_v43, %v6166_v36  ;;  %vm5928_vm5 = vcmp.gt.f32.partialorder %v5672_v24, 0.0  ;;  %v6168_v0 = vmul.f32 0.33, %v5656_v48 }
 0x4e2   : > { %v6438_v37 = vsel %vm5926_vm3, %v5670_v58, %v6182_v22  ;;  %v6184_v21 = vmul.f32 0.33, %v5672_v24  ;;  %v5317_v63 = vadd.f32 %v12948_v3, %v14773_v6  ;;  %v5333_v57 = vadd.f32 %v12948_v3, %v12244_v10 }
 0x4e3   : > { %9433 = vmatpush1.bf16.msra.mxu1 %v9432_v8  ;;  %v9402_v28 = vpack.c.bf16 %v6438_v37, %v6422_v41  ;;  %v6424_v29 = vsel %vm5912_vm4, %v5656_v48, %v6168_v0  ;;  %v5319_v26 = vadd.f32 %v12954_v46, %v14773_v6  ;;  %v5335_v11 = vadd.f32 %v12954_v46, %v12244_v10 }
 0x4e4   : > { %v6440_v51 = vsel %vm5928_vm5, %v5672_v24, %v6184_v21  ;;  %v5653_v43 = vadd.f32 %v12539_v19, %v5317_v63  ;;  %v5669_v49 = vadd.f32 %v12541_v34, %v5333_v57  ;;  %v5350_v58 = vadd.f32 %v12956_v4, %v12246_v35 }
 0x4e5   : > { %9403 = vmatprep.subr.bf16.mxu0 %v9402_v28  ;;  %v9434_v62 = vpack.c.bf16 %v6440_v51, %v6424_v29  ;;  %v5655_v36 = vadd.f32 %v12539_v19, %v5319_v26  ;;  %v5671_v48 = vadd.f32 %v12541_v34, %v5335_v11  ;;  %v5366_v6 = vadd.f32 %v12956_v4, %v12248_v44  ;;  %v13365_v51 = vpop.permute.xlu0 %6507 }
 0x4e6   : > { %vm5909_vm6 = vcmp.gt.f32.partialorder %v5653_v43, 0.0  ;;  %vm5925_vm7 = vcmp.gt.f32.partialorder %v5669_v49, 0.0  ;;  %v6165_v10 = vmul.f32 0.33, %v5653_v43  ;;  %v6181_v24 = vmul.f32 0.33, %v5669_v49 }
 0x4e7   : > { %9435 = vmatprep.subr.bf16.mxu1 %v9434_v62  ;;  %vm5911_vm8 = vcmp.gt.f32.partialorder %v5655_v36, 0.0  ;;  %vm5927_vm9 = vcmp.gt.f32.partialorder %v5671_v48, 0.0  ;;  %v6167_v42 = vmul.f32 0.33, %v5655_v36  ;;  %v6183_v22 = vmul.f32 0.33, %v5671_v48 }
 0x4e8   : > { %v6421_v8 = vsel %vm5909_vm6, %v5653_v43, %v6165_v10  ;;  %v6437_v41 = vsel %vm5925_vm7, %v5669_v49, %v6181_v24  ;;  %v5686_v0 = vadd.f32 %v12573_v30, %v5350_v58  ;;  %v5702_v19 = vadd.f32 %v12578_v15, %v5366_v6 }
 0x4e9   : > { %v9404_v37 = vpack.c.bf16 %v6437_v41, %v6421_v8  ;;  %v6423_v34 = vsel %vm5911_vm8, %v5655_v36, %v6167_v42  ;;  %v6439_v21 = vsel %vm5927_vm9, %v5671_v48, %v6183_v22  ;;  %v5352_v4 = vadd.f32 %v12963_v52, %v12246_v35  ;;  %v13373_v36 = vpop.permute.xlu1 %6512 }
 0x4ea   : > { %v9436_v63 = vpack.c.bf16 %v6439_v21, %v6423_v34  ;;  %vm5942_vm10 = vcmp.gt.f32.partialorder %v5686_v0, 0.0  ;;  %vm5958_vm11 = vcmp.gt.f32.partialorder %v5702_v19, 0.0  ;;  %v6198_v57 = vmul.f32 0.33, %v5686_v0 }
 0x4eb   : > { %9405 = vmatpush1.bf16.msra.mxu0 %v9404_v37  ;;  %v6214_v28 = vmul.f32 0.33, %v5702_v19  ;;  %v5368_v29 = vadd.f32 %v12963_v52, %v12248_v44  ;;  %v5688_v26 = vadd.f32 %v12573_v30, %v5352_v4  ;;  %v5349_v11 = vadd.f32 %v12948_v3, %v12246_v35 }
 0x4ec   : > { %9437 = vmatpush1.bf16.msra.mxu1 %v9436_v63  ;;  %v6454_v43 = vsel %vm5942_vm10, %v5686_v0, %v6198_v57  ;;  %v5365_v49 = vadd.f32 %v12948_v3, %v12248_v44  ;;  %v5351_v58 = vadd.f32 %v12954_v46, %v12246_v35  ;;  %v5367_v62 = vadd.f32 %v12954_v46, %v12248_v44 }
 0x4ed   : > { %v6470_v52 = vsel %vm5958_vm11, %v5702_v19, %v6214_v28  ;;  %v5704_v48 = vadd.f32 %v12578_v15, %v5368_v29  ;;  %vm5944_vm12 = vcmp.gt.f32.partialorder %v5688_v26, 0.0  ;;  %v6200_v6 = vmul.f32 0.33, %v5688_v26  ;;  %v13380_v19 = vpop.permute.xlu0 %6487  ;;  %v13382_v4 = vpop.permute.xlu1 %6492 }
 0x4ee   : > { %v9406_v10 = vpack.c.bf16 %v6470_v52, %v6454_v43  ;;  %v5685_v24 = vadd.f32 %v12573_v30, %v5349_v11  ;;  %v5701_v42 = vadd.f32 %v12578_v15, %v5365_v49  ;;  %v5687_v3 = vadd.f32 %v12573_v30, %v5351_v58 }
 0x4ef   : > { %vm5960_vm13 = vcmp.gt.f32.partialorder %v5704_v48, 0.0  ;;  %v6216_v22 = vmul.f32 0.33, %v5704_v48  ;;  %v6456_v35 = vsel %vm5944_vm12, %v5688_v26, %v6200_v6  ;;  %v5703_v8 = vadd.f32 %v12578_v15, %v5367_v62 }
 0x4f0   : > { %9407 = vmatprep.subr.bf16.mxu0 %v9406_v10  ;;  %vm5941_vm14 = vcmp.gt.f32.partialorder %v5685_v24, 0.0  ;;  %vm5957_vm15 = vcmp.gt.f32.partialorder %v5701_v42, 0.0  ;;  %v6197_v44 = vmul.f32 0.33, %v5685_v24  ;;  %v6213_v46 = vmul.f32 0.33, %v5701_v42 }
 0x4f1   : > { %v6472_v41 = vsel %vm5960_vm13, %v5704_v48, %v6216_v22  ;;  %vm5943_vm1 = vcmp.gt.f32.partialorder %v5687_v3, 0.0  ;;  %vm5959_vm2 = vcmp.gt.f32.partialorder %v5703_v8, 0.0  ;;  %v6199_v0 = vmul.f32 0.33, %v5687_v3  ;;  %v13396_v52 = vpop.permute.xlu0 %6497 }
 0x4f2   : > { %v9438_v37 = vpack.c.bf16 %v6472_v41, %v6456_v35  ;;  %v6453_v34 = vsel %vm5941_vm14, %v5685_v24, %v6197_v44  ;;  %v6469_v21 = vsel %vm5957_vm15, %v5701_v42, %v6213_v46  ;;  %v6215_v30 = vmul.f32 0.33, %v5703_v8  ;;  %v13432_v35 = vpop.permute.xlu1 %6502 }
 0x4f3   : > { %v9408_v63 = vpack.c.bf16 %v6469_v21, %v6453_v34  ;;  %v6455_v57 = vsel %vm5943_vm1, %v5687_v3, %v6199_v0  ;;  %v6582_v15 = vadd.f32 %v13231_v9, %v13380_v19  ;;  %v6683_v28 = vadd.f32 %v13241_v55, %v13380_v19 }
 0x4f4   : > { %9439 = vmatprep.subr.bf16.mxu1 %v9438_v37  ;;  %v6471_v29 = vsel %vm5959_vm2, %v5703_v8, %v6215_v30  ;;  %v6584_v26 = vadd.f32 %v13237_v38, %v13380_v19  ;;  %v13392_v11 = vadd.f32 %v13245_v45, %v13380_v19  ;;  %v6588_v43 = vadd.f32 %v13247_v39, %v13382_v4 }
 0x4f5   : > { %9409 = vmatpush1.bf16.msra.mxu0 %v9408_v63  ;;  %v9440_v49 = vpack.c.bf16 %v6471_v29, %v6455_v57  ;;  %vm7323_vm3 = vcmp.gt.f32.partialorder %v6582_v15, 0.0  ;;  %v7419_v58 = vmul.f32 0.33, %v6582_v15  ;;  %vm7325_vm4 = vcmp.gt.f32.partialorder %v6683_v28, 0.0 }
 0x4f6   : > { %v7421_v9 = vmul.f32 0.33, %v6683_v28  ;;  %vm7324_vm5 = vcmp.gt.f32.partialorder %v6584_v26, 0.0  ;;  %v7420_v55 = vmul.f32 0.33, %v6584_v26  ;;  %vm7339_vm6 = vcmp.gt.f32.partialorder %v6588_v43, 0.0 }
 0x4f7   : > { %9441 = vmatpush1.bf16.msra.mxu1 %v9440_v49  ;;  %v7435_v62 = vmul.f32 0.33, %v6588_v43  ;;  %v13399_v38 = vsel %vm7323_vm3, %v6582_v15, %v7419_v58  ;;  %v13402_v45 = vmul.f32 0.33, %v13392_v11  ;;  %v6689_v39 = vadd.f32 %v13249_v5, %v13382_v4 }
 0x4f8   : > { %7186 = vmatmul.mubr.f32.vlgmr.msra.gmra.mrb[66].mxu0 %v13095_v14  ;;  %v6590_v48 = vadd.f32 %v13256_v20, %v13382_v4  ;;  %v13413_v10 = vadd.f32 %v13258_v50, %v13382_v4  ;;  %v6594_v24 = vadd.f32 %v13271_v61, %v13396_v52  ;;  %v6695_v42 = vadd.f32 %v13273_v32, %v13396_v52 }
 0x4f9   : > { %7191 = vmatprep.mubr.f32.mxu0 %v14363_v31  ;;  %v13409_v6 = vsel %vm7339_vm6, %v6588_v43, %v7435_v62  ;;  %vm7341_vm7 = vcmp.gt.f32.partialorder %v6689_v39, 0.0  ;;  %v7437_v20 = vmul.f32 0.33, %v6689_v39  ;;  %v13424_v3 = vsel %vm7325_vm4, %v6683_v28, %v7421_v9 }
 0x4fa   : > { %7287 = vmatmul.mubr.f32.vlgmr.msra.gmra.mrb[70].mxu1 %v13095_v14  ;;  %v9444_v5 = vpack.c.bf16 %v13409_v6, %v13399_v38  ;;  %vm7340_vm8 = vcmp.gt.f32.partialorder %v6590_v48, 0.0  ;;  %v13427_v50 = vsel %vm7324_vm5, %v6584_v26, %v7420_v55  ;;  %v7436_v61 = vmul.f32 0.33, %v6590_v48 }
 0x4fb   : > { %7292 = vmatprep.mubr.f32.mxu1 %v14363_v31  ;;  %vm7355_vm9 = vcmp.gt.f32.partialorder %v6594_v24, 0.0  ;;  %v13430_v32 = vsel %vm7341_vm7, %v6689_v39, %v7437_v20  ;;  %v7451_v14 = vmul.f32 0.33, %v6594_v24  ;;  %vm7357_vm10 = vcmp.gt.f32.partialorder %v6695_v42, 0.0 }
 0x4fc   : > { %7192 = vmatmul.mubr.f32.gmra.mrb[68].mxu0 %v13119_v7  ;;  %v7453_v22 = vmul.f32 0.33, %v6695_v42  ;;  %v9468_v8 = vpack.c.bf16 %v13430_v32, %v13424_v3  ;;  %v13437_v44 = vsel %vm7340_vm8, %v6590_v48, %v7436_v61  ;;  %v6596_v46 = vadd.f32 %v13276_v56, %v13396_v52  ;;  %v7619_v3 = vld [vmem:[%s14022_s5 + $0x30] sm:$0xff]  ;;  %v7616_v32 = vld [vmem:[%s14022_s5 + $0x18] sm:$0xff] }
 0x4fd   : > { %7197 = vmatprep.mubr.f32.mxu0 %v14363_v31  ;;  %v13443_v41 = vadd.f32 %v13278_v47, %v13396_v52  ;;  %v9456_v0 = vpack.c.bf16 %v13437_v44, %v13427_v50  ;;  %v13449_v37 = vmul.f32 0.33, %v13413_v10  ;;  %v13451_v34 = vsel %vm7355_vm9, %v6594_v24, %v7451_v14 }
 0x4fe   : > { %7293 = vmatmul.mubr.f32.gmra.mrb[72].mxu1 %v13119_v7  ;;  %v6600_v21 = vadd.f32 %v13284_v2, %v13432_v35  ;;  %v13456_v56 = vsel %vm7357_vm10, %v6695_v42, %v7453_v22  ;;  %vm7356_vm11 = vcmp.gt.f32.partialorder %v6596_v46, 0.0  ;;  %v7452_v47 = vmul.f32 0.33, %v6596_v46  ;;  %v7614_v22 = vld [vmem:[%s14022_s5 + $0x8] sm:$0xff] }
 0x4ff   : > { %7298 = vmatprep.mubr.f32.mxu1 %v14363_v31  ;;  %v13459_v30 = vmul.f32 0.33, %v13443_v41  ;;  %vm7326_vm12 = vcmp.gt.f32.partialorder %v13392_v11, 0.0  ;;  %vm7342_vm13 = vcmp.gt.f32.partialorder %v13413_v10, 0.0  ;;  %v6701_v2 = vadd.f32 %v13286_v18, %v13432_v35 }
 0x500   : > { %7198 = vmatmul.mubr.f32.gmra.mrb[70].mxu0 %v13132_v13  ;;  %vm7371_vm14 = vcmp.gt.f32.partialorder %v6600_v21, 0.0  ;;  %v7467_v7 = vmul.f32 0.33, %v6600_v21  ;;  %v6602_v63 = vadd.f32 %v13294_v54, %v13432_v35  ;;  %v13469_v57 = vsel %vm7356_vm11, %v6596_v46, %v7452_v47 }
 0x501   : > { %7203 = vmatprep.mubr.f32.mxu0 %v14363_v31  ;;  %v13473_v15 = vadd.f32 %v13296_v17, %v13432_v35  ;;  %v6606_v28 = vadd.f32 %v13308_v25, %v13365_v51  ;;  %v6707_v29 = vadd.f32 %v13310_v59, %v13365_v51  ;;  %vm7358_vm15 = vcmp.gt.f32.partialorder %v13443_v41, 0.0 }
 0x502   : > { %7299 = vmatmul.mubr.f32.gmra.mrb[74].mxu1 %v13132_v13  ;;  %v13481_v18 = vsel %vm7371_vm14, %v6600_v21, %v7467_v7  ;;  %vm7373_vm1 = vcmp.gt.f32.partialorder %v6701_v2, 0.0  ;;  %v7469_v54 = vmul.f32 0.33, %v6701_v2  ;;  %vm7372_vm2 = vcmp.gt.f32.partialorder %v6602_v63, 0.0 }
 0x503   : > { %7304 = vmatprep.mubr.f32.mxu1 %v14363_v31  ;;  %v9448_v17 = vpack.c.bf16 %v13481_v18, %v13451_v34  ;;  %v7468_v26 = vmul.f32 0.33, %v6602_v63  ;;  %vm7374_vm3 = vcmp.gt.f32.partialorder %v13473_v15, 0.0  ;;  %v7470_v25 = vmul.f32 0.33, %v13473_v15 }
 0x504   : > { %7204 = vmatmul.mubr.f32.gmra.mrb[72].mxu0 %v13159_v12  ;;  %v13489_v13 = vsel %vm7373_vm1, %v6701_v2, %v7469_v54  ;;  %vm7387_vm4 = vcmp.gt.f32.partialorder %v6606_v28, 0.0  ;;  %v7483_v59 = vmul.f32 0.33, %v6606_v28  ;;  %vm7389_vm5 = vcmp.gt.f32.partialorder %v6707_v29, 0.0 }
 0x505   : > { %7209 = vmatprep.mubr.f32.mxu0 %v14363_v31  ;;  %v9472_v43 = vpack.c.bf16 %v13489_v13, %v13456_v56  ;;  %v13494_v49 = vsel %vm7372_vm2, %v6602_v63, %v7468_v26  ;;  %v7485_v58 = vmul.f32 0.33, %v6707_v29  ;;  %v6608_v9 = vadd.f32 %v13312_v16, %v13365_v51 }
 0x506   : > { %7305 = vmatmul.mubr.f32.gmra.mrb[76].mxu1 %v13159_v12  ;;  %v9460_v55 = vpack.c.bf16 %v13494_v49, %v13469_v57  ;;  %v7579_v62 = vsel %vm7387_vm4, %v6606_v28, %v7483_v59  ;;  %v6709_v39 = vadd.f32 %v13314_v1, %v13365_v51  ;;  %v6612_v48 = vadd.f32 %v13318_v40, %v13373_v36 }
 0x507   : > { %7310 = vmatprep.mubr.f32.mxu1 %v14363_v31  ;;  %vm7388_vm6 = vcmp.gt.f32.partialorder %v6608_v9, 0.0  ;;  %v7484_v24 = vmul.f32 0.33, %v6608_v9  ;;  %v6713_v42 = vadd.f32 %v13325_v27, %v13373_v36  ;;  %v6614_v12 = vadd.f32 %v13327_v53, %v13373_v36 }
 0x508   : > { %7210 = vmatmul.mubr.f32.gmra.mrb[74].mxu0 %v13187_v60  ;;  %vm7390_vm7 = vcmp.gt.f32.partialorder %v6709_v39, 0.0  ;;  %v7486_v16 = vmul.f32 0.33, %v6709_v39  ;;  %vm7403_vm8 = vcmp.gt.f32.partialorder %v6612_v48, 0.0  ;;  %v7499_v20 = vmul.f32 0.33, %v6612_v48 }
 0x509   : > { %7215 = vmatprep.mubr.f32.mxu0 %v14363_v31  ;;  %v13512_v1 = vsel %vm7388_vm6, %v6608_v9, %v7484_v24  ;;  %vm7405_vm9 = vcmp.gt.f32.partialorder %v6713_v42, 0.0  ;;  %v7501_v40 = vmul.f32 0.33, %v6713_v42  ;;  %vm7404_vm10 = vcmp.gt.f32.partialorder %v6614_v12, 0.0 }
 0x50a   : > { %7311 = vmatmul.mubr.f32.gmra.mrb[78].mxu1 %v13187_v60  ;;  %v7595_v61 = vsel %vm7403_vm8, %v6612_v48, %v7499_v20  ;;  %v7500_v27 = vmul.f32 0.33, %v6614_v12  ;;  %v6715_v53 = vadd.f32 %v13334_v33, %v13373_v36  ;;  %v7581_v14 = vsel %vm7389_vm5, %v6707_v29, %v7485_v58 }
 0x50b   : > { %7316 = vmatprep.mubr.f32.mxu1 %v14363_v31  ;;  %v9452_v46 = vpack.c.bf16 %v7595_v61, %v7579_v62  ;;  %v7597_v34 = vsel %vm7405_vm9, %v6713_v42, %v7501_v40  ;;  %v7518_v60 = vsel %vm7326_vm12, %v13392_v11, %v13402_v45  ;;  %v7534_v33 = vsel %vm7342_vm13, %v13413_v10, %v13449_v37 }
 0x50c   : > { %7216 = vmatmul.mubr.f32.gmra.mrb[76].mxu0 %v13197_v23  ;;  %v13531_v21 = vsel %vm7404_vm10, %v6614_v12, %v7500_v27  ;;  %vm7406_vm11 = vcmp.gt.f32.partialorder %v6715_v53, 0.0  ;;  %v7502_v47 = vmul.f32 0.33, %v6715_v53  ;;  %v9442_v7 = vpack.c.bf16 %v7597_v34, %v7581_v14 }
 0x50d   : > { %v9464_v2 = vpack.c.bf16 %v13531_v21, %v13512_v1  ;;  %v9446_v63 = vpack.c.bf16 %v7534_v33, %v7518_v60  ;;  %v7550_v11 = vsel %vm7358_vm15, %v13443_v41, %v13459_v30  ;;  %v7566_v45 = vsel %vm7374_vm3, %v13473_v15, %v7470_v25  ;;  %7699 = vmatprep.mubr.f32.mxu0 %v7614_v22 }
 0x50e   : > { %7317 = vmatmul.mubr.f32.gmra.mrb[80].mxu1 %v13197_v23  ;;  %9443 = vmatprep.subr.bf16.mxu0 %v9442_v7  ;;  %v9450_v10 = vpack.c.bf16 %v7566_v45, %v7550_v11  ;;  %v7582_v37 = vsel %vm7390_vm7, %v6709_v39, %v7486_v16  ;;  %v7598_v28 = vsel %vm7406_vm11, %v6715_v53, %v7502_v47 }
 0x50f   : > { %9445 = vmatpush3.bf16.msra.mxu0 %v9444_v5  ;;  %v9454_v29 = vpack.c.bf16 %v7598_v28, %v7582_v37  ;;  %7774 = vmatprep.mubr.f32.mxu1 %v7616_v32 }
 0x510   : > { %9447 = vmatprep.subr.bf16.mxu0 %v9446_v63 }
 0x513   : > { %9449 = vmatpush3.bf16.msra.mxu0 %v9448_v17 }
 0x514   : > { %9451 = vmatprep.subr.bf16.mxu0 %v9450_v10 }
 0x517   : > { %9453 = vmatpush3.bf16.msra.mxu0 %v9452_v46 }
 0x518   : > { %9455 = vmatprep.subr.bf16.mxu0 %v9454_v29 }
 0x51b   : > { %9457 = vmatpush3.bf16.msra.mxu0 %v9456_v0 }
 0x51c   : > { %v6783_v23 = vpop.f32.mrb[42].mxu0 }
 0x51d   : > { %v6784_v41 = vadd.f32 %v6783_v23, %v13380_v19  ;;  %v6884_v30 = vpop.f32.mrb[46].mxu1  ;;  %v6785_v15 = vpop.f32.mrb[43].mxu0 }
 0x51e   : > { %v6885_v18 = vadd.f32 %v6884_v30, %v13380_v19  ;;  %v6786_v38 = vadd.f32 %v6785_v15, %v13380_v19  ;;  %v6886_v6 = vpop.f32.mrb[47].mxu1 }
 0x51f   : > { %v6887_v5 = vadd.f32 %v6886_v6, %v13380_v19  ;;  %v7423_v54 = vmul.f32 0.33, %v6784_v41  ;;  %vm7327_vm12 = vcmp.gt.f32.partialorder %v6784_v41, 0.0 }
 0x520   : > { %vm7329_vm13 = vcmp.gt.f32.partialorder %v6885_v18, 0.0  ;;  %v7425_v17 = vmul.f32 0.33, %v6885_v18  ;;  %v6789_v26 = vpop.f32.mrb[44].mxu0  ;;  %vm7328_vm14 = vcmp.gt.f32.partialorder %v6786_v38, 0.0 }
 0x521   : > { %v6890_v25 = vpop.f32.mrb[48].mxu1  ;;  %v7426_v50 = vmul.f32 0.33, %v6887_v5  ;;  %v6790_v44 = vadd.f32 %v6789_v26, %v13382_v4  ;;  %v6791_v59 = vpop.f32.mrb[45].mxu0  ;;  %v7424_v9 = vmul.f32 0.33, %v6786_v38  ;;  %v7519_v16 = vsel %vm7327_vm12, %v6784_v41, %v7423_v54 }
 0x522   : > { %v6891_v0 = vadd.f32 %v6890_v25, %v13382_v4  ;;  %v6892_v58 = vpop.f32.mrb[49].mxu1  ;;  %vm7330_vm15 = vcmp.gt.f32.partialorder %v6887_v5, 0.0  ;;  %v6792_v62 = vadd.f32 %v6791_v59, %v13382_v4  ;;  %v13559_v42 = vsel %vm7329_vm13, %v6885_v18, %v7425_v17 }
 0x523   : > { %v6893_v39 = vadd.f32 %v6892_v58, %v13382_v4  ;;  %vm7343_vm1 = vcmp.gt.f32.partialorder %v6790_v44, 0.0  ;;  %v7439_v48 = vmul.f32 0.33, %v6790_v44  ;;  %v13562_v20 = vsel %vm7330_vm15, %v6887_v5, %v7426_v50 }
 0x524   : > { %vm7345_vm2 = vcmp.gt.f32.partialorder %v6891_v0, 0.0  ;;  %v7441_v24 = vmul.f32 0.33, %v6891_v0  ;;  %v7440_v61 = vmul.f32 0.33, %v6792_v62  ;;  %vm7344_vm4 = vcmp.gt.f32.partialorder %v6792_v62, 0.0 }
 0x525   : > { %vm7346_vm3 = vcmp.gt.f32.partialorder %v6893_v39, 0.0  ;;  %v7442_v12 = vmul.f32 0.33, %v6893_v39  ;;  %v7535_v14 = vsel %vm7343_vm1, %v6790_v44, %v7439_v48  ;;  %v13580_v28 = vsel %vm7328_vm14, %v6786_v38, %v7424_v9 }
 0x526   : > { %v13564_v40 = vsel %vm7345_vm2, %v6891_v0, %v7441_v24  ;;  %v6795_v27 = vpop.f32.mrb[46].mxu0  ;;  %v6896_v53 = vpop.f32.mrb[50].mxu1  ;;  %v9458_v11 = vpack.c.bf16 %v7535_v14, %v7519_v16  ;;  %v13582_v29 = vsel %vm7344_vm4, %v6792_v62, %v7440_v61 }
 0x527   : > { %v9484_v22 = vpack.c.bf16 %v13564_v40, %v13559_v42  ;;  %v13568_v46 = vsel %vm7346_vm3, %v6893_v39, %v7442_v12  ;;  %v6796_v34 = vadd.f32 %v6795_v27, %v13396_v52  ;;  %v6897_v60 = vadd.f32 %v6896_v53, %v13396_v52  ;;  %v6797_v33 = vpop.f32.mrb[47].mxu0  ;;  %v6898_v47 = vpop.f32.mrb[51].mxu1  ;;  %v7615_v42 = vld [vmem:[%s14022_s5 + $0x10] sm:$0xff]  ;;  %v7621_v40 = vld [vmem:[%s14022_s5 + $0x40] sm:$0xff] }
 0x528   : > { %v9496_v7 = vpack.c.bf16 %v13568_v46, %v13562_v20  ;;  %v6798_v63 = vadd.f32 %v6797_v33, %v13396_v52  ;;  %v6899_v45 = vadd.f32 %v6898_v47, %v13396_v52  ;;  %9459 = vmatprep.subr.bf16.mxu0 %v9458_v11  ;;  %v9470_v15 = vpack.c.bf16 %v13582_v29, %v13580_v28  ;;  %v7622_v20 = vld [vmem:[%s14022_s5 + $0x48] sm:$0xff] }
 0x529   : > { %v7455_v10 = vmul.f32 0.33, %v6796_v34  ;;  %v7457_v37 = vmul.f32 0.33, %v6897_v60  ;;  %vm7359_vm5 = vcmp.gt.f32.partialorder %v6796_v34, 0.0  ;;  %vm7361_vm6 = vcmp.gt.f32.partialorder %v6897_v60, 0.0  ;;  %9461 = vmatpush3.bf16.msra.mxu0 %v9460_v55 }
 0x52a   : > { %vm7360_vm7 = vcmp.gt.f32.partialorder %v6798_v63, 0.0  ;;  %v7456_v23 = vmul.f32 0.33, %v6798_v63  ;;  %vm7362_vm8 = vcmp.gt.f32.partialorder %v6899_v45, 0.0  ;;  %v7458_v18 = vmul.f32 0.33, %v6899_v45 }
 0x52b   : > { %v13588_v55 = vsel %vm7361_vm6, %v6897_v60, %v7457_v37  ;;  %v7551_v17 = vsel %vm7359_vm5, %v6796_v34, %v7455_v10 }
 0x52c   : > { %v6801_v41 = vpop.f32.mrb[48].mxu0  ;;  %v6902_v30 = vpop.f32.mrb[52].mxu1  ;;  %v13594_v0 = vsel %vm7360_vm7, %v6798_v63, %v7456_v23  ;;  %v13597_v59 = vsel %vm7362_vm8, %v6899_v45, %v7458_v18 }
 0x52d   : > { %v6802_v6 = vadd.f32 %v6801_v41, %v13432_v35  ;;  %v6903_v5 = vadd.f32 %v6902_v30, %v13432_v35  ;;  %v6803_v57 = vpop.f32.mrb[49].mxu0  ;;  %v6904_v49 = vpop.f32.mrb[53].mxu1 }
 0x52e   : > { %v6804_v38 = vadd.f32 %v6803_v57, %v13432_v35  ;;  %v6905_v54 = vadd.f32 %v6904_v49, %v13432_v35 }
 0x52f   : > { %vm7375_vm9 = vcmp.gt.f32.partialorder %v6802_v6, 0.0  ;;  %v7471_v26 = vmul.f32 0.33, %v6802_v6  ;;  %vm7377_vm10 = vcmp.gt.f32.partialorder %v6903_v5, 0.0  ;;  %v7473_v25 = vmul.f32 0.33, %v6903_v5 }
 0x530   : > { %vm7376_vm11 = vcmp.gt.f32.partialorder %v6804_v38, 0.0  ;;  %v7472_v50 = vmul.f32 0.33, %v6804_v38  ;;  %vm7378_vm12 = vcmp.gt.f32.partialorder %v6905_v54, 0.0  ;;  %v7474_v44 = vmul.f32 0.33, %v6905_v54 }
 0x531   : > { %v13599_v58 = vsel %vm7377_vm10, %v6903_v5, %v7473_v25  ;;  %v6807_v9 = vpop.f32.mrb[50].mxu0  ;;  %v6908_v62 = vpop.f32.mrb[54].mxu1  ;;  %v7567_v39 = vsel %vm7375_vm9, %v6802_v6, %v7471_v26 }
 0x532   : > { %v9488_v48 = vpack.c.bf16 %v13599_v58, %v13588_v55  ;;  %v13603_v24 = vsel %vm7376_vm11, %v6804_v38, %v7472_v50  ;;  %v13605_v12 = vsel %vm7378_vm12, %v6905_v54, %v7474_v44  ;;  %v6808_v16 = vadd.f32 %v6807_v9, %v13365_v51  ;;  %v6809_v61 = vpop.f32.mrb[51].mxu0  ;;  %v6910_v27 = vpop.f32.mrb[55].mxu1 }
 0x533   : > { %v9476_v53 = vpack.c.bf16 %v13603_v24, %v13594_v0  ;;  %v9500_v14 = vpack.c.bf16 %v13605_v12, %v13597_v59  ;;  %v6909_v34 = vadd.f32 %v6908_v62, %v13365_v51  ;;  %v6810_v60 = vadd.f32 %v6809_v61, %v13365_v51  ;;  %v7618_v0 = vld [vmem:[%s14022_s5 + $0x28] sm:$0xff] }
 0x534   : > { %v7487_v33 = vmul.f32 0.33, %v6808_v16  ;;  %v6911_v47 = vadd.f32 %v6910_v27, %v13365_v51  ;;  %v9462_v63 = vpack.c.bf16 %v7567_v39, %v7551_v17  ;;  %vm7391_vm13 = vcmp.gt.f32.partialorder %v6808_v16, 0.0  ;;  %v7613_v27 = vld [vmem:[%s14022_s5] sm:$0xff] }
 0x535   : > { %vm7393_vm14 = vcmp.gt.f32.partialorder %v6909_v34, 0.0  ;;  %v7489_v11 = vmul.f32 0.33, %v6909_v34  ;;  %vm7392_vm15 = vcmp.gt.f32.partialorder %v6810_v60, 0.0  ;;  %v7488_v45 = vmul.f32 0.33, %v6810_v60 }
 0x536   : > { %v6813_v10 = vpop.f32.mrb[52].mxu0  ;;  %v6914_v37 = vpop.f32.mrb[56].mxu1  ;;  %9463 = vmatprep.subr.bf16.mxu0 %v9462_v63  ;;  %vm7394_vm1 = vcmp.gt.f32.partialorder %v6911_v47, 0.0  ;;  %v7490_v23 = vmul.f32 0.33, %v6911_v47  ;;  %v7583_v38 = vsel %vm7391_vm13, %v6808_v16, %v7487_v33 }
 0x537   : > { %v6814_v41 = vadd.f32 %v6813_v10, %v13373_v36  ;;  %v6915_v30 = vadd.f32 %v6914_v37, %v13373_v36  ;;  %v6815_v18 = vpop.f32.mrb[53].mxu0  ;;  %v6916_v6 = vpop.f32.mrb[57].mxu1  ;;  %9465 = vmatpush3.bf16.msra.mxu0 %v9464_v2  ;;  %v13620_v5 = vsel %vm7393_vm14, %v6909_v34, %v7489_v11  ;;  %v13626_v50 = vsel %vm7392_vm15, %v6810_v60, %v7488_v45  ;;  %v7620_v34 = vld [vmem:[%s14022_s5 + $0x38] sm:$0xff] }
 0x538   : > { %v6816_v57 = vadd.f32 %v6815_v18, %v13373_v36  ;;  %v6917_v49 = vadd.f32 %v6916_v6, %v13373_v36  ;;  %v13629_v1 = vsel %vm7394_vm1, %v6911_v47, %v7490_v23 }
 0x539   : > { %vm7407_vm2 = vcmp.gt.f32.partialorder %v6814_v41, 0.0  ;;  %v7503_v54 = vmul.f32 0.33, %v6814_v41  ;;  %vm7409_vm3 = vcmp.gt.f32.partialorder %v6915_v30, 0.0  ;;  %v7505_v17 = vmul.f32 0.33, %v6915_v30 }
 0x53a   : > { %vm7408_vm4 = vcmp.gt.f32.partialorder %v6816_v57, 0.0  ;;  %v7504_v26 = vmul.f32 0.33, %v6816_v57  ;;  %vm7410_vm5 = vcmp.gt.f32.partialorder %v6917_v49, 0.0  ;;  %v7506_v25 = vmul.f32 0.33, %v6917_v49 }
 0x53b   : > { %v13631_v21 = vsel %vm7409_vm3, %v6915_v30, %v7505_v17  ;;  %v7599_v2 = vsel %vm7407_vm2, %v6814_v41, %v7503_v54 }
 0x53c   : > { %v9492_v44 = vpack.c.bf16 %v13631_v21, %v13620_v5  ;;  %v13635_v9 = vsel %vm7408_vm4, %v6816_v57, %v7504_v26  ;;  %v13637_v62 = vsel %vm7410_vm5, %v6917_v49, %v7506_v25  ;;  %v9466_v39 = vpack.c.bf16 %v7599_v2, %v7583_v38 }
 0x53d   : > { %v9480_v16 = vpack.c.bf16 %v13635_v9, %v13626_v50  ;;  %v9504_v61 = vpack.c.bf16 %v13637_v62, %v13629_v1 }
 0x53e   : > { %9467 = vmatprep.subr.bf16.mxu0 %v9466_v39 }
 0x53f   : > { %9469 = vmatpush3.bf16.msra.mxu0 %v9468_v8 }
 0x540   : > { %9471 = vmatprep.subr.bf16.mxu0 %v9470_v15 }
 0x543   : > { %9473 = vmatpush3.bf16.msra.mxu0 %v9472_v43 }
 0x546   : > { %7700 = vmatmul.mubr.f32.vlgmr.msra.gmra.mrb[78].mxu0 %v7613_v27 }
 0x547   : > { %7704 = vmatprep.mubr.f32.mxu0 %v7620_v34 }
 0x54a   : > { %7705 = vmatmul.mubr.f32.gmra.mrb[80].mxu0 %v7619_v3 }
 0x54b   : > { %7849 = vmatprep.mubr.f32.mxu0 %v7618_v0 }
 0x573   : > { %v6985_v8 = vpop.f32.mrb[54].mxu0 }
 0x574   : > { %v6986_v56 = vadd.f32 %v6985_v8, %v13380_v19  ;;  %v6987_v13 = vpop.f32.mrb[55].mxu0 }
 0x575   : > { %v6988_v43 = vadd.f32 %v6987_v13, %v13380_v19 }
 0x576   : > { %v7427_v28 = vmul.f32 0.33, %v6986_v56  ;;  %vm7331_vm6 = vcmp.gt.f32.partialorder %v6986_v56, 0.0 }
 0x577   : > { %v7086_v29 = vpop.f32.mrb[58].mxu1  ;;  %v6991_v15 = vpop.f32.mrb[56].mxu0  ;;  %v7428_v10 = vmul.f32 0.33, %v6988_v43  ;;  %vm7332_vm8 = vcmp.gt.f32.partialorder %v6988_v43, 0.0 }
 0x578   : > { %v7088_v60 = vpop.f32.mrb[59].mxu1  ;;  %v6992_v33 = vadd.f32 %v6991_v15, %v13382_v4  ;;  %v6993_v47 = vpop.f32.mrb[57].mxu0  ;;  %v7087_v45 = vadd.f32 %v7086_v29, %v13380_v19  ;;  %v7523_v18 = vsel %vm7331_vm6, %v6986_v56, %v7427_v28 }
 0x579   : > { %v7089_v63 = vadd.f32 %v7088_v60, %v13380_v19  ;;  %v6994_v11 = vadd.f32 %v6993_v47, %v13382_v4  ;;  %v13675_v27 = vsel %vm7332_vm8, %v6988_v43, %v7428_v10 }
 0x57a   : > { %vm7347_vm7 = vcmp.gt.f32.partialorder %v6992_v33, 0.0  ;;  %v7443_v37 = vmul.f32 0.33, %v6992_v33  ;;  %vm7333_vm11 = vcmp.gt.f32.partialorder %v7087_v45, 0.0  ;;  %v7429_v2 = vmul.f32 0.33, %v7087_v45 }
 0x57b   : > { %v7430_v23 = vmul.f32 0.33, %v7089_v63  ;;  %v7092_v41 = vpop.f32.mrb[60].mxu1  ;;  %vm7348_vm9 = vcmp.gt.f32.partialorder %v6994_v11, 0.0  ;;  %v6997_v30 = vpop.f32.mrb[58].mxu0  ;;  %vm7334_vm10 = vcmp.gt.f32.partialorder %v7089_v63, 0.0 }
 0x57c   : > { %v7093_v6 = vadd.f32 %v7092_v41, %v13382_v4  ;;  %v7444_v57 = vmul.f32 0.33, %v6994_v11  ;;  %v7094_v49 = vpop.f32.mrb[61].mxu1  ;;  %v6998_v38 = vadd.f32 %v6997_v30, %v13396_v52  ;;  %v6999_v54 = vpop.f32.mrb[59].mxu0  ;;  %v7539_v17 = vsel %vm7347_vm7, %v6992_v33, %v7443_v37 }
 0x57d   : > { %v7095_v26 = vadd.f32 %v7094_v49, %v13382_v4  ;;  %v9474_v25 = vpack.c.bf16 %v7539_v17, %v7523_v18  ;;  %v7000_v39 = vadd.f32 %v6999_v54, %v13396_v52  ;;  %v13680_v56 = vsel %vm7334_vm10, %v7089_v63, %v7430_v23 }
 0x57e   : > { %v7459_v3 = vmul.f32 0.33, %v6998_v38  ;;  %v13678_v8 = vsel %vm7348_vm9, %v6994_v11, %v7444_v57  ;;  %v7445_v13 = vmul.f32 0.33, %v7093_v6  ;;  %vm7363_vm13 = vcmp.gt.f32.partialorder %v6998_v38, 0.0 }
 0x57f   : > { %vm7350_vm12 = vcmp.gt.f32.partialorder %v7095_v26, 0.0  ;;  %v7446_v34 = vmul.f32 0.33, %v7095_v26  ;;  %v7098_v32 = vpop.f32.mrb[62].mxu1  ;;  %9475 = vmatprep.subr.bf16.mxu1 %v9474_v25  ;;  %v9486_v43 = vpack.c.bf16 %v13678_v8, %v13675_v27  ;;  %vm7349_vm14 = vcmp.gt.f32.partialorder %v7093_v6, 0.0 }
 0x580   : > { %v7100_v28 = vpop.f32.mrb[63].mxu1  ;;  %v7003_v29 = vpop.f32.mrb[60].mxu0  ;;  %9477 = vmatpush3.bf16.msra.mxu1 %v9476_v53  ;;  %vm7364_vm15 = vcmp.gt.f32.partialorder %v7000_v39, 0.0  ;;  %v7460_v11 = vmul.f32 0.33, %v7000_v39  ;;  %v7099_v24 = vadd.f32 %v7098_v32, %v13396_v52  ;;  %v7555_v37 = vsel %vm7363_vm13, %v6998_v38, %v7459_v3 }
 0x581   : > { %v13687_v15 = vsel %vm7350_vm12, %v7095_v26, %v7446_v34  ;;  %v7101_v60 = vadd.f32 %v7100_v28, %v13396_v52  ;;  %v7004_v33 = vadd.f32 %v7003_v29, %v13432_v35  ;;  %v7005_v47 = vpop.f32.mrb[61].mxu0  ;;  %v13700_v30 = vsel %vm7333_vm11, %v7087_v45, %v7429_v2 }
 0x582   : > { %v9512_v63 = vpack.c.bf16 %v13687_v15, %v13680_v56  ;;  %v7006_v10 = vadd.f32 %v7005_v47, %v13432_v35  ;;  %v13703_v18 = vsel %vm7349_vm14, %v7093_v6, %v7445_v13  ;;  %v13710_v34 = vsel %vm7364_vm15, %v7000_v39, %v7460_v11  ;;  %v7617_v56 = vld [vmem:[%s14022_s5 + $0x20] sm:$0xff]  ;;  %v7624_v15 = vld [vmem:[%s14022_s5 + $0x58] sm:$0xff] }
 0x583   : > { %vm7379_vm1 = vcmp.gt.f32.partialorder %v7004_v33, 0.0  ;;  %v7475_v53 = vmul.f32 0.33, %v7004_v33  ;;  %v7104_v23 = vpop.f32.mrb[64].mxu1  ;;  %v7462_v57 = vmul.f32 0.33, %v7101_v60  ;;  %v9498_v26 = vpack.c.bf16 %v13703_v18, %v13700_v30 }
 0x584   : > { %vm7380_vm2 = vcmp.gt.f32.partialorder %v7006_v10, 0.0  ;;  %v7476_v41 = vmul.f32 0.33, %v7006_v10  ;;  %v7105_v49 = vadd.f32 %v7104_v23, %v13432_v35  ;;  %v7106_v54 = vpop.f32.mrb[65].mxu1  ;;  %v7461_v45 = vmul.f32 0.33, %v7099_v24 }
 0x585   : > { %v7571_v17 = vsel %vm7379_vm1, %v7004_v33, %v7475_v53  ;;  %v7107_v38 = vadd.f32 %v7106_v54, %v13432_v35  ;;  %vm7366_vm3 = vcmp.gt.f32.partialorder %v7101_v60, 0.0  ;;  %vm7365_vm6 = vcmp.gt.f32.partialorder %v7099_v24, 0.0 }
 0x586   : > { %v9478_v25 = vpack.c.bf16 %v7571_v17, %v7555_v37  ;;  %v13712_v3 = vsel %vm7380_vm2, %v7006_v10, %v7476_v41  ;;  %v7477_v6 = vmul.f32 0.33, %v7105_v49  ;;  %vm7381_vm4 = vcmp.gt.f32.partialorder %v7105_v49, 0.0 }
 0x587   : > { %v7009_v2 = vpop.f32.mrb[62].mxu0  ;;  %v9490_v32 = vpack.c.bf16 %v13712_v3, %v13710_v34  ;;  %vm7382_vm5 = vcmp.gt.f32.partialorder %v7107_v38, 0.0  ;;  %v7478_v13 = vmul.f32 0.33, %v7107_v38  ;;  %v13721_v47 = vsel %vm7366_vm3, %v7101_v60, %v7462_v57 }
 0x588   : > { %v7010_v28 = vadd.f32 %v7009_v2, %v13365_v51  ;;  %v7011_v29 = vpop.f32.mrb[63].mxu0  ;;  %9479 = vmatprep.subr.bf16.mxu1 %v9478_v25  ;;  %v7573_v23 = vsel %vm7381_vm4, %v7105_v49, %v7477_v6  ;;  %v7557_v9 = vsel %vm7365_vm6, %v7099_v24, %v7461_v45 }
 0x589   : > { %v7110_v33 = vpop.f32.mrb[66].mxu1  ;;  %v7012_v39 = vadd.f32 %v7011_v29, %v13365_v51  ;;  %9481 = vmatpush3.bf16.msra.mxu1 %v9480_v16  ;;  %v13723_v11 = vsel %vm7382_vm5, %v7107_v38, %v7478_v13  ;;  %v9502_v38 = vpack.c.bf16 %v7573_v23, %v7557_v9 }
 0x58a   : > { %v7111_v10 = vadd.f32 %v7110_v33, %v13365_v51  ;;  %v7112_v0 = vpop.f32.mrb[67].mxu1  ;;  %v9516_v53 = vpack.c.bf16 %v13723_v11, %v13721_v47  ;;  %v7491_v41 = vmul.f32 0.33, %v7010_v28  ;;  %vm7395_vm7 = vcmp.gt.f32.partialorder %v7010_v28, 0.0 }
 0x58b   : > { %v7015_v37 = vpop.f32.mrb[64].mxu0  ;;  %v7113_v54 = vadd.f32 %v7112_v0, %v13365_v51  ;;  %vm7396_vm8 = vcmp.gt.f32.partialorder %v7012_v39, 0.0  ;;  %v7492_v16 = vmul.f32 0.33, %v7012_v39 }
 0x58c   : > { %v7016_v17 = vadd.f32 %v7015_v37, %v13373_v36  ;;  %v7017_v50 = vpop.f32.mrb[65].mxu0  ;;  %vm7397_vm9 = vcmp.gt.f32.partialorder %v7111_v10, 0.0  ;;  %v7493_v25 = vmul.f32 0.33, %v7111_v10  ;;  %v7587_v13 = vsel %vm7395_vm7, %v7010_v28, %v7491_v41 }
 0x58d   : > { %v7018_v60 = vadd.f32 %v7017_v50, %v13373_v36  ;;  %v7494_v3 = vmul.f32 0.33, %v7113_v54  ;;  %v7588_v33 = vsel %vm7396_vm8, %v7012_v39, %v7492_v16  ;;  %vm7398_vm12 = vcmp.gt.f32.partialorder %v7113_v54, 0.0 }
 0x58e   : > { %vm7411_vm10 = vcmp.gt.f32.partialorder %v7016_v17, 0.0  ;;  %v7507_v57 = vmul.f32 0.33, %v7016_v17  ;;  %v13736_v9 = vsel %vm7397_vm9, %v7111_v10, %v7493_v25 }
 0x58f   : > { %v7116_v34 = vpop.f32.mrb[68].mxu1  ;;  %vm7412_vm11 = vcmp.gt.f32.partialorder %v7018_v60, 0.0  ;;  %v7508_v49 = vmul.f32 0.33, %v7018_v60  ;;  %v13743_v28 = vsel %vm7398_vm12, %v7113_v54, %v7494_v3 }
 0x590   : > { %v7117_v6 = vadd.f32 %v7116_v34, %v13373_v36  ;;  %v7118_v2 = vpop.f32.mrb[69].mxu1  ;;  %v7603_v29 = vsel %vm7411_vm10, %v7016_v17, %v7507_v57 }
 0x591   : > { %v7119_v24 = vadd.f32 %v7118_v2, %v13373_v36  ;;  %v9482_v45 = vpack.c.bf16 %v7603_v29, %v7587_v13  ;;  %v7604_v0 = vsel %vm7412_vm11, %v7018_v60, %v7508_v49 }
 0x592   : > { %vm7413_vm13 = vcmp.gt.f32.partialorder %v7117_v6, 0.0  ;;  %v7509_v37 = vmul.f32 0.33, %v7117_v6  ;;  %v9494_v23 = vpack.c.bf16 %v7604_v0, %v7588_v33 }
 0x593   : > { %vm7414_vm14 = vcmp.gt.f32.partialorder %v7119_v24, 0.0  ;;  %v7510_v50 = vmul.f32 0.33, %v7119_v24  ;;  %9483 = vmatprep.subr.bf16.mxu1 %v9482_v45 }
 0x594   : > { %v13738_v34 = vsel %vm7413_vm13, %v7117_v6, %v7509_v37  ;;  %9485 = vmatpush3.bf16.msra.mxu1 %v9484_v22 }
 0x595   : > { %v9508_v39 = vpack.c.bf16 %v13738_v34, %v13736_v9  ;;  %v13747_v41 = vsel %vm7414_vm14, %v7119_v24, %v7510_v50  ;;  %9487 = vmatprep.subr.bf16.mxu1 %v9486_v43 }
 0x596   : > { %v9520_v10 = vpack.c.bf16 %v13747_v41, %v13743_v28 }
 0x598   : > { %9489 = vmatpush3.bf16.msra.mxu1 %v9488_v48 }
 0x599   : > { %9491 = vmatprep.subr.bf16.mxu1 %v9490_v32 }
 0x59c   : > { %9493 = vmatpush3.bf16.msra.mxu1 %v9492_v44 }
 0x59d   : > { %9495 = vmatprep.subr.bf16.mxu1 %v9494_v23 }
 0x5a0   : > { %9497 = vmatpush3.bf16.msra.mxu1 %v9496_v7 }
 0x5a1   : > { %9499 = vmatprep.subr.bf16.mxu1 %v9498_v26 }
 0x5a4   : > { %9501 = vmatpush3.bf16.msra.mxu1 %v9500_v14 }
 0x5a5   : > { %9503 = vmatprep.subr.bf16.mxu1 %v9502_v38 }
 0x5a8   : > { %9505 = vmatpush3.bf16.msra.mxu1 %v9504_v61 }
 0x5ab   : > { %7775 = vmatmul.mubr.f32.vlgmr.msra.gmra.mrb[82].mxu1 %v7615_v42 }
 0x5ac   : > { %7779 = vmatprep.mubr.f32.mxu1 %v7622_v20 }
 0x5af   : > { %7780 = vmatmul.mubr.f32.gmra.mrb[84].mxu1 %v7621_v40 }
 0x5cb   : > { %v7187_v22 = vpop.f32.mrb[66].mxu0 }
 0x5cc   : > { %v7188_v46 = vadd.f32 %v7187_v22, %v13380_v19  ;;  %v7189_v7 = vpop.f32.mrb[67].mxu0 }
 0x5cd   : > { %v7288_v55 = vpop.f32.mrb[70].mxu1  ;;  %v7190_v59 = vadd.f32 %v7189_v7, %v13380_v19 }
 0x5ce   : > { %vm7335_vm15 = vcmp.gt.f32.partialorder %v7188_v46, 0.0  ;;  %v7431_v58 = vmul.f32 0.33, %v7188_v46  ;;  %v7289_v48 = vadd.f32 %v7288_v55, %v13380_v19  ;;  %v7290_v12 = vpop.f32.mrb[71].mxu1 }
 0x5cf   : > { %vm7336_vm1 = vcmp.gt.f32.partialorder %v7190_v59, 0.0  ;;  %v7432_v14 = vmul.f32 0.33, %v7190_v59  ;;  %v7291_v5 = vadd.f32 %v7290_v12, %v13380_v19  ;;  %v7193_v1 = vpop.f32.mrb[68].mxu0 }
 0x5d0   : > { %vm7337_vm2 = vcmp.gt.f32.partialorder %v7289_v48, 0.0  ;;  %v7433_v21 = vmul.f32 0.33, %v7289_v48  ;;  %v7194_v44 = vadd.f32 %v7193_v1, %v13382_v4  ;;  %v7195_v62 = vpop.f32.mrb[69].mxu0  ;;  %v13786_v61 = vsel %vm7335_vm15, %v7188_v46, %v7431_v58 }
 0x5d1   : > { %v13788_v27 = vsel %vm7336_vm1, %v7190_v59, %v7432_v14  ;;  %vm7338_vm3 = vcmp.gt.f32.partialorder %v7291_v5, 0.0  ;;  %v7294_v8 = vpop.f32.mrb[72].mxu1  ;;  %v7196_v43 = vadd.f32 %v7195_v62, %v13382_v4  ;;  %v7434_v30 = vmul.f32 0.33, %v7291_v5 }
 0x5d2   : > { %vm7351_vm4 = vcmp.gt.f32.partialorder %v7194_v44, 0.0  ;;  %v7447_v18 = vmul.f32 0.33, %v7194_v44  ;;  %v7295_v26 = vadd.f32 %v7294_v8, %v13382_v4  ;;  %v7296_v19 = vpop.f32.mrb[73].mxu1  ;;  %v13794_v16 = vsel %vm7337_vm2, %v7289_v48, %v7433_v21 }
 0x5d3   : > { %vm7352_vm5 = vcmp.gt.f32.partialorder %v7196_v43, 0.0  ;;  %v7448_v32 = vmul.f32 0.33, %v7196_v43  ;;  %v7297_v54 = vadd.f32 %v7296_v19, %v13382_v4  ;;  %v7199_v17 = vpop.f32.mrb[70].mxu0  ;;  %v13814_v23 = vsel %vm7338_vm3, %v7291_v5, %v7434_v30 }
 0x5d4   : > { %v13796_v60 = vsel %vm7351_vm4, %v7194_v44, %v7447_v18  ;;  %vm7353_vm6 = vcmp.gt.f32.partialorder %v7295_v26, 0.0  ;;  %v7449_v57 = vmul.f32 0.33, %v7295_v26  ;;  %v7200_v38 = vadd.f32 %v7199_v17, %v13396_v52  ;;  %v7201_v25 = vpop.f32.mrb[71].mxu0 }
 0x5d5   : > { %v9524_v49 = vpack.c.bf16 %v13796_v60, %v13786_v61  ;;  %v13801_v3 = vsel %vm7352_vm5, %v7196_v43, %v7448_v32  ;;  %vm7354_vm7 = vcmp.gt.f32.partialorder %v7297_v54, 0.0  ;;  %v7450_v6 = vmul.f32 0.33, %v7297_v54  ;;  %v7300_v2 = vpop.f32.mrb[74].mxu1  ;;  %v7877_v61 = vld [vmem:[%s14023_s6] sm:$0xff] }
 0x5d6   : > { %v9536_v4 = vpack.c.bf16 %v13801_v3, %v13788_v27  ;;  %vm7367_vm8 = vcmp.gt.f32.partialorder %v7200_v38, 0.0  ;;  %v7463_v13 = vmul.f32 0.33, %v7200_v38  ;;  %v7301_v29 = vadd.f32 %v7300_v2, %v13396_v52  ;;  %v7302_v24 = vpop.f32.mrb[75].mxu1  ;;  %8572 = vmatprep.mubr.msk.f32.mxu1 %vm479_vm0, %v7877_v61 }
 0x5d7   : > { %v7202_v45 = vadd.f32 %v7201_v25, %v13396_v52  ;;  %v13808_v33 = vadd.f32 %v7302_v24, %v13396_v52  ;;  %v7205_v0 = vpop.f32.mrb[72].mxu0  ;;  %v13811_v37 = vsel %vm7353_vm6, %v7295_v26, %v7449_v57  ;;  %v13818_v40 = vsel %vm7354_vm7, %v7297_v54, %v7450_v6 }
 0x5d8   : > { %vm7369_vm9 = vcmp.gt.f32.partialorder %v7301_v29, 0.0  ;;  %v7465_v50 = vmul.f32 0.33, %v7301_v29  ;;  %v7206_v42 = vadd.f32 %v7205_v0, %v13432_v35  ;;  %v7207_v20 = vpop.f32.mrb[73].mxu0  ;;  %v13820_v22 = vsel %vm7367_vm8, %v7200_v38, %v7463_v13 }
 0x5d9   : > { %vm7368_vm10 = vcmp.gt.f32.partialorder %v7202_v45, 0.0  ;;  %v7464_v52 = vmul.f32 0.33, %v7202_v45  ;;  %v13823_v46 = vmul.f32 0.33, %v13808_v33  ;;  %v7306_v55 = vpop.f32.mrb[76].mxu1  ;;  %v7208_v59 = vadd.f32 %v7207_v20, %v13432_v35 }
 0x5da   : > { %vm7383_vm11 = vcmp.gt.f32.partialorder %v7206_v42, 0.0  ;;  %v7479_v7 = vmul.f32 0.33, %v7206_v42  ;;  %v9514_v58 = vpack.c.bf16 %v13811_v37, %v13794_v16  ;;  %v7307_v48 = vadd.f32 %v7306_v55, %v13432_v35  ;;  %v7308_v12 = vpop.f32.mrb[77].mxu1  ;;  %v7628_v16 = vpop.permute.xlu0 %7627 }
 0x5db   : > { %v7211_v14 = vpop.f32.mrb[74].mxu0  ;;  %v7560_v5 = vsel %vm7368_vm10, %v7202_v45, %v7464_v52  ;;  %v13830_v1 = vsel %vm7369_vm9, %v7301_v29, %v7465_v50  ;;  %v9526_v21 = vpack.c.bf16 %v13818_v40, %v13814_v23  ;;  %vm7370_vm12 = vcmp.gt.f32.partialorder %v13808_v33, 0.0  ;;  %v7633_v37 = vpop.permute.xlu1 %7632 }
 0x5dc   : > { %v13835_v44 = vsel %vm7383_vm11, %v7206_v42, %v7479_v7  ;;  %vm7384_vm13 = vcmp.gt.f32.partialorder %v7208_v59, 0.0  ;;  %v7480_v62 = vmul.f32 0.33, %v7208_v59  ;;  %v7309_v8 = vadd.f32 %v7308_v12, %v13432_v35  ;;  %v7213_v43 = vpop.f32.mrb[75].mxu0 }
 0x5dd   : > { %v9528_v30 = vpack.c.bf16 %v13835_v44, %v13820_v22  ;;  %vm7385_vm14 = vcmp.gt.f32.partialorder %v7307_v48, 0.0  ;;  %v7481_v18 = vmul.f32 0.33, %v7307_v48  ;;  %v7212_v26 = vadd.f32 %v7211_v14, %v13365_v51  ;;  %v7312_v19 = vpop.f32.mrb[78].mxu1 }
 0x5de   : > { %vm7386_vm15 = vcmp.gt.f32.partialorder %v7309_v8, 0.0  ;;  %v7482_v32 = vmul.f32 0.33, %v7309_v8  ;;  %v7313_v54 = vadd.f32 %v7312_v19, %v13365_v51  ;;  %v7214_v17 = vadd.f32 %v7213_v43, %v13365_v51  ;;  %v7314_v57 = vpop.f32.mrb[79].mxu1 }
 0x5df   : > { %vm7399_vm1 = vcmp.gt.f32.partialorder %v7212_v26, 0.0  ;;  %v7495_v38 = vmul.f32 0.33, %v7212_v26  ;;  %v7315_v35 = vadd.f32 %v7314_v57, %v13365_v51  ;;  %v7217_v25 = vpop.f32.mrb[76].mxu0  ;;  %v7576_v6 = vsel %vm7384_vm13, %v7208_v59, %v7480_v62 }
 0x5e0   : > { %vm7401_vm2 = vcmp.gt.f32.partialorder %v7313_v54, 0.0  ;;  %v7497_v2 = vmul.f32 0.33, %v7313_v54  ;;  %vm7400_vm3 = vcmp.gt.f32.partialorder %v7214_v17, 0.0  ;;  %v7496_v13 = vmul.f32 0.33, %v7214_v17 }
 0x5e1   : > { %v7591_v29 = vsel %vm7399_vm1, %v7212_v26, %v7495_v38  ;;  %vm7402_vm4 = vcmp.gt.f32.partialorder %v7315_v35, 0.0  ;;  %v7498_v24 = vmul.f32 0.33, %v7315_v35  ;;  %v7218_v45 = vadd.f32 %v7217_v25, %v13373_v36  ;;  %v7318_v0 = vpop.f32.mrb[80].mxu1  ;;  %v7219_v50 = vpop.f32.mrb[77].mxu0 }
 0x5e2   : > { %v7319_v42 = vadd.f32 %v7318_v0, %v13373_v36  ;;  %v7220_v20 = vadd.f32 %v7219_v50, %v13373_v36  ;;  %v7320_v52 = vpop.f32.mrb[81].mxu1  ;;  %v9506_v51 = vpack.c.bf16 %v7576_v6, %v7560_v5  ;;  %v7592_v7 = vsel %vm7400_vm3, %v7214_v17, %v7496_v13  ;;  %v7879_v0 = vld [vmem:[%s14023_s6 + $0x10] sm:$0xff]  ;;  %v7880_v50 = vld [vmem:[%s14023_s6 + $0x18] sm:$0xff] }
 0x5e3   : > { %vm7415_vm5 = vcmp.gt.f32.partialorder %v7218_v45, 0.0  ;;  %v7511_v55 = vmul.f32 0.33, %v7218_v45  ;;  %v7321_v59 = vadd.f32 %v7320_v52, %v13373_v36  ;;  %v7577_v12 = vsel %vm7385_vm14, %v7307_v48, %v7481_v18  ;;  %v7883_v52 = vld [vmem:[%s14023_s6 + $0x30] sm:$0xff] }
 0x5e4   : > { %vm7417_vm6 = vcmp.gt.f32.partialorder %v7319_v42, 0.0  ;;  %v7513_v14 = vmul.f32 0.33, %v7319_v42  ;;  %vm7416_vm7 = vcmp.gt.f32.partialorder %v7220_v20, 0.0  ;;  %v7512_v62 = vmul.f32 0.33, %v7220_v20  ;;  %9507 = vmatprep.subr.bf16.mxu0 %v9506_v51 }
 0x5e5   : > { %v7607_v43 = vsel %vm7415_vm5, %v7218_v45, %v7511_v55  ;;  %vm7418_vm8 = vcmp.gt.f32.partialorder %v7321_v59, 0.0  ;;  %v7514_v26 = vmul.f32 0.33, %v7321_v59  ;;  %9509 = vmatpush3.bf16.msra.mxu0 %v9508_v39  ;;  %v9518_v5 = vpack.c.bf16 %v7577_v12, %v13830_v1  ;;  %v7878_v45 = vld [vmem:[%s14023_s6 + $0x8] sm:$0xff]  ;;  %v7884_v51 = vld [vmem:[%s14023_s6 + $0x38] sm:$0xff]  ;;  %v7893_v55 = vpop.permute.xlu1 %7892 }
 0x5e6   : > { %v9532_v19 = vpack.c.bf16 %v7607_v43, %v7591_v29  ;;  %v7608_v17 = vsel %vm7416_vm7, %v7220_v20, %v7512_v62  ;;  %v7593_v36 = vsel %vm7401_vm2, %v7313_v54, %v7497_v2  ;;  %v7609_v57 = vsel %vm7417_vm6, %v7319_v42, %v7513_v14  ;;  %v7881_v42 = vld [vmem:[%s14023_s6 + $0x20] sm:$0xff]  ;;  %v7882_v20 = vld [vmem:[%s14023_s6 + $0x28] sm:$0xff] }
 0x5e7   : > { %v9510_v48 = vpack.c.bf16 %v7608_v17, %v7592_v7  ;;  %v9522_v18 = vpack.c.bf16 %v7609_v57, %v7593_v36  ;;  %v7562_v38 = vsel %vm7370_vm12, %v13808_v33, %v13823_v46  ;;  %v7578_v25 = vsel %vm7386_vm15, %v7309_v8, %v7482_v32  ;;  %v8078_v7 = vld [vmem:[%s14024_s7] sm:$0xff] }
 0x5e8   : > { %v9530_v6 = vpack.c.bf16 %v7578_v25, %v7562_v38  ;;  %v7594_v9 = vsel %vm7402_vm4, %v7315_v35, %v7498_v24  ;;  %v7610_v34 = vsel %vm7418_vm8, %v7321_v59, %v7514_v26  ;;  %vm8090_vm11 = vcmask 523264   ;;  %v7888_v59 = vpop.permute.xlu0 %7887 }
 0x5e9   : > { %9511 = vmatprep.subr.bf16.mxu0 %v9510_v48  ;;  %v9534_v39 = vpack.c.bf16 %v7610_v34, %v7594_v9  ;;  %v7903_v12 = vpop.permute.xlu1 %7902  ;;  %vm9721_vm4 = vmmov 0   ;;  %vm8188_vm6 = vcmask 1041408   ;;  %vm9722_vm8 = vmmov 1  }
 0x5ea   : > { %9513 = vmatpush3.bf16.msra.mxu0 %v9512_v63  ;;  %v7623_v63 = vld [vmem:[%s14022_s5 + $0x50] sm:$0xff] }
 0x5eb   : > { %9515 = vmatprep.subr.bf16.mxu0 %v9514_v58 }
 0x5ec   : > { %v7898_v62 = vpop.permute.xlu0 %7897 }
 0x5ed   : > { %v7913_v38 = vpop.permute.xlu1 %7912 }
 0x5ee   : > { %9517 = vmatpush3.bf16.msra.mxu0 %v9516_v53 }
 0x5ef   : > { %9519 = vmatprep.subr.bf16.mxu0 %v9518_v5 }
 0x5f0   : > { %v7908_v9 = vpop.permute.xlu0 %7907 }
 0x5f1   : > { %v7923_v61 = vpop.permute.xlu1 %7922 }
 0x5f2   : > { %9521 = vmatpush3.bf16.msra.mxu0 %v9520_v10 }
 0x5f3   : > { %9523 = vmatprep.subr.bf16.mxu0 %v9522_v18 }
 0x5f6   : > { %9525 = vmatpush3.bf16.msra.mxu0 %v9524_v49 }
 0x5f7   : > { %9527 = vmatprep.subr.bf16.mxu0 %v9526_v21 }
 0x5fa   : > { %9529 = vmatpush3.bf16.msra.mxu0 %v9528_v30 }
 0x5fb   : > { %9531 = vmatprep.subr.bf16.mxu0 %v9530_v6 }
 0x5fe   : > { %9533 = vmatpush3.bf16.msra.mxu0 %v9532_v19 }
 0x5ff   : > { %9535 = vmatprep.subr.bf16.mxu0 %v9534_v39 }
 0x602   : > { %9537 = vmatpush3.bf16.msra.mxu0 %v9536_v4 }
 0x605   : > { %7850 = vmatmul.mubr.f32.vlgmr.msra.gmra.mrb[82].mxu0 %v7617_v56 }
 0x606   : > { %7854 = vmatprep.mubr.f32.mxu0 %v7624_v15 }
 0x609   : > { %7855 = vmatmul.mubr.f32.gmra.mrb[84].mxu0 %v7623_v63 }
 0x619   : > { %v8463_v47 = vpop.f32.mrb[78].mxu0 }
 0x61a   : > { %v8464_v11 = vpop.f32.mrb[79].mxu0 }
 0x61b   : > { %v8465_v53 = vadd.f32 %v8464_v11, %v8463_v47 }
 0x61d   : > { %v8466_v28 = vpop.f32.mrb[80].mxu0  ;;  %v7702_v49 = vadd.f32 %v8465_v53, %v7628_v16 }
 0x61e   : > { %v8467_v41 = vpop.f32.mrb[81].mxu0 }
 0x61f   : > { %v8468_v10 = vadd.f32 %v8467_v41, %v8466_v28 }
 0x621   : > { %v7707_v40 = vadd.f32 %v8468_v10, %v7633_v37 }
 0x67e   : > { %v8501_v27 = vpop.f32.mrb[82].mxu1 }
 0x67f   : > { %v8502_v60 = vpop.f32.mrb[83].mxu1 }
 0x680   : > { %v8503_v3 = vadd.f32 %v8502_v60, %v8501_v27  ;;  %v7918_v60 = vpop.permute.xlu0 %7917 }
 0x682   : > { %v7777_v4 = vadd.f32 %v8503_v3, %v7702_v49  ;;  %v8504_v33 = vpop.f32.mrb[84].mxu1 }
 0x683   : > { %v8505_v23 = vpop.f32.mrb[85].mxu1 }
 0x684   : > { %v8506_v22 = vadd.f32 %v8505_v23, %v8504_v33 }
 0x686   : > { %v7782_v46 = vadd.f32 %v8506_v22, %v7707_v40 }
 0x6d8   : > { %v8539_v58 = vpop.f32.mrb[82].mxu0 }
 0x6d9   : > { %v8540_v1 = vpop.f32.mrb[83].mxu0 }
 0x6da   : > { %v8541_v21 = vadd.f32 %v8540_v1, %v8539_v58 }
 0x6dc   : > { %v7852_v44 = vadd.f32 %v8541_v21, %v7777_v4  ;;  %v8542_v8 = vpop.f32.mrb[84].mxu0  ;;  %v8079_v21 = vld [vmem:[%s14024_s7 + $0x8] sm:$0x3] }
 0x6dd   : > { %v8543_v30 = vpop.f32.mrb[85].mxu0 }
 0x6de   : > { %v8544_v32 = vadd.f32 %v8543_v30, %v8542_v8  ;;  %v7862_v54 = vmul.f32 0.33, %v7852_v44  ;;  %vm7860_vm9 = vcmp.gt.f32.partialorder %v7852_v44, 0.0  ;;  %v8088_v8 = vpop.permute.xlu1 %8087 }
 0x6e0   : > { %v7857_v35 = vadd.f32 %v8544_v32, %v7782_v46  ;;  %v7864_v13 = vsel %vm7860_vm9, %v7852_v44, %v7862_v54  ;;  %v9720_v44 = vmov 0.0|0.0   ;;  %v8083_v32 = vpop.permute.xlu0 %8082  ;;  %vm9560_vm9 = vmpackc.low %vm8188_vm6, %vm9722_vm8 }
 0x6e2   : > { %vm7861_vm10 = vcmp.gt.f32.partialorder %v7857_v35, 0.0  ;;  %v7863_v2 = vmul.f32 0.33, %v7857_v35 }
 0x6e4   : > { %v7865_v29 = vsel %vm7861_vm10, %v7857_v35, %v7863_v2  ;;  %vm8184_vm10 = vcmask 80896  }
 0x6e5   : > { %v9538_v24 = vpack.c.bf16 %v7865_v29, %v7864_v13 }
 0x6e7   : > { %9539 = vmatprep.subr.bf16.mxu1 %v9538_v24 }
 0x6e8   : > { %9541 = vmatpush3.bf16.msra.mxu1 %v9538_v24 }
 0x6eb   : > { %8573 = vmatmul.mubr.msk.f32.vlgmr.msra.gmra.mrb[86].mxu1 %vm479_vm0, %v7878_v45 }
 0x6ec   : > { %8575 = vmatprep.mubr.msk.f32.mxu1 %vm479_vm0, %v7879_v0 }
 0x6ef   : > { %8576 = vmatmul.mubr.msk.f32.gmra.mrb[88].mxu1 %vm479_vm0, %v7880_v50  ;;  %v9723_v50 = vmov 1.0  }
 0x6f0   : > { %8578 = vmatprep.mubr.msk.f32.mxu1 %vm479_vm0, %v7881_v42  ;;  %8263 = vst [vmem:[%s397_s29] sm:$0x1] %v9723_v50 }
 0x6f3   : > { %8579 = vmatmul.mubr.msk.f32.gmra.mrb[90].mxu1 %vm479_vm0, %v7882_v20 }
 0x6f4   : > { %8581 = vmatprep.mubr.msk.f32.mxu1 %vm479_vm0, %v7883_v52 }
 0x6f7   : > { %8582 = vmatmul.mubr.msk.f32.gmra.mrb[92].mxu1 %vm479_vm0, %v7884_v51 }
 0x6f8   : > { %8600 = vmatprep.mubr.msk.f32.mxu1 %vm8090_vm11, %v8078_v7 }
 0x7be   : > { %v8574_v14 = vpop.f32.mrb[86].mxu1 }
 0x7bf   : > { %v8021_v43 = vadd.f32 %v8574_v14, %v7893_v55  ;;  %v8015_v26 = vpop.f32.mrb[87].mxu1 }
 0x7c0   : > { %v8016_v5 = vadd.f32 %v8015_v26, %v7888_v59 }
 0x7c1   : > { %vm8055_vm12 = vcmp.gt.f32.partialorder %v8021_v43, 0.0  ;;  %v8063_v19 = vmul.f32 0.33, %v8021_v43 }
 0x7c2   : > { %vm8054_vm13 = vcmp.gt.f32.partialorder %v8016_v5, 0.0  ;;  %v8062_v17 = vmul.f32 0.33, %v8016_v5  ;;  %v8577_v36 = vpop.f32.mrb[88].mxu1 }
 0x7c3   : > { %v8031_v57 = vadd.f32 %v8577_v36, %v7903_v12  ;;  %v8025_v48 = vpop.f32.mrb[89].mxu1  ;;  %v8071_v18 = vsel %vm8055_vm12, %v8021_v43, %v8063_v19 }
 0x7c4   : > { %v8026_v25 = vadd.f32 %v8025_v48, %v7898_v62  ;;  %v8070_v6 = vsel %vm8054_vm13, %v8016_v5, %v8062_v17 }
 0x7c5   : > { %vm8057_vm0 = vcmp.gt.f32.partialorder %v8031_v57, 0.0  ;;  %v8065_v34 = vmul.f32 0.33, %v8031_v57  ;;  %v9542_v39 = vpack.c.bf16 %v8071_v18, %v8070_v6 }
 0x7c6   : > { %vm8056_vm14 = vcmp.gt.f32.partialorder %v8026_v25, 0.0  ;;  %v8064_v56 = vmul.f32 0.33, %v8026_v25  ;;  %v8580_v15 = vpop.f32.mrb[90].mxu1 }
 0x7c7   : > { %v8041_v63 = vadd.f32 %v8580_v15, %v7913_v38  ;;  %v8035_v47 = vpop.f32.mrb[91].mxu1  ;;  %9543 = vmatprep.subr.bf16.mxu1 %v9542_v39  ;;  %v8073_v11 = vsel %vm8057_vm0, %v8031_v57, %v8065_v34 }
 0x7c8   : > { %v8036_v53 = vadd.f32 %v8035_v47, %v7908_v9  ;;  %9545 = vmatpush3.bf16.msra.mxu1 %v9542_v39  ;;  %v8072_v28 = vsel %vm8056_vm14, %v8026_v25, %v8064_v56 }
 0x7c9   : > { %vm8059_vm15 = vcmp.gt.f32.partialorder %v8041_v63, 0.0  ;;  %v8067_v41 = vmul.f32 0.33, %v8041_v63  ;;  %v9546_v10 = vpack.c.bf16 %v8073_v11, %v8072_v28 }
 0x7ca   : > { %vm8058_vm1 = vcmp.gt.f32.partialorder %v8036_v53, 0.0  ;;  %v8066_v27 = vmul.f32 0.33, %v8036_v53  ;;  %v8583_v16 = vpop.f32.mrb[92].mxu1 }
 0x7cb   : > { %v8051_v49 = vadd.f32 %v8583_v16, %v7923_v61  ;;  %v8045_v3 = vpop.f32.mrb[93].mxu1  ;;  %9547 = vmatprep.subr.bf16.mxu1 %v9546_v10  ;;  %v8075_v4 = vsel %vm8059_vm15, %v8041_v63, %v8067_v41 }
 0x7cc   : > { %v8046_v33 = vadd.f32 %v8045_v3, %v7918_v60  ;;  %9549 = vmatpush3.bf16.msra.mxu1 %v9546_v10  ;;  %v8074_v37 = vsel %vm8058_vm1, %v8036_v53, %v8066_v27 }
 0x7cd   : > { %vm8061_vm2 = vcmp.gt.f32.partialorder %v8051_v49, 0.0  ;;  %v8069_v23 = vmul.f32 0.33, %v8051_v49  ;;  %v9550_v40 = vpack.c.bf16 %v8075_v4, %v8074_v37 }
 0x7ce   : > { %vm8060_vm3 = vcmp.gt.f32.partialorder %v8046_v33, 0.0  ;;  %v8068_v22 = vmul.f32 0.33, %v8046_v33 }
 0x7cf   : > { %9551 = vmatprep.subr.bf16.mxu1 %v9550_v40  ;;  %v8077_v46 = vsel %vm8061_vm2, %v8051_v49, %v8069_v23 }
 0x7d0   : > { %9553 = vmatpush3.bf16.msra.mxu1 %v9550_v40  ;;  %v8076_v58 = vsel %vm8060_vm3, %v8046_v33, %v8068_v22 }
 0x7d1   : > { %v9554_v1 = vpack.c.bf16 %v8077_v46, %v8076_v58 }
 0x7d3   : > { %9555 = vmatprep.subr.bf16.mxu1 %v9554_v1 }
 0x7d4   : > { %9557 = vmatpush3.bf16.msra.mxu1 %v9554_v1 }
 0x7d5   : > { %9558 = vmatprep.subr.bf16.mxu1 %v9720_v44 }
 0x7d7   : > { %8601 = vmatmul.mubr.msk.f32.vlgmr.msra.gmra.mrb[94].mxu1 %vm8090_vm11, %v8079_v21 }
 0x7d8   : > { %8607 = vmatprep.mubr.msk.f32.mxu1 %vm9721_vm4, %v14363_v31  ;;  %v8178_v31 = vld [vmem:[%s14025_s8] sm:$0x1] }
 0x8aa   : > { %v8602_v30 = vpop.f32.mrb[94].mxu1 }
 0x8ab   : > { %v8169_v54 = vadd.f32 %v8602_v30, %v8088_v8  ;;  %v8163_v35 = vpop.f32.mrb[95].mxu1 }
 0x8ac   : > { %v8164_v2 = vadd.f32 %v8163_v35, %v8083_v32 }
 0x8ad   : > { %vm8173_vm5 = vcmp.gt.f32.partialorder %v8169_v54, 0.0  ;;  %v8175_v13 = vmul.f32 0.33, %v8169_v54 }
 0x8ae   : > { %vm8172_vm7 = vcmp.gt.f32.partialorder %v8164_v2, 0.0  ;;  %v8174_v29 = vmul.f32 0.33, %v8164_v2 }
 0x8af   : > { %v8177_v24 = vsel %vm8173_vm5, %v8169_v54, %v8175_v13 }
 0x8b0   : > { %v8176_v45 = vsel %vm8172_vm7, %v8164_v2, %v8174_v29 }
 0x8b1   : > { %v9559_v0 = vpack.c.bf16 %v8177_v24, %v8176_v45 }
 0x8b3   : > { %9561 = vmatpush3.bf16.msk.msra.mxu1 %vm9560_vm9, %v9559_v0 }
 0x8b6   : > { %8608 = vmatmul.mubr.msk.f32.vlgmr.msra.gmra.mrb[96].mxu1 %vm8184_vm10, %v8178_v31 }
 0x8b7   : > { %9635 = shalt.err (!%p9632_p3)
}
 0x8b8   : > { %s9636_s29 = scalar_lea.hbm %s13948_s12, 16  ;;  %s9640_s14 = scalar_lea.hbm %s14027_s10, 32 }
 0x8b9   : > { %p9637_p4 = scmp.ne.s32.totalorder %s13948_s12, %s9636_s29  ;;  %p9641_p9 = scmp.lt.u32.totalorder %s13948_s12, %s14027_s10 }
 0x8ba   : > { %p9642_p10 = scmp.lt.u32.totalorder %s9640_s14, %s9636_s29  ;;  %p9644_p12 = scmp.lt.u32.totalorder %s9636_s29, %s13948_s12 }
 0x8bb   : > { %p9638_p7 = pnand %p9637_p4, %p9824_p5 }
 0x8bc   : > { %p9643_p11 = por %p9642_p10, %p9641_p9 }
 0x8bd   : > { %p9639_p8 = pneg %p9638_p7 }
 0x8be   : > { %p9645_p13 = por %p9644_p12, %p9643_p11 }
 0x8c0   : > { %p9646_p0 = pnand %p9645_p13, %p9639_p8 }
 0x8c2   : > { %9649 = shalt.err (!%p9646_p0)
}
 0x8c3   : > { %9562 = dma.vmem_to_hbm [thread:$0]  (%p9824_p5), %s8282_s24, 16, %s13948_s12, %s8265_s13   ;;  %v8182_v42 = vpop.permute.xlu0 %8181 }
 0x8c4   : > { %s403_s1 = scalar_lea.vmem [#allocation4], %s13939_s22  ;;  %s14774_s16 = sshll.u32 %s9807_s21, 4 }
 0x8c5   : > { %s8294_s15 = sshll.u32 %s403_s1, 4  ;;  %s13974_s30 = scalar_lea.hbm %s14028_s11, %s14774_s16  ;;  %s13976_s15 = int_to_ptr.vmem [resolvable:$true] %s8294_s15 }
 0x8c6   : > { %s8269_s14 = scalar_lea.sflag [#allocation5], %s13939_s22  ;;  %s9650_s24 = scalar_lea.vmem %s13976_s15, 16 }
 0x8c7   : > { %p9651_p1 = scmp.ne.s32.totalorder %s13976_s15, %s9650_s24  ;;  %s9725_s12 = smov [#allocation4]  }
 0x8c8   : > { %s9654_s13 = sshll.u32 %s9725_s12, 4  ;;  %s9655_s13 = int_to_ptr.vmem [resolvable:$false] %s9654_s13 }
 0x8c9   : > { %p9652_p2 = pnand %p9651_p1, %p9824_p5  ;;  %s9656_s21 = scalar_lea.vmem %s9655_s13, 32 }
 0x8ca   : > { %p9657_p4 = scmp.lt.s32.totalorder %s13976_s15, %s9655_s13  ;;  %p9658_p7 = scmp.lt.s32.totalorder %s9656_s21, %s9650_s24 }
 0x8cb   : > { %p9653_p3 = pneg %p9652_p2 }
 0x8cc   : > { %p9659_p8 = por %p9658_p7, %p9657_p4 }
 0x8ce   : > { %p9660_p9 = pnand %p9659_p8, %p9653_p3 }
 0x989   : > { %v8258_v20 = vpop.f32.mrb[96].mxu1 }
 0x98a   : > { %v8259_v52 = vadd.f32 %v8258_v20, %v8182_v42  ;;  %v8609_v51 = vpop.f32.mrb[97].mxu1 }
 0x98c   : > { %8262 = vst [vmem:[%s403_s1] sm:$0x1] %v8259_v52 }
 0x98d   : > { %9663 = shalt.err (!%p9660_p9)
}
 0x98e   : > { %s9664_s22 = scalar_lea.hbm %s13974_s30, 16  ;;  %s9668_s16 = scalar_lea.hbm %s14028_s11, 32 }
 0x98f   : > { %p9665_p10 = scmp.ne.s32.totalorder %s13974_s30, %s9664_s22  ;;  %p9669_p13 = scmp.lt.u32.totalorder %s13974_s30, %s14028_s11 }
 0x990   : > { %p9670_p0 = scmp.lt.u32.totalorder %s9668_s16, %s9664_s22  ;;  %p9672_p2 = scmp.lt.u32.totalorder %s9664_s22, %s13974_s30 }
 0x991   : > { %p9666_p11 = pnand %p9665_p10, %p9824_p5 }
 0x992   : > { %p9671_p1 = por %p9670_p0, %p9669_p13 }
 0x993   : > { %p9667_p12 = pneg %p9666_p11 }
 0x994   : > { %p9673_p3 = por %p9672_p2, %p9671_p1 }
 0x996   : > { %p9674_p4 = pnand %p9673_p3, %p9667_p12 }
 0x998   : > { %9677 = shalt.err (!%p9674_p4)
}
 0x999   : > { %9563 = dma.vmem_to_hbm [thread:$0]  (%p9824_p5), %s13976_s15, 16, %s13974_s30, %s8269_s14  }
 0x99a PF: > { %p9573_p7 = scmp.ge.s32.totalorder %s9716_s20, 2  ;;  %s8306_s24 = sand.u32 1, %s9704_s17  }
 0x99b   : > { %s8307_s12 = scalar_lea.sflag [#allocation3], %s8306_s24 }
 0x99c   : > { %p9567_p8 = pnand %p9573_p7, %p9828_p6 }
 0x99e   : > { %9695 = dma.done.wait (!%p9567_p8), %s8307_s12, 16  }
 0x99f   : > { %9697 = vsyncadd (!%p9567_p8), %s8307_s12, 4294967280  ;;  %s8315_s13 = scalar_lea.sflag [#allocation5], %s8306_s24 }
 0x9a0   : > { %9699 = dma.done.wait (!%p9567_p8), %s8315_s13, 16  }
 0x9a1   : > { %9701 = vsyncadd (!%p9567_p8), %s8315_s13, 4294967280  ;;  %p25_p5 = scmp.ge.s32.totalorder %s9811_s23, 4   ;;  %s14775_s17 = smov %s9708_s18 }
 0x9a2   : > { %s14776_s18 = smov %s9712_s19  ;;  %s14777_s19 = smov %s9822_s26 }
 0x9a3   : > { %s14778_s20 = smov %s9811_s23  ;;  %27 = sbr.rel (!%p25_p5) target bundleno = 8 (0x8), region = 115 }
 0x9aa   :  { %8319 = vsyncpa [#allocation3], 1 }
 0x9ab   :  { %8321 = vsyncpa [#allocation3 + $0x1], 1 }
 0x9ac   :  { %8322 = vsyncpa [#allocation5], 1 }
 0x9ad   :  { %8324 = vsyncpa [#allocation5 + $0x1], 1 }

</bundles_post_ra>
